<compile_context>
chip_gen: v5e
topology: v5e:2x2
jax: 0.10.0
libtpu: 0.0.40
codegen_flags: <defaults>
</compile_context>

<pallas_src>
import jax
import jax.numpy as jnp
from jax.experimental import pallas as pl
from jax.experimental.pallas import tpu as pltpu

LEAKY_SLOPE = 0.1
TM_MAX = 512          # row tile (M)
TN_MAX = 512          # col tile (Cout); keeps j-extent >= 2 when Cout = 1024 (v7x 2 TCs)
FULL_K_MAX = 2304     # single full-K reduction step whenever K <= this (fits VMEM easily)
VMEM_LIMIT_BYTES = 48 * 1024 * 1024


# ----------------------------------------------------------------------------
# Pallas kernels: tiled (patches @ W) with f32 accumulator, fused bias + LeakyReLU [+ residual]
# ----------------------------------------------------------------------------
def _fused_kernel(p_ref, w_ref, b_ref, o_ref, acc_ref):
    @pl.when(pl.program_id(2) == 0)
    def _():
        acc_ref[...] = jnp.zeros_like(acc_ref)

    acc_ref[...] += jnp.dot(p_ref[...], w_ref[...], preferred_element_type=jnp.float32)

    @pl.when(pl.program_id(2) == pl.num_programs(2) - 1)
    def _():
        y = acc_ref[...] + b_ref[...]
        y = jnp.where(y > 0, y, LEAKY_SLOPE * y)
        o_ref[...] = y.astype(o_ref.dtype)


def _fused_res_kernel(p_ref, w_ref, b_ref, r_ref, o_ref, acc_ref):
    @pl.when(pl.program_id(2) == 0)
    def _():
        acc_ref[...] = jnp.zeros_like(acc_ref)

    acc_ref[...] += jnp.dot(p_ref[...], w_ref[...], preferred_element_type=jnp.float32)

    @pl.when(pl.program_id(2) == pl.num_programs(2) - 1)
    def _():
        y = acc_ref[...] + b_ref[...]
        y = jnp.where(y > 0, y, LEAKY_SLOPE * y) + r_ref[...].astype(jnp.float32)
        o_ref[...] = y.astype(o_ref.dtype)


def _round_up(x, m):
    return ((x + m - 1) // m) * m


def _pick_tm(M):
    """Row tile: avoid padding the (already large) patch tensor whenever possible."""
    if M <= TM_MAX:
        return _round_up(M, 8)                  # single tile, at most 7 padded rows
    for d in range(TM_MAX, 127, -8):            # largest multiple-of-8 divisor of M
        if M % d == 0:
            return d
    return TM_MAX                               # rare fallback: pad M up to TM_MAX multiple


def _pick_tk(K):
    """Reduction tile tk and padded K. Full-K single step whenever it fits comfortably."""
    if K <= FULL_K_MAX:
        return K, K
    for t in (2304, 1536, 1152, 768, 512):      # exact divisors for real darknet K values
        if K % t == 0:
            return t, K
    return 512, _round_up(K, 512)


def _pad2d(a, rows, cols):
    r, c = rows - a.shape[0], cols - a.shape[1]
    if r or c:
        a = jnp.pad(a, ((0, r), (0, c)))
    return a


def fused_conv_matmul(patches, W, bias, residual=None):
    """patches: (M, K) bf16, W: (K, Cout) bf16, bias: (Cout,) f32, residual: (M, Cout) bf16|None.
    Returns (M, Cout) bf16."""
    M, K = patches.shape
    _, Cout = W.shape

    tm = _pick_tm(M)
    Mp = _round_up(M, tm)
    Np = _round_up(Cout, 128)                   # lane-dense output stores
    if Np <= TN_MAX:
        tn = Np
    else:
        tn = TN_MAX
        Np = _round_up(Np, tn)
    tk, Kp = _pick_tk(K)

    patches = _pad2d(patches, Mp, Kp)
    W = _pad2d(W, Kp, Np)
    bias2 = _pad2d(bias.astype(jnp.float32).reshape(1, Cout), 1, Np)

    in_specs = [
        pl.BlockSpec((tm, tk), lambda i, j, kk: (i, kk)),
        pl.BlockSpec((tk, tn), lambda i, j, kk: (kk, j)),
        pl.BlockSpec((1, tn), lambda i, j, kk: (0, j)),
    ]
    args = [patches, W, bias2]
    if residual is not None:
        args.append(_pad2d(residual.astype(jnp.bfloat16), Mp, Np))
        in_specs.append(pl.BlockSpec((tm, tn), lambda i, j, kk: (i, j)))
        kernel = _fused_res_kernel
    else:
        kernel = _fused_kernel

    grid = (Mp // tm, Np // tn, Kp // tk)
    flops = 2 * Mp * Kp * Np
    bytes_accessed = (patches.size + W.size) * 2 + bias2.size * 4 + Mp * Np * 2
    if residual is not None:
        bytes_accessed += Mp * Np * 2

    out = pl.pallas_call(
        kernel,
        out_shape=jax.ShapeDtypeStruct((Mp, Np), jnp.bfloat16),
        grid_spec=pltpu.PrefetchScalarGridSpec(
            num_scalar_prefetch=0,
            grid=grid,
            in_specs=in_specs,
            out_specs=pl.BlockSpec((tm, tn), lambda i, j, kk: (i, j)),
            scratch_shapes=[pltpu.VMEM((tm, tn), jnp.float32)],
        ),
        compiler_params=pltpu.CompilerParams(
            dimension_semantics=("parallel", "parallel", "arbitrary"),
            vmem_limit_bytes=VMEM_LIMIT_BYTES),
        cost_estimate=pl.CostEstimate(
            flops=int(flops), transcendentals=0, bytes_accessed=int(bytes_accessed)),
    )(*args)

    if Mp != M or Np != Cout:
        out = out[:M, :Cout]
    return out


# ----------------------------------------------------------------------------
# im2col glue (NHWC) -- k and stride are Python ints (static)
# ----------------------------------------------------------------------------
def im2col(x_nhwc, k, stride):
    N, H, W, C = x_nhwc.shape
    pad = k // 2
    xp = jnp.pad(x_nhwc, ((0, 0), (pad, pad), (pad, pad), (0, 0)))
    Ho = (H + 2 * pad - k) // stride + 1
    Wo = (W + 2 * pad - k) // stride + 1
    cols = []
    for dy in range(k):
        for dx in range(k):
            cols.append(xp[:, dy:dy + stride * Ho:stride, dx:dx + stride * Wo:stride, :])
    patches = jnp.concatenate(cols, axis=-1)  # (N, Ho, Wo, k*k*C), tap-major / channel-minor
    return patches.reshape(N * Ho * Wo, k * k * C), (N, Ho, Wo)


# ----------------------------------------------------------------------------
# Conv2dBatchLeaky / Stage / backbone (structure mirrors vn_layer)
# ----------------------------------------------------------------------------
def apply_cbl(x, p, stride, residual=None):
    W4 = p["W"]                       # (k, k, Cin, Cout), BN scale already folded in
    k, _, cin, cout = W4.shape        # static shapes -> no tracer leaks into pad/slicing
    if x.dtype != jnp.bfloat16:
        x = x.astype(jnp.bfloat16)    # only the network input needs this cast
    patches, (N, Ho, Wo) = im2col(x, k, stride)
    W2 = W4.reshape(k * k * cin, cout).astype(jnp.bfloat16)
    res_flat = None if residual is None else residual.reshape(N * Ho * Wo, cout)
    out = fused_conv_matmul(patches, W2, p["bias"], res_flat)   # bf16
    return out.reshape(N, Ho, Wo, cout)


def apply_stage(x, sp):
    # Stage(nchannels, nblocks): downsample conv (3x3 stride 2, C->2C) then nblocks residual
    # blocks of [1x1 2C->C, 3x3 C->2C] with skip connection.
    x = apply_cbl(x, sp["down"], stride=2)
    for p1, p2 in sp["blocks"]:
        h = apply_cbl(x, p1, stride=1)
        x = apply_cbl(h, p2, stride=1, residual=x)
    return x


def yolov3_forward(x_nchw, params):
    x = jnp.transpose(x_nchw, (0, 2, 3, 1))  # NCHW -> NHWC
    x = apply_cbl(x, params["stage_1"], stride=1)
    x = apply_stage(x, params["stage_2"])
    x = apply_stage(x, params["stage_3"])
    stage_4 = apply_stage(x, params["stage_4"])
    stage_5 = apply_stage(stage_4, params["stage_5"])
    stage_6 = apply_stage(stage_5, params["stage_6"])
    to_nchw = lambda t: jnp.transpose(t, (0, 3, 1, 2)).astype(jnp.float32)
    return [to_nchw(stage_6), to_nchw(stage_5), to_nchw(stage_4)]


# ----------------------------------------------------------------------------
# Deterministic synthetic parameters (shapes follow the PyTorch module __init__)
# ----------------------------------------------------------------------------
def make_cbl_params(key, cin, cout, k):
    kw, ks, kb = jax.random.split(key, 3)
    fan_in = cin * k * k
    W = jax.random.normal(kw, (k, k, cin, cout), jnp.float32) / jnp.sqrt(float(fan_in))
    scale = 1.0 + 0.1 * jax.random.normal(ks, (cout,), jnp.float32)  # folded BN gamma/sqrt(var+eps)
    bias = 0.1 * jax.random.normal(kb, (cout,), jnp.float32)          # folded BN beta - mean*scale
    W = W * scale  # fold eval-mode BN scale into the conv weight (per-output-channel)
    return {"W": W, "bias": bias}


def build_params(key, input_channels):
    stage_cfg = {"stage_2": 2, "stage_3": 3, "stage_4": 9, "stage_5": 9, "stage_6": 5}
    n_convs = 1 + sum(1 + 2 * n for n in stage_cfg.values())
    keys = iter(jax.random.split(key, n_convs))

    def cbl(cin, cout, k):
        return make_cbl_params(next(keys), cin, cout, k)

    def stage_params(cin, nblocks):
        sp = {"down": cbl(cin, 2 * cin, 3), "blocks": []}
        for _ in range(nblocks):
            sp["blocks"].append((cbl(2 * cin, cin, 1), cbl(cin, 2 * cin, 3)))
        return sp

    c = input_channels
    return {
        "stage_1": cbl(3, c, 3),
        "stage_2": stage_params(c, stage_cfg["stage_2"]),
        "stage_3": stage_params(2 * c, stage_cfg["stage_3"]),
        "stage_4": stage_params(4 * c, stage_cfg["stage_4"]),
        "stage_5": stage_params(8 * c, stage_cfg["stage_5"]),
        "stage_6": stage_params(16 * c, stage_cfg["stage_6"]),
    }


# ----------------------------------------------------------------------------
# Pure-JAX reference (same bf16 operand/output rounding, XLA conv instead of Pallas)
# ----------------------------------------------------------------------------
def ref_cbl(x, p, stride, residual=None):
    W4 = p["W"]
    k = W4.shape[0]
    y = jax.lax.conv_general_dilated(
        x.astype(jnp.bfloat16), W4.astype(jnp.bfloat16), (stride, stride),
        padding=[(k // 2, k // 2)] * 2,
        dimension_numbers=("NHWC", "HWIO", "NHWC"),
        preferred_element_type=jnp.float32)
    y = y + p["bias"]
    y = jnp.where(y > 0, y, LEAKY_SLOPE * y)
    if residual is not None:
        y = y + residual.astype(jnp.float32)
    return y.astype(jnp.bfloat16)


def ref_stage(x, sp):
    x = ref_cbl(x, sp["down"], 2)
    for p1, p2 in sp["blocks"]:
        h = ref_cbl(x, p1, 1)
        x = ref_cbl(h, p2, 1, residual=x)
    return x


def ref_forward(x_nchw, params):
    x = jnp.transpose(x_nchw, (0, 2, 3, 1))
    x = ref_cbl(x, params["stage_1"], 1)
    x = ref_stage(x, params["stage_2"])
    x = ref_stage(x, params["stage_3"])
    s4 = ref_stage(x, params["stage_4"])
    s5 = ref_stage(s4, params["stage_5"])
    s6 = ref_stage(s5, params["stage_6"])
    to_nchw = lambda t: jnp.transpose(t, (0, 3, 1, 2)).astype(jnp.float32)
    return [to_nchw(s6), to_nchw(s5), to_nchw(s4)]


# ----------------------------------------------------------------------------
if __name__ == "__main__":
    key = jax.random.PRNGKey(0)
    kx, kp = jax.random.split(key)

    input_channels = 4            # small stand-in for the default 32
    x = jax.random.normal(kx, (2, 3, 32, 32), jnp.float32)  # NCHW, 3 input channels
    params = build_params(kp, input_channels)

    fwd = jax.jit(yolov3_forward)
    outs = fwd(x, params)
    outs = jax.block_until_ready(outs)

    # sanity-check against a pure-JAX reference (same bf16 rounding points)
    refs = jax.jit(ref_forward)(x, params)
    refs = jax.block_until_ready(refs)

    ok = True
    for o, r in zip(outs, refs):
        assert o.shape == r.shape, (o.shape, r.shape)
        if not jnp.allclose(o, r, rtol=5e-2, atol=5e-2):
            ok = False
            print("mismatch:", o.shape, float(jnp.max(jnp.abs(o - r))))

    # expected shapes: stage_6 (2,128,1,1), stage_5 (2,64,2,2), stage_4 (2,32,4,4)
    if ok:
        print("KERNEL_OK")
    else:
        raise SystemExit(1)
</pallas_src>

<mosaic_0001>
module attributes {stable_mosaic.version = 11 : i64} {
  func.func @_fused_kernel(%arg0: i32, %arg1: i32, %arg2: i32, %arg3: memref<512x27xbf16, #tpu.memory_space<vmem>>, %arg4: memref<27x128xbf16, #tpu.memory_space<vmem>>, %arg5: memref<1x128xf32, #tpu.memory_space<vmem>>, %arg6: memref<512x128xbf16, #tpu.memory_space<vmem>>, %arg7: memref<512x128xf32, #tpu.memory_space<vmem>>) attributes {dimension_semantics = [#tpu.dimension_semantics<parallel>, #tpu.dimension_semantics<parallel>, #tpu.dimension_semantics<arbitrary>], iteration_bounds = array<i64: 4, 1, 1>, scalar_prefetch = 0 : i64, scratch_operands = 1 : i64, tpu.core_type = #tpu.core_type<tc>, window_params = [{transform_indices = @transform_0, window_bounds = array<i64: 512, 27>}, {transform_indices = @transform_1, window_bounds = array<i64: 27, 128>}, {transform_indices = @transform_2, window_bounds = array<i64: 1, 128>}, {transform_indices = @transform_3, window_bounds = array<i64: 512, 128>}]} {
    %c0_i32 = arith.constant 0 : i32
    %0 = arith.cmpi eq, %arg2, %c0_i32 : i32
    %1 = arith.extui %0 : i1 to i32
    %c0_i32_0 = arith.constant 0 : i32
    %2 = arith.cmpi ne, %1, %c0_i32_0 : i32
    scf.if %2 {
      %cst_10 = arith.constant 0.000000e+00 : f32
      %12 = vector.broadcast %cst_10 : f32 to vector<512x128xf32>
      %c0_11 = arith.constant 0 : index
      %c0_12 = arith.constant 0 : index
      %13 = vector.load %arg7[%c0_11, %c0_12] : memref<512x128xf32, #tpu.memory_space<vmem>>, vector<512x128xf32>
      tpu.vector_store %arg7[%c0_11, %c0_12], %12 {strides = array<i32>} : memref<512x128xf32, #tpu.memory_space<vmem>>, vector<512x128xf32>,
    } else {
    }
    %c0 = arith.constant 0 : index
    %c0_1 = arith.constant 0 : index
    %3 = vector.load %arg7[%c0, %c0_1] : memref<512x128xf32, #tpu.memory_space<vmem>>, vector<512x128xf32>
    %c0_2 = arith.constant 0 : index
    %c0_3 = arith.constant 0 : index
    %4 = vector.load %arg3[%c0_2, %c0_3] : memref<512x27xbf16, #tpu.memory_space<vmem>>, vector<512x27xbf16>
    %c0_4 = arith.constant 0 : index
    %c0_5 = arith.constant 0 : index
    %5 = vector.load %arg4[%c0_4, %c0_5] : memref<27x128xbf16, #tpu.memory_space<vmem>>, vector<27x128xbf16>
    %cst = arith.constant dense<0.000000e+00> : vector<512x128xf32>
    %6 = tpu.matmul %4, %5, %cst {dimension_numbers = #tpu.dot_dimension_numbers<[1], [0], [0], [1], [0, 0, 1, 1], [], []>} : vector<512x27xbf16>, vector<27x128xbf16>, vector<512x128xf32> -> vector<512x128xf32>
    %7 = arith.addf %3, %6 : vector<512x128xf32>
    %c0_6 = arith.constant 0 : index
    %c0_7 = arith.constant 0 : index
    %8 = vector.load %arg7[%c0_6, %c0_7] : memref<512x128xf32, #tpu.memory_space<vmem>>, vector<512x128xf32>
    tpu.vector_store %arg7[%c0_6, %c0_7], %7 {strides = array<i32>} : memref<512x128xf32, #tpu.memory_space<vmem>>, vector<512x128xf32>,
    %c0_i32_8 = arith.constant 0 : i32
    %9 = arith.cmpi eq, %arg2, %c0_i32_8 : i32
    %10 = arith.extui %9 : i1 to i32
    %c0_i32_9 = arith.constant 0 : i32
    %11 = arith.cmpi ne, %10, %c0_i32_9 : i32
    scf.if %11 {
      %c0_10 = arith.constant 0 : index
      %c0_11 = arith.constant 0 : index
      %12 = vector.load %arg7[%c0_10, %c0_11] : memref<512x128xf32, #tpu.memory_space<vmem>>, vector<512x128xf32>
      %c0_12 = arith.constant 0 : index
      %c0_13 = arith.constant 0 : index
      %13 = vector.load %arg5[%c0_12, %c0_13] : memref<1x128xf32, #tpu.memory_space<vmem>>, vector<1x128xf32>
      %14 = vector.broadcast %13 : vector<1x128xf32> to vector<512x128xf32>
      %15 = arith.addf %12, %14 : vector<512x128xf32>
      %cst_14 = arith.constant 0.000000e+00 : f32
      %16 = vector.broadcast %cst_14 : f32 to vector<512x128xf32>
      %17 = arith.cmpf ogt, %15, %16 : vector<512x128xf32>
      %cst_15 = arith.constant 1.000000e-01 : f32
      %18 = vector.broadcast %cst_15 : f32 to vector<512x128xf32>
      %19 = arith.mulf %18, %15 : vector<512x128xf32>
      %20 = arith.select %17, %15, %19 : vector<512x128xi1>, vector<512x128xf32>
      %21 = arith.truncf %20 : vector<512x128xf32> to vector<512x128xbf16>
      %c0_16 = arith.constant 0 : index
      %c0_17 = arith.constant 0 : index
      %22 = vector.load %arg6[%c0_16, %c0_17] : memref<512x128xbf16, #tpu.memory_space<vmem>>, vector<512x128xbf16>
      tpu.vector_store %arg6[%c0_16, %c0_17], %21 {strides = array<i32>} : memref<512x128xbf16, #tpu.memory_space<vmem>>, vector<512x128xbf16>,
    } else {
    }
    return
  }
  func.func @transform_0(%arg0: i32, %arg1: i32, %arg2: i32) -> (i32, i32) {
    %c0_i32 = arith.constant 0 : i32
    return %arg0, %arg2 : i32, i32
  }
  func.func @transform_1(%arg0: i32, %arg1: i32, %arg2: i32) -> (i32, i32) {
    %c0_i32 = arith.constant 0 : i32
    return %arg2, %arg1 : i32, i32
  }
  func.func @transform_2(%arg0: i32, %arg1: i32, %arg2: i32) -> (i32, i32) {
    %c0_i32 = arith.constant 0 : i32
    %c0_i32_0 = arith.constant 0 : i32
    return %c0_i32, %arg1 : i32, i32
  }
  func.func @transform_3(%arg0: i32, %arg1: i32, %arg2: i32) -> (i32, i32) {
    %c0_i32 = arith.constant 0 : i32
    return %arg0, %arg1 : i32, i32
  }
}

module attributes {stable_mosaic.version = 11 : i64} {
  func.func @_fused_kernel(%arg0: i32, %arg1: i32, %arg2: i32, %arg3: memref<512x36xbf16, #tpu.memory_space<vmem>>, %arg4: memref<36x128xbf16, #tpu.memory_space<vmem>>, %arg5: memref<1x128xf32, #tpu.memory_space<vmem>>, %arg6: memref<512x128xbf16, #tpu.memory_space<vmem>>, %arg7: memref<512x128xf32, #tpu.memory_space<vmem>>) attributes {dimension_semantics = [#tpu.dimension_semantics<parallel>, #tpu.dimension_semantics<parallel>, #tpu.dimension_semantics<arbitrary>], iteration_bounds = array<i64: 1, 1, 1>, scalar_prefetch = 0 : i64, scratch_operands = 1 : i64, tpu.core_type = #tpu.core_type<tc>, window_params = [{transform_indices = @transform_0, window_bounds = array<i64: 512, 36>}, {transform_indices = @transform_1, window_bounds = array<i64: 36, 128>}, {transform_indices = @transform_2, window_bounds = array<i64: 1, 128>}, {transform_indices = @transform_3, window_bounds = array<i64: 512, 128>}]} {
    %c0_i32 = arith.constant 0 : i32
    %0 = arith.cmpi eq, %arg2, %c0_i32 : i32
    %1 = arith.extui %0 : i1 to i32
    %c0_i32_0 = arith.constant 0 : i32
    %2 = arith.cmpi ne, %1, %c0_i32_0 : i32
    scf.if %2 {
      %cst_10 = arith.constant 0.000000e+00 : f32
      %12 = vector.broadcast %cst_10 : f32 to vector<512x128xf32>
      %c0_11 = arith.constant 0 : index
      %c0_12 = arith.constant 0 : index
      %13 = vector.load %arg7[%c0_11, %c0_12] : memref<512x128xf32, #tpu.memory_space<vmem>>, vector<512x128xf32>
      tpu.vector_store %arg7[%c0_11, %c0_12], %12 {strides = array<i32>} : memref<512x128xf32, #tpu.memory_space<vmem>>, vector<512x128xf32>,
    } else {
    }
    %c0 = arith.constant 0 : index
    %c0_1 = arith.constant 0 : index
    %3 = vector.load %arg7[%c0, %c0_1] : memref<512x128xf32, #tpu.memory_space<vmem>>, vector<512x128xf32>
    %c0_2 = arith.constant 0 : index
    %c0_3 = arith.constant 0 : index
    %4 = vector.load %arg3[%c0_2, %c0_3] : memref<512x36xbf16, #tpu.memory_space<vmem>>, vector<512x36xbf16>
    %c0_4 = arith.constant 0 : index
    %c0_5 = arith.constant 0 : index
    %5 = vector.load %arg4[%c0_4, %c0_5] : memref<36x128xbf16, #tpu.memory_space<vmem>>, vector<36x128xbf16>
    %cst = arith.constant dense<0.000000e+00> : vector<512x128xf32>
    %6 = tpu.matmul %4, %5, %cst {dimension_numbers = #tpu.dot_dimension_numbers<[1], [0], [0], [1], [0, 0, 1, 1], [], []>} : vector<512x36xbf16>, vector<36x128xbf16>, vector<512x128xf32> -> vector<512x128xf32>
    %7 = arith.addf %3, %6 : vector<512x128xf32>
    %c0_6 = arith.constant 0 : index
    %c0_7 = arith.constant 0 : index
    %8 = vector.load %arg7[%c0_6, %c0_7] : memref<512x128xf32, #tpu.memory_space<vmem>>, vector<512x128xf32>
    tpu.vector_store %arg7[%c0_6, %c0_7], %7 {strides = array<i32>} : memref<512x128xf32, #tpu.memory_space<vmem>>, vector<512x128xf32>,
    %c0_i32_8 = arith.constant 0 : i32
    %9 = arith.cmpi eq, %arg2, %c0_i32_8 : i32
    %10 = arith.extui %9 : i1 to i32
    %c0_i32_9 = arith.constant 0 : i32
    %11 = arith.cmpi ne, %10, %c0_i32_9 : i32
    scf.if %11 {
      %c0_10 = arith.constant 0 : index
      %c0_11 = arith.constant 0 : index
      %12 = vector.load %arg7[%c0_10, %c0_11] : memref<512x128xf32, #tpu.memory_space<vmem>>, vector<512x128xf32>
      %c0_12 = arith.constant 0 : index
      %c0_13 = arith.constant 0 : index
      %13 = vector.load %arg5[%c0_12, %c0_13] : memref<1x128xf32, #tpu.memory_space<vmem>>, vector<1x128xf32>
      %14 = vector.broadcast %13 : vector<1x128xf32> to vector<512x128xf32>
      %15 = arith.addf %12, %14 : vector<512x128xf32>
      %cst_14 = arith.constant 0.000000e+00 : f32
      %16 = vector.broadcast %cst_14 : f32 to vector<512x128xf32>
      %17 = arith.cmpf ogt, %15, %16 : vector<512x128xf32>
      %cst_15 = arith.constant 1.000000e-01 : f32
      %18 = vector.broadcast %cst_15 : f32 to vector<512x128xf32>
      %19 = arith.mulf %18, %15 : vector<512x128xf32>
      %20 = arith.select %17, %15, %19 : vector<512x128xi1>, vector<512x128xf32>
      %21 = arith.truncf %20 : vector<512x128xf32> to vector<512x128xbf16>
      %c0_16 = arith.constant 0 : index
      %c0_17 = arith.constant 0 : index
      %22 = vector.load %arg6[%c0_16, %c0_17] : memref<512x128xbf16, #tpu.memory_space<vmem>>, vector<512x128xbf16>
      tpu.vector_store %arg6[%c0_16, %c0_17], %21 {strides = array<i32>} : memref<512x128xbf16, #tpu.memory_space<vmem>>, vector<512x128xbf16>,
    } else {
    }
    return
  }
  func.func @transform_0(%arg0: i32, %arg1: i32, %arg2: i32) -> (i32, i32) {
    %c0_i32 = arith.constant 0 : i32
    return %arg0, %arg2 : i32, i32
  }
  func.func @transform_1(%arg0: i32, %arg1: i32, %arg2: i32) -> (i32, i32) {
    %c0_i32 = arith.constant 0 : i32
    return %arg2, %arg1 : i32, i32
  }
  func.func @transform_2(%arg0: i32, %arg1: i32, %arg2: i32) -> (i32, i32) {
    %c0_i32 = arith.constant 0 : i32
    %c0_i32_0 = arith.constant 0 : i32
    return %c0_i32, %arg1 : i32, i32
  }
  func.func @transform_3(%arg0: i32, %arg1: i32, %arg2: i32) -> (i32, i32) {
    %c0_i32 = arith.constant 0 : i32
    return %arg0, %arg1 : i32, i32
  }
}

module attributes {stable_mosaic.version = 11 : i64} {
  func.func @_fused_kernel(%arg0: i32, %arg1: i32, %arg2: i32, %arg3: memref<512x8xbf16, #tpu.memory_space<vmem>>, %arg4: memref<8x128xbf16, #tpu.memory_space<vmem>>, %arg5: memref<1x128xf32, #tpu.memory_space<vmem>>, %arg6: memref<512x128xbf16, #tpu.memory_space<vmem>>, %arg7: memref<512x128xf32, #tpu.memory_space<vmem>>) attributes {dimension_semantics = [#tpu.dimension_semantics<parallel>, #tpu.dimension_semantics<parallel>, #tpu.dimension_semantics<arbitrary>], iteration_bounds = array<i64: 1, 1, 1>, scalar_prefetch = 0 : i64, scratch_operands = 1 : i64, tpu.core_type = #tpu.core_type<tc>, window_params = [{transform_indices = @transform_0, window_bounds = array<i64: 512, 8>}, {transform_indices = @transform_1, window_bounds = array<i64: 8, 128>}, {transform_indices = @transform_2, window_bounds = array<i64: 1, 128>}, {transform_indices = @transform_3, window_bounds = array<i64: 512, 128>}]} {
    %c0_i32 = arith.constant 0 : i32
    %0 = arith.cmpi eq, %arg2, %c0_i32 : i32
    %1 = arith.extui %0 : i1 to i32
    %c0_i32_0 = arith.constant 0 : i32
    %2 = arith.cmpi ne, %1, %c0_i32_0 : i32
    scf.if %2 {
      %cst_10 = arith.constant 0.000000e+00 : f32
      %12 = vector.broadcast %cst_10 : f32 to vector<512x128xf32>
      %c0_11 = arith.constant 0 : index
      %c0_12 = arith.constant 0 : index
      %13 = vector.load %arg7[%c0_11, %c0_12] : memref<512x128xf32, #tpu.memory_space<vmem>>, vector<512x128xf32>
      tpu.vector_store %arg7[%c0_11, %c0_12], %12 {strides = array<i32>} : memref<512x128xf32, #tpu.memory_space<vmem>>, vector<512x128xf32>,
    } else {
    }
    %c0 = arith.constant 0 : index
    %c0_1 = arith.constant 0 : index
    %3 = vector.load %arg7[%c0, %c0_1] : memref<512x128xf32, #tpu.memory_space<vmem>>, vector<512x128xf32>
    %c0_2 = arith.constant 0 : index
    %c0_3 = arith.constant 0 : index
    %4 = vector.load %arg3[%c0_2, %c0_3] : memref<512x8xbf16, #tpu.memory_space<vmem>>, vector<512x8xbf16>
    %c0_4 = arith.constant 0 : index
    %c0_5 = arith.constant 0 : index
    %5 = vector.load %arg4[%c0_4, %c0_5] : memref<8x128xbf16, #tpu.memory_space<vmem>>, vector<8x128xbf16>
    %cst = arith.constant dense<0.000000e+00> : vector<512x128xf32>
    %6 = tpu.matmul %4, %5, %cst {dimension_numbers = #tpu.dot_dimension_numbers<[1], [0], [0], [1], [0, 0, 1, 1], [], []>} : vector<512x8xbf16>, vector<8x128xbf16>, vector<512x128xf32> -> vector<512x128xf32>
    %7 = arith.addf %3, %6 : vector<512x128xf32>
    %c0_6 = arith.constant 0 : index
    %c0_7 = arith.constant 0 : index
    %8 = vector.load %arg7[%c0_6, %c0_7] : memref<512x128xf32, #tpu.memory_space<vmem>>, vector<512x128xf32>
    tpu.vector_store %arg7[%c0_6, %c0_7], %7 {strides = array<i32>} : memref<512x128xf32, #tpu.memory_space<vmem>>, vector<512x128xf32>,
    %c0_i32_8 = arith.constant 0 : i32
    %9 = arith.cmpi eq, %arg2, %c0_i32_8 : i32
    %10 = arith.extui %9 : i1 to i32
    %c0_i32_9 = arith.constant 0 : i32
    %11 = arith.cmpi ne, %10, %c0_i32_9 : i32
    scf.if %11 {
      %c0_10 = arith.constant 0 : index
      %c0_11 = arith.constant 0 : index
      %12 = vector.load %arg7[%c0_10, %c0_11] : memref<512x128xf32, #tpu.memory_space<vmem>>, vector<512x128xf32>
      %c0_12 = arith.constant 0 : index
      %c0_13 = arith.constant 0 : index
      %13 = vector.load %arg5[%c0_12, %c0_13] : memref<1x128xf32, #tpu.memory_space<vmem>>, vector<1x128xf32>
      %14 = vector.broadcast %13 : vector<1x128xf32> to vector<512x128xf32>
      %15 = arith.addf %12, %14 : vector<512x128xf32>
      %cst_14 = arith.constant 0.000000e+00 : f32
      %16 = vector.broadcast %cst_14 : f32 to vector<512x128xf32>
      %17 = arith.cmpf ogt, %15, %16 : vector<512x128xf32>
      %cst_15 = arith.constant 1.000000e-01 : f32
      %18 = vector.broadcast %cst_15 : f32 to vector<512x128xf32>
      %19 = arith.mulf %18, %15 : vector<512x128xf32>
      %20 = arith.select %17, %15, %19 : vector<512x128xi1>, vector<512x128xf32>
      %21 = arith.truncf %20 : vector<512x128xf32> to vector<512x128xbf16>
      %c0_16 = arith.constant 0 : index
      %c0_17 = arith.constant 0 : index
      %22 = vector.load %arg6[%c0_16, %c0_17] : memref<512x128xbf16, #tpu.memory_space<vmem>>, vector<512x128xbf16>
      tpu.vector_store %arg6[%c0_16, %c0_17], %21 {strides = array<i32>} : memref<512x128xbf16, #tpu.memory_space<vmem>>, vector<512x128xbf16>,
    } else {
    }
    return
  }
  func.func @transform_0(%arg0: i32, %arg1: i32, %arg2: i32) -> (i32, i32) {
    %c0_i32 = arith.constant 0 : i32
    return %arg0, %arg2 : i32, i32
  }
  func.func @transform_1(%arg0: i32, %arg1: i32, %arg2: i32) -> (i32, i32) {
    %c0_i32 = arith.constant 0 : i32
    return %arg2, %arg1 : i32, i32
  }
  func.func @transform_2(%arg0: i32, %arg1: i32, %arg2: i32) -> (i32, i32) {
    %c0_i32 = arith.constant 0 : i32
    %c0_i32_0 = arith.constant 0 : i32
    return %c0_i32, %arg1 : i32, i32
  }
  func.func @transform_3(%arg0: i32, %arg1: i32, %arg2: i32) -> (i32, i32) {
    %c0_i32 = arith.constant 0 : i32
    return %arg0, %arg1 : i32, i32
  }
}

module attributes {stable_mosaic.version = 11 : i64} {
  func.func @_fused_res_kernel(%arg0: i32, %arg1: i32, %arg2: i32, %arg3: memref<512x36xbf16, #tpu.memory_space<vmem>>, %arg4: memref<36x128xbf16, #tpu.memory_space<vmem>>, %arg5: memref<1x128xf32, #tpu.memory_space<vmem>>, %arg6: memref<512x128xbf16, #tpu.memory_space<vmem>>, %arg7: memref<512x128xbf16, #tpu.memory_space<vmem>>, %arg8: memref<512x128xf32, #tpu.memory_space<vmem>>) attributes {dimension_semantics = [#tpu.dimension_semantics<parallel>, #tpu.dimension_semantics<parallel>, #tpu.dimension_semantics<arbitrary>], iteration_bounds = array<i64: 1, 1, 1>, scalar_prefetch = 0 : i64, scratch_operands = 1 : i64, tpu.core_type = #tpu.core_type<tc>, window_params = [{transform_indices = @transform_0, window_bounds = array<i64: 512, 36>}, {transform_indices = @transform_1, window_bounds = array<i64: 36, 128>}, {transform_indices = @transform_2, window_bounds = array<i64: 1, 128>}, {transform_indices = @transform_3, window_bounds = array<i64: 512, 128>}, {transform_indices = @transform_4, window_bounds = array<i64: 512, 128>}]} {
    %c0_i32 = arith.constant 0 : i32
    %0 = arith.cmpi eq, %arg2, %c0_i32 : i32
    %1 = arith.extui %0 : i1 to i32
    %c0_i32_0 = arith.constant 0 : i32
    %2 = arith.cmpi ne, %1, %c0_i32_0 : i32
    scf.if %2 {
      %cst_10 = arith.constant 0.000000e+00 : f32
      %12 = vector.broadcast %cst_10 : f32 to vector<512x128xf32>
      %c0_11 = arith.constant 0 : index
      %c0_12 = arith.constant 0 : index
      %13 = vector.load %arg8[%c0_11, %c0_12] : memref<512x128xf32, #tpu.memory_space<vmem>>, vector<512x128xf32>
      tpu.vector_store %arg8[%c0_11, %c0_12], %12 {strides = array<i32>} : memref<512x128xf32, #tpu.memory_space<vmem>>, vector<512x128xf32>,
    } else {
    }
    %c0 = arith.constant 0 : index
    %c0_1 = arith.constant 0 : index
    %3 = vector.load %arg8[%c0, %c0_1] : memref<512x128xf32, #tpu.memory_space<vmem>>, vector<512x128xf32>
    %c0_2 = arith.constant 0 : index
    %c0_3 = arith.constant 0 : index
    %4 = vector.load %arg3[%c0_2, %c0_3] : memref<512x36xbf16, #tpu.memory_space<vmem>>, vector<512x36xbf16>
    %c0_4 = arith.constant 0 : index
    %c0_5 = arith.constant 0 : index
    %5 = vector.load %arg4[%c0_4, %c0_5] : memref<36x128xbf16, #tpu.memory_space<vmem>>, vector<36x128xbf16>
    %cst = arith.constant dense<0.000000e+00> : vector<512x128xf32>
    %6 = tpu.matmul %4, %5, %cst {dimension_numbers = #tpu.dot_dimension_numbers<[1], [0], [0], [1], [0, 0, 1, 1], [], []>} : vector<512x36xbf16>, vector<36x128xbf16>, vector<512x128xf32> -> vector<512x128xf32>
    %7 = arith.addf %3, %6 : vector<512x128xf32>
    %c0_6 = arith.constant 0 : index
    %c0_7 = arith.constant 0 : index
    %8 = vector.load %arg8[%c0_6, %c0_7] : memref<512x128xf32, #tpu.memory_space<vmem>>, vector<512x128xf32>
    tpu.vector_store %arg8[%c0_6, %c0_7], %7 {strides = array<i32>} : memref<512x128xf32, #tpu.memory_space<vmem>>, vector<512x128xf32>,
    %c0_i32_8 = arith.constant 0 : i32
    %9 = arith.cmpi eq, %arg2, %c0_i32_8 : i32
    %10 = arith.extui %9 : i1 to i32
    %c0_i32_9 = arith.constant 0 : i32
    %11 = arith.cmpi ne, %10, %c0_i32_9 : i32
    scf.if %11 {
      %c0_10 = arith.constant 0 : index
      %c0_11 = arith.constant 0 : index
      %12 = vector.load %arg8[%c0_10, %c0_11] : memref<512x128xf32, #tpu.memory_space<vmem>>, vector<512x128xf32>
      %c0_12 = arith.constant 0 : index
      %c0_13 = arith.constant 0 : index
      %13 = vector.load %arg5[%c0_12, %c0_13] : memref<1x128xf32, #tpu.memory_space<vmem>>, vector<1x128xf32>
      %14 = vector.broadcast %13 : vector<1x128xf32> to vector<512x128xf32>
      %15 = arith.addf %12, %14 : vector<512x128xf32>
      %cst_14 = arith.constant 0.000000e+00 : f32
      %16 = vector.broadcast %cst_14 : f32 to vector<512x128xf32>
      %17 = arith.cmpf ogt, %15, %16 : vector<512x128xf32>
      %cst_15 = arith.constant 1.000000e-01 : f32
      %18 = vector.broadcast %cst_15 : f32 to vector<512x128xf32>
      %19 = arith.mulf %18, %15 : vector<512x128xf32>
      %20 = arith.select %17, %15, %19 : vector<512x128xi1>, vector<512x128xf32>
      %c0_16 = arith.constant 0 : index
      %c0_17 = arith.constant 0 : index
      %21 = vector.load %arg6[%c0_16, %c0_17] : memref<512x128xbf16, #tpu.memory_space<vmem>>, vector<512x128xbf16>
      %22 = arith.extf %21 : vector<512x128xbf16> to vector<512x128xf32>
      %23 = arith.addf %20, %22 : vector<512x128xf32>
      %24 = arith.truncf %23 : vector<512x128xf32> to vector<512x128xbf16>
      %c0_18 = arith.constant 0 : index
      %c0_19 = arith.constant 0 : index
      %25 = vector.load %arg7[%c0_18, %c0_19] : memref<512x128xbf16, #tpu.memory_space<vmem>>, vector<512x128xbf16>
      tpu.vector_store %arg7[%c0_18, %c0_19], %24 {strides = array<i32>} : memref<512x128xbf16, #tpu.memory_space<vmem>>, vector<512x128xbf16>,
    } else {
    }
    return
  }
  func.func @transform_0(%arg0: i32, %arg1: i32, %arg2: i32) -> (i32, i32) {
    %c0_i32 = arith.constant 0 : i32
    return %arg0, %arg2 : i32, i32
  }
  func.func @transform_1(%arg0: i32, %arg1: i32, %arg2: i32) -> (i32, i32) {
    %c0_i32 = arith.constant 0 : i32
    return %arg2, %arg1 : i32, i32
  }
  func.func @transform_2(%arg0: i32, %arg1: i32, %arg2: i32) -> (i32, i32) {
    %c0_i32 = arith.constant 0 : i32
    %c0_i32_0 = arith.constant 0 : i32
    return %c0_i32, %arg1 : i32, i32
  }
  func.func @transform_3(%arg0: i32, %arg1: i32, %arg2: i32) -> (i32, i32) {
    %c0_i32 = arith.constant 0 : i32
    return %arg0, %arg1 : i32, i32
  }
  func.func @transform_4(%arg0: i32, %arg1: i32, %arg2: i32) -> (i32, i32) {
    %c0_i32 = arith.constant 0 : i32
    return %arg0, %arg1 : i32, i32
  }
}

module attributes {stable_mosaic.version = 11 : i64} {
  func.func @_fused_kernel(%arg0: i32, %arg1: i32, %arg2: i32, %arg3: memref<128x16xbf16, #tpu.memory_space<vmem>>, %arg4: memref<16x128xbf16, #tpu.memory_space<vmem>>, %arg5: memref<1x128xf32, #tpu.memory_space<vmem>>, %arg6: memref<128x128xbf16, #tpu.memory_space<vmem>>, %arg7: memref<128x128xf32, #tpu.memory_space<vmem>>) attributes {dimension_semantics = [#tpu.dimension_semantics<parallel>, #tpu.dimension_semantics<parallel>, #tpu.dimension_semantics<arbitrary>], iteration_bounds = array<i64: 1, 1, 1>, scalar_prefetch = 0 : i64, scratch_operands = 1 : i64, tpu.core_type = #tpu.core_type<tc>, window_params = [{transform_indices = @transform_0, window_bounds = array<i64: 128, 16>}, {transform_indices = @transform_1, window_bounds = array<i64: 16, 128>}, {transform_indices = @transform_2, window_bounds = array<i64: 1, 128>}, {transform_indices = @transform_3, window_bounds = array<i64: 128, 128>}]} {
    %c0_i32 = arith.constant 0 : i32
    %0 = arith.cmpi eq, %arg2, %c0_i32 : i32
    %1 = arith.extui %0 : i1 to i32
    %c0_i32_0 = arith.constant 0 : i32
    %2 = arith.cmpi ne, %1, %c0_i32_0 : i32
    scf.if %2 {
      %cst_10 = arith.constant 0.000000e+00 : f32
      %12 = vector.broadcast %cst_10 : f32 to vector<128x128xf32>
      %c0_11 = arith.constant 0 : index
      %c0_12 = arith.constant 0 : index
      %13 = vector.load %arg7[%c0_11, %c0_12] : memref<128x128xf32, #tpu.memory_space<vmem>>, vector<128x128xf32>
      tpu.vector_store %arg7[%c0_11, %c0_12], %12 {strides = array<i32>} : memref<128x128xf32, #tpu.memory_space<vmem>>, vector<128x128xf32>,
    } else {
    }
    %c0 = arith.constant 0 : index
    %c0_1 = arith.constant 0 : index
    %3 = vector.load %arg7[%c0, %c0_1] : memref<128x128xf32, #tpu.memory_space<vmem>>, vector<128x128xf32>
    %c0_2 = arith.constant 0 : index
    %c0_3 = arith.constant 0 : index
    %4 = vector.load %arg3[%c0_2, %c0_3] : memref<128x16xbf16, #tpu.memory_space<vmem>>, vector<128x16xbf16>
    %c0_4 = arith.constant 0 : index
    %c0_5 = arith.constant 0 : index
    %5 = vector.load %arg4[%c0_4, %c0_5] : memref<16x128xbf16, #tpu.memory_space<vmem>>, vector<16x128xbf16>
    %cst = arith.constant dense<0.000000e+00> : vector<128x128xf32>
    %6 = tpu.matmul %4, %5, %cst {dimension_numbers = #tpu.dot_dimension_numbers<[1], [0], [0], [1], [0, 0, 1, 1], [], []>} : vector<128x16xbf16>, vector<16x128xbf16>, vector<128x128xf32> -> vector<128x128xf32>
    %7 = arith.addf %3, %6 : vector<128x128xf32>
    %c0_6 = arith.constant 0 : index
    %c0_7 = arith.constant 0 : index
    %8 = vector.load %arg7[%c0_6, %c0_7] : memref<128x128xf32, #tpu.memory_space<vmem>>, vector<128x128xf32>
    tpu.vector_store %arg7[%c0_6, %c0_7], %7 {strides = array<i32>} : memref<128x128xf32, #tpu.memory_space<vmem>>, vector<128x128xf32>,
    %c0_i32_8 = arith.constant 0 : i32
    %9 = arith.cmpi eq, %arg2, %c0_i32_8 : i32
    %10 = arith.extui %9 : i1 to i32
    %c0_i32_9 = arith.constant 0 : i32
    %11 = arith.cmpi ne, %10, %c0_i32_9 : i32
    scf.if %11 {
      %c0_10 = arith.constant 0 : index
      %c0_11 = arith.constant 0 : index
      %12 = vector.load %arg7[%c0_10, %c0_11] : memref<128x128xf32, #tpu.memory_space<vmem>>, vector<128x128xf32>
      %c0_12 = arith.constant 0 : index
      %c0_13 = arith.constant 0 : index
      %13 = vector.load %arg5[%c0_12, %c0_13] : memref<1x128xf32, #tpu.memory_space<vmem>>, vector<1x128xf32>
      %14 = vector.broadcast %13 : vector<1x128xf32> to vector<128x128xf32>
      %15 = arith.addf %12, %14 : vector<128x128xf32>
      %cst_14 = arith.constant 0.000000e+00 : f32
      %16 = vector.broadcast %cst_14 : f32 to vector<128x128xf32>
      %17 = arith.cmpf ogt, %15, %16 : vector<128x128xf32>
      %cst_15 = arith.constant 1.000000e-01 : f32
      %18 = vector.broadcast %cst_15 : f32 to vector<128x128xf32>
      %19 = arith.mulf %18, %15 : vector<128x128xf32>
      %20 = arith.select %17, %15, %19 : vector<128x128xi1>, vector<128x128xf32>
      %21 = arith.truncf %20 : vector<128x128xf32> to vector<128x128xbf16>
      %c0_16 = arith.constant 0 : index
      %c0_17 = arith.constant 0 : index
      %22 = vector.load %arg6[%c0_16, %c0_17] : memref<128x128xbf16, #tpu.memory_space<vmem>>, vector<128x128xbf16>
      tpu.vector_store %arg6[%c0_16, %c0_17], %21 {strides = array<i32>} : memref<128x128xbf16, #tpu.memory_space<vmem>>, vector<128x128xbf16>,
    } else {
    }
    return
  }
  func.func @transform_0(%arg0: i32, %arg1: i32, %arg2: i32) -> (i32, i32) {
    %c0_i32 = arith.constant 0 : i32
    return %arg0, %arg2 : i32, i32
  }
  func.func @transform_1(%arg0: i32, %arg1: i32, %arg2: i32) -> (i32, i32) {
    %c0_i32 = arith.constant 0 : i32
    return %arg2, %arg1 : i32, i32
  }
  func.func @transform_2(%arg0: i32, %arg1: i32, %arg2: i32) -> (i32, i32) {
    %c0_i32 = arith.constant 0 : i32
    %c0_i32_0 = arith.constant 0 : i32
    return %c0_i32, %arg1 : i32, i32
  }
  func.func @transform_3(%arg0: i32, %arg1: i32, %arg2: i32) -> (i32, i32) {
    %c0_i32 = arith.constant 0 : i32
    return %arg0, %arg1 : i32, i32
  }
}

module attributes {stable_mosaic.version = 11 : i64} {
  func.func @_fused_kernel(%arg0: i32, %arg1: i32, %arg2: i32, %arg3: memref<128x72xbf16, #tpu.memory_space<vmem>>, %arg4: memref<72x128xbf16, #tpu.memory_space<vmem>>, %arg5: memref<1x128xf32, #tpu.memory_space<vmem>>, %arg6: memref<128x128xbf16, #tpu.memory_space<vmem>>, %arg7: memref<128x128xf32, #tpu.memory_space<vmem>>) attributes {dimension_semantics = [#tpu.dimension_semantics<parallel>, #tpu.dimension_semantics<parallel>, #tpu.dimension_semantics<arbitrary>], iteration_bounds = array<i64: 1, 1, 1>, scalar_prefetch = 0 : i64, scratch_operands = 1 : i64, tpu.core_type = #tpu.core_type<tc>, window_params = [{transform_indices = @transform_0, window_bounds = array<i64: 128, 72>}, {transform_indices = @transform_1, window_bounds = array<i64: 72, 128>}, {transform_indices = @transform_2, window_bounds = array<i64: 1, 128>}, {transform_indices = @transform_3, window_bounds = array<i64: 128, 128>}]} {
    %c0_i32 = arith.constant 0 : i32
    %0 = arith.cmpi eq, %arg2, %c0_i32 : i32
    %1 = arith.extui %0 : i1 to i32
    %c0_i32_0 = arith.constant 0 : i32
    %2 = arith.cmpi ne, %1, %c0_i32_0 : i32
    scf.if %2 {
      %cst_10 = arith.constant 0.000000e+00 : f32
      %12 = vector.broadcast %cst_10 : f32 to vector<128x128xf32>
      %c0_11 = arith.constant 0 : index
      %c0_12 = arith.constant 0 : index
      %13 = vector.load %arg7[%c0_11, %c0_12] : memref<128x128xf32, #tpu.memory_space<vmem>>, vector<128x128xf32>
      tpu.vector_store %arg7[%c0_11, %c0_12], %12 {strides = array<i32>} : memref<128x128xf32, #tpu.memory_space<vmem>>, vector<128x128xf32>,
    } else {
    }
    %c0 = arith.constant 0 : index
    %c0_1 = arith.constant 0 : index
    %3 = vector.load %arg7[%c0, %c0_1] : memref<128x128xf32, #tpu.memory_space<vmem>>, vector<128x128xf32>
    %c0_2 = arith.constant 0 : index
    %c0_3 = arith.constant 0 : index
    %4 = vector.load %arg3[%c0_2, %c0_3] : memref<128x72xbf16, #tpu.memory_space<vmem>>, vector<128x72xbf16>
    %c0_4 = arith.constant 0 : index
    %c0_5 = arith.constant 0 : index
    %5 = vector.load %arg4[%c0_4, %c0_5] : memref<72x128xbf16, #tpu.memory_space<vmem>>, vector<72x128xbf16>
    %cst = arith.constant dense<0.000000e+00> : vector<128x128xf32>
    %6 = tpu.matmul %4, %5, %cst {dimension_numbers = #tpu.dot_dimension_numbers<[1], [0], [0], [1], [0, 0, 1, 1], [], []>} : vector<128x72xbf16>, vector<72x128xbf16>, vector<128x128xf32> -> vector<128x128xf32>
    %7 = arith.addf %3, %6 : vector<128x128xf32>
    %c0_6 = arith.constant 0 : index
    %c0_7 = arith.constant 0 : index
    %8 = vector.load %arg7[%c0_6, %c0_7] : memref<128x128xf32, #tpu.memory_space<vmem>>, vector<128x128xf32>
    tpu.vector_store %arg7[%c0_6, %c0_7], %7 {strides = array<i32>} : memref<128x128xf32, #tpu.memory_space<vmem>>, vector<128x128xf32>,
    %c0_i32_8 = arith.constant 0 : i32
    %9 = arith.cmpi eq, %arg2, %c0_i32_8 : i32
    %10 = arith.extui %9 : i1 to i32
    %c0_i32_9 = arith.constant 0 : i32
    %11 = arith.cmpi ne, %10, %c0_i32_9 : i32
    scf.if %11 {
      %c0_10 = arith.constant 0 : index
      %c0_11 = arith.constant 0 : index
      %12 = vector.load %arg7[%c0_10, %c0_11] : memref<128x128xf32, #tpu.memory_space<vmem>>, vector<128x128xf32>
      %c0_12 = arith.constant 0 : index
      %c0_13 = arith.constant 0 : index
      %13 = vector.load %arg5[%c0_12, %c0_13] : memref<1x128xf32, #tpu.memory_space<vmem>>, vector<1x128xf32>
      %14 = vector.broadcast %13 : vector<1x128xf32> to vector<128x128xf32>
      %15 = arith.addf %12, %14 : vector<128x128xf32>
      %cst_14 = arith.constant 0.000000e+00 : f32
      %16 = vector.broadcast %cst_14 : f32 to vector<128x128xf32>
      %17 = arith.cmpf ogt, %15, %16 : vector<128x128xf32>
      %cst_15 = arith.constant 1.000000e-01 : f32
      %18 = vector.broadcast %cst_15 : f32 to vector<128x128xf32>
      %19 = arith.mulf %18, %15 : vector<128x128xf32>
      %20 = arith.select %17, %15, %19 : vector<128x128xi1>, vector<128x128xf32>
      %21 = arith.truncf %20 : vector<128x128xf32> to vector<128x128xbf16>
      %c0_16 = arith.constant 0 : index
      %c0_17 = arith.constant 0 : index
      %22 = vector.load %arg6[%c0_16, %c0_17] : memref<128x128xbf16, #tpu.memory_space<vmem>>, vector<128x128xbf16>
      tpu.vector_store %arg6[%c0_16, %c0_17], %21 {strides = array<i32>} : memref<128x128xbf16, #tpu.memory_space<vmem>>, vector<128x128xbf16>,
    } else {
    }
    return
  }
  func.func @transform_0(%arg0: i32, %arg1: i32, %arg2: i32) -> (i32, i32) {
    %c0_i32 = arith.constant 0 : i32
    return %arg0, %arg2 : i32, i32
  }
  func.func @transform_1(%arg0: i32, %arg1: i32, %arg2: i32) -> (i32, i32) {
    %c0_i32 = arith.constant 0 : i32
    return %arg2, %arg1 : i32, i32
  }
  func.func @transform_2(%arg0: i32, %arg1: i32, %arg2: i32) -> (i32, i32) {
    %c0_i32 = arith.constant 0 : i32
    %c0_i32_0 = arith.constant 0 : i32
    return %c0_i32, %arg1 : i32, i32
  }
  func.func @transform_3(%arg0: i32, %arg1: i32, %arg2: i32) -> (i32, i32) {
    %c0_i32 = arith.constant 0 : i32
    return %arg0, %arg1 : i32, i32
  }
}

module attributes {stable_mosaic.version = 11 : i64} {
  func.func @_fused_res_kernel(%arg0: i32, %arg1: i32, %arg2: i32, %arg3: memref<128x72xbf16, #tpu.memory_space<vmem>>, %arg4: memref<72x128xbf16, #tpu.memory_space<vmem>>, %arg5: memref<1x128xf32, #tpu.memory_space<vmem>>, %arg6: memref<128x128xbf16, #tpu.memory_space<vmem>>, %arg7: memref<128x128xbf16, #tpu.memory_space<vmem>>, %arg8: memref<128x128xf32, #tpu.memory_space<vmem>>) attributes {dimension_semantics = [#tpu.dimension_semantics<parallel>, #tpu.dimension_semantics<parallel>, #tpu.dimension_semantics<arbitrary>], iteration_bounds = array<i64: 1, 1, 1>, scalar_prefetch = 0 : i64, scratch_operands = 1 : i64, tpu.core_type = #tpu.core_type<tc>, window_params = [{transform_indices = @transform_0, window_bounds = array<i64: 128, 72>}, {transform_indices = @transform_1, window_bounds = array<i64: 72, 128>}, {transform_indices = @transform_2, window_bounds = array<i64: 1, 128>}, {transform_indices = @transform_3, window_bounds = array<i64: 128, 128>}, {transform_indices = @transform_4, window_bounds = array<i64: 128, 128>}]} {
    %c0_i32 = arith.constant 0 : i32
    %0 = arith.cmpi eq, %arg2, %c0_i32 : i32
    %1 = arith.extui %0 : i1 to i32
    %c0_i32_0 = arith.constant 0 : i32
    %2 = arith.cmpi ne, %1, %c0_i32_0 : i32
    scf.if %2 {
      %cst_10 = arith.constant 0.000000e+00 : f32
      %12 = vector.broadcast %cst_10 : f32 to vector<128x128xf32>
      %c0_11 = arith.constant 0 : index
      %c0_12 = arith.constant 0 : index
      %13 = vector.load %arg8[%c0_11, %c0_12] : memref<128x128xf32, #tpu.memory_space<vmem>>, vector<128x128xf32>
      tpu.vector_store %arg8[%c0_11, %c0_12], %12 {strides = array<i32>} : memref<128x128xf32, #tpu.memory_space<vmem>>, vector<128x128xf32>,
    } else {
    }
    %c0 = arith.constant 0 : index
    %c0_1 = arith.constant 0 : index
    %3 = vector.load %arg8[%c0, %c0_1] : memref<128x128xf32, #tpu.memory_space<vmem>>, vector<128x128xf32>
    %c0_2 = arith.constant 0 : index
    %c0_3 = arith.constant 0 : index
    %4 = vector.load %arg3[%c0_2, %c0_3] : memref<128x72xbf16, #tpu.memory_space<vmem>>, vector<128x72xbf16>
    %c0_4 = arith.constant 0 : index
    %c0_5 = arith.constant 0 : index
    %5 = vector.load %arg4[%c0_4, %c0_5] : memref<72x128xbf16, #tpu.memory_space<vmem>>, vector<72x128xbf16>
    %cst = arith.constant dense<0.000000e+00> : vector<128x128xf32>
    %6 = tpu.matmul %4, %5, %cst {dimension_numbers = #tpu.dot_dimension_numbers<[1], [0], [0], [1], [0, 0, 1, 1], [], []>} : vector<128x72xbf16>, vector<72x128xbf16>, vector<128x128xf32> -> vector<128x128xf32>
    %7 = arith.addf %3, %6 : vector<128x128xf32>
    %c0_6 = arith.constant 0 : index
    %c0_7 = arith.constant 0 : index
    %8 = vector.load %arg8[%c0_6, %c0_7] : memref<128x128xf32, #tpu.memory_space<vmem>>, vector<128x128xf32>
    tpu.vector_store %arg8[%c0_6, %c0_7], %7 {strides = array<i32>} : memref<128x128xf32, #tpu.memory_space<vmem>>, vector<128x128xf32>,
    %c0_i32_8 = arith.constant 0 : i32
    %9 = arith.cmpi eq, %arg2, %c0_i32_8 : i32
    %10 = arith.extui %9 : i1 to i32
    %c0_i32_9 = arith.constant 0 : i32
    %11 = arith.cmpi ne, %10, %c0_i32_9 : i32
    scf.if %11 {
      %c0_10 = arith.constant 0 : index
      %c0_11 = arith.constant 0 : index
      %12 = vector.load %arg8[%c0_10, %c0_11] : memref<128x128xf32, #tpu.memory_space<vmem>>, vector<128x128xf32>
      %c0_12 = arith.constant 0 : index
      %c0_13 = arith.constant 0 : index
      %13 = vector.load %arg5[%c0_12, %c0_13] : memref<1x128xf32, #tpu.memory_space<vmem>>, vector<1x128xf32>
      %14 = vector.broadcast %13 : vector<1x128xf32> to vector<128x128xf32>
      %15 = arith.addf %12, %14 : vector<128x128xf32>
      %cst_14 = arith.constant 0.000000e+00 : f32
      %16 = vector.broadcast %cst_14 : f32 to vector<128x128xf32>
      %17 = arith.cmpf ogt, %15, %16 : vector<128x128xf32>
      %cst_15 = arith.constant 1.000000e-01 : f32
      %18 = vector.broadcast %cst_15 : f32 to vector<128x128xf32>
      %19 = arith.mulf %18, %15 : vector<128x128xf32>
      %20 = arith.select %17, %15, %19 : vector<128x128xi1>, vector<128x128xf32>
      %c0_16 = arith.constant 0 : index
      %c0_17 = arith.constant 0 : index
      %21 = vector.load %arg6[%c0_16, %c0_17] : memref<128x128xbf16, #tpu.memory_space<vmem>>, vector<128x128xbf16>
      %22 = arith.extf %21 : vector<128x128xbf16> to vector<128x128xf32>
      %23 = arith.addf %20, %22 : vector<128x128xf32>
      %24 = arith.truncf %23 : vector<128x128xf32> to vector<128x128xbf16>
      %c0_18 = arith.constant 0 : index
      %c0_19 = arith.constant 0 : index
      %25 = vector.load %arg7[%c0_18, %c0_19] : memref<128x128xbf16, #tpu.memory_space<vmem>>, vector<128x128xbf16>
      tpu.vector_store %arg7[%c0_18, %c0_19], %24 {strides = array<i32>} : memref<128x128xbf16, #tpu.memory_space<vmem>>, vector<128x128xbf16>,
    } else {
    }
    return
  }
  func.func @transform_0(%arg0: i32, %arg1: i32, %arg2: i32) -> (i32, i32) {
    %c0_i32 = arith.constant 0 : i32
    return %arg0, %arg2 : i32, i32
  }
  func.func @transform_1(%arg0: i32, %arg1: i32, %arg2: i32) -> (i32, i32) {
    %c0_i32 = arith.constant 0 : i32
    return %arg2, %arg1 : i32, i32
  }
  func.func @transform_2(%arg0: i32, %arg1: i32, %arg2: i32) -> (i32, i32) {
    %c0_i32 = arith.constant 0 : i32
    %c0_i32_0 = arith.constant 0 : i32
    return %c0_i32, %arg1 : i32, i32
  }
  func.func @transform_3(%arg0: i32, %arg1: i32, %arg2: i32) -> (i32, i32) {
    %c0_i32 = arith.constant 0 : i32
    return %arg0, %arg1 : i32, i32
  }
  func.func @transform_4(%arg0: i32, %arg1: i32, %arg2: i32) -> (i32, i32) {
    %c0_i32 = arith.constant 0 : i32
    return %arg0, %arg1 : i32, i32
  }
}

module attributes {stable_mosaic.version = 11 : i64} {
  func.func @_fused_kernel(%arg0: i32, %arg1: i32, %arg2: i32, %arg3: memref<32x144xbf16, #tpu.memory_space<vmem>>, %arg4: memref<144x128xbf16, #tpu.memory_space<vmem>>, %arg5: memref<1x128xf32, #tpu.memory_space<vmem>>, %arg6: memref<32x128xbf16, #tpu.memory_space<vmem>>, %arg7: memref<32x128xf32, #tpu.memory_space<vmem>>) attributes {dimension_semantics = [#tpu.dimension_semantics<parallel>, #tpu.dimension_semantics<parallel>, #tpu.dimension_semantics<arbitrary>], iteration_bounds = array<i64: 1, 1, 1>, scalar_prefetch = 0 : i64, scratch_operands = 1 : i64, tpu.core_type = #tpu.core_type<tc>, window_params = [{transform_indices = @transform_0, window_bounds = array<i64: 32, 144>}, {transform_indices = @transform_1, window_bounds = array<i64: 144, 128>}, {transform_indices = @transform_2, window_bounds = array<i64: 1, 128>}, {transform_indices = @transform_3, window_bounds = array<i64: 32, 128>}]} {
    %c0_i32 = arith.constant 0 : i32
    %0 = arith.cmpi eq, %arg2, %c0_i32 : i32
    %1 = arith.extui %0 : i1 to i32
    %c0_i32_0 = arith.constant 0 : i32
    %2 = arith.cmpi ne, %1, %c0_i32_0 : i32
    scf.if %2 {
      %cst_10 = arith.constant 0.000000e+00 : f32
      %12 = vector.broadcast %cst_10 : f32 to vector<32x128xf32>
      %c0_11 = arith.constant 0 : index
      %c0_12 = arith.constant 0 : index
      %13 = vector.load %arg7[%c0_11, %c0_12] : memref<32x128xf32, #tpu.memory_space<vmem>>, vector<32x128xf32>
      tpu.vector_store %arg7[%c0_11, %c0_12], %12 {strides = array<i32>} : memref<32x128xf32, #tpu.memory_space<vmem>>, vector<32x128xf32>,
    } else {
    }
    %c0 = arith.constant 0 : index
    %c0_1 = arith.constant 0 : index
    %3 = vector.load %arg7[%c0, %c0_1] : memref<32x128xf32, #tpu.memory_space<vmem>>, vector<32x128xf32>
    %c0_2 = arith.constant 0 : index
    %c0_3 = arith.constant 0 : index
    %4 = vector.load %arg3[%c0_2, %c0_3] : memref<32x144xbf16, #tpu.memory_space<vmem>>, vector<32x144xbf16>
    %c0_4 = arith.constant 0 : index
    %c0_5 = arith.constant 0 : index
    %5 = vector.load %arg4[%c0_4, %c0_5] : memref<144x128xbf16, #tpu.memory_space<vmem>>, vector<144x128xbf16>
    %cst = arith.constant dense<0.000000e+00> : vector<32x128xf32>
    %6 = tpu.matmul %4, %5, %cst {dimension_numbers = #tpu.dot_dimension_numbers<[1], [0], [0], [1], [0, 0, 1, 1], [], []>} : vector<32x144xbf16>, vector<144x128xbf16>, vector<32x128xf32> -> vector<32x128xf32>
    %7 = arith.addf %3, %6 : vector<32x128xf32>
    %c0_6 = arith.constant 0 : index
    %c0_7 = arith.constant 0 : index
    %8 = vector.load %arg7[%c0_6, %c0_7] : memref<32x128xf32, #tpu.memory_space<vmem>>, vector<32x128xf32>
    tpu.vector_store %arg7[%c0_6, %c0_7], %7 {strides = array<i32>} : memref<32x128xf32, #tpu.memory_space<vmem>>, vector<32x128xf32>,
    %c0_i32_8 = arith.constant 0 : i32
    %9 = arith.cmpi eq, %arg2, %c0_i32_8 : i32
    %10 = arith.extui %9 : i1 to i32
    %c0_i32_9 = arith.constant 0 : i32
    %11 = arith.cmpi ne, %10, %c0_i32_9 : i32
    scf.if %11 {
      %c0_10 = arith.constant 0 : index
      %c0_11 = arith.constant 0 : index
      %12 = vector.load %arg7[%c0_10, %c0_11] : memref<32x128xf32, #tpu.memory_space<vmem>>, vector<32x128xf32>
      %c0_12 = arith.constant 0 : index
      %c0_13 = arith.constant 0 : index
      %13 = vector.load %arg5[%c0_12, %c0_13] : memref<1x128xf32, #tpu.memory_space<vmem>>, vector<1x128xf32>
      %14 = vector.broadcast %13 : vector<1x128xf32> to vector<32x128xf32>
      %15 = arith.addf %12, %14 : vector<32x128xf32>
      %cst_14 = arith.constant 0.000000e+00 : f32
      %16 = vector.broadcast %cst_14 : f32 to vector<32x128xf32>
      %17 = arith.cmpf ogt, %15, %16 : vector<32x128xf32>
      %cst_15 = arith.constant 1.000000e-01 : f32
      %18 = vector.broadcast %cst_15 : f32 to vector<32x128xf32>
      %19 = arith.mulf %18, %15 : vector<32x128xf32>
      %20 = arith.select %17, %15, %19 : vector<32x128xi1>, vector<32x128xf32>
      %21 = arith.truncf %20 : vector<32x128xf32> to vector<32x128xbf16>
      %c0_16 = arith.constant 0 : index
      %c0_17 = arith.constant 0 : index
      %22 = vector.load %arg6[%c0_16, %c0_17] : memref<32x128xbf16, #tpu.memory_space<vmem>>, vector<32x128xbf16>
      tpu.vector_store %arg6[%c0_16, %c0_17], %21 {strides = array<i32>} : memref<32x128xbf16, #tpu.memory_space<vmem>>, vector<32x128xbf16>,
    } else {
    }
    return
  }
  func.func @transform_0(%arg0: i32, %arg1: i32, %arg2: i32) -> (i32, i32) {
    %c0_i32 = arith.constant 0 : i32
    return %arg0, %arg2 : i32, i32
  }
  func.func @transform_1(%arg0: i32, %arg1: i32, %arg2: i32) -> (i32, i32) {
    %c0_i32 = arith.constant 0 : i32
    return %arg2, %arg1 : i32, i32
  }
  func.func @transform_2(%arg0: i32, %arg1: i32, %arg2: i32) -> (i32, i32) {
    %c0_i32 = arith.constant 0 : i32
    %c0_i32_0 = arith.constant 0 : i32
    return %c0_i32, %arg1 : i32, i32
  }
  func.func @transform_3(%arg0: i32, %arg1: i32, %arg2: i32) -> (i32, i32) {
    %c0_i32 = arith.constant 0 : i32
    return %arg0, %arg1 : i32, i32
  }
}

module attributes {stable_mosaic.version = 11 : i64} {
  func.func @_fused_kernel(%arg0: i32, %arg1: i32, %arg2: i32, %arg3: memref<32x32xbf16, #tpu.memory_space<vmem>>, %arg4: memref<32x128xbf16, #tpu.memory_space<vmem>>, %arg5: memref<1x128xf32, #tpu.memory_space<vmem>>, %arg6: memref<32x128xbf16, #tpu.memory_space<vmem>>, %arg7: memref<32x128xf32, #tpu.memory_space<vmem>>) attributes {dimension_semantics = [#tpu.dimension_semantics<parallel>, #tpu.dimension_semantics<parallel>, #tpu.dimension_semantics<arbitrary>], iteration_bounds = array<i64: 1, 1, 1>, scalar_prefetch = 0 : i64, scratch_operands = 1 : i64, tpu.core_type = #tpu.core_type<tc>, window_params = [{transform_indices = @transform_0, window_bounds = array<i64: 32, 32>}, {transform_indices = @transform_1, window_bounds = array<i64: 32, 128>}, {transform_indices = @transform_2, window_bounds = array<i64: 1, 128>}, {transform_indices = @transform_3, window_bounds = array<i64: 32, 128>}]} {
    %c0_i32 = arith.constant 0 : i32
    %0 = arith.cmpi eq, %arg2, %c0_i32 : i32
    %1 = arith.extui %0 : i1 to i32
    %c0_i32_0 = arith.constant 0 : i32
    %2 = arith.cmpi ne, %1, %c0_i32_0 : i32
    scf.if %2 {
      %cst_10 = arith.constant 0.000000e+00 : f32
      %12 = vector.broadcast %cst_10 : f32 to vector<32x128xf32>
      %c0_11 = arith.constant 0 : index
      %c0_12 = arith.constant 0 : index
      %13 = vector.load %arg7[%c0_11, %c0_12] : memref<32x128xf32, #tpu.memory_space<vmem>>, vector<32x128xf32>
      tpu.vector_store %arg7[%c0_11, %c0_12], %12 {strides = array<i32>} : memref<32x128xf32, #tpu.memory_space<vmem>>, vector<32x128xf32>,
    } else {
    }
    %c0 = arith.constant 0 : index
    %c0_1 = arith.constant 0 : index
    %3 = vector.load %arg7[%c0, %c0_1] : memref<32x128xf32, #tpu.memory_space<vmem>>, vector<32x128xf32>
    %c0_2 = arith.constant 0 : index
    %c0_3 = arith.constant 0 : index
    %4 = vector.load %arg3[%c0_2, %c0_3] : memref<32x32xbf16, #tpu.memory_space<vmem>>, vector<32x32xbf16>
    %c0_4 = arith.constant 0 : index
    %c0_5 = arith.constant 0 : index
    %5 = vector.load %arg4[%c0_4, %c0_5] : memref<32x128xbf16, #tpu.memory_space<vmem>>, vector<32x128xbf16>
    %cst = arith.constant dense<0.000000e+00> : vector<32x128xf32>
    %6 = tpu.matmul %4, %5, %cst {dimension_numbers = #tpu.dot_dimension_numbers<[1], [0], [0], [1], [0, 0, 1, 1], [], []>} : vector<32x32xbf16>, vector<32x128xbf16>, vector<32x128xf32> -> vector<32x128xf32>
    %7 = arith.addf %3, %6 : vector<32x128xf32>
    %c0_6 = arith.constant 0 : index
    %c0_7 = arith.constant 0 : index
    %8 = vector.load %arg7[%c0_6, %c0_7] : memref<32x128xf32, #tpu.memory_space<vmem>>, vector<32x128xf32>
    tpu.vector_store %arg7[%c0_6, %c0_7], %7 {strides = array<i32>} : memref<32x128xf32, #tpu.memory_space<vmem>>, vector<32x128xf32>,
    %c0_i32_8 = arith.constant 0 : i32
    %9 = arith.cmpi eq, %arg2, %c0_i32_8 : i32
    %10 = arith.extui %9 : i1 to i32
    %c0_i32_9 = arith.constant 0 : i32
    %11 = arith.cmpi ne, %10, %c0_i32_9 : i32
    scf.if %11 {
      %c0_10 = arith.constant 0 : index
      %c0_11 = arith.constant 0 : index
      %12 = vector.load %arg7[%c0_10, %c0_11] : memref<32x128xf32, #tpu.memory_space<vmem>>, vector<32x128xf32>
      %c0_12 = arith.constant 0 : index
      %c0_13 = arith.constant 0 : index
      %13 = vector.load %arg5[%c0_12, %c0_13] : memref<1x128xf32, #tpu.memory_space<vmem>>, vector<1x128xf32>
      %14 = vector.broadcast %13 : vector<1x128xf32> to vector<32x128xf32>
      %15 = arith.addf %12, %14 : vector<32x128xf32>
      %cst_14 = arith.constant 0.000000e+00 : f32
      %16 = vector.broadcast %cst_14 : f32 to vector<32x128xf32>
      %17 = arith.cmpf ogt, %15, %16 : vector<32x128xf32>
      %cst_15 = arith.constant 1.000000e-01 : f32
      %18 = vector.broadcast %cst_15 : f32 to vector<32x128xf32>
      %19 = arith.mulf %18, %15 : vector<32x128xf32>
      %20 = arith.select %17, %15, %19 : vector<32x128xi1>, vector<32x128xf32>
      %21 = arith.truncf %20 : vector<32x128xf32> to vector<32x128xbf16>
      %c0_16 = arith.constant 0 : index
      %c0_17 = arith.constant 0 : index
      %22 = vector.load %arg6[%c0_16, %c0_17] : memref<32x128xbf16, #tpu.memory_space<vmem>>, vector<32x128xbf16>
      tpu.vector_store %arg6[%c0_16, %c0_17], %21 {strides = array<i32>} : memref<32x128xbf16, #tpu.memory_space<vmem>>, vector<32x128xbf16>,
    } else {
    }
    return
  }
  func.func @transform_0(%arg0: i32, %arg1: i32, %arg2: i32) -> (i32, i32) {
    %c0_i32 = arith.constant 0 : i32
    return %arg0, %arg2 : i32, i32
  }
  func.func @transform_1(%arg0: i32, %arg1: i32, %arg2: i32) -> (i32, i32) {
    %c0_i32 = arith.constant 0 : i32
    return %arg2, %arg1 : i32, i32
  }
  func.func @transform_2(%arg0: i32, %arg1: i32, %arg2: i32) -> (i32, i32) {
    %c0_i32 = arith.constant 0 : i32
    %c0_i32_0 = arith.constant 0 : i32
    return %c0_i32, %arg1 : i32, i32
  }
  func.func @transform_3(%arg0: i32, %arg1: i32, %arg2: i32) -> (i32, i32) {
    %c0_i32 = arith.constant 0 : i32
    return %arg0, %arg1 : i32, i32
  }
}

module attributes {stable_mosaic.version = 11 : i64} {
  func.func @_fused_res_kernel(%arg0: i32, %arg1: i32, %arg2: i32, %arg3: memref<32x144xbf16, #tpu.memory_space<vmem>>, %arg4: memref<144x128xbf16, #tpu.memory_space<vmem>>, %arg5: memref<1x128xf32, #tpu.memory_space<vmem>>, %arg6: memref<32x128xbf16, #tpu.memory_space<vmem>>, %arg7: memref<32x128xbf16, #tpu.memory_space<vmem>>, %arg8: memref<32x128xf32, #tpu.memory_space<vmem>>) attributes {dimension_semantics = [#tpu.dimension_semantics<parallel>, #tpu.dimension_semantics<parallel>, #tpu.dimension_semantics<arbitrary>], iteration_bounds = array<i64: 1, 1, 1>, scalar_prefetch = 0 : i64, scratch_operands = 1 : i64, tpu.core_type = #tpu.core_type<tc>, window_params = [{transform_indices = @transform_0, window_bounds = array<i64: 32, 144>}, {transform_indices = @transform_1, window_bounds = array<i64: 144, 128>}, {transform_indices = @transform_2, window_bounds = array<i64: 1, 128>}, {transform_indices = @transform_3, window_bounds = array<i64: 32, 128>}, {transform_indices = @transform_4, window_bounds = array<i64: 32, 128>}]} {
    %c0_i32 = arith.constant 0 : i32
    %0 = arith.cmpi eq, %arg2, %c0_i32 : i32
    %1 = arith.extui %0 : i1 to i32
    %c0_i32_0 = arith.constant 0 : i32
    %2 = arith.cmpi ne, %1, %c0_i32_0 : i32
    scf.if %2 {
      %cst_10 = arith.constant 0.000000e+00 : f32
      %12 = vector.broadcast %cst_10 : f32 to vector<32x128xf32>
      %c0_11 = arith.constant 0 : index
      %c0_12 = arith.constant 0 : index
      %13 = vector.load %arg8[%c0_11, %c0_12] : memref<32x128xf32, #tpu.memory_space<vmem>>, vector<32x128xf32>
      tpu.vector_store %arg8[%c0_11, %c0_12], %12 {strides = array<i32>} : memref<32x128xf32, #tpu.memory_space<vmem>>, vector<32x128xf32>,
    } else {
    }
    %c0 = arith.constant 0 : index
    %c0_1 = arith.constant 0 : index
    %3 = vector.load %arg8[%c0, %c0_1] : memref<32x128xf32, #tpu.memory_space<vmem>>, vector<32x128xf32>
    %c0_2 = arith.constant 0 : index
    %c0_3 = arith.constant 0 : index
    %4 = vector.load %arg3[%c0_2, %c0_3] : memref<32x144xbf16, #tpu.memory_space<vmem>>, vector<32x144xbf16>
    %c0_4 = arith.constant 0 : index
    %c0_5 = arith.constant 0 : index
    %5 = vector.load %arg4[%c0_4, %c0_5] : memref<144x128xbf16, #tpu.memory_space<vmem>>, vector<144x128xbf16>
    %cst = arith.constant dense<0.000000e+00> : vector<32x128xf32>
    %6 = tpu.matmul %4, %5, %cst {dimension_numbers = #tpu.dot_dimension_numbers<[1], [0], [0], [1], [0, 0, 1, 1], [], []>} : vector<32x144xbf16>, vector<144x128xbf16>, vector<32x128xf32> -> vector<32x128xf32>
    %7 = arith.addf %3, %6 : vector<32x128xf32>
    %c0_6 = arith.constant 0 : index
    %c0_7 = arith.constant 0 : index
    %8 = vector.load %arg8[%c0_6, %c0_7] : memref<32x128xf32, #tpu.memory_space<vmem>>, vector<32x128xf32>
    tpu.vector_store %arg8[%c0_6, %c0_7], %7 {strides = array<i32>} : memref<32x128xf32, #tpu.memory_space<vmem>>, vector<32x128xf32>,
    %c0_i32_8 = arith.constant 0 : i32
    %9 = arith.cmpi eq, %arg2, %c0_i32_8 : i32
    %10 = arith.extui %9 : i1 to i32
    %c0_i32_9 = arith.constant 0 : i32
    %11 = arith.cmpi ne, %10, %c0_i32_9 : i32
    scf.if %11 {
      %c0_10 = arith.constant 0 : index
      %c0_11 = arith.constant 0 : index
      %12 = vector.load %arg8[%c0_10, %c0_11] : memref<32x128xf32, #tpu.memory_space<vmem>>, vector<32x128xf32>
      %c0_12 = arith.constant 0 : index
      %c0_13 = arith.constant 0 : index
      %13 = vector.load %arg5[%c0_12, %c0_13] : memref<1x128xf32, #tpu.memory_space<vmem>>, vector<1x128xf32>
      %14 = vector.broadcast %13 : vector<1x128xf32> to vector<32x128xf32>
      %15 = arith.addf %12, %14 : vector<32x128xf32>
      %cst_14 = arith.constant 0.000000e+00 : f32
      %16 = vector.broadcast %cst_14 : f32 to vector<32x128xf32>
      %17 = arith.cmpf ogt, %15, %16 : vector<32x128xf32>
      %cst_15 = arith.constant 1.000000e-01 : f32
      %18 = vector.broadcast %cst_15 : f32 to vector<32x128xf32>
      %19 = arith.mulf %18, %15 : vector<32x128xf32>
      %20 = arith.select %17, %15, %19 : vector<32x128xi1>, vector<32x128xf32>
      %c0_16 = arith.constant 0 : index
      %c0_17 = arith.constant 0 : index
      %21 = vector.load %arg6[%c0_16, %c0_17] : memref<32x128xbf16, #tpu.memory_space<vmem>>, vector<32x128xbf16>
      %22 = arith.extf %21 : vector<32x128xbf16> to vector<32x128xf32>
      %23 = arith.addf %20, %22 : vector<32x128xf32>
      %24 = arith.truncf %23 : vector<32x128xf32> to vector<32x128xbf16>
      %c0_18 = arith.constant 0 : index
      %c0_19 = arith.constant 0 : index
      %25 = vector.load %arg7[%c0_18, %c0_19] : memref<32x128xbf16, #tpu.memory_space<vmem>>, vector<32x128xbf16>
      tpu.vector_store %arg7[%c0_18, %c0_19], %24 {strides = array<i32>} : memref<32x128xbf16, #tpu.memory_space<vmem>>, vector<32x128xbf16>,
    } else {
    }
    return
  }
  func.func @transform_0(%arg0: i32, %arg1: i32, %arg2: i32) -> (i32, i32) {
    %c0_i32 = arith.constant 0 : i32
    return %arg0, %arg2 : i32, i32
  }
  func.func @transform_1(%arg0: i32, %arg1: i32, %arg2: i32) -> (i32, i32) {
    %c0_i32 = arith.constant 0 : i32
    return %arg2, %arg1 : i32, i32
  }
  func.func @transform_2(%arg0: i32, %arg1: i32, %arg2: i32) -> (i32, i32) {
    %c0_i32 = arith.constant 0 : i32
    %c0_i32_0 = arith.constant 0 : i32
    return %c0_i32, %arg1 : i32, i32
  }
  func.func @transform_3(%arg0: i32, %arg1: i32, %arg2: i32) -> (i32, i32) {
    %c0_i32 = arith.constant 0 : i32
    return %arg0, %arg1 : i32, i32
  }
  func.func @transform_4(%arg0: i32, %arg1: i32, %arg2: i32) -> (i32, i32) {
    %c0_i32 = arith.constant 0 : i32
    return %arg0, %arg1 : i32, i32
  }
}

module attributes {stable_mosaic.version = 11 : i64} {
  func.func @_fused_kernel(%arg0: i32, %arg1: i32, %arg2: i32, %arg3: memref<8x288xbf16, #tpu.memory_space<vmem>>, %arg4: memref<288x128xbf16, #tpu.memory_space<vmem>>, %arg5: memref<1x128xf32, #tpu.memory_space<vmem>>, %arg6: memref<8x128xbf16, #tpu.memory_space<vmem>>, %arg7: memref<8x128xf32, #tpu.memory_space<vmem>>) attributes {dimension_semantics = [#tpu.dimension_semantics<parallel>, #tpu.dimension_semantics<parallel>, #tpu.dimension_semantics<arbitrary>], iteration_bounds = array<i64: 1, 1, 1>, scalar_prefetch = 0 : i64, scratch_operands = 1 : i64, tpu.core_type = #tpu.core_type<tc>, window_params = [{transform_indices = @transform_0, window_bounds = array<i64: 8, 288>}, {transform_indices = @transform_1, window_bounds = array<i64: 288, 128>}, {transform_indices = @transform_2, window_bounds = array<i64: 1, 128>}, {transform_indices = @transform_3, window_bounds = array<i64: 8, 128>}]} {
    %c0_i32 = arith.constant 0 : i32
    %0 = arith.cmpi eq, %arg2, %c0_i32 : i32
    %1 = arith.extui %0 : i1 to i32
    %c0_i32_0 = arith.constant 0 : i32
    %2 = arith.cmpi ne, %1, %c0_i32_0 : i32
    scf.if %2 {
      %cst_10 = arith.constant 0.000000e+00 : f32
      %12 = vector.broadcast %cst_10 : f32 to vector<8x128xf32>
      %c0_11 = arith.constant 0 : index
      %c0_12 = arith.constant 0 : index
      %13 = vector.load %arg7[%c0_11, %c0_12] : memref<8x128xf32, #tpu.memory_space<vmem>>, vector<8x128xf32>
      tpu.vector_store %arg7[%c0_11, %c0_12], %12 {strides = array<i32>} : memref<8x128xf32, #tpu.memory_space<vmem>>, vector<8x128xf32>,
    } else {
    }
    %c0 = arith.constant 0 : index
    %c0_1 = arith.constant 0 : index
    %3 = vector.load %arg7[%c0, %c0_1] : memref<8x128xf32, #tpu.memory_space<vmem>>, vector<8x128xf32>
    %c0_2 = arith.constant 0 : index
    %c0_3 = arith.constant 0 : index
    %4 = vector.load %arg3[%c0_2, %c0_3] : memref<8x288xbf16, #tpu.memory_space<vmem>>, vector<8x288xbf16>
    %c0_4 = arith.constant 0 : index
    %c0_5 = arith.constant 0 : index
    %5 = vector.load %arg4[%c0_4, %c0_5] : memref<288x128xbf16, #tpu.memory_space<vmem>>, vector<288x128xbf16>
    %cst = arith.constant dense<0.000000e+00> : vector<8x128xf32>
    %6 = tpu.matmul %4, %5, %cst {dimension_numbers = #tpu.dot_dimension_numbers<[1], [0], [0], [1], [0, 0, 1, 1], [], []>} : vector<8x288xbf16>, vector<288x128xbf16>, vector<8x128xf32> -> vector<8x128xf32>
    %7 = arith.addf %3, %6 : vector<8x128xf32>
    %c0_6 = arith.constant 0 : index
    %c0_7 = arith.constant 0 : index
    %8 = vector.load %arg7[%c0_6, %c0_7] : memref<8x128xf32, #tpu.memory_space<vmem>>, vector<8x128xf32>
    tpu.vector_store %arg7[%c0_6, %c0_7], %7 {strides = array<i32>} : memref<8x128xf32, #tpu.memory_space<vmem>>, vector<8x128xf32>,
    %c0_i32_8 = arith.constant 0 : i32
    %9 = arith.cmpi eq, %arg2, %c0_i32_8 : i32
    %10 = arith.extui %9 : i1 to i32
    %c0_i32_9 = arith.constant 0 : i32
    %11 = arith.cmpi ne, %10, %c0_i32_9 : i32
    scf.if %11 {
      %c0_10 = arith.constant 0 : index
      %c0_11 = arith.constant 0 : index
      %12 = vector.load %arg7[%c0_10, %c0_11] : memref<8x128xf32, #tpu.memory_space<vmem>>, vector<8x128xf32>
      %c0_12 = arith.constant 0 : index
      %c0_13 = arith.constant 0 : index
      %13 = vector.load %arg5[%c0_12, %c0_13] : memref<1x128xf32, #tpu.memory_space<vmem>>, vector<1x128xf32>
      %14 = vector.broadcast %13 : vector<1x128xf32> to vector<8x128xf32>
      %15 = arith.addf %12, %14 : vector<8x128xf32>
      %cst_14 = arith.constant 0.000000e+00 : f32
      %16 = vector.broadcast %cst_14 : f32 to vector<8x128xf32>
      %17 = arith.cmpf ogt, %15, %16 : vector<8x128xf32>
      %cst_15 = arith.constant 1.000000e-01 : f32
      %18 = vector.broadcast %cst_15 : f32 to vector<8x128xf32>
      %19 = arith.mulf %18, %15 : vector<8x128xf32>
      %20 = arith.select %17, %15, %19 : vector<8x128xi1>, vector<8x128xf32>
      %21 = arith.truncf %20 : vector<8x128xf32> to vector<8x128xbf16>
      %c0_16 = arith.constant 0 : index
      %c0_17 = arith.constant 0 : index
      %22 = vector.load %arg6[%c0_16, %c0_17] : memref<8x128xbf16, #tpu.memory_space<vmem>>, vector<8x128xbf16>
      tpu.vector_store %arg6[%c0_16, %c0_17], %21 {strides = array<i32>} : memref<8x128xbf16, #tpu.memory_space<vmem>>, vector<8x128xbf16>,
    } else {
    }
    return
  }
  func.func @transform_0(%arg0: i32, %arg1: i32, %arg2: i32) -> (i32, i32) {
    %c0_i32 = arith.constant 0 : i32
    return %arg0, %arg2 : i32, i32
  }
  func.func @transform_1(%arg0: i32, %arg1: i32, %arg2: i32) -> (i32, i32) {
    %c0_i32 = arith.constant 0 : i32
    return %arg2, %arg1 : i32, i32
  }
  func.func @transform_2(%arg0: i32, %arg1: i32, %arg2: i32) -> (i32, i32) {
    %c0_i32 = arith.constant 0 : i32
    %c0_i32_0 = arith.constant 0 : i32
    return %c0_i32, %arg1 : i32, i32
  }
  func.func @transform_3(%arg0: i32, %arg1: i32, %arg2: i32) -> (i32, i32) {
    %c0_i32 = arith.constant 0 : i32
    return %arg0, %arg1 : i32, i32
  }
}

module attributes {stable_mosaic.version = 11 : i64} {
  func.func @_fused_kernel(%arg0: i32, %arg1: i32, %arg2: i32, %arg3: memref<8x64xbf16, #tpu.memory_space<vmem>>, %arg4: memref<64x128xbf16, #tpu.memory_space<vmem>>, %arg5: memref<1x128xf32, #tpu.memory_space<vmem>>, %arg6: memref<8x128xbf16, #tpu.memory_space<vmem>>, %arg7: memref<8x128xf32, #tpu.memory_space<vmem>>) attributes {dimension_semantics = [#tpu.dimension_semantics<parallel>, #tpu.dimension_semantics<parallel>, #tpu.dimension_semantics<arbitrary>], iteration_bounds = array<i64: 1, 1, 1>, scalar_prefetch = 0 : i64, scratch_operands = 1 : i64, tpu.core_type = #tpu.core_type<tc>, window_params = [{transform_indices = @transform_0, window_bounds = array<i64: 8, 64>}, {transform_indices = @transform_1, window_bounds = array<i64: 64, 128>}, {transform_indices = @transform_2, window_bounds = array<i64: 1, 128>}, {transform_indices = @transform_3, window_bounds = array<i64: 8, 128>}]} {
    %c0_i32 = arith.constant 0 : i32
    %0 = arith.cmpi eq, %arg2, %c0_i32 : i32
    %1 = arith.extui %0 : i1 to i32
    %c0_i32_0 = arith.constant 0 : i32
    %2 = arith.cmpi ne, %1, %c0_i32_0 : i32
    scf.if %2 {
      %cst_10 = arith.constant 0.000000e+00 : f32
      %12 = vector.broadcast %cst_10 : f32 to vector<8x128xf32>
      %c0_11 = arith.constant 0 : index
      %c0_12 = arith.constant 0 : index
      %13 = vector.load %arg7[%c0_11, %c0_12] : memref<8x128xf32, #tpu.memory_space<vmem>>, vector<8x128xf32>
      tpu.vector_store %arg7[%c0_11, %c0_12], %12 {strides = array<i32>} : memref<8x128xf32, #tpu.memory_space<vmem>>, vector<8x128xf32>,
    } else {
    }
    %c0 = arith.constant 0 : index
    %c0_1 = arith.constant 0 : index
    %3 = vector.load %arg7[%c0, %c0_1] : memref<8x128xf32, #tpu.memory_space<vmem>>, vector<8x128xf32>
    %c0_2 = arith.constant 0 : index
    %c0_3 = arith.constant 0 : index
    %4 = vector.load %arg3[%c0_2, %c0_3] : memref<8x64xbf16, #tpu.memory_space<vmem>>, vector<8x64xbf16>
    %c0_4 = arith.constant 0 : index
    %c0_5 = arith.constant 0 : index
    %5 = vector.load %arg4[%c0_4, %c0_5] : memref<64x128xbf16, #tpu.memory_space<vmem>>, vector<64x128xbf16>
    %cst = arith.constant dense<0.000000e+00> : vector<8x128xf32>
    %6 = tpu.matmul %4, %5, %cst {dimension_numbers = #tpu.dot_dimension_numbers<[1], [0], [0], [1], [0, 0, 1, 1], [], []>} : vector<8x64xbf16>, vector<64x128xbf16>, vector<8x128xf32> -> vector<8x128xf32>
    %7 = arith.addf %3, %6 : vector<8x128xf32>
    %c0_6 = arith.constant 0 : index
    %c0_7 = arith.constant 0 : index
    %8 = vector.load %arg7[%c0_6, %c0_7] : memref<8x128xf32, #tpu.memory_space<vmem>>, vector<8x128xf32>
    tpu.vector_store %arg7[%c0_6, %c0_7], %7 {strides = array<i32>} : memref<8x128xf32, #tpu.memory_space<vmem>>, vector<8x128xf32>,
    %c0_i32_8 = arith.constant 0 : i32
    %9 = arith.cmpi eq, %arg2, %c0_i32_8 : i32
    %10 = arith.extui %9 : i1 to i32
    %c0_i32_9 = arith.constant 0 : i32
    %11 = arith.cmpi ne, %10, %c0_i32_9 : i32
    scf.if %11 {
      %c0_10 = arith.constant 0 : index
      %c0_11 = arith.constant 0 : index
      %12 = vector.load %arg7[%c0_10, %c0_11] : memref<8x128xf32, #tpu.memory_space<vmem>>, vector<8x128xf32>
      %c0_12 = arith.constant 0 : index
      %c0_13 = arith.constant 0 : index
      %13 = vector.load %arg5[%c0_12, %c0_13] : memref<1x128xf32, #tpu.memory_space<vmem>>, vector<1x128xf32>
      %14 = vector.broadcast %13 : vector<1x128xf32> to vector<8x128xf32>
      %15 = arith.addf %12, %14 : vector<8x128xf32>
      %cst_14 = arith.constant 0.000000e+00 : f32
      %16 = vector.broadcast %cst_14 : f32 to vector<8x128xf32>
      %17 = arith.cmpf ogt, %15, %16 : vector<8x128xf32>
      %cst_15 = arith.constant 1.000000e-01 : f32
      %18 = vector.broadcast %cst_15 : f32 to vector<8x128xf32>
      %19 = arith.mulf %18, %15 : vector<8x128xf32>
      %20 = arith.select %17, %15, %19 : vector<8x128xi1>, vector<8x128xf32>
      %21 = arith.truncf %20 : vector<8x128xf32> to vector<8x128xbf16>
      %c0_16 = arith.constant 0 : index
      %c0_17 = arith.constant 0 : index
      %22 = vector.load %arg6[%c0_16, %c0_17] : memref<8x128xbf16, #tpu.memory_space<vmem>>, vector<8x128xbf16>
      tpu.vector_store %arg6[%c0_16, %c0_17], %21 {strides = array<i32>} : memref<8x128xbf16, #tpu.memory_space<vmem>>, vector<8x128xbf16>,
    } else {
    }
    return
  }
  func.func @transform_0(%arg0: i32, %arg1: i32, %arg2: i32) -> (i32, i32) {
    %c0_i32 = arith.constant 0 : i32
    return %arg0, %arg2 : i32, i32
  }
  func.func @transform_1(%arg0: i32, %arg1: i32, %arg2: i32) -> (i32, i32) {
    %c0_i32 = arith.constant 0 : i32
    return %arg2, %arg1 : i32, i32
  }
  func.func @transform_2(%arg0: i32, %arg1: i32, %arg2: i32) -> (i32, i32) {
    %c0_i32 = arith.constant 0 : i32
    %c0_i32_0 = arith.constant 0 : i32
    return %c0_i32, %arg1 : i32, i32
  }
  func.func @transform_3(%arg0: i32, %arg1: i32, %arg2: i32) -> (i32, i32) {
    %c0_i32 = arith.constant 0 : i32
    return %arg0, %arg1 : i32, i32
  }
}

module attributes {stable_mosaic.version = 11 : i64} {
  func.func @_fused_res_kernel(%arg0: i32, %arg1: i32, %arg2: i32, %arg3: memref<8x288xbf16, #tpu.memory_space<vmem>>, %arg4: memref<288x128xbf16, #tpu.memory_space<vmem>>, %arg5: memref<1x128xf32, #tpu.memory_space<vmem>>, %arg6: memref<8x128xbf16, #tpu.memory_space<vmem>>, %arg7: memref<8x128xbf16, #tpu.memory_space<vmem>>, %arg8: memref<8x128xf32, #tpu.memory_space<vmem>>) attributes {dimension_semantics = [#tpu.dimension_semantics<parallel>, #tpu.dimension_semantics<parallel>, #tpu.dimension_semantics<arbitrary>], iteration_bounds = array<i64: 1, 1, 1>, scalar_prefetch = 0 : i64, scratch_operands = 1 : i64, tpu.core_type = #tpu.core_type<tc>, window_params = [{transform_indices = @transform_0, window_bounds = array<i64: 8, 288>}, {transform_indices = @transform_1, window_bounds = array<i64: 288, 128>}, {transform_indices = @transform_2, window_bounds = array<i64: 1, 128>}, {transform_indices = @transform_3, window_bounds = array<i64: 8, 128>}, {transform_indices = @transform_4, window_bounds = array<i64: 8, 128>}]} {
    %c0_i32 = arith.constant 0 : i32
    %0 = arith.cmpi eq, %arg2, %c0_i32 : i32
    %1 = arith.extui %0 : i1 to i32
    %c0_i32_0 = arith.constant 0 : i32
    %2 = arith.cmpi ne, %1, %c0_i32_0 : i32
    scf.if %2 {
      %cst_10 = arith.constant 0.000000e+00 : f32
      %12 = vector.broadcast %cst_10 : f32 to vector<8x128xf32>
      %c0_11 = arith.constant 0 : index
      %c0_12 = arith.constant 0 : index
      %13 = vector.load %arg8[%c0_11, %c0_12] : memref<8x128xf32, #tpu.memory_space<vmem>>, vector<8x128xf32>
      tpu.vector_store %arg8[%c0_11, %c0_12], %12 {strides = array<i32>} : memref<8x128xf32, #tpu.memory_space<vmem>>, vector<8x128xf32>,
    } else {
    }
    %c0 = arith.constant 0 : index
    %c0_1 = arith.constant 0 : index
    %3 = vector.load %arg8[%c0, %c0_1] : memref<8x128xf32, #tpu.memory_space<vmem>>, vector<8x128xf32>
    %c0_2 = arith.constant 0 : index
    %c0_3 = arith.constant 0 : index
    %4 = vector.load %arg3[%c0_2, %c0_3] : memref<8x288xbf16, #tpu.memory_space<vmem>>, vector<8x288xbf16>
    %c0_4 = arith.constant 0 : index
    %c0_5 = arith.constant 0 : index
    %5 = vector.load %arg4[%c0_4, %c0_5] : memref<288x128xbf16, #tpu.memory_space<vmem>>, vector<288x128xbf16>
    %cst = arith.constant dense<0.000000e+00> : vector<8x128xf32>
    %6 = tpu.matmul %4, %5, %cst {dimension_numbers = #tpu.dot_dimension_numbers<[1], [0], [0], [1], [0, 0, 1, 1], [], []>} : vector<8x288xbf16>, vector<288x128xbf16>, vector<8x128xf32> -> vector<8x128xf32>
    %7 = arith.addf %3, %6 : vector<8x128xf32>
    %c0_6 = arith.constant 0 : index
    %c0_7 = arith.constant 0 : index
    %8 = vector.load %arg8[%c0_6, %c0_7] : memref<8x128xf32, #tpu.memory_space<vmem>>, vector<8x128xf32>
    tpu.vector_store %arg8[%c0_6, %c0_7], %7 {strides = array<i32>} : memref<8x128xf32, #tpu.memory_space<vmem>>, vector<8x128xf32>,
    %c0_i32_8 = arith.constant 0 : i32
    %9 = arith.cmpi eq, %arg2, %c0_i32_8 : i32
    %10 = arith.extui %9 : i1 to i32
    %c0_i32_9 = arith.constant 0 : i32
    %11 = arith.cmpi ne, %10, %c0_i32_9 : i32
    scf.if %11 {
      %c0_10 = arith.constant 0 : index
      %c0_11 = arith.constant 0 : index
      %12 = vector.load %arg8[%c0_10, %c0_11] : memref<8x128xf32, #tpu.memory_space<vmem>>, vector<8x128xf32>
      %c0_12 = arith.constant 0 : index
      %c0_13 = arith.constant 0 : index
      %13 = vector.load %arg5[%c0_12, %c0_13] : memref<1x128xf32, #tpu.memory_space<vmem>>, vector<1x128xf32>
      %14 = vector.broadcast %13 : vector<1x128xf32> to vector<8x128xf32>
      %15 = arith.addf %12, %14 : vector<8x128xf32>
      %cst_14 = arith.constant 0.000000e+00 : f32
      %16 = vector.broadcast %cst_14 : f32 to vector<8x128xf32>
      %17 = arith.cmpf ogt, %15, %16 : vector<8x128xf32>
      %cst_15 = arith.constant 1.000000e-01 : f32
      %18 = vector.broadcast %cst_15 : f32 to vector<8x128xf32>
      %19 = arith.mulf %18, %15 : vector<8x128xf32>
      %20 = arith.select %17, %15, %19 : vector<8x128xi1>, vector<8x128xf32>
      %c0_16 = arith.constant 0 : index
      %c0_17 = arith.constant 0 : index
      %21 = vector.load %arg6[%c0_16, %c0_17] : memref<8x128xbf16, #tpu.memory_space<vmem>>, vector<8x128xbf16>
      %22 = arith.extf %21 : vector<8x128xbf16> to vector<8x128xf32>
      %23 = arith.addf %20, %22 : vector<8x128xf32>
      %24 = arith.truncf %23 : vector<8x128xf32> to vector<8x128xbf16>
      %c0_18 = arith.constant 0 : index
      %c0_19 = arith.constant 0 : index
      %25 = vector.load %arg7[%c0_18, %c0_19] : memref<8x128xbf16, #tpu.memory_space<vmem>>, vector<8x128xbf16>
      tpu.vector_store %arg7[%c0_18, %c0_19], %24 {strides = array<i32>} : memref<8x128xbf16, #tpu.memory_space<vmem>>, vector<8x128xbf16>,
    } else {
    }
    return
  }
  func.func @transform_0(%arg0: i32, %arg1: i32, %arg2: i32) -> (i32, i32) {
    %c0_i32 = arith.constant 0 : i32
    return %arg0, %arg2 : i32, i32
  }
  func.func @transform_1(%arg0: i32, %arg1: i32, %arg2: i32) -> (i32, i32) {
    %c0_i32 = arith.constant 0 : i32
    return %arg2, %arg1 : i32, i32
  }
  func.func @transform_2(%arg0: i32, %arg1: i32, %arg2: i32) -> (i32, i32) {
    %c0_i32 = arith.constant 0 : i32
    %c0_i32_0 = arith.constant 0 : i32
    return %c0_i32, %arg1 : i32, i32
  }
  func.func @transform_3(%arg0: i32, %arg1: i32, %arg2: i32) -> (i32, i32) {
    %c0_i32 = arith.constant 0 : i32
    return %arg0, %arg1 : i32, i32
  }
  func.func @transform_4(%arg0: i32, %arg1: i32, %arg2: i32) -> (i32, i32) {
    %c0_i32 = arith.constant 0 : i32
    return %arg0, %arg1 : i32, i32
  }
}

module attributes {stable_mosaic.version = 11 : i64} {
  func.func @_fused_kernel(%arg0: i32, %arg1: i32, %arg2: i32, %arg3: memref<8x576xbf16, #tpu.memory_space<vmem>>, %arg4: memref<576x128xbf16, #tpu.memory_space<vmem>>, %arg5: memref<1x128xf32, #tpu.memory_space<vmem>>, %arg6: memref<8x128xbf16, #tpu.memory_space<vmem>>, %arg7: memref<8x128xf32, #tpu.memory_space<vmem>>) attributes {dimension_semantics = [#tpu.dimension_semantics<parallel>, #tpu.dimension_semantics<parallel>, #tpu.dimension_semantics<arbitrary>], iteration_bounds = array<i64: 1, 1, 1>, scalar_prefetch = 0 : i64, scratch_operands = 1 : i64, tpu.core_type = #tpu.core_type<tc>, window_params = [{transform_indices = @transform_0, window_bounds = array<i64: 8, 576>}, {transform_indices = @transform_1, window_bounds = array<i64: 576, 128>}, {transform_indices = @transform_2, window_bounds = array<i64: 1, 128>}, {transform_indices = @transform_3, window_bounds = array<i64: 8, 128>}]} {
    %c0_i32 = arith.constant 0 : i32
    %0 = arith.cmpi eq, %arg2, %c0_i32 : i32
    %1 = arith.extui %0 : i1 to i32
    %c0_i32_0 = arith.constant 0 : i32
    %2 = arith.cmpi ne, %1, %c0_i32_0 : i32
    scf.if %2 {
      %cst_10 = arith.constant 0.000000e+00 : f32
      %12 = vector.broadcast %cst_10 : f32 to vector<8x128xf32>
      %c0_11 = arith.constant 0 : index
      %c0_12 = arith.constant 0 : index
      %13 = vector.load %arg7[%c0_11, %c0_12] : memref<8x128xf32, #tpu.memory_space<vmem>>, vector<8x128xf32>
      tpu.vector_store %arg7[%c0_11, %c0_12], %12 {strides = array<i32>} : memref<8x128xf32, #tpu.memory_space<vmem>>, vector<8x128xf32>,
    } else {
    }
    %c0 = arith.constant 0 : index
    %c0_1 = arith.constant 0 : index
    %3 = vector.load %arg7[%c0, %c0_1] : memref<8x128xf32, #tpu.memory_space<vmem>>, vector<8x128xf32>
    %c0_2 = arith.constant 0 : index
    %c0_3 = arith.constant 0 : index
    %4 = vector.load %arg3[%c0_2, %c0_3] : memref<8x576xbf16, #tpu.memory_space<vmem>>, vector<8x576xbf16>
    %c0_4 = arith.constant 0 : index
    %c0_5 = arith.constant 0 : index
    %5 = vector.load %arg4[%c0_4, %c0_5] : memref<576x128xbf16, #tpu.memory_space<vmem>>, vector<576x128xbf16>
    %cst = arith.constant dense<0.000000e+00> : vector<8x128xf32>
    %6 = tpu.matmul %4, %5, %cst {dimension_numbers = #tpu.dot_dimension_numbers<[1], [0], [0], [1], [0, 0, 1, 1], [], []>} : vector<8x576xbf16>, vector<576x128xbf16>, vector<8x128xf32> -> vector<8x128xf32>
    %7 = arith.addf %3, %6 : vector<8x128xf32>
    %c0_6 = arith.constant 0 : index
    %c0_7 = arith.constant 0 : index
    %8 = vector.load %arg7[%c0_6, %c0_7] : memref<8x128xf32, #tpu.memory_space<vmem>>, vector<8x128xf32>
    tpu.vector_store %arg7[%c0_6, %c0_7], %7 {strides = array<i32>} : memref<8x128xf32, #tpu.memory_space<vmem>>, vector<8x128xf32>,
    %c0_i32_8 = arith.constant 0 : i32
    %9 = arith.cmpi eq, %arg2, %c0_i32_8 : i32
    %10 = arith.extui %9 : i1 to i32
    %c0_i32_9 = arith.constant 0 : i32
    %11 = arith.cmpi ne, %10, %c0_i32_9 : i32
    scf.if %11 {
      %c0_10 = arith.constant 0 : index
      %c0_11 = arith.constant 0 : index
      %12 = vector.load %arg7[%c0_10, %c0_11] : memref<8x128xf32, #tpu.memory_space<vmem>>, vector<8x128xf32>
      %c0_12 = arith.constant 0 : index
      %c0_13 = arith.constant 0 : index
      %13 = vector.load %arg5[%c0_12, %c0_13] : memref<1x128xf32, #tpu.memory_space<vmem>>, vector<1x128xf32>
      %14 = vector.broadcast %13 : vector<1x128xf32> to vector<8x128xf32>
      %15 = arith.addf %12, %14 : vector<8x128xf32>
      %cst_14 = arith.constant 0.000000e+00 : f32
      %16 = vector.broadcast %cst_14 : f32 to vector<8x128xf32>
      %17 = arith.cmpf ogt, %15, %16 : vector<8x128xf32>
      %cst_15 = arith.constant 1.000000e-01 : f32
      %18 = vector.broadcast %cst_15 : f32 to vector<8x128xf32>
      %19 = arith.mulf %18, %15 : vector<8x128xf32>
      %20 = arith.select %17, %15, %19 : vector<8x128xi1>, vector<8x128xf32>
      %21 = arith.truncf %20 : vector<8x128xf32> to vector<8x128xbf16>
      %c0_16 = arith.constant 0 : index
      %c0_17 = arith.constant 0 : index
      %22 = vector.load %arg6[%c0_16, %c0_17] : memref<8x128xbf16, #tpu.memory_space<vmem>>, vector<8x128xbf16>
      tpu.vector_store %arg6[%c0_16, %c0_17], %21 {strides = array<i32>} : memref<8x128xbf16, #tpu.memory_space<vmem>>, vector<8x128xbf16>,
    } else {
    }
    return
  }
  func.func @transform_0(%arg0: i32, %arg1: i32, %arg2: i32) -> (i32, i32) {
    %c0_i32 = arith.constant 0 : i32
    return %arg0, %arg2 : i32, i32
  }
  func.func @transform_1(%arg0: i32, %arg1: i32, %arg2: i32) -> (i32, i32) {
    %c0_i32 = arith.constant 0 : i32
    return %arg2, %arg1 : i32, i32
  }
  func.func @transform_2(%arg0: i32, %arg1: i32, %arg2: i32) -> (i32, i32) {
    %c0_i32 = arith.constant 0 : i32
    %c0_i32_0 = arith.constant 0 : i32
    return %c0_i32, %arg1 : i32, i32
  }
  func.func @transform_3(%arg0: i32, %arg1: i32, %arg2: i32) -> (i32, i32) {
    %c0_i32 = arith.constant 0 : i32
    return %arg0, %arg1 : i32, i32
  }
}

module attributes {stable_mosaic.version = 11 : i64} {
  func.func @_fused_kernel(%arg0: i32, %arg1: i32, %arg2: i32, %arg3: memref<8x128xbf16, #tpu.memory_space<vmem>>, %arg4: memref<128x128xbf16, #tpu.memory_space<vmem>>, %arg5: memref<1x128xf32, #tpu.memory_space<vmem>>, %arg6: memref<8x128xbf16, #tpu.memory_space<vmem>>, %arg7: memref<8x128xf32, #tpu.memory_space<vmem>>) attributes {dimension_semantics = [#tpu.dimension_semantics<parallel>, #tpu.dimension_semantics<parallel>, #tpu.dimension_semantics<arbitrary>], iteration_bounds = array<i64: 1, 1, 1>, scalar_prefetch = 0 : i64, scratch_operands = 1 : i64, tpu.core_type = #tpu.core_type<tc>, window_params = [{transform_indices = @transform_0, window_bounds = array<i64: 8, 128>}, {transform_indices = @transform_1, window_bounds = array<i64: 128, 128>}, {transform_indices = @transform_2, window_bounds = array<i64: 1, 128>}, {transform_indices = @transform_3, window_bounds = array<i64: 8, 128>}]} {
    %c0_i32 = arith.constant 0 : i32
    %0 = arith.cmpi eq, %arg2, %c0_i32 : i32
    %1 = arith.extui %0 : i1 to i32
    %c0_i32_0 = arith.constant 0 : i32
    %2 = arith.cmpi ne, %1, %c0_i32_0 : i32
    scf.if %2 {
      %cst_10 = arith.constant 0.000000e+00 : f32
      %12 = vector.broadcast %cst_10 : f32 to vector<8x128xf32>
      %c0_11 = arith.constant 0 : index
      %c0_12 = arith.constant 0 : index
      %13 = vector.load %arg7[%c0_11, %c0_12] : memref<8x128xf32, #tpu.memory_space<vmem>>, vector<8x128xf32>
      tpu.vector_store %arg7[%c0_11, %c0_12], %12 {strides = array<i32>} : memref<8x128xf32, #tpu.memory_space<vmem>>, vector<8x128xf32>,
    } else {
    }
    %c0 = arith.constant 0 : index
    %c0_1 = arith.constant 0 : index
    %3 = vector.load %arg7[%c0, %c0_1] : memref<8x128xf32, #tpu.memory_space<vmem>>, vector<8x128xf32>
    %c0_2 = arith.constant 0 : index
    %c0_3 = arith.constant 0 : index
    %4 = vector.load %arg3[%c0_2, %c0_3] : memref<8x128xbf16, #tpu.memory_space<vmem>>, vector<8x128xbf16>
    %c0_4 = arith.constant 0 : index
    %c0_5 = arith.constant 0 : index
    %5 = vector.load %arg4[%c0_4, %c0_5] : memref<128x128xbf16, #tpu.memory_space<vmem>>, vector<128x128xbf16>
    %cst = arith.constant dense<0.000000e+00> : vector<8x128xf32>
    %6 = tpu.matmul %4, %5, %cst {dimension_numbers = #tpu.dot_dimension_numbers<[1], [0], [0], [1], [0, 0, 1, 1], [], []>} : vector<8x128xbf16>, vector<128x128xbf16>, vector<8x128xf32> -> vector<8x128xf32>
    %7 = arith.addf %3, %6 : vector<8x128xf32>
    %c0_6 = arith.constant 0 : index
    %c0_7 = arith.constant 0 : index
    %8 = vector.load %arg7[%c0_6, %c0_7] : memref<8x128xf32, #tpu.memory_space<vmem>>, vector<8x128xf32>
    tpu.vector_store %arg7[%c0_6, %c0_7], %7 {strides = array<i32>} : memref<8x128xf32, #tpu.memory_space<vmem>>, vector<8x128xf32>,
    %c0_i32_8 = arith.constant 0 : i32
    %9 = arith.cmpi eq, %arg2, %c0_i32_8 : i32
    %10 = arith.extui %9 : i1 to i32
    %c0_i32_9 = arith.constant 0 : i32
    %11 = arith.cmpi ne, %10, %c0_i32_9 : i32
    scf.if %11 {
      %c0_10 = arith.constant 0 : index
      %c0_11 = arith.constant 0 : index
      %12 = vector.load %arg7[%c0_10, %c0_11] : memref<8x128xf32, #tpu.memory_space<vmem>>, vector<8x128xf32>
      %c0_12 = arith.constant 0 : index
      %c0_13 = arith.constant 0 : index
      %13 = vector.load %arg5[%c0_12, %c0_13] : memref<1x128xf32, #tpu.memory_space<vmem>>, vector<1x128xf32>
      %14 = vector.broadcast %13 : vector<1x128xf32> to vector<8x128xf32>
      %15 = arith.addf %12, %14 : vector<8x128xf32>
      %cst_14 = arith.constant 0.000000e+00 : f32
      %16 = vector.broadcast %cst_14 : f32 to vector<8x128xf32>
      %17 = arith.cmpf ogt, %15, %16 : vector<8x128xf32>
      %cst_15 = arith.constant 1.000000e-01 : f32
      %18 = vector.broadcast %cst_15 : f32 to vector<8x128xf32>
      %19 = arith.mulf %18, %15 : vector<8x128xf32>
      %20 = arith.select %17, %15, %19 : vector<8x128xi1>, vector<8x128xf32>
      %21 = arith.truncf %20 : vector<8x128xf32> to vector<8x128xbf16>
      %c0_16 = arith.constant 0 : index
      %c0_17 = arith.constant 0 : index
      %22 = vector.load %arg6[%c0_16, %c0_17] : memref<8x128xbf16, #tpu.memory_space<vmem>>, vector<8x128xbf16>
      tpu.vector_store %arg6[%c0_16, %c0_17], %21 {strides = array<i32>} : memref<8x128xbf16, #tpu.memory_space<vmem>>, vector<8x128xbf16>,
    } else {
    }
    return
  }
  func.func @transform_0(%arg0: i32, %arg1: i32, %arg2: i32) -> (i32, i32) {
    %c0_i32 = arith.constant 0 : i32
    return %arg0, %arg2 : i32, i32
  }
  func.func @transform_1(%arg0: i32, %arg1: i32, %arg2: i32) -> (i32, i32) {
    %c0_i32 = arith.constant 0 : i32
    return %arg2, %arg1 : i32, i32
  }
  func.func @transform_2(%arg0: i32, %arg1: i32, %arg2: i32) -> (i32, i32) {
    %c0_i32 = arith.constant 0 : i32
    %c0_i32_0 = arith.constant 0 : i32
    return %c0_i32, %arg1 : i32, i32
  }
  func.func @transform_3(%arg0: i32, %arg1: i32, %arg2: i32) -> (i32, i32) {
    %c0_i32 = arith.constant 0 : i32
    return %arg0, %arg1 : i32, i32
  }
}

module attributes {stable_mosaic.version = 11 : i64} {
  func.func @_fused_res_kernel(%arg0: i32, %arg1: i32, %arg2: i32, %arg3: memref<8x576xbf16, #tpu.memory_space<vmem>>, %arg4: memref<576x128xbf16, #tpu.memory_space<vmem>>, %arg5: memref<1x128xf32, #tpu.memory_space<vmem>>, %arg6: memref<8x128xbf16, #tpu.memory_space<vmem>>, %arg7: memref<8x128xbf16, #tpu.memory_space<vmem>>, %arg8: memref<8x128xf32, #tpu.memory_space<vmem>>) attributes {dimension_semantics = [#tpu.dimension_semantics<parallel>, #tpu.dimension_semantics<parallel>, #tpu.dimension_semantics<arbitrary>], iteration_bounds = array<i64: 1, 1, 1>, scalar_prefetch = 0 : i64, scratch_operands = 1 : i64, tpu.core_type = #tpu.core_type<tc>, window_params = [{transform_indices = @transform_0, window_bounds = array<i64: 8, 576>}, {transform_indices = @transform_1, window_bounds = array<i64: 576, 128>}, {transform_indices = @transform_2, window_bounds = array<i64: 1, 128>}, {transform_indices = @transform_3, window_bounds = array<i64: 8, 128>}, {transform_indices = @transform_4, window_bounds = array<i64: 8, 128>}]} {
    %c0_i32 = arith.constant 0 : i32
    %0 = arith.cmpi eq, %arg2, %c0_i32 : i32
    %1 = arith.extui %0 : i1 to i32
    %c0_i32_0 = arith.constant 0 : i32
    %2 = arith.cmpi ne, %1, %c0_i32_0 : i32
    scf.if %2 {
      %cst_10 = arith.constant 0.000000e+00 : f32
      %12 = vector.broadcast %cst_10 : f32 to vector<8x128xf32>
      %c0_11 = arith.constant 0 : index
      %c0_12 = arith.constant 0 : index
      %13 = vector.load %arg8[%c0_11, %c0_12] : memref<8x128xf32, #tpu.memory_space<vmem>>, vector<8x128xf32>
      tpu.vector_store %arg8[%c0_11, %c0_12], %12 {strides = array<i32>} : memref<8x128xf32, #tpu.memory_space<vmem>>, vector<8x128xf32>,
    } else {
    }
    %c0 = arith.constant 0 : index
    %c0_1 = arith.constant 0 : index
    %3 = vector.load %arg8[%c0, %c0_1] : memref<8x128xf32, #tpu.memory_space<vmem>>, vector<8x128xf32>
    %c0_2 = arith.constant 0 : index
    %c0_3 = arith.constant 0 : index
    %4 = vector.load %arg3[%c0_2, %c0_3] : memref<8x576xbf16, #tpu.memory_space<vmem>>, vector<8x576xbf16>
    %c0_4 = arith.constant 0 : index
    %c0_5 = arith.constant 0 : index
    %5 = vector.load %arg4[%c0_4, %c0_5] : memref<576x128xbf16, #tpu.memory_space<vmem>>, vector<576x128xbf16>
    %cst = arith.constant dense<0.000000e+00> : vector<8x128xf32>
    %6 = tpu.matmul %4, %5, %cst {dimension_numbers = #tpu.dot_dimension_numbers<[1], [0], [0], [1], [0, 0, 1, 1], [], []>} : vector<8x576xbf16>, vector<576x128xbf16>, vector<8x128xf32> -> vector<8x128xf32>
    %7 = arith.addf %3, %6 : vector<8x128xf32>
    %c0_6 = arith.constant 0 : index
    %c0_7 = arith.constant 0 : index
    %8 = vector.load %arg8[%c0_6, %c0_7] : memref<8x128xf32, #tpu.memory_space<vmem>>, vector<8x128xf32>
    tpu.vector_store %arg8[%c0_6, %c0_7], %7 {strides = array<i32>} : memref<8x128xf32, #tpu.memory_space<vmem>>, vector<8x128xf32>,
    %c0_i32_8 = arith.constant 0 : i32
    %9 = arith.cmpi eq, %arg2, %c0_i32_8 : i32
    %10 = arith.extui %9 : i1 to i32
    %c0_i32_9 = arith.constant 0 : i32
    %11 = arith.cmpi ne, %10, %c0_i32_9 : i32
    scf.if %11 {
      %c0_10 = arith.constant 0 : index
      %c0_11 = arith.constant 0 : index
      %12 = vector.load %arg8[%c0_10, %c0_11] : memref<8x128xf32, #tpu.memory_space<vmem>>, vector<8x128xf32>
      %c0_12 = arith.constant 0 : index
      %c0_13 = arith.constant 0 : index
      %13 = vector.load %arg5[%c0_12, %c0_13] : memref<1x128xf32, #tpu.memory_space<vmem>>, vector<1x128xf32>
      %14 = vector.broadcast %13 : vector<1x128xf32> to vector<8x128xf32>
      %15 = arith.addf %12, %14 : vector<8x128xf32>
      %cst_14 = arith.constant 0.000000e+00 : f32
      %16 = vector.broadcast %cst_14 : f32 to vector<8x128xf32>
      %17 = arith.cmpf ogt, %15, %16 : vector<8x128xf32>
      %cst_15 = arith.constant 1.000000e-01 : f32
      %18 = vector.broadcast %cst_15 : f32 to vector<8x128xf32>
      %19 = arith.mulf %18, %15 : vector<8x128xf32>
      %20 = arith.select %17, %15, %19 : vector<8x128xi1>, vector<8x128xf32>
      %c0_16 = arith.constant 0 : index
      %c0_17 = arith.constant 0 : index
      %21 = vector.load %arg6[%c0_16, %c0_17] : memref<8x128xbf16, #tpu.memory_space<vmem>>, vector<8x128xbf16>
      %22 = arith.extf %21 : vector<8x128xbf16> to vector<8x128xf32>
      %23 = arith.addf %20, %22 : vector<8x128xf32>
      %24 = arith.truncf %23 : vector<8x128xf32> to vector<8x128xbf16>
      %c0_18 = arith.constant 0 : index
      %c0_19 = arith.constant 0 : index
      %25 = vector.load %arg7[%c0_18, %c0_19] : memref<8x128xbf16, #tpu.memory_space<vmem>>, vector<8x128xbf16>
      tpu.vector_store %arg7[%c0_18, %c0_19], %24 {strides = array<i32>} : memref<8x128xbf16, #tpu.memory_space<vmem>>, vector<8x128xbf16>,
    } else {
    }
    return
  }
  func.func @transform_0(%arg0: i32, %arg1: i32, %arg2: i32) -> (i32, i32) {
    %c0_i32 = arith.constant 0 : i32
    return %arg0, %arg2 : i32, i32
  }
  func.func @transform_1(%arg0: i32, %arg1: i32, %arg2: i32) -> (i32, i32) {
    %c0_i32 = arith.constant 0 : i32
    return %arg2, %arg1 : i32, i32
  }
  func.func @transform_2(%arg0: i32, %arg1: i32, %arg2: i32) -> (i32, i32) {
    %c0_i32 = arith.constant 0 : i32
    %c0_i32_0 = arith.constant 0 : i32
    return %c0_i32, %arg1 : i32, i32
  }
  func.func @transform_3(%arg0: i32, %arg1: i32, %arg2: i32) -> (i32, i32) {
    %c0_i32 = arith.constant 0 : i32
    return %arg0, %arg1 : i32, i32
  }
  func.func @transform_4(%arg0: i32, %arg1: i32, %arg2: i32) -> (i32, i32) {
    %c0_i32 = arith.constant 0 : i32
    return %arg0, %arg1 : i32, i32
  }
}

</mosaic_0001>

<bundles_post_ra>
// kernel: yolov3_forward.62
= control target key start
LH: loop header
LB: loop body
LE: loop exit
PB: predicated region body
PF: predicated region fallthrough
CT: control target
= control target key end

     0   :  { %s2081_s12 = smov 0   ;;  %s2083_s13 = smov 0   ;;  %s2299_s0 = inlined_call_operand.vmem [shape: bf16[2048,27], index: 0, kind: input, shape index: {}]   ;;  %s2300_s1 = inlined_call_operand.vmem [shape: bf16[27,128], index: 1, kind: input, shape index: {}]   ;;  %s2301_s2 = inlined_call_operand.vmem [shape: f32[1,128], index: 2, kind: input, shape index: {}]   ;;  %s2302_s3 = inlined_call_operand.vmem [shape: bf16[2048,128], index: 3, kind: output, shape index: {}]  }
   0x1   :  { %s2085_s14 = smov 0  }
   0x2 LB: > { %s32_s15 = sadd.s32 1, %s2054_s13  ;;  %p1604_p0 = scmp.ge.s32.totalorder %s2058_s14, 1  ;;  %s2058_s14 = sphi %s2085_s14, %s13_s14   ;;  %s2054_s13 = sphi %s2083_s13, %s2304_s13   ;;  %s2050_s12 = sphi %s2081_s12, %s2303_s12  }
   0x3   : > { %p34_p1 = scmp.ge.s32.totalorder %s32_s15, 4  ;;  %p188_p2 = scmp.lt.s32.totalorder %s2058_s14, 5 }
   0x5   : > { %s2306_s15 = smov (%p34_p1, %s32_s15), 0  ;;  %p189_p3 = pnand %p1604_p0, %p188_p2 }
   0x6   : > { %s1605_s20 = sshll.u32 (!%p189_p3), %s2050_s12, 6 }
   0x7   : > { %192 = sbr.rel (%p189_p3) target bundleno = 287 (0x11f), region = 32  ;;  %p230_p4 = scmp.lt.s32.totalorder (!%p189_p3), %s1605_s20, 255 }
   0xc   : > { %v1743_v0 = vld [vmem:[%s2300_s1 + $0x8] sm:$0xf]  ;;  %v1812_v1 = vld [vmem:[%s2300_s1 + $0x8] sm:$0x30]  ;;  %vm728_vm0 = vcmask 1044480   ;;  %vm729_vm1 = vcmask 1045504  }
   0xd   : > { %v1744_v2 = vor.u32 %v1812_v1, %v1743_v0  ;;  %v2060_v3 = vmov 65535   ;;  %s2308_s20 = smov (!%p230_p4, %s1605_s20), 255  ;;  %v1811_v7 = vld [vmem:[%s2300_s1] sm:$0xff]  ;;  %vm631_vm2 = vcmask 220160  }
   0xe   : > { %v730_v4 = vsel %vm728_vm0, 4294967295, %v2060_v3  ;;  %s1606_s23 = sshll.u32 %s2308_s20, 2  ;;  %v2185_v42 = vld [vmem:[%s2301_s2] ss:$0 sm:$0xff] }
   0xf   : > { %v731_v5 = vsel %vm729_vm1, %v730_v4, 0  ;;  %s2116_s26 = scalar_lea.vmem %s2299_s0, %s1606_s23  ;;  %s2198_s4 = scalar_lea.vmem %s2302_s3, %s1606_s23 }
  0x10   : > { %v733_v6 = vand.u32 %v1744_v2, %v731_v5  ;;  %v1779_v8 = vld [vmem:[%s2116_s26] sm:$0xff]  ;;  %v1780_v12 = vld [vmem:[%s2116_s26 + $0x8] sm:$0xff]  ;;  %v1781_v16 = vld [vmem:[%s2116_s26 + $0x10] sm:$0xff] }
  0x11   : > { %v1787_v9 = vld [vmem:[%s2116_s26 + $0x40] sm:$0xff]  ;;  %v1788_v13 = vld [vmem:[%s2116_s26 + $0x48] sm:$0xff]  ;;  %v1789_v17 = vld [vmem:[%s2116_s26 + $0x50] sm:$0xff] }
  0x12   : > { %741 = vmatpush.bf16.msra.mxu0 %v733_v6  ;;  %2004 = vmatpush.bf16.msra.mxu1 %v733_v6  ;;  %v1795_v10 = vld [vmem:[%s2116_s26 + $0x80] sm:$0xff]  ;;  %v1796_v14 = vld [vmem:[%s2116_s26 + $0x88] sm:$0xff]  ;;  %v1797_v18 = vld [vmem:[%s2116_s26 + $0x90] sm:$0xff] }
  0x13   : > { %2005 = vmatpush.bf16.msra.mxu2 %v733_v6  ;;  %2006 = vmatpush.bf16.msra.mxu3 %v733_v6  ;;  %v1803_v11 = vld [vmem:[%s2116_s26 + $0xc0] sm:$0xff]  ;;  %v1804_v15 = vld [vmem:[%s2116_s26 + $0xc8] sm:$0xff]  ;;  %v1805_v19 = vld [vmem:[%s2116_s26 + $0xd0] sm:$0xff] }
  0x14   : > { %v1782_v20 = vld [vmem:[%s2116_s26 + $0x18] sm:$0xff]  ;;  %v1783_v24 = vld [vmem:[%s2116_s26 + $0x20] sm:$0xff]  ;;  %v1784_v28 = vld [vmem:[%s2116_s26 + $0x28] sm:$0xff] }
  0x15   : > { %v1790_v21 = vld [vmem:[%s2116_s26 + $0x58] sm:$0xff]  ;;  %v1791_v25 = vld [vmem:[%s2116_s26 + $0x60] sm:$0xff]  ;;  %v1792_v29 = vld [vmem:[%s2116_s26 + $0x68] sm:$0xff] }
  0x16   : > { %742 = vmatpush.bf16.msra.mxu0 %v1811_v7  ;;  %2007 = vmatpush.bf16.msra.mxu1 %v1811_v7  ;;  %v1798_v22 = vld [vmem:[%s2116_s26 + $0x98] sm:$0xff]  ;;  %v1799_v26 = vld [vmem:[%s2116_s26 + $0xa0] sm:$0xff]  ;;  %v1800_v30 = vld [vmem:[%s2116_s26 + $0xa8] sm:$0xff] }
  0x17   : > { %2008 = vmatpush.bf16.msra.mxu2 %v1811_v7  ;;  %2009 = vmatpush.bf16.msra.mxu3 %v1811_v7  ;;  %v1806_v23 = vld [vmem:[%s2116_s26 + $0xd8] sm:$0xff]  ;;  %v1807_v27 = vld [vmem:[%s2116_s26 + $0xe0] sm:$0xff]  ;;  %v1808_v31 = vld [vmem:[%s2116_s26 + $0xe8] sm:$0xff] }
  0x18   : > { %v1785_v32 = vld [vmem:[%s2116_s26 + $0x30] sm:$0xff]  ;;  %v1786_v36 = vld [vmem:[%s2116_s26 + $0x38] sm:$0xff] }
  0x19   : > { %1745 = vmatmul.msk.bf16.vlgmr.msra.gmra.mxu0 %vm631_vm2, %v1779_v8  ;;  %1753 = vmatmul.msk.bf16.vlgmr.msra.gmra.mxu1 %vm631_vm2, %v1787_v9  ;;  %v1793_v33 = vld [vmem:[%s2116_s26 + $0x70] sm:$0xff]  ;;  %v1794_v37 = vld [vmem:[%s2116_s26 + $0x78] sm:$0xff] }
  0x1a   : > { %1761 = vmatmul.msk.bf16.vlgmr.msra.gmra.mxu2 %vm631_vm2, %v1795_v10  ;;  %1769 = vmatmul.msk.bf16.vlgmr.msra.gmra.mxu3 %vm631_vm2, %v1803_v11  ;;  %v1801_v34 = vld [vmem:[%s2116_s26 + $0xb0] sm:$0xff]  ;;  %v1802_v38 = vld [vmem:[%s2116_s26 + $0xb8] sm:$0xff] }
  0x1b   : > { %v1809_v35 = vld [vmem:[%s2116_s26 + $0xf0] sm:$0xff]  ;;  %v1810_v39 = vld [vmem:[%s2116_s26 + $0xf8] sm:$0xff] }
  0x29   : > { %1746 = vmatmul.msk.bf16.gmra.mxu0 %vm631_vm2, %v1780_v12  ;;  %1754 = vmatmul.msk.bf16.gmra.mxu1 %vm631_vm2, %v1788_v13 }
  0x2a   : > { %1762 = vmatmul.msk.bf16.gmra.mxu2 %vm631_vm2, %v1796_v14  ;;  %1770 = vmatmul.msk.bf16.gmra.mxu3 %vm631_vm2, %v1804_v15 }
  0x39   : > { %1747 = vmatmul.msk.bf16.gmra.mxu0 %vm631_vm2, %v1781_v16  ;;  %1755 = vmatmul.msk.bf16.gmra.mxu1 %vm631_vm2, %v1789_v17 }
  0x3a   : > { %1763 = vmatmul.msk.bf16.gmra.mxu2 %vm631_vm2, %v1797_v18  ;;  %1771 = vmatmul.msk.bf16.gmra.mxu3 %vm631_vm2, %v1805_v19 }
  0x49   : > { %1748 = vmatmul.msk.bf16.gmra.mxu0 %vm631_vm2, %v1782_v20  ;;  %1756 = vmatmul.msk.bf16.gmra.mxu1 %vm631_vm2, %v1790_v21 }
  0x4a   : > { %1764 = vmatmul.msk.bf16.gmra.mxu2 %vm631_vm2, %v1798_v22  ;;  %1772 = vmatmul.msk.bf16.gmra.mxu3 %vm631_vm2, %v1806_v23 }
  0x59   : > { %1749 = vmatmul.msk.bf16.gmra.mxu0 %vm631_vm2, %v1783_v24  ;;  %1757 = vmatmul.msk.bf16.gmra.mxu1 %vm631_vm2, %v1791_v25 }
  0x5a   : > { %1765 = vmatmul.msk.bf16.gmra.mxu2 %vm631_vm2, %v1799_v26  ;;  %1773 = vmatmul.msk.bf16.gmra.mxu3 %vm631_vm2, %v1807_v27 }
  0x69   : > { %1750 = vmatmul.msk.bf16.gmra.mxu0 %vm631_vm2, %v1784_v28  ;;  %1758 = vmatmul.msk.bf16.gmra.mxu1 %vm631_vm2, %v1792_v29 }
  0x6a   : > { %1766 = vmatmul.msk.bf16.gmra.mxu2 %vm631_vm2, %v1800_v30  ;;  %1774 = vmatmul.msk.bf16.gmra.mxu3 %vm631_vm2, %v1808_v31 }
  0x79   : > { %1751 = vmatmul.msk.bf16.gmra.mxu0 %vm631_vm2, %v1785_v32  ;;  %1759 = vmatmul.msk.bf16.gmra.mxu1 %vm631_vm2, %v1793_v33 }
  0x7a   : > { %1767 = vmatmul.msk.bf16.gmra.mxu2 %vm631_vm2, %v1801_v34  ;;  %1775 = vmatmul.msk.bf16.gmra.mxu3 %vm631_vm2, %v1809_v35 }
  0x89   : > { %1752 = vmatmul.msk.bf16.gmra.mxu0 %vm631_vm2, %v1786_v36  ;;  %1760 = vmatmul.msk.bf16.gmra.mxu1 %vm631_vm2, %v1794_v37 }
  0x8a   : > { %1768 = vmatmul.msk.bf16.gmra.mxu2 %vm631_vm2, %v1802_v38  ;;  %1776 = vmatmul.msk.bf16.gmra.mxu3 %vm631_vm2, %v1810_v39 }
  0x96   : > { %v744_v40 = vpop.f32.mrf.mxu0  ;;  %v784_v41 = vpop.f32.mrf.mxu1 }
  0x97   : > { %v1103_v43 = vadd.f32 %v2185_v42, %v744_v40  ;;  %v1119_v44 = vadd.f32 %v2185_v42, %v784_v41 }
  0x99   : > { %v1231_v49 = vmul.f32 0.1, %v1103_v43  ;;  %v1247_v50 = vmul.f32 0.1, %v1119_v44  ;;  %vm1167_vm3 = vcmp.gt.f32.partialorder %v1103_v43, 0.0  ;;  %vm1183_vm4 = vcmp.gt.f32.partialorder %v1119_v44, 0.0 }
  0x9b   : > { %v1295_v57 = vsel %vm1167_vm3, %v1103_v43, %v1231_v49  ;;  %v1311_v58 = vsel %vm1183_vm4, %v1119_v44, %v1247_v50 }
  0x9d   : > { %v824_v45 = vpop.f32.mrf.mxu2  ;;  %v864_v46 = vpop.f32.mrf.mxu3 }
  0x9e   : > { %v746_v47 = vpop.f32.mrf.mxu0  ;;  %v786_v48 = vpop.f32.mrf.mxu1  ;;  %v1135_v55 = vadd.f32 %v2185_v42, %v824_v45  ;;  %v1151_v56 = vadd.f32 %v2185_v42, %v864_v46 }
  0x9f   : > { %v1104_v51 = vadd.f32 %v2185_v42, %v746_v47  ;;  %v1120_v52 = vadd.f32 %v2185_v42, %v786_v48 }
  0xa0   : > { %v1263_v1 = vmul.f32 0.1, %v1135_v55  ;;  %v1279_v2 = vmul.f32 0.1, %v1151_v56  ;;  %vm1199_vm7 = vcmp.gt.f32.partialorder %v1135_v55, 0.0  ;;  %vm1215_vm8 = vcmp.gt.f32.partialorder %v1151_v56, 0.0 }
  0xa1   : > { %vm1168_vm5 = vcmp.gt.f32.partialorder %v1104_v51, 0.0  ;;  %v1232_v53 = vmul.f32 0.1, %v1104_v51  ;;  %vm1184_vm6 = vcmp.gt.f32.partialorder %v1120_v52, 0.0  ;;  %v1248_v54 = vmul.f32 0.1, %v1120_v52 }
  0xa2   : > { %v1327_v9 = vsel %vm1199_vm7, %v1135_v55, %v1263_v1  ;;  %v1343_v10 = vsel %vm1215_vm8, %v1151_v56, %v1279_v2 }
  0xa3   : > { %v1296_v59 = vsel %vm1168_vm5, %v1104_v51, %v1232_v53  ;;  %v1312_v60 = vsel %vm1184_vm6, %v1120_v52, %v1248_v54 }
  0xa4   : > { %v1816_v61 = vpack.c.bf16 %v1296_v59, %v1295_v57  ;;  %v1856_v62 = vpack.c.bf16 %v1312_v60, %v1311_v58 }
  0xa5   : > { %v826_v63 = vpop.f32.mrf.mxu2  ;;  %v866_v0 = vpop.f32.mrf.mxu3 }
  0xa6   : > { %1817 = vst [vmem:[%s2198_s4] sm:$0xff] %v1816_v61   ;;  %v1136_v3 = vadd.f32 %v2185_v42, %v826_v63  ;;  %v1152_v4 = vadd.f32 %v2185_v42, %v866_v0  ;;  %v749_v5 = vpop.f32.mrf.mxu0  ;;  %v789_v6 = vpop.f32.mrf.mxu1 }
  0xa7   : > { %1980 = vst [vmem:[%s2198_s4 + $0x40] sm:$0xff] %v1856_v62   ;;  %v1105_v15 = vadd.f32 %v2185_v42, %v749_v5  ;;  %v1121_v16 = vadd.f32 %v2185_v42, %v789_v6 }
  0xa8   : > { %vm1200_vm9 = vcmp.gt.f32.partialorder %v1136_v3, 0.0  ;;  %v1264_v7 = vmul.f32 0.1, %v1136_v3  ;;  %vm1216_vm10 = vcmp.gt.f32.partialorder %v1152_v4, 0.0  ;;  %v1280_v8 = vmul.f32 0.1, %v1152_v4 }
  0xa9   : > { %v1233_v21 = vmul.f32 0.1, %v1105_v15  ;;  %v1249_v22 = vmul.f32 0.1, %v1121_v16  ;;  %vm1169_vm11 = vcmp.gt.f32.partialorder %v1105_v15, 0.0  ;;  %vm1185_vm12 = vcmp.gt.f32.partialorder %v1121_v16, 0.0 }
  0xaa   : > { %v1328_v11 = vsel %vm1200_vm9, %v1136_v3, %v1264_v7  ;;  %v1344_v12 = vsel %vm1216_vm10, %v1152_v4, %v1280_v8 }
  0xab   : > { %v1896_v13 = vpack.c.bf16 %v1328_v11, %v1327_v9  ;;  %v1936_v14 = vpack.c.bf16 %v1344_v12, %v1343_v10  ;;  %v1297_v29 = vsel %vm1169_vm11, %v1105_v15, %v1233_v21  ;;  %v1313_v30 = vsel %vm1185_vm12, %v1121_v16, %v1249_v22 }
  0xad   : > { %1988 = vst [vmem:[%s2198_s4 + $0x80] sm:$0xff] %v1896_v13   ;;  %v829_v17 = vpop.f32.mrf.mxu2  ;;  %v869_v18 = vpop.f32.mrf.mxu3 }
  0xae   : > { %1996 = vst [vmem:[%s2198_s4 + $0xc0] sm:$0xff] %v1936_v14   ;;  %v751_v19 = vpop.f32.mrf.mxu0  ;;  %v791_v20 = vpop.f32.mrf.mxu1  ;;  %v1137_v27 = vadd.f32 %v2185_v42, %v829_v17  ;;  %v1153_v28 = vadd.f32 %v2185_v42, %v869_v18 }
  0xaf   : > { %v1106_v23 = vadd.f32 %v2185_v42, %v751_v19  ;;  %v1122_v24 = vadd.f32 %v2185_v42, %v791_v20 }
  0xb0   : > { %v1265_v37 = vmul.f32 0.1, %v1137_v27  ;;  %v1281_v38 = vmul.f32 0.1, %v1153_v28  ;;  %vm1201_vm15 = vcmp.gt.f32.partialorder %v1137_v27, 0.0  ;;  %vm1217_vm0 = vcmp.gt.f32.partialorder %v1153_v28, 0.0 }
  0xb1   : > { %vm1170_vm13 = vcmp.gt.f32.partialorder %v1106_v23, 0.0  ;;  %v1234_v25 = vmul.f32 0.1, %v1106_v23  ;;  %vm1186_vm14 = vcmp.gt.f32.partialorder %v1122_v24, 0.0  ;;  %v1250_v26 = vmul.f32 0.1, %v1122_v24 }
  0xb2   : > { %v1329_v46 = vsel %vm1201_vm15, %v1137_v27, %v1265_v37  ;;  %v1345_v47 = vsel %vm1217_vm0, %v1153_v28, %v1281_v38 }
  0xb3   : > { %v1298_v31 = vsel %vm1170_vm13, %v1106_v23, %v1234_v25  ;;  %v1314_v32 = vsel %vm1186_vm14, %v1122_v24, %v1250_v26 }
  0xb4   : > { %v1821_v33 = vpack.c.bf16 %v1298_v31, %v1297_v29  ;;  %v1861_v34 = vpack.c.bf16 %v1314_v32, %v1313_v30 }
  0xb5   : > { %v831_v35 = vpop.f32.mrf.mxu2  ;;  %v871_v36 = vpop.f32.mrf.mxu3 }
  0xb6   : > { %1973 = vst [vmem:[%s2198_s4 + $0x8] sm:$0xff] %v1821_v33   ;;  %v1138_v39 = vadd.f32 %v2185_v42, %v831_v35  ;;  %v1154_v40 = vadd.f32 %v2185_v42, %v871_v36  ;;  %v754_v41 = vpop.f32.mrf.mxu0  ;;  %v794_v43 = vpop.f32.mrf.mxu1 }
  0xb7   : > { %1981 = vst [vmem:[%s2198_s4 + $0x48] sm:$0xff] %v1861_v34   ;;  %v1107_v52 = vadd.f32 %v2185_v42, %v754_v41  ;;  %v1123_v53 = vadd.f32 %v2185_v42, %v794_v43 }
  0xb8   : > { %vm1202_vm1 = vcmp.gt.f32.partialorder %v1138_v39, 0.0  ;;  %v1266_v44 = vmul.f32 0.1, %v1138_v39  ;;  %vm1218_vm2 = vcmp.gt.f32.partialorder %v1154_v40, 0.0  ;;  %v1282_v45 = vmul.f32 0.1, %v1154_v40 }
  0xb9   : > { %v1235_v58 = vmul.f32 0.1, %v1107_v52  ;;  %v1251_v59 = vmul.f32 0.1, %v1123_v53  ;;  %vm1171_vm3 = vcmp.gt.f32.partialorder %v1107_v52, 0.0  ;;  %vm1187_vm4 = vcmp.gt.f32.partialorder %v1123_v53, 0.0 }
  0xba   : > { %v1330_v48 = vsel %vm1202_vm1, %v1138_v39, %v1266_v44  ;;  %v1346_v49 = vsel %vm1218_vm2, %v1154_v40, %v1282_v45 }
  0xbb   : > { %v1901_v50 = vpack.c.bf16 %v1330_v48, %v1329_v46  ;;  %v1941_v51 = vpack.c.bf16 %v1346_v49, %v1345_v47  ;;  %v1299_v2 = vsel %vm1171_vm3, %v1107_v52, %v1235_v58  ;;  %v1315_v3 = vsel %vm1187_vm4, %v1123_v53, %v1251_v59 }
  0xbd   : > { %1989 = vst [vmem:[%s2198_s4 + $0x88] sm:$0xff] %v1901_v50   ;;  %v834_v54 = vpop.f32.mrf.mxu2  ;;  %v874_v55 = vpop.f32.mrf.mxu3 }
  0xbe   : > { %1997 = vst [vmem:[%s2198_s4 + $0xc8] sm:$0xff] %v1941_v51   ;;  %v756_v56 = vpop.f32.mrf.mxu0  ;;  %v796_v57 = vpop.f32.mrf.mxu1  ;;  %v1139_v0 = vadd.f32 %v2185_v42, %v834_v54  ;;  %v1155_v1 = vadd.f32 %v2185_v42, %v874_v55 }
  0xbf   : > { %v1108_v60 = vadd.f32 %v2185_v42, %v756_v56  ;;  %v1124_v61 = vadd.f32 %v2185_v42, %v796_v57 }
  0xc0   : > { %v1267_v10 = vmul.f32 0.1, %v1139_v0  ;;  %v1283_v11 = vmul.f32 0.1, %v1155_v1  ;;  %vm1203_vm7 = vcmp.gt.f32.partialorder %v1139_v0, 0.0  ;;  %vm1219_vm8 = vcmp.gt.f32.partialorder %v1155_v1, 0.0 }
  0xc1   : > { %vm1172_vm5 = vcmp.gt.f32.partialorder %v1108_v60, 0.0  ;;  %v1236_v62 = vmul.f32 0.1, %v1108_v60  ;;  %vm1188_vm6 = vcmp.gt.f32.partialorder %v1124_v61, 0.0  ;;  %v1252_v63 = vmul.f32 0.1, %v1124_v61 }
  0xc2   : > { %v1331_v18 = vsel %vm1203_vm7, %v1139_v0, %v1267_v10  ;;  %v1347_v19 = vsel %vm1219_vm8, %v1155_v1, %v1283_v11 }
  0xc3   : > { %v1300_v4 = vsel %vm1172_vm5, %v1108_v60, %v1236_v62  ;;  %v1316_v5 = vsel %vm1188_vm6, %v1124_v61, %v1252_v63 }
  0xc4   : > { %v1826_v6 = vpack.c.bf16 %v1300_v4, %v1299_v2  ;;  %v1866_v7 = vpack.c.bf16 %v1316_v5, %v1315_v3 }
  0xc5   : > { %v836_v8 = vpop.f32.mrf.mxu2  ;;  %v876_v9 = vpop.f32.mrf.mxu3 }
  0xc6   : > { %1974 = vst [vmem:[%s2198_s4 + $0x10] sm:$0xff] %v1826_v6   ;;  %v1140_v12 = vadd.f32 %v2185_v42, %v836_v8  ;;  %v1156_v13 = vadd.f32 %v2185_v42, %v876_v9  ;;  %v759_v14 = vpop.f32.mrf.mxu0  ;;  %v799_v15 = vpop.f32.mrf.mxu1 }
  0xc7   : > { %1982 = vst [vmem:[%s2198_s4 + $0x50] sm:$0xff] %v1866_v7   ;;  %v1109_v24 = vadd.f32 %v2185_v42, %v759_v14  ;;  %v1125_v25 = vadd.f32 %v2185_v42, %v799_v15 }
  0xc8   : > { %vm1204_vm9 = vcmp.gt.f32.partialorder %v1140_v12, 0.0  ;;  %v1268_v16 = vmul.f32 0.1, %v1140_v12  ;;  %vm1220_vm10 = vcmp.gt.f32.partialorder %v1156_v13, 0.0  ;;  %v1284_v17 = vmul.f32 0.1, %v1156_v13 }
  0xc9   : > { %v1237_v30 = vmul.f32 0.1, %v1109_v24  ;;  %v1253_v31 = vmul.f32 0.1, %v1125_v25  ;;  %vm1173_vm11 = vcmp.gt.f32.partialorder %v1109_v24, 0.0  ;;  %vm1189_vm12 = vcmp.gt.f32.partialorder %v1125_v25, 0.0 }
  0xca   : > { %v1332_v20 = vsel %vm1204_vm9, %v1140_v12, %v1268_v16  ;;  %v1348_v21 = vsel %vm1220_vm10, %v1156_v13, %v1284_v17 }
  0xcb   : > { %v1906_v22 = vpack.c.bf16 %v1332_v20, %v1331_v18  ;;  %v1946_v23 = vpack.c.bf16 %v1348_v21, %v1347_v19  ;;  %v1301_v38 = vsel %vm1173_vm11, %v1109_v24, %v1237_v30  ;;  %v1317_v39 = vsel %vm1189_vm12, %v1125_v25, %v1253_v31 }
  0xcd   : > { %1990 = vst [vmem:[%s2198_s4 + $0x90] sm:$0xff] %v1906_v22   ;;  %v839_v26 = vpop.f32.mrf.mxu2  ;;  %v879_v27 = vpop.f32.mrf.mxu3 }
  0xce   : > { %1998 = vst [vmem:[%s2198_s4 + $0xd0] sm:$0xff] %v1946_v23   ;;  %v761_v28 = vpop.f32.mrf.mxu0  ;;  %v801_v29 = vpop.f32.mrf.mxu1  ;;  %v1141_v36 = vadd.f32 %v2185_v42, %v839_v26  ;;  %v1157_v37 = vadd.f32 %v2185_v42, %v879_v27 }
  0xcf   : > { %v1110_v32 = vadd.f32 %v2185_v42, %v761_v28  ;;  %v1126_v33 = vadd.f32 %v2185_v42, %v801_v29 }
  0xd0   : > { %v1269_v47 = vmul.f32 0.1, %v1141_v36  ;;  %v1285_v48 = vmul.f32 0.1, %v1157_v37  ;;  %vm1205_vm15 = vcmp.gt.f32.partialorder %v1141_v36, 0.0  ;;  %vm1221_vm0 = vcmp.gt.f32.partialorder %v1157_v37, 0.0 }
  0xd1   : > { %vm1174_vm13 = vcmp.gt.f32.partialorder %v1110_v32, 0.0  ;;  %v1238_v34 = vmul.f32 0.1, %v1110_v32  ;;  %vm1190_vm14 = vcmp.gt.f32.partialorder %v1126_v33, 0.0  ;;  %v1254_v35 = vmul.f32 0.1, %v1126_v33 }
  0xd2   : > { %v1333_v55 = vsel %vm1205_vm15, %v1141_v36, %v1269_v47  ;;  %v1349_v56 = vsel %vm1221_vm0, %v1157_v37, %v1285_v48 }
  0xd3   : > { %v1302_v40 = vsel %vm1174_vm13, %v1110_v32, %v1238_v34  ;;  %v1318_v41 = vsel %vm1190_vm14, %v1126_v33, %v1254_v35 }
  0xd4   : > { %v1831_v43 = vpack.c.bf16 %v1302_v40, %v1301_v38  ;;  %v1871_v44 = vpack.c.bf16 %v1318_v41, %v1317_v39 }
  0xd5   : > { %v841_v45 = vpop.f32.mrf.mxu2  ;;  %v881_v46 = vpop.f32.mrf.mxu3 }
  0xd6   : > { %1975 = vst [vmem:[%s2198_s4 + $0x18] sm:$0xff] %v1831_v43   ;;  %v1142_v49 = vadd.f32 %v2185_v42, %v841_v45  ;;  %v1158_v50 = vadd.f32 %v2185_v42, %v881_v46  ;;  %v764_v51 = vpop.f32.mrf.mxu0  ;;  %v804_v52 = vpop.f32.mrf.mxu1 }
  0xd7   : > { %1983 = vst [vmem:[%s2198_s4 + $0x58] sm:$0xff] %v1871_v44   ;;  %v1111_v61 = vadd.f32 %v2185_v42, %v764_v51  ;;  %v1127_v62 = vadd.f32 %v2185_v42, %v804_v52 }
  0xd8   : > { %vm1206_vm1 = vcmp.gt.f32.partialorder %v1142_v49, 0.0  ;;  %v1270_v53 = vmul.f32 0.1, %v1142_v49  ;;  %vm1222_vm2 = vcmp.gt.f32.partialorder %v1158_v50, 0.0  ;;  %v1286_v54 = vmul.f32 0.1, %v1158_v50 }
  0xd9   : > { %v1239_v3 = vmul.f32 0.1, %v1111_v61  ;;  %v1255_v4 = vmul.f32 0.1, %v1127_v62  ;;  %vm1175_vm3 = vcmp.gt.f32.partialorder %v1111_v61, 0.0  ;;  %vm1191_vm4 = vcmp.gt.f32.partialorder %v1127_v62, 0.0 }
  0xda   : > { %v1334_v57 = vsel %vm1206_vm1, %v1142_v49, %v1270_v53  ;;  %v1350_v58 = vsel %vm1222_vm2, %v1158_v50, %v1286_v54 }
  0xdb   : > { %v1911_v59 = vpack.c.bf16 %v1334_v57, %v1333_v55  ;;  %v1951_v60 = vpack.c.bf16 %v1350_v58, %v1349_v56  ;;  %v1303_v11 = vsel %vm1175_vm3, %v1111_v61, %v1239_v3  ;;  %v1319_v12 = vsel %vm1191_vm4, %v1127_v62, %v1255_v4 }
  0xdd   : > { %1991 = vst [vmem:[%s2198_s4 + $0x98] sm:$0xff] %v1911_v59   ;;  %v844_v63 = vpop.f32.mrf.mxu2  ;;  %v884_v0 = vpop.f32.mrf.mxu3 }
  0xde   : > { %1999 = vst [vmem:[%s2198_s4 + $0xd8] sm:$0xff] %v1951_v60   ;;  %v766_v1 = vpop.f32.mrf.mxu0  ;;  %v806_v2 = vpop.f32.mrf.mxu1  ;;  %v1143_v9 = vadd.f32 %v2185_v42, %v844_v63  ;;  %v1159_v10 = vadd.f32 %v2185_v42, %v884_v0 }
  0xdf   : > { %v1112_v5 = vadd.f32 %v2185_v42, %v766_v1  ;;  %v1128_v6 = vadd.f32 %v2185_v42, %v806_v2 }
  0xe0   : > { %v1271_v19 = vmul.f32 0.1, %v1143_v9  ;;  %v1287_v20 = vmul.f32 0.1, %v1159_v10  ;;  %vm1207_vm7 = vcmp.gt.f32.partialorder %v1143_v9, 0.0  ;;  %vm1223_vm8 = vcmp.gt.f32.partialorder %v1159_v10, 0.0 }
  0xe1   : > { %vm1176_vm5 = vcmp.gt.f32.partialorder %v1112_v5, 0.0  ;;  %v1240_v7 = vmul.f32 0.1, %v1112_v5  ;;  %vm1192_vm6 = vcmp.gt.f32.partialorder %v1128_v6, 0.0  ;;  %v1256_v8 = vmul.f32 0.1, %v1128_v6 }
  0xe2   : > { %v1335_v27 = vsel %vm1207_vm7, %v1143_v9, %v1271_v19  ;;  %v1351_v28 = vsel %vm1223_vm8, %v1159_v10, %v1287_v20 }
  0xe3   : > { %v1304_v13 = vsel %vm1176_vm5, %v1112_v5, %v1240_v7  ;;  %v1320_v14 = vsel %vm1192_vm6, %v1128_v6, %v1256_v8 }
  0xe4   : > { %v1836_v15 = vpack.c.bf16 %v1304_v13, %v1303_v11  ;;  %v1876_v16 = vpack.c.bf16 %v1320_v14, %v1319_v12 }
  0xe5   : > { %v846_v17 = vpop.f32.mrf.mxu2  ;;  %v886_v18 = vpop.f32.mrf.mxu3 }
  0xe6   : > { %1976 = vst [vmem:[%s2198_s4 + $0x20] sm:$0xff] %v1836_v15   ;;  %v1144_v21 = vadd.f32 %v2185_v42, %v846_v17  ;;  %v1160_v22 = vadd.f32 %v2185_v42, %v886_v18  ;;  %v769_v23 = vpop.f32.mrf.mxu0  ;;  %v809_v24 = vpop.f32.mrf.mxu1 }
  0xe7   : > { %1984 = vst [vmem:[%s2198_s4 + $0x60] sm:$0xff] %v1876_v16   ;;  %v1113_v33 = vadd.f32 %v2185_v42, %v769_v23  ;;  %v1129_v34 = vadd.f32 %v2185_v42, %v809_v24 }
  0xe8   : > { %vm1208_vm9 = vcmp.gt.f32.partialorder %v1144_v21, 0.0  ;;  %v1272_v25 = vmul.f32 0.1, %v1144_v21  ;;  %vm1224_vm10 = vcmp.gt.f32.partialorder %v1160_v22, 0.0  ;;  %v1288_v26 = vmul.f32 0.1, %v1160_v22 }
  0xe9   : > { %v1241_v39 = vmul.f32 0.1, %v1113_v33  ;;  %v1257_v40 = vmul.f32 0.1, %v1129_v34  ;;  %vm1177_vm11 = vcmp.gt.f32.partialorder %v1113_v33, 0.0  ;;  %vm1193_vm12 = vcmp.gt.f32.partialorder %v1129_v34, 0.0 }
  0xea   : > { %v1336_v29 = vsel %vm1208_vm9, %v1144_v21, %v1272_v25  ;;  %v1352_v30 = vsel %vm1224_vm10, %v1160_v22, %v1288_v26 }
  0xeb   : > { %v1916_v31 = vpack.c.bf16 %v1336_v29, %v1335_v27  ;;  %v1956_v32 = vpack.c.bf16 %v1352_v30, %v1351_v28  ;;  %v1305_v48 = vsel %vm1177_vm11, %v1113_v33, %v1241_v39  ;;  %v1321_v49 = vsel %vm1193_vm12, %v1129_v34, %v1257_v40 }
  0xed   : > { %1992 = vst [vmem:[%s2198_s4 + $0xa0] sm:$0xff] %v1916_v31   ;;  %v849_v35 = vpop.f32.mrf.mxu2  ;;  %v889_v36 = vpop.f32.mrf.mxu3 }
  0xee   : > { %2000 = vst [vmem:[%s2198_s4 + $0xe0] sm:$0xff] %v1956_v32   ;;  %v771_v37 = vpop.f32.mrf.mxu0  ;;  %v811_v38 = vpop.f32.mrf.mxu1  ;;  %v1145_v46 = vadd.f32 %v2185_v42, %v849_v35  ;;  %v1161_v47 = vadd.f32 %v2185_v42, %v889_v36 }
  0xef   : > { %v1114_v41 = vadd.f32 %v2185_v42, %v771_v37  ;;  %v1130_v43 = vadd.f32 %v2185_v42, %v811_v38 }
  0xf0   : > { %v1273_v56 = vmul.f32 0.1, %v1145_v46  ;;  %v1289_v57 = vmul.f32 0.1, %v1161_v47  ;;  %vm1209_vm15 = vcmp.gt.f32.partialorder %v1145_v46, 0.0  ;;  %vm1225_vm0 = vcmp.gt.f32.partialorder %v1161_v47, 0.0 }
  0xf1   : > { %vm1178_vm13 = vcmp.gt.f32.partialorder %v1114_v41, 0.0  ;;  %v1242_v44 = vmul.f32 0.1, %v1114_v41  ;;  %vm1194_vm14 = vcmp.gt.f32.partialorder %v1130_v43, 0.0  ;;  %v1258_v45 = vmul.f32 0.1, %v1130_v43 }
  0xf2   : > { %v1337_v0 = vsel %vm1209_vm15, %v1145_v46, %v1273_v56  ;;  %v1353_v1 = vsel %vm1225_vm0, %v1161_v47, %v1289_v57 }
  0xf3   : > { %v1306_v50 = vsel %vm1178_vm13, %v1114_v41, %v1242_v44  ;;  %v1322_v51 = vsel %vm1194_vm14, %v1130_v43, %v1258_v45 }
  0xf4   : > { %v1841_v52 = vpack.c.bf16 %v1306_v50, %v1305_v48  ;;  %v1881_v53 = vpack.c.bf16 %v1322_v51, %v1321_v49 }
  0xf5   : > { %v851_v54 = vpop.f32.mrf.mxu2  ;;  %v891_v55 = vpop.f32.mrf.mxu3 }
  0xf6   : > { %1977 = vst [vmem:[%s2198_s4 + $0x28] sm:$0xff] %v1841_v52   ;;  %v1146_v58 = vadd.f32 %v2185_v42, %v851_v54  ;;  %v1162_v59 = vadd.f32 %v2185_v42, %v891_v55  ;;  %v774_v60 = vpop.f32.mrf.mxu0  ;;  %v814_v61 = vpop.f32.mrf.mxu1 }
  0xf7   : > { %1985 = vst [vmem:[%s2198_s4 + $0x68] sm:$0xff] %v1881_v53   ;;  %v1115_v6 = vadd.f32 %v2185_v42, %v774_v60  ;;  %v1131_v7 = vadd.f32 %v2185_v42, %v814_v61 }
  0xf8   : > { %vm1210_vm1 = vcmp.gt.f32.partialorder %v1146_v58, 0.0  ;;  %v1274_v62 = vmul.f32 0.1, %v1146_v58  ;;  %vm1226_vm2 = vcmp.gt.f32.partialorder %v1162_v59, 0.0  ;;  %v1290_v63 = vmul.f32 0.1, %v1162_v59 }
  0xf9   : > { %v1243_v12 = vmul.f32 0.1, %v1115_v6  ;;  %v1259_v13 = vmul.f32 0.1, %v1131_v7  ;;  %vm1179_vm3 = vcmp.gt.f32.partialorder %v1115_v6, 0.0  ;;  %vm1195_vm4 = vcmp.gt.f32.partialorder %v1131_v7, 0.0 }
  0xfa   : > { %v1338_v2 = vsel %vm1210_vm1, %v1146_v58, %v1274_v62  ;;  %v1354_v3 = vsel %vm1226_vm2, %v1162_v59, %v1290_v63 }
  0xfb   : > { %v1921_v4 = vpack.c.bf16 %v1338_v2, %v1337_v0  ;;  %v1961_v5 = vpack.c.bf16 %v1354_v3, %v1353_v1  ;;  %v1307_v20 = vsel %vm1179_vm3, %v1115_v6, %v1243_v12  ;;  %v1323_v21 = vsel %vm1195_vm4, %v1131_v7, %v1259_v13 }
  0xfd   : > { %1993 = vst [vmem:[%s2198_s4 + $0xa8] sm:$0xff] %v1921_v4   ;;  %v854_v8 = vpop.f32.mrf.mxu2  ;;  %v894_v9 = vpop.f32.mrf.mxu3 }
  0xfe   : > { %2001 = vst [vmem:[%s2198_s4 + $0xe8] sm:$0xff] %v1961_v5   ;;  %v776_v10 = vpop.f32.mrf.mxu0  ;;  %v816_v11 = vpop.f32.mrf.mxu1  ;;  %v1147_v18 = vadd.f32 %v2185_v42, %v854_v8  ;;  %v1163_v19 = vadd.f32 %v2185_v42, %v894_v9 }
  0xff   : > { %v1116_v14 = vadd.f32 %v2185_v42, %v776_v10  ;;  %v1132_v15 = vadd.f32 %v2185_v42, %v816_v11 }
 0x100   : > { %v1275_v28 = vmul.f32 0.1, %v1147_v18  ;;  %v1291_v29 = vmul.f32 0.1, %v1163_v19  ;;  %vm1211_vm7 = vcmp.gt.f32.partialorder %v1147_v18, 0.0  ;;  %vm1227_vm8 = vcmp.gt.f32.partialorder %v1163_v19, 0.0 }
 0x101   : > { %vm1180_vm5 = vcmp.gt.f32.partialorder %v1116_v14, 0.0  ;;  %v1244_v16 = vmul.f32 0.1, %v1116_v14  ;;  %vm1196_vm6 = vcmp.gt.f32.partialorder %v1132_v15, 0.0  ;;  %v1260_v17 = vmul.f32 0.1, %v1132_v15 }
 0x102   : > { %v1339_v36 = vsel %vm1211_vm7, %v1147_v18, %v1275_v28  ;;  %v1355_v37 = vsel %vm1227_vm8, %v1163_v19, %v1291_v29 }
 0x103   : > { %v1308_v22 = vsel %vm1180_vm5, %v1116_v14, %v1244_v16  ;;  %v1324_v23 = vsel %vm1196_vm6, %v1132_v15, %v1260_v17 }
 0x104   : > { %v1846_v24 = vpack.c.bf16 %v1308_v22, %v1307_v20  ;;  %v1886_v25 = vpack.c.bf16 %v1324_v23, %v1323_v21 }
 0x105   : > { %v856_v26 = vpop.f32.mrf.mxu2  ;;  %v896_v27 = vpop.f32.mrf.mxu3 }
 0x106   : > { %1978 = vst [vmem:[%s2198_s4 + $0x30] sm:$0xff] %v1846_v24   ;;  %v1148_v30 = vadd.f32 %v2185_v42, %v856_v26  ;;  %v1164_v31 = vadd.f32 %v2185_v42, %v896_v27  ;;  %v779_v32 = vpop.f32.mrf.mxu0  ;;  %v819_v33 = vpop.f32.mrf.mxu1 }
 0x107   : > { %1986 = vst [vmem:[%s2198_s4 + $0x70] sm:$0xff] %v1886_v25   ;;  %v1117_v43 = vadd.f32 %v2185_v42, %v779_v32  ;;  %v1133_v44 = vadd.f32 %v2185_v42, %v819_v33 }
 0x108   : > { %vm1212_vm9 = vcmp.gt.f32.partialorder %v1148_v30, 0.0  ;;  %v1276_v34 = vmul.f32 0.1, %v1148_v30  ;;  %vm1228_vm10 = vcmp.gt.f32.partialorder %v1164_v31, 0.0  ;;  %v1292_v35 = vmul.f32 0.1, %v1164_v31 }
 0x109   : > { %v1245_v49 = vmul.f32 0.1, %v1117_v43  ;;  %v1261_v50 = vmul.f32 0.1, %v1133_v44  ;;  %vm1181_vm11 = vcmp.gt.f32.partialorder %v1117_v43, 0.0  ;;  %vm1197_vm12 = vcmp.gt.f32.partialorder %v1133_v44, 0.0 }
 0x10a   : > { %v1340_v38 = vsel %vm1212_vm9, %v1148_v30, %v1276_v34  ;;  %v1356_v39 = vsel %vm1228_vm10, %v1164_v31, %v1292_v35 }
 0x10b   : > { %v1926_v40 = vpack.c.bf16 %v1340_v38, %v1339_v36  ;;  %v1966_v41 = vpack.c.bf16 %v1356_v39, %v1355_v37  ;;  %v1309_v57 = vsel %vm1181_vm11, %v1117_v43, %v1245_v49  ;;  %v1325_v58 = vsel %vm1197_vm12, %v1133_v44, %v1261_v50 }
 0x10d   : > { %1994 = vst [vmem:[%s2198_s4 + $0xb0] sm:$0xff] %v1926_v40   ;;  %v859_v45 = vpop.f32.mrf.mxu2  ;;  %v899_v46 = vpop.f32.mrf.mxu3 }
 0x10e   : > { %2002 = vst [vmem:[%s2198_s4 + $0xf0] sm:$0xff] %v1966_v41   ;;  %v781_v47 = vpop.f32.mrf.mxu0  ;;  %v821_v48 = vpop.f32.mrf.mxu1  ;;  %v1149_v55 = vadd.f32 %v2185_v42, %v859_v45  ;;  %v1165_v56 = vadd.f32 %v2185_v42, %v899_v46 }
 0x10f   : > { %v1118_v51 = vadd.f32 %v2185_v42, %v781_v47  ;;  %v1134_v52 = vadd.f32 %v2185_v42, %v821_v48 }
 0x110   : > { %v1277_v1 = vmul.f32 0.1, %v1149_v55  ;;  %v1293_v2 = vmul.f32 0.1, %v1165_v56  ;;  %vm1213_vm15 = vcmp.gt.f32.partialorder %v1149_v55, 0.0  ;;  %vm1229_vm0 = vcmp.gt.f32.partialorder %v1165_v56, 0.0 }
 0x111   : > { %vm1182_vm13 = vcmp.gt.f32.partialorder %v1118_v51, 0.0  ;;  %v1246_v53 = vmul.f32 0.1, %v1118_v51  ;;  %vm1198_vm14 = vcmp.gt.f32.partialorder %v1134_v52, 0.0  ;;  %v1262_v54 = vmul.f32 0.1, %v1134_v52 }
 0x112   : > { %v1341_v7 = vsel %vm1213_vm15, %v1149_v55, %v1277_v1  ;;  %v1357_v8 = vsel %vm1229_vm0, %v1165_v56, %v1293_v2 }
 0x113   : > { %v1310_v59 = vsel %vm1182_vm13, %v1118_v51, %v1246_v53  ;;  %v1326_v60 = vsel %vm1198_vm14, %v1134_v52, %v1262_v54 }
 0x114   : > { %v1851_v61 = vpack.c.bf16 %v1310_v59, %v1309_v57  ;;  %v1891_v62 = vpack.c.bf16 %v1326_v60, %v1325_v58 }
 0x115   : > { %v861_v63 = vpop.f32.mrf.mxu2  ;;  %v901_v0 = vpop.f32.mrf.mxu3 }
 0x116   : > { %1979 = vst [vmem:[%s2198_s4 + $0x38] sm:$0xff] %v1851_v61   ;;  %v1150_v3 = vadd.f32 %v2185_v42, %v861_v63  ;;  %v1166_v4 = vadd.f32 %v2185_v42, %v901_v0 }
 0x117   : > { %1987 = vst [vmem:[%s2198_s4 + $0x78] sm:$0xff] %v1891_v62  }
 0x118   : > { %vm1214_vm1 = vcmp.gt.f32.partialorder %v1150_v3, 0.0  ;;  %v1278_v5 = vmul.f32 0.1, %v1150_v3  ;;  %vm1230_vm2 = vcmp.gt.f32.partialorder %v1166_v4, 0.0  ;;  %v1294_v6 = vmul.f32 0.1, %v1166_v4 }
 0x11a   : > { %v1342_v9 = vsel %vm1214_vm1, %v1150_v3, %v1278_v5  ;;  %v1358_v10 = vsel %vm1230_vm2, %v1166_v4, %v1294_v6 }
 0x11b   : > { %v1931_v11 = vpack.c.bf16 %v1342_v9, %v1341_v7  ;;  %v1971_v12 = vpack.c.bf16 %v1358_v10, %v1357_v8 }
 0x11d   : > { %1995 = vst [vmem:[%s2198_s4 + $0xb8] sm:$0xff] %v1931_v11  }
 0x11e   : > { %2003 = vst [vmem:[%s2198_s4 + $0xf8] sm:$0xff] %v1971_v12  }
 0x11f PF: > { %s13_s14 = sadd.s32 1, %s2058_s14   ;;  %s2303_s12 = smov %s2054_s13 }
 0x120   : > { %p10_p5 = scmp.ge.s32.totalorder %s13_s14, 6   ;;  %s2304_s13 = smov %s2306_s15 }
 0x122   :  { %12 = sbr.rel (!%p10_p5) target bundleno = 2 (0x2), region = 76 }

// kernel: yolov3_forward.63
= control target key start
LH: loop header
LB: loop body
LE: loop exit
PB: predicated region body
PF: predicated region fallthrough
CT: control target
= control target key end

     0   :  { %vm488_vm0 = vcmask 1041408   ;;  %vm391_vm1 = vcmask 293888   ;;  %s1973_s1 = inlined_call_operand.vmem [shape: bf16[36,128], index: 1, kind: input, shape index: {}]   ;;  %s1974_s2 = inlined_call_operand.vmem [shape: f32[1,128], index: 2, kind: input, shape index: {}]   ;;  %s1975_s0 = inlined_call_operand.vmem [shape: bf16[512,36], index: 0, kind: input, shape index: {}]   ;;  %s1976_s3 = inlined_call_operand.vmem [shape: bf16[512,128], index: 3, kind: output, shape index: {}]  }
   0x1   :  { %v215_v0 = vld [vmem:[%s1973_s1 + $0x10] sm:$0x3]  ;;  %v1449_v4 = vld [vmem:[%s1973_s1 + $0x8] sm:$0xff]  ;;  %v1448_v5 = vld [vmem:[%s1973_s1] sm:$0xff] }
   0x2   :  { %v385_v1 = vunpack.c.l.b16 %v215_v0  ;;  %v1416_v6 = vld [vmem:[%s1975_s0] sm:$0xff]  ;;  %v1417_v10 = vld [vmem:[%s1975_s0 + $0x8] sm:$0xff]  ;;  %v1418_v14 = vld [vmem:[%s1975_s0 + $0x10] sm:$0xff] }
   0x3   :  { %v1424_v7 = vld [vmem:[%s1975_s0 + $0x40] sm:$0xff]  ;;  %v1425_v11 = vld [vmem:[%s1975_s0 + $0x48] sm:$0xff]  ;;  %v1426_v15 = vld [vmem:[%s1975_s0 + $0x50] sm:$0xff] }
   0x4   :  { %v388_v2 = vpack.c.b16 %v385_v1, %v385_v1  ;;  %v1432_v8 = vld [vmem:[%s1975_s0 + $0x80] sm:$0xff]  ;;  %v1433_v12 = vld [vmem:[%s1975_s0 + $0x88] sm:$0xff]  ;;  %v1434_v16 = vld [vmem:[%s1975_s0 + $0x90] sm:$0xff] }
   0x5   :  { %v1440_v9 = vld [vmem:[%s1975_s0 + $0xc0] sm:$0xff]  ;;  %v1441_v13 = vld [vmem:[%s1975_s0 + $0xc8] sm:$0xff]  ;;  %v1442_v17 = vld [vmem:[%s1975_s0 + $0xd0] sm:$0xff] }
   0x6   :  { %v490_v3 = vsel %vm488_vm0, %v388_v2, 0  ;;  %v1419_v18 = vld [vmem:[%s1975_s0 + $0x18] sm:$0xff]  ;;  %v1420_v22 = vld [vmem:[%s1975_s0 + $0x20] sm:$0xff]  ;;  %v1421_v26 = vld [vmem:[%s1975_s0 + $0x28] sm:$0xff] }
   0x7   :  { %497 = vmatpush.bf16.msra.mxu0 %v490_v3  ;;  %1641 = vmatpush.bf16.msra.mxu1 %v490_v3  ;;  %v1427_v19 = vld [vmem:[%s1975_s0 + $0x58] sm:$0xff]  ;;  %v1428_v23 = vld [vmem:[%s1975_s0 + $0x60] sm:$0xff]  ;;  %v1429_v27 = vld [vmem:[%s1975_s0 + $0x68] sm:$0xff] }
   0x8   :  { %1642 = vmatpush.bf16.msra.mxu2 %v490_v3  ;;  %1643 = vmatpush.bf16.msra.mxu3 %v490_v3  ;;  %v1435_v20 = vld [vmem:[%s1975_s0 + $0x98] sm:$0xff]  ;;  %v1436_v24 = vld [vmem:[%s1975_s0 + $0xa0] sm:$0xff]  ;;  %v1437_v28 = vld [vmem:[%s1975_s0 + $0xa8] sm:$0xff] }
   0x9   :  { %v1443_v21 = vld [vmem:[%s1975_s0 + $0xd8] sm:$0xff]  ;;  %v1444_v25 = vld [vmem:[%s1975_s0 + $0xe0] sm:$0xff]  ;;  %v1445_v29 = vld [vmem:[%s1975_s0 + $0xe8] sm:$0xff] }
   0xa   :  { %v1422_v30 = vld [vmem:[%s1975_s0 + $0x30] sm:$0xff]  ;;  %v1423_v34 = vld [vmem:[%s1975_s0 + $0x38] sm:$0xff]  ;;  %v1811_v40 = vld [vmem:[%s1974_s2] ss:$0 sm:$0xff] }
   0xb   :  { %498 = vmatpush.bf16.msra.mxu0 %v1449_v4  ;;  %1644 = vmatpush.bf16.msra.mxu1 %v1449_v4  ;;  %v1430_v31 = vld [vmem:[%s1975_s0 + $0x70] sm:$0xff]  ;;  %v1431_v35 = vld [vmem:[%s1975_s0 + $0x78] sm:$0xff] }
   0xc   :  { %1645 = vmatpush.bf16.msra.mxu2 %v1449_v4  ;;  %1646 = vmatpush.bf16.msra.mxu3 %v1449_v4  ;;  %v1438_v32 = vld [vmem:[%s1975_s0 + $0xb0] sm:$0xff]  ;;  %v1439_v36 = vld [vmem:[%s1975_s0 + $0xb8] sm:$0xff] }
   0xd   :  { %v1446_v33 = vld [vmem:[%s1975_s0 + $0xf0] sm:$0xff]  ;;  %v1447_v37 = vld [vmem:[%s1975_s0 + $0xf8] sm:$0xff] }
   0xf   :  { %499 = vmatpush.bf16.msra.mxu0 %v1448_v5  ;;  %1647 = vmatpush.bf16.msra.mxu1 %v1448_v5 }
  0x10   :  { %1648 = vmatpush.bf16.msra.mxu2 %v1448_v5  ;;  %1649 = vmatpush.bf16.msra.mxu3 %v1448_v5 }
  0x12   :  { %1384 = vmatmul.msk.bf16.vlgmr.msra.gmra.mxu0 %vm391_vm1, %v1416_v6  ;;  %1392 = vmatmul.msk.bf16.vlgmr.msra.gmra.mxu1 %vm391_vm1, %v1424_v7 }
  0x13   :  { %1400 = vmatmul.msk.bf16.vlgmr.msra.gmra.mxu2 %vm391_vm1, %v1432_v8  ;;  %1408 = vmatmul.msk.bf16.vlgmr.msra.gmra.mxu3 %vm391_vm1, %v1440_v9 }
  0x22   :  { %1385 = vmatmul.msk.bf16.gmra.mxu0 %vm391_vm1, %v1417_v10  ;;  %1393 = vmatmul.msk.bf16.gmra.mxu1 %vm391_vm1, %v1425_v11 }
  0x23   :  { %1401 = vmatmul.msk.bf16.gmra.mxu2 %vm391_vm1, %v1433_v12  ;;  %1409 = vmatmul.msk.bf16.gmra.mxu3 %vm391_vm1, %v1441_v13 }
  0x32   :  { %1386 = vmatmul.msk.bf16.gmra.mxu0 %vm391_vm1, %v1418_v14  ;;  %1394 = vmatmul.msk.bf16.gmra.mxu1 %vm391_vm1, %v1426_v15 }
  0x33   :  { %1402 = vmatmul.msk.bf16.gmra.mxu2 %vm391_vm1, %v1434_v16  ;;  %1410 = vmatmul.msk.bf16.gmra.mxu3 %vm391_vm1, %v1442_v17 }
  0x42   :  { %1387 = vmatmul.msk.bf16.gmra.mxu0 %vm391_vm1, %v1419_v18  ;;  %1395 = vmatmul.msk.bf16.gmra.mxu1 %vm391_vm1, %v1427_v19 }
  0x43   :  { %1403 = vmatmul.msk.bf16.gmra.mxu2 %vm391_vm1, %v1435_v20  ;;  %1411 = vmatmul.msk.bf16.gmra.mxu3 %vm391_vm1, %v1443_v21 }
  0x52   :  { %1388 = vmatmul.msk.bf16.gmra.mxu0 %vm391_vm1, %v1420_v22  ;;  %1396 = vmatmul.msk.bf16.gmra.mxu1 %vm391_vm1, %v1428_v23 }
  0x53   :  { %1404 = vmatmul.msk.bf16.gmra.mxu2 %vm391_vm1, %v1436_v24  ;;  %1412 = vmatmul.msk.bf16.gmra.mxu3 %vm391_vm1, %v1444_v25 }
  0x62   :  { %1389 = vmatmul.msk.bf16.gmra.mxu0 %vm391_vm1, %v1421_v26  ;;  %1397 = vmatmul.msk.bf16.gmra.mxu1 %vm391_vm1, %v1429_v27 }
  0x63   :  { %1405 = vmatmul.msk.bf16.gmra.mxu2 %vm391_vm1, %v1437_v28  ;;  %1413 = vmatmul.msk.bf16.gmra.mxu3 %vm391_vm1, %v1445_v29 }
  0x72   :  { %1390 = vmatmul.msk.bf16.gmra.mxu0 %vm391_vm1, %v1422_v30  ;;  %1398 = vmatmul.msk.bf16.gmra.mxu1 %vm391_vm1, %v1430_v31 }
  0x73   :  { %1406 = vmatmul.msk.bf16.gmra.mxu2 %vm391_vm1, %v1438_v32  ;;  %1414 = vmatmul.msk.bf16.gmra.mxu3 %vm391_vm1, %v1446_v33 }
  0x82   :  { %1391 = vmatmul.msk.bf16.gmra.mxu0 %vm391_vm1, %v1423_v34  ;;  %1399 = vmatmul.msk.bf16.gmra.mxu1 %vm391_vm1, %v1431_v35 }
  0x83   :  { %1407 = vmatmul.msk.bf16.gmra.mxu2 %vm391_vm1, %v1439_v36  ;;  %1415 = vmatmul.msk.bf16.gmra.mxu3 %vm391_vm1, %v1447_v37 }
  0x8f   :  { %v501_v38 = vpop.f32.mrf.mxu0  ;;  %v541_v39 = vpop.f32.mrf.mxu1 }
  0x90   :  { %v860_v41 = vadd.f32 %v1811_v40, %v501_v38  ;;  %v876_v42 = vadd.f32 %v1811_v40, %v541_v39 }
  0x92   :  { %v988_v47 = vmul.f32 0.1, %v860_v41  ;;  %v1004_v48 = vmul.f32 0.1, %v876_v42  ;;  %vm924_vm2 = vcmp.gt.f32.partialorder %v860_v41, 0.0  ;;  %vm940_vm3 = vcmp.gt.f32.partialorder %v876_v42, 0.0 }
  0x94   :  { %v1052_v55 = vsel %vm924_vm2, %v860_v41, %v988_v47  ;;  %v1068_v56 = vsel %vm940_vm3, %v876_v42, %v1004_v48 }
  0x96   :  { %v581_v43 = vpop.f32.mrf.mxu2  ;;  %v621_v44 = vpop.f32.mrf.mxu3 }
  0x97   :  { %v503_v45 = vpop.f32.mrf.mxu0  ;;  %v543_v46 = vpop.f32.mrf.mxu1  ;;  %v892_v53 = vadd.f32 %v1811_v40, %v581_v43  ;;  %v908_v54 = vadd.f32 %v1811_v40, %v621_v44 }
  0x98   :  { %v861_v49 = vadd.f32 %v1811_v40, %v503_v45  ;;  %v877_v50 = vadd.f32 %v1811_v40, %v543_v46 }
  0x99   :  { %v1020_v63 = vmul.f32 0.1, %v892_v53  ;;  %v1036_v0 = vmul.f32 0.1, %v908_v54  ;;  %vm956_vm6 = vcmp.gt.f32.partialorder %v892_v53, 0.0  ;;  %vm972_vm7 = vcmp.gt.f32.partialorder %v908_v54, 0.0 }
  0x9a   :  { %vm925_vm4 = vcmp.gt.f32.partialorder %v861_v49, 0.0  ;;  %v989_v51 = vmul.f32 0.1, %v861_v49  ;;  %vm941_vm5 = vcmp.gt.f32.partialorder %v877_v50, 0.0  ;;  %v1005_v52 = vmul.f32 0.1, %v877_v50 }
  0x9b   :  { %v1084_v7 = vsel %vm956_vm6, %v892_v53, %v1020_v63  ;;  %v1100_v8 = vsel %vm972_vm7, %v908_v54, %v1036_v0 }
  0x9c   :  { %v1053_v57 = vsel %vm925_vm4, %v861_v49, %v989_v51  ;;  %v1069_v58 = vsel %vm941_vm5, %v877_v50, %v1005_v52 }
  0x9d   :  { %v1453_v59 = vpack.c.bf16 %v1053_v57, %v1052_v55  ;;  %v1493_v60 = vpack.c.bf16 %v1069_v58, %v1068_v56 }
  0x9e   :  { %v583_v61 = vpop.f32.mrf.mxu2  ;;  %v623_v62 = vpop.f32.mrf.mxu3 }
  0x9f   :  { %1454 = vst [vmem:[%s1976_s3] sm:$0xff] %v1453_v59   ;;  %v893_v1 = vadd.f32 %v1811_v40, %v583_v61  ;;  %v909_v2 = vadd.f32 %v1811_v40, %v623_v62  ;;  %v506_v3 = vpop.f32.mrf.mxu0  ;;  %v546_v4 = vpop.f32.mrf.mxu1 }
  0xa0   :  { %1617 = vst [vmem:[%s1976_s3 + $0x40] sm:$0xff] %v1493_v60   ;;  %v862_v13 = vadd.f32 %v1811_v40, %v506_v3  ;;  %v878_v14 = vadd.f32 %v1811_v40, %v546_v4 }
  0xa1   :  { %vm957_vm8 = vcmp.gt.f32.partialorder %v893_v1, 0.0  ;;  %v1021_v5 = vmul.f32 0.1, %v893_v1  ;;  %vm973_vm9 = vcmp.gt.f32.partialorder %v909_v2, 0.0  ;;  %v1037_v6 = vmul.f32 0.1, %v909_v2 }
  0xa2   :  { %v990_v19 = vmul.f32 0.1, %v862_v13  ;;  %v1006_v20 = vmul.f32 0.1, %v878_v14  ;;  %vm926_vm10 = vcmp.gt.f32.partialorder %v862_v13, 0.0  ;;  %vm942_vm11 = vcmp.gt.f32.partialorder %v878_v14, 0.0 }
  0xa3   :  { %v1085_v9 = vsel %vm957_vm8, %v893_v1, %v1021_v5  ;;  %v1101_v10 = vsel %vm973_vm9, %v909_v2, %v1037_v6 }
  0xa4   :  { %v1533_v11 = vpack.c.bf16 %v1085_v9, %v1084_v7  ;;  %v1573_v12 = vpack.c.bf16 %v1101_v10, %v1100_v8  ;;  %v1054_v27 = vsel %vm926_vm10, %v862_v13, %v990_v19  ;;  %v1070_v28 = vsel %vm942_vm11, %v878_v14, %v1006_v20 }
  0xa6   :  { %1625 = vst [vmem:[%s1976_s3 + $0x80] sm:$0xff] %v1533_v11   ;;  %v586_v15 = vpop.f32.mrf.mxu2  ;;  %v626_v16 = vpop.f32.mrf.mxu3 }
  0xa7   :  { %1633 = vst [vmem:[%s1976_s3 + $0xc0] sm:$0xff] %v1573_v12   ;;  %v508_v17 = vpop.f32.mrf.mxu0  ;;  %v548_v18 = vpop.f32.mrf.mxu1  ;;  %v894_v25 = vadd.f32 %v1811_v40, %v586_v15  ;;  %v910_v26 = vadd.f32 %v1811_v40, %v626_v16 }
  0xa8   :  { %v863_v21 = vadd.f32 %v1811_v40, %v508_v17  ;;  %v879_v22 = vadd.f32 %v1811_v40, %v548_v18 }
  0xa9   :  { %v1022_v35 = vmul.f32 0.1, %v894_v25  ;;  %v1038_v36 = vmul.f32 0.1, %v910_v26  ;;  %vm958_vm14 = vcmp.gt.f32.partialorder %v894_v25, 0.0  ;;  %vm974_vm15 = vcmp.gt.f32.partialorder %v910_v26, 0.0 }
  0xaa   :  { %vm927_vm12 = vcmp.gt.f32.partialorder %v863_v21, 0.0  ;;  %v991_v23 = vmul.f32 0.1, %v863_v21  ;;  %vm943_vm13 = vcmp.gt.f32.partialorder %v879_v22, 0.0  ;;  %v1007_v24 = vmul.f32 0.1, %v879_v22 }
  0xab   :  { %v1086_v44 = vsel %vm958_vm14, %v894_v25, %v1022_v35  ;;  %v1102_v45 = vsel %vm974_vm15, %v910_v26, %v1038_v36 }
  0xac   :  { %v1055_v29 = vsel %vm927_vm12, %v863_v21, %v991_v23  ;;  %v1071_v30 = vsel %vm943_vm13, %v879_v22, %v1007_v24 }
  0xad   :  { %v1458_v31 = vpack.c.bf16 %v1055_v29, %v1054_v27  ;;  %v1498_v32 = vpack.c.bf16 %v1071_v30, %v1070_v28 }
  0xae   :  { %v588_v33 = vpop.f32.mrf.mxu2  ;;  %v628_v34 = vpop.f32.mrf.mxu3 }
  0xaf   :  { %1610 = vst [vmem:[%s1976_s3 + $0x8] sm:$0xff] %v1458_v31   ;;  %v895_v37 = vadd.f32 %v1811_v40, %v588_v33  ;;  %v911_v38 = vadd.f32 %v1811_v40, %v628_v34  ;;  %v511_v39 = vpop.f32.mrf.mxu0  ;;  %v551_v41 = vpop.f32.mrf.mxu1 }
  0xb0   :  { %1618 = vst [vmem:[%s1976_s3 + $0x48] sm:$0xff] %v1498_v32   ;;  %v864_v50 = vadd.f32 %v1811_v40, %v511_v39  ;;  %v880_v51 = vadd.f32 %v1811_v40, %v551_v41 }
  0xb1   :  { %vm959_vm0 = vcmp.gt.f32.partialorder %v895_v37, 0.0  ;;  %v1023_v42 = vmul.f32 0.1, %v895_v37  ;;  %vm975_vm1 = vcmp.gt.f32.partialorder %v911_v38, 0.0  ;;  %v1039_v43 = vmul.f32 0.1, %v911_v38 }
  0xb2   :  { %v992_v56 = vmul.f32 0.1, %v864_v50  ;;  %v1008_v57 = vmul.f32 0.1, %v880_v51  ;;  %vm928_vm2 = vcmp.gt.f32.partialorder %v864_v50, 0.0  ;;  %vm944_vm3 = vcmp.gt.f32.partialorder %v880_v51, 0.0 }
  0xb3   :  { %v1087_v46 = vsel %vm959_vm0, %v895_v37, %v1023_v42  ;;  %v1103_v47 = vsel %vm975_vm1, %v911_v38, %v1039_v43 }
  0xb4   :  { %v1538_v48 = vpack.c.bf16 %v1087_v46, %v1086_v44  ;;  %v1578_v49 = vpack.c.bf16 %v1103_v47, %v1102_v45  ;;  %v1056_v0 = vsel %vm928_vm2, %v864_v50, %v992_v56  ;;  %v1072_v1 = vsel %vm944_vm3, %v880_v51, %v1008_v57 }
  0xb6   :  { %1626 = vst [vmem:[%s1976_s3 + $0x88] sm:$0xff] %v1538_v48   ;;  %v591_v52 = vpop.f32.mrf.mxu2  ;;  %v631_v53 = vpop.f32.mrf.mxu3 }
  0xb7   :  { %1634 = vst [vmem:[%s1976_s3 + $0xc8] sm:$0xff] %v1578_v49   ;;  %v513_v54 = vpop.f32.mrf.mxu0  ;;  %v553_v55 = vpop.f32.mrf.mxu1  ;;  %v896_v62 = vadd.f32 %v1811_v40, %v591_v52  ;;  %v912_v63 = vadd.f32 %v1811_v40, %v631_v53 }
  0xb8   :  { %v865_v58 = vadd.f32 %v1811_v40, %v513_v54  ;;  %v881_v59 = vadd.f32 %v1811_v40, %v553_v55 }
  0xb9   :  { %v1024_v8 = vmul.f32 0.1, %v896_v62  ;;  %v1040_v9 = vmul.f32 0.1, %v912_v63  ;;  %vm960_vm6 = vcmp.gt.f32.partialorder %v896_v62, 0.0  ;;  %vm976_vm7 = vcmp.gt.f32.partialorder %v912_v63, 0.0 }
  0xba   :  { %vm929_vm4 = vcmp.gt.f32.partialorder %v865_v58, 0.0  ;;  %v993_v60 = vmul.f32 0.1, %v865_v58  ;;  %vm945_vm5 = vcmp.gt.f32.partialorder %v881_v59, 0.0  ;;  %v1009_v61 = vmul.f32 0.1, %v881_v59 }
  0xbb   :  { %v1088_v16 = vsel %vm960_vm6, %v896_v62, %v1024_v8  ;;  %v1104_v17 = vsel %vm976_vm7, %v912_v63, %v1040_v9 }
  0xbc   :  { %v1057_v2 = vsel %vm929_vm4, %v865_v58, %v993_v60  ;;  %v1073_v3 = vsel %vm945_vm5, %v881_v59, %v1009_v61 }
  0xbd   :  { %v1463_v4 = vpack.c.bf16 %v1057_v2, %v1056_v0  ;;  %v1503_v5 = vpack.c.bf16 %v1073_v3, %v1072_v1 }
  0xbe   :  { %v593_v6 = vpop.f32.mrf.mxu2  ;;  %v633_v7 = vpop.f32.mrf.mxu3 }
  0xbf   :  { %1611 = vst [vmem:[%s1976_s3 + $0x10] sm:$0xff] %v1463_v4   ;;  %v897_v10 = vadd.f32 %v1811_v40, %v593_v6  ;;  %v913_v11 = vadd.f32 %v1811_v40, %v633_v7  ;;  %v516_v12 = vpop.f32.mrf.mxu0  ;;  %v556_v13 = vpop.f32.mrf.mxu1 }
  0xc0   :  { %1619 = vst [vmem:[%s1976_s3 + $0x50] sm:$0xff] %v1503_v5   ;;  %v866_v22 = vadd.f32 %v1811_v40, %v516_v12  ;;  %v882_v23 = vadd.f32 %v1811_v40, %v556_v13 }
  0xc1   :  { %vm961_vm8 = vcmp.gt.f32.partialorder %v897_v10, 0.0  ;;  %v1025_v14 = vmul.f32 0.1, %v897_v10  ;;  %vm977_vm9 = vcmp.gt.f32.partialorder %v913_v11, 0.0  ;;  %v1041_v15 = vmul.f32 0.1, %v913_v11 }
  0xc2   :  { %v994_v28 = vmul.f32 0.1, %v866_v22  ;;  %v1010_v29 = vmul.f32 0.1, %v882_v23  ;;  %vm930_vm10 = vcmp.gt.f32.partialorder %v866_v22, 0.0  ;;  %vm946_vm11 = vcmp.gt.f32.partialorder %v882_v23, 0.0 }
  0xc3   :  { %v1089_v18 = vsel %vm961_vm8, %v897_v10, %v1025_v14  ;;  %v1105_v19 = vsel %vm977_vm9, %v913_v11, %v1041_v15 }
  0xc4   :  { %v1543_v20 = vpack.c.bf16 %v1089_v18, %v1088_v16  ;;  %v1583_v21 = vpack.c.bf16 %v1105_v19, %v1104_v17  ;;  %v1058_v36 = vsel %vm930_vm10, %v866_v22, %v994_v28  ;;  %v1074_v37 = vsel %vm946_vm11, %v882_v23, %v1010_v29 }
  0xc6   :  { %1627 = vst [vmem:[%s1976_s3 + $0x90] sm:$0xff] %v1543_v20   ;;  %v596_v24 = vpop.f32.mrf.mxu2  ;;  %v636_v25 = vpop.f32.mrf.mxu3 }
  0xc7   :  { %1635 = vst [vmem:[%s1976_s3 + $0xd0] sm:$0xff] %v1583_v21   ;;  %v518_v26 = vpop.f32.mrf.mxu0  ;;  %v558_v27 = vpop.f32.mrf.mxu1  ;;  %v898_v34 = vadd.f32 %v1811_v40, %v596_v24  ;;  %v914_v35 = vadd.f32 %v1811_v40, %v636_v25 }
  0xc8   :  { %v867_v30 = vadd.f32 %v1811_v40, %v518_v26  ;;  %v883_v31 = vadd.f32 %v1811_v40, %v558_v27 }
  0xc9   :  { %v1026_v45 = vmul.f32 0.1, %v898_v34  ;;  %v1042_v46 = vmul.f32 0.1, %v914_v35  ;;  %vm962_vm14 = vcmp.gt.f32.partialorder %v898_v34, 0.0  ;;  %vm978_vm15 = vcmp.gt.f32.partialorder %v914_v35, 0.0 }
  0xca   :  { %vm931_vm12 = vcmp.gt.f32.partialorder %v867_v30, 0.0  ;;  %v995_v32 = vmul.f32 0.1, %v867_v30  ;;  %vm947_vm13 = vcmp.gt.f32.partialorder %v883_v31, 0.0  ;;  %v1011_v33 = vmul.f32 0.1, %v883_v31 }
  0xcb   :  { %v1090_v53 = vsel %vm962_vm14, %v898_v34, %v1026_v45  ;;  %v1106_v54 = vsel %vm978_vm15, %v914_v35, %v1042_v46 }
  0xcc   :  { %v1059_v38 = vsel %vm931_vm12, %v867_v30, %v995_v32  ;;  %v1075_v39 = vsel %vm947_vm13, %v883_v31, %v1011_v33 }
  0xcd   :  { %v1468_v41 = vpack.c.bf16 %v1059_v38, %v1058_v36  ;;  %v1508_v42 = vpack.c.bf16 %v1075_v39, %v1074_v37 }
  0xce   :  { %v598_v43 = vpop.f32.mrf.mxu2  ;;  %v638_v44 = vpop.f32.mrf.mxu3 }
  0xcf   :  { %1612 = vst [vmem:[%s1976_s3 + $0x18] sm:$0xff] %v1468_v41   ;;  %v899_v47 = vadd.f32 %v1811_v40, %v598_v43  ;;  %v915_v48 = vadd.f32 %v1811_v40, %v638_v44  ;;  %v521_v49 = vpop.f32.mrf.mxu0  ;;  %v561_v50 = vpop.f32.mrf.mxu1 }
  0xd0   :  { %1620 = vst [vmem:[%s1976_s3 + $0x58] sm:$0xff] %v1508_v42   ;;  %v868_v59 = vadd.f32 %v1811_v40, %v521_v49  ;;  %v884_v60 = vadd.f32 %v1811_v40, %v561_v50 }
  0xd1   :  { %vm963_vm0 = vcmp.gt.f32.partialorder %v899_v47, 0.0  ;;  %v1027_v51 = vmul.f32 0.1, %v899_v47  ;;  %vm979_vm1 = vcmp.gt.f32.partialorder %v915_v48, 0.0  ;;  %v1043_v52 = vmul.f32 0.1, %v915_v48 }
  0xd2   :  { %v996_v1 = vmul.f32 0.1, %v868_v59  ;;  %v1012_v2 = vmul.f32 0.1, %v884_v60  ;;  %vm932_vm2 = vcmp.gt.f32.partialorder %v868_v59, 0.0  ;;  %vm948_vm3 = vcmp.gt.f32.partialorder %v884_v60, 0.0 }
  0xd3   :  { %v1091_v55 = vsel %vm963_vm0, %v899_v47, %v1027_v51  ;;  %v1107_v56 = vsel %vm979_vm1, %v915_v48, %v1043_v52 }
  0xd4   :  { %v1548_v57 = vpack.c.bf16 %v1091_v55, %v1090_v53  ;;  %v1588_v58 = vpack.c.bf16 %v1107_v56, %v1106_v54  ;;  %v1060_v9 = vsel %vm932_vm2, %v868_v59, %v996_v1  ;;  %v1076_v10 = vsel %vm948_vm3, %v884_v60, %v1012_v2 }
  0xd6   :  { %1628 = vst [vmem:[%s1976_s3 + $0x98] sm:$0xff] %v1548_v57   ;;  %v601_v61 = vpop.f32.mrf.mxu2  ;;  %v641_v62 = vpop.f32.mrf.mxu3 }
  0xd7   :  { %1636 = vst [vmem:[%s1976_s3 + $0xd8] sm:$0xff] %v1588_v58   ;;  %v523_v63 = vpop.f32.mrf.mxu0  ;;  %v563_v0 = vpop.f32.mrf.mxu1  ;;  %v900_v7 = vadd.f32 %v1811_v40, %v601_v61  ;;  %v916_v8 = vadd.f32 %v1811_v40, %v641_v62 }
  0xd8   :  { %v869_v3 = vadd.f32 %v1811_v40, %v523_v63  ;;  %v885_v4 = vadd.f32 %v1811_v40, %v563_v0 }
  0xd9   :  { %v1028_v17 = vmul.f32 0.1, %v900_v7  ;;  %v1044_v18 = vmul.f32 0.1, %v916_v8  ;;  %vm964_vm6 = vcmp.gt.f32.partialorder %v900_v7, 0.0  ;;  %vm980_vm7 = vcmp.gt.f32.partialorder %v916_v8, 0.0 }
  0xda   :  { %vm933_vm4 = vcmp.gt.f32.partialorder %v869_v3, 0.0  ;;  %v997_v5 = vmul.f32 0.1, %v869_v3  ;;  %vm949_vm5 = vcmp.gt.f32.partialorder %v885_v4, 0.0  ;;  %v1013_v6 = vmul.f32 0.1, %v885_v4 }
  0xdb   :  { %v1092_v25 = vsel %vm964_vm6, %v900_v7, %v1028_v17  ;;  %v1108_v26 = vsel %vm980_vm7, %v916_v8, %v1044_v18 }
  0xdc   :  { %v1061_v11 = vsel %vm933_vm4, %v869_v3, %v997_v5  ;;  %v1077_v12 = vsel %vm949_vm5, %v885_v4, %v1013_v6 }
  0xdd   :  { %v1473_v13 = vpack.c.bf16 %v1061_v11, %v1060_v9  ;;  %v1513_v14 = vpack.c.bf16 %v1077_v12, %v1076_v10 }
  0xde   :  { %v603_v15 = vpop.f32.mrf.mxu2  ;;  %v643_v16 = vpop.f32.mrf.mxu3 }
  0xdf   :  { %1613 = vst [vmem:[%s1976_s3 + $0x20] sm:$0xff] %v1473_v13   ;;  %v901_v19 = vadd.f32 %v1811_v40, %v603_v15  ;;  %v917_v20 = vadd.f32 %v1811_v40, %v643_v16  ;;  %v526_v21 = vpop.f32.mrf.mxu0  ;;  %v566_v22 = vpop.f32.mrf.mxu1 }
  0xe0   :  { %1621 = vst [vmem:[%s1976_s3 + $0x60] sm:$0xff] %v1513_v14   ;;  %v870_v31 = vadd.f32 %v1811_v40, %v526_v21  ;;  %v886_v32 = vadd.f32 %v1811_v40, %v566_v22 }
  0xe1   :  { %vm965_vm8 = vcmp.gt.f32.partialorder %v901_v19, 0.0  ;;  %v1029_v23 = vmul.f32 0.1, %v901_v19  ;;  %vm981_vm9 = vcmp.gt.f32.partialorder %v917_v20, 0.0  ;;  %v1045_v24 = vmul.f32 0.1, %v917_v20 }
  0xe2   :  { %v998_v37 = vmul.f32 0.1, %v870_v31  ;;  %v1014_v38 = vmul.f32 0.1, %v886_v32  ;;  %vm934_vm10 = vcmp.gt.f32.partialorder %v870_v31, 0.0  ;;  %vm950_vm11 = vcmp.gt.f32.partialorder %v886_v32, 0.0 }
  0xe3   :  { %v1093_v27 = vsel %vm965_vm8, %v901_v19, %v1029_v23  ;;  %v1109_v28 = vsel %vm981_vm9, %v917_v20, %v1045_v24 }
  0xe4   :  { %v1553_v29 = vpack.c.bf16 %v1093_v27, %v1092_v25  ;;  %v1593_v30 = vpack.c.bf16 %v1109_v28, %v1108_v26  ;;  %v1062_v46 = vsel %vm934_vm10, %v870_v31, %v998_v37  ;;  %v1078_v47 = vsel %vm950_vm11, %v886_v32, %v1014_v38 }
  0xe6   :  { %1629 = vst [vmem:[%s1976_s3 + $0xa0] sm:$0xff] %v1553_v29   ;;  %v606_v33 = vpop.f32.mrf.mxu2  ;;  %v646_v34 = vpop.f32.mrf.mxu3 }
  0xe7   :  { %1637 = vst [vmem:[%s1976_s3 + $0xe0] sm:$0xff] %v1593_v30   ;;  %v528_v35 = vpop.f32.mrf.mxu0  ;;  %v568_v36 = vpop.f32.mrf.mxu1  ;;  %v902_v44 = vadd.f32 %v1811_v40, %v606_v33  ;;  %v918_v45 = vadd.f32 %v1811_v40, %v646_v34 }
  0xe8   :  { %v871_v39 = vadd.f32 %v1811_v40, %v528_v35  ;;  %v887_v41 = vadd.f32 %v1811_v40, %v568_v36 }
  0xe9   :  { %v1030_v54 = vmul.f32 0.1, %v902_v44  ;;  %v1046_v55 = vmul.f32 0.1, %v918_v45  ;;  %vm966_vm14 = vcmp.gt.f32.partialorder %v902_v44, 0.0  ;;  %vm982_vm15 = vcmp.gt.f32.partialorder %v918_v45, 0.0 }
  0xea   :  { %vm935_vm12 = vcmp.gt.f32.partialorder %v871_v39, 0.0  ;;  %v999_v42 = vmul.f32 0.1, %v871_v39  ;;  %vm951_vm13 = vcmp.gt.f32.partialorder %v887_v41, 0.0  ;;  %v1015_v43 = vmul.f32 0.1, %v887_v41 }
  0xeb   :  { %v1094_v62 = vsel %vm966_vm14, %v902_v44, %v1030_v54  ;;  %v1110_v63 = vsel %vm982_vm15, %v918_v45, %v1046_v55 }
  0xec   :  { %v1063_v48 = vsel %vm935_vm12, %v871_v39, %v999_v42  ;;  %v1079_v49 = vsel %vm951_vm13, %v887_v41, %v1015_v43 }
  0xed   :  { %v1478_v50 = vpack.c.bf16 %v1063_v48, %v1062_v46  ;;  %v1518_v51 = vpack.c.bf16 %v1079_v49, %v1078_v47 }
  0xee   :  { %v608_v52 = vpop.f32.mrf.mxu2  ;;  %v648_v53 = vpop.f32.mrf.mxu3 }
  0xef   :  { %1614 = vst [vmem:[%s1976_s3 + $0x28] sm:$0xff] %v1478_v50   ;;  %v903_v56 = vadd.f32 %v1811_v40, %v608_v52  ;;  %v919_v57 = vadd.f32 %v1811_v40, %v648_v53  ;;  %v531_v58 = vpop.f32.mrf.mxu0  ;;  %v571_v59 = vpop.f32.mrf.mxu1 }
  0xf0   :  { %1622 = vst [vmem:[%s1976_s3 + $0x68] sm:$0xff] %v1518_v51   ;;  %v872_v4 = vadd.f32 %v1811_v40, %v531_v58  ;;  %v888_v5 = vadd.f32 %v1811_v40, %v571_v59 }
  0xf1   :  { %vm967_vm0 = vcmp.gt.f32.partialorder %v903_v56, 0.0  ;;  %v1031_v60 = vmul.f32 0.1, %v903_v56  ;;  %vm983_vm1 = vcmp.gt.f32.partialorder %v919_v57, 0.0  ;;  %v1047_v61 = vmul.f32 0.1, %v919_v57 }
  0xf2   :  { %v1000_v10 = vmul.f32 0.1, %v872_v4  ;;  %v1016_v11 = vmul.f32 0.1, %v888_v5  ;;  %vm936_vm2 = vcmp.gt.f32.partialorder %v872_v4, 0.0  ;;  %vm952_vm3 = vcmp.gt.f32.partialorder %v888_v5, 0.0 }
  0xf3   :  { %v1095_v0 = vsel %vm967_vm0, %v903_v56, %v1031_v60  ;;  %v1111_v1 = vsel %vm983_vm1, %v919_v57, %v1047_v61 }
  0xf4   :  { %v1558_v2 = vpack.c.bf16 %v1095_v0, %v1094_v62  ;;  %v1598_v3 = vpack.c.bf16 %v1111_v1, %v1110_v63  ;;  %v1064_v18 = vsel %vm936_vm2, %v872_v4, %v1000_v10  ;;  %v1080_v19 = vsel %vm952_vm3, %v888_v5, %v1016_v11 }
  0xf6   :  { %1630 = vst [vmem:[%s1976_s3 + $0xa8] sm:$0xff] %v1558_v2   ;;  %v611_v6 = vpop.f32.mrf.mxu2  ;;  %v651_v7 = vpop.f32.mrf.mxu3 }
  0xf7   :  { %1638 = vst [vmem:[%s1976_s3 + $0xe8] sm:$0xff] %v1598_v3   ;;  %v533_v8 = vpop.f32.mrf.mxu0  ;;  %v573_v9 = vpop.f32.mrf.mxu1  ;;  %v904_v16 = vadd.f32 %v1811_v40, %v611_v6  ;;  %v920_v17 = vadd.f32 %v1811_v40, %v651_v7 }
  0xf8   :  { %v873_v12 = vadd.f32 %v1811_v40, %v533_v8  ;;  %v889_v13 = vadd.f32 %v1811_v40, %v573_v9 }
  0xf9   :  { %v1032_v26 = vmul.f32 0.1, %v904_v16  ;;  %v1048_v27 = vmul.f32 0.1, %v920_v17  ;;  %vm968_vm6 = vcmp.gt.f32.partialorder %v904_v16, 0.0  ;;  %vm984_vm7 = vcmp.gt.f32.partialorder %v920_v17, 0.0 }
  0xfa   :  { %vm937_vm4 = vcmp.gt.f32.partialorder %v873_v12, 0.0  ;;  %v1001_v14 = vmul.f32 0.1, %v873_v12  ;;  %vm953_vm5 = vcmp.gt.f32.partialorder %v889_v13, 0.0  ;;  %v1017_v15 = vmul.f32 0.1, %v889_v13 }
  0xfb   :  { %v1096_v34 = vsel %vm968_vm6, %v904_v16, %v1032_v26  ;;  %v1112_v35 = vsel %vm984_vm7, %v920_v17, %v1048_v27 }
  0xfc   :  { %v1065_v20 = vsel %vm937_vm4, %v873_v12, %v1001_v14  ;;  %v1081_v21 = vsel %vm953_vm5, %v889_v13, %v1017_v15 }
  0xfd   :  { %v1483_v22 = vpack.c.bf16 %v1065_v20, %v1064_v18  ;;  %v1523_v23 = vpack.c.bf16 %v1081_v21, %v1080_v19 }
  0xfe   :  { %v613_v24 = vpop.f32.mrf.mxu2  ;;  %v653_v25 = vpop.f32.mrf.mxu3 }
  0xff   :  { %1615 = vst [vmem:[%s1976_s3 + $0x30] sm:$0xff] %v1483_v22   ;;  %v905_v28 = vadd.f32 %v1811_v40, %v613_v24  ;;  %v921_v29 = vadd.f32 %v1811_v40, %v653_v25  ;;  %v536_v30 = vpop.f32.mrf.mxu0  ;;  %v576_v31 = vpop.f32.mrf.mxu1 }
 0x100   :  { %1623 = vst [vmem:[%s1976_s3 + $0x70] sm:$0xff] %v1523_v23   ;;  %v874_v41 = vadd.f32 %v1811_v40, %v536_v30  ;;  %v890_v42 = vadd.f32 %v1811_v40, %v576_v31 }
 0x101   :  { %vm969_vm8 = vcmp.gt.f32.partialorder %v905_v28, 0.0  ;;  %v1033_v32 = vmul.f32 0.1, %v905_v28  ;;  %vm985_vm9 = vcmp.gt.f32.partialorder %v921_v29, 0.0  ;;  %v1049_v33 = vmul.f32 0.1, %v921_v29 }
 0x102   :  { %v1002_v47 = vmul.f32 0.1, %v874_v41  ;;  %v1018_v48 = vmul.f32 0.1, %v890_v42  ;;  %vm938_vm10 = vcmp.gt.f32.partialorder %v874_v41, 0.0  ;;  %vm954_vm11 = vcmp.gt.f32.partialorder %v890_v42, 0.0 }
 0x103   :  { %v1097_v36 = vsel %vm969_vm8, %v905_v28, %v1033_v32  ;;  %v1113_v37 = vsel %vm985_vm9, %v921_v29, %v1049_v33 }
 0x104   :  { %v1563_v38 = vpack.c.bf16 %v1097_v36, %v1096_v34  ;;  %v1603_v39 = vpack.c.bf16 %v1113_v37, %v1112_v35  ;;  %v1066_v55 = vsel %vm938_vm10, %v874_v41, %v1002_v47  ;;  %v1082_v56 = vsel %vm954_vm11, %v890_v42, %v1018_v48 }
 0x106   :  { %1631 = vst [vmem:[%s1976_s3 + $0xb0] sm:$0xff] %v1563_v38   ;;  %v616_v43 = vpop.f32.mrf.mxu2  ;;  %v656_v44 = vpop.f32.mrf.mxu3 }
 0x107   :  { %1639 = vst [vmem:[%s1976_s3 + $0xf0] sm:$0xff] %v1603_v39   ;;  %v538_v45 = vpop.f32.mrf.mxu0  ;;  %v578_v46 = vpop.f32.mrf.mxu1  ;;  %v906_v53 = vadd.f32 %v1811_v40, %v616_v43  ;;  %v922_v54 = vadd.f32 %v1811_v40, %v656_v44 }
 0x108   :  { %v875_v49 = vadd.f32 %v1811_v40, %v538_v45  ;;  %v891_v50 = vadd.f32 %v1811_v40, %v578_v46 }
 0x109   :  { %v1034_v63 = vmul.f32 0.1, %v906_v53  ;;  %v1050_v0 = vmul.f32 0.1, %v922_v54  ;;  %vm970_vm14 = vcmp.gt.f32.partialorder %v906_v53, 0.0  ;;  %vm986_vm15 = vcmp.gt.f32.partialorder %v922_v54, 0.0 }
 0x10a   :  { %vm939_vm12 = vcmp.gt.f32.partialorder %v875_v49, 0.0  ;;  %v1003_v51 = vmul.f32 0.1, %v875_v49  ;;  %vm955_vm13 = vcmp.gt.f32.partialorder %v891_v50, 0.0  ;;  %v1019_v52 = vmul.f32 0.1, %v891_v50 }
 0x10b   :  { %v1098_v5 = vsel %vm970_vm14, %v906_v53, %v1034_v63  ;;  %v1114_v6 = vsel %vm986_vm15, %v922_v54, %v1050_v0 }
 0x10c   :  { %v1067_v57 = vsel %vm939_vm12, %v875_v49, %v1003_v51  ;;  %v1083_v58 = vsel %vm955_vm13, %v891_v50, %v1019_v52 }
 0x10d   :  { %v1488_v59 = vpack.c.bf16 %v1067_v57, %v1066_v55  ;;  %v1528_v60 = vpack.c.bf16 %v1083_v58, %v1082_v56 }
 0x10e   :  { %v618_v61 = vpop.f32.mrf.mxu2  ;;  %v658_v62 = vpop.f32.mrf.mxu3 }
 0x10f   :  { %1616 = vst [vmem:[%s1976_s3 + $0x38] sm:$0xff] %v1488_v59   ;;  %v907_v1 = vadd.f32 %v1811_v40, %v618_v61  ;;  %v923_v2 = vadd.f32 %v1811_v40, %v658_v62 }
 0x110   :  { %1624 = vst [vmem:[%s1976_s3 + $0x78] sm:$0xff] %v1528_v60  }
 0x111   :  { %vm971_vm0 = vcmp.gt.f32.partialorder %v907_v1, 0.0  ;;  %v1035_v3 = vmul.f32 0.1, %v907_v1  ;;  %vm987_vm1 = vcmp.gt.f32.partialorder %v923_v2, 0.0  ;;  %v1051_v4 = vmul.f32 0.1, %v923_v2 }
 0x113   :  { %v1099_v7 = vsel %vm971_vm0, %v907_v1, %v1035_v3  ;;  %v1115_v8 = vsel %vm987_vm1, %v923_v2, %v1051_v4 }
 0x114   :  { %v1568_v9 = vpack.c.bf16 %v1099_v7, %v1098_v5  ;;  %v1608_v10 = vpack.c.bf16 %v1115_v8, %v1114_v6 }
 0x116   :  { %1632 = vst [vmem:[%s1976_s3 + $0xb8] sm:$0xff] %v1568_v9  }
 0x117   :  { %1640 = vst [vmem:[%s1976_s3 + $0xf8] sm:$0xff] %v1608_v10  }

// kernel: yolov3_forward.64
= control target key start
LH: loop header
LB: loop body
LE: loop exit
PB: predicated region body
PF: predicated region fallthrough
CT: control target
= control target key end

     0   :  { %vm469_vm0 = vcmask 1043456   ;;  %vm372_vm1 = vcmask 64512   ;;  %s1932_s1 = inlined_call_operand.vmem [shape: bf16[8,128], index: 1, kind: input, shape index: {}]   ;;  %s1933_s0 = inlined_call_operand.vmem [shape: bf16[512,8], index: 0, kind: input, shape index: {}]   ;;  %s1934_s2 = inlined_call_operand.vmem [shape: f32[1,128], index: 2, kind: input, shape index: {}]   ;;  %s1935_s3 = inlined_call_operand.vmem [shape: bf16[512,128], index: 3, kind: output, shape index: {}]  }
   0x1   :  { %v211_v0 = vld [vmem:[%s1932_s1] sm:$0xf]  ;;  %v1390_v6 = vld [vmem:[%s1933_s0 + $0x8] sm:$0xff]  ;;  %v1391_v10 = vld [vmem:[%s1933_s0 + $0x10] sm:$0xff] }
   0x2   :  { %v471_v1 = vsel %vm469_vm0, %v211_v0, 0  ;;  %v1389_v2 = vld [vmem:[%s1933_s0] sm:$0xff]  ;;  %v1398_v7 = vld [vmem:[%s1933_s0 + $0x48] sm:$0xff]  ;;  %v1399_v11 = vld [vmem:[%s1933_s0 + $0x50] sm:$0xff] }
   0x3   :  { %v1397_v3 = vld [vmem:[%s1933_s0 + $0x40] sm:$0xff]  ;;  %480 = vmatpush.bf16.msra.mxu0 %v471_v1  ;;  %1612 = vmatpush.bf16.msra.mxu1 %v471_v1  ;;  %v1406_v8 = vld [vmem:[%s1933_s0 + $0x88] sm:$0xff]  ;;  %v1407_v12 = vld [vmem:[%s1933_s0 + $0x90] sm:$0xff] }
   0x4   :  { %v1405_v4 = vld [vmem:[%s1933_s0 + $0x80] sm:$0xff]  ;;  %1613 = vmatpush.bf16.msra.mxu2 %v471_v1  ;;  %1614 = vmatpush.bf16.msra.mxu3 %v471_v1  ;;  %v1414_v9 = vld [vmem:[%s1933_s0 + $0xc8] sm:$0xff]  ;;  %v1415_v13 = vld [vmem:[%s1933_s0 + $0xd0] sm:$0xff] }
   0x5   :  { %v1413_v5 = vld [vmem:[%s1933_s0 + $0xc0] sm:$0xff]  ;;  %v1392_v14 = vld [vmem:[%s1933_s0 + $0x18] sm:$0xff]  ;;  %v1394_v22 = vld [vmem:[%s1933_s0 + $0x28] sm:$0xff] }
   0x6   :  { %1357 = vmatmul.msk.bf16.vlgmr.msra.gmra.mxu0 %vm372_vm1, %v1389_v2  ;;  %1365 = vmatmul.msk.bf16.vlgmr.msra.gmra.mxu1 %vm372_vm1, %v1397_v3  ;;  %v1400_v15 = vld [vmem:[%s1933_s0 + $0x58] sm:$0xff]  ;;  %v1393_v18 = vld [vmem:[%s1933_s0 + $0x20] sm:$0xff]  ;;  %v1402_v23 = vld [vmem:[%s1933_s0 + $0x68] sm:$0xff] }
   0x7   :  { %1373 = vmatmul.msk.bf16.vlgmr.msra.gmra.mxu2 %vm372_vm1, %v1405_v4  ;;  %1381 = vmatmul.msk.bf16.vlgmr.msra.gmra.mxu3 %vm372_vm1, %v1413_v5  ;;  %v1408_v16 = vld [vmem:[%s1933_s0 + $0x98] sm:$0xff]  ;;  %v1401_v19 = vld [vmem:[%s1933_s0 + $0x60] sm:$0xff]  ;;  %v1410_v24 = vld [vmem:[%s1933_s0 + $0xa8] sm:$0xff] }
   0x8   :  { %v1416_v17 = vld [vmem:[%s1933_s0 + $0xd8] sm:$0xff]  ;;  %v1409_v20 = vld [vmem:[%s1933_s0 + $0xa0] sm:$0xff]  ;;  %v1418_v25 = vld [vmem:[%s1933_s0 + $0xe8] sm:$0xff] }
   0x9   :  { %v1417_v21 = vld [vmem:[%s1933_s0 + $0xe0] sm:$0xff]  ;;  %v1395_v26 = vld [vmem:[%s1933_s0 + $0x30] sm:$0xff]  ;;  %v1396_v30 = vld [vmem:[%s1933_s0 + $0x38] sm:$0xff] }
   0xa   :  { %v1403_v27 = vld [vmem:[%s1933_s0 + $0x70] sm:$0xff]  ;;  %v1404_v31 = vld [vmem:[%s1933_s0 + $0x78] sm:$0xff]  ;;  %v1770_v36 = vld [vmem:[%s1934_s2] ss:$0 sm:$0xff] }
   0xb   :  { %v1411_v28 = vld [vmem:[%s1933_s0 + $0xb0] sm:$0xff]  ;;  %v1412_v32 = vld [vmem:[%s1933_s0 + $0xb8] sm:$0xff] }
   0xc   :  { %v1419_v29 = vld [vmem:[%s1933_s0 + $0xf0] sm:$0xff]  ;;  %v1420_v33 = vld [vmem:[%s1933_s0 + $0xf8] sm:$0xff] }
  0x16   :  { %1358 = vmatmul.msk.bf16.gmra.mxu0 %vm372_vm1, %v1390_v6  ;;  %1366 = vmatmul.msk.bf16.gmra.mxu1 %vm372_vm1, %v1398_v7 }
  0x17   :  { %1374 = vmatmul.msk.bf16.gmra.mxu2 %vm372_vm1, %v1406_v8  ;;  %1382 = vmatmul.msk.bf16.gmra.mxu3 %vm372_vm1, %v1414_v9 }
  0x26   :  { %1359 = vmatmul.msk.bf16.gmra.mxu0 %vm372_vm1, %v1391_v10  ;;  %1367 = vmatmul.msk.bf16.gmra.mxu1 %vm372_vm1, %v1399_v11 }
  0x27   :  { %1375 = vmatmul.msk.bf16.gmra.mxu2 %vm372_vm1, %v1407_v12  ;;  %1383 = vmatmul.msk.bf16.gmra.mxu3 %vm372_vm1, %v1415_v13 }
  0x36   :  { %1360 = vmatmul.msk.bf16.gmra.mxu0 %vm372_vm1, %v1392_v14  ;;  %1368 = vmatmul.msk.bf16.gmra.mxu1 %vm372_vm1, %v1400_v15 }
  0x37   :  { %1376 = vmatmul.msk.bf16.gmra.mxu2 %vm372_vm1, %v1408_v16  ;;  %1384 = vmatmul.msk.bf16.gmra.mxu3 %vm372_vm1, %v1416_v17 }
  0x46   :  { %1361 = vmatmul.msk.bf16.gmra.mxu0 %vm372_vm1, %v1393_v18  ;;  %1369 = vmatmul.msk.bf16.gmra.mxu1 %vm372_vm1, %v1401_v19 }
  0x47   :  { %1377 = vmatmul.msk.bf16.gmra.mxu2 %vm372_vm1, %v1409_v20  ;;  %1385 = vmatmul.msk.bf16.gmra.mxu3 %vm372_vm1, %v1417_v21 }
  0x56   :  { %1362 = vmatmul.msk.bf16.gmra.mxu0 %vm372_vm1, %v1394_v22  ;;  %1370 = vmatmul.msk.bf16.gmra.mxu1 %vm372_vm1, %v1402_v23 }
  0x57   :  { %1378 = vmatmul.msk.bf16.gmra.mxu2 %vm372_vm1, %v1410_v24  ;;  %1386 = vmatmul.msk.bf16.gmra.mxu3 %vm372_vm1, %v1418_v25 }
  0x66   :  { %1363 = vmatmul.msk.bf16.gmra.mxu0 %vm372_vm1, %v1395_v26  ;;  %1371 = vmatmul.msk.bf16.gmra.mxu1 %vm372_vm1, %v1403_v27 }
  0x67   :  { %1379 = vmatmul.msk.bf16.gmra.mxu2 %vm372_vm1, %v1411_v28  ;;  %1387 = vmatmul.msk.bf16.gmra.mxu3 %vm372_vm1, %v1419_v29 }
  0x76   :  { %1364 = vmatmul.msk.bf16.gmra.mxu0 %vm372_vm1, %v1396_v30  ;;  %1372 = vmatmul.msk.bf16.gmra.mxu1 %vm372_vm1, %v1404_v31 }
  0x77   :  { %1380 = vmatmul.msk.bf16.gmra.mxu2 %vm372_vm1, %v1412_v32  ;;  %1388 = vmatmul.msk.bf16.gmra.mxu3 %vm372_vm1, %v1420_v33 }
  0x83   :  { %v482_v34 = vpop.f32.mrf.mxu0  ;;  %v522_v35 = vpop.f32.mrf.mxu1 }
  0x84   :  { %v841_v37 = vadd.f32 %v1770_v36, %v482_v34  ;;  %v857_v38 = vadd.f32 %v1770_v36, %v522_v35 }
  0x86   :  { %v969_v43 = vmul.f32 0.1, %v841_v37  ;;  %v985_v44 = vmul.f32 0.1, %v857_v38  ;;  %vm905_vm2 = vcmp.gt.f32.partialorder %v841_v37, 0.0  ;;  %vm921_vm3 = vcmp.gt.f32.partialorder %v857_v38, 0.0 }
  0x88   :  { %v1033_v51 = vsel %vm905_vm2, %v841_v37, %v969_v43  ;;  %v1049_v52 = vsel %vm921_vm3, %v857_v38, %v985_v44 }
  0x8a   :  { %v562_v39 = vpop.f32.mrf.mxu2  ;;  %v602_v40 = vpop.f32.mrf.mxu3 }
  0x8b   :  { %v484_v41 = vpop.f32.mrf.mxu0  ;;  %v524_v42 = vpop.f32.mrf.mxu1  ;;  %v873_v49 = vadd.f32 %v1770_v36, %v562_v39  ;;  %v889_v50 = vadd.f32 %v1770_v36, %v602_v40 }
  0x8c   :  { %v842_v45 = vadd.f32 %v1770_v36, %v484_v41  ;;  %v858_v46 = vadd.f32 %v1770_v36, %v524_v42 }
  0x8d   :  { %v1001_v59 = vmul.f32 0.1, %v873_v49  ;;  %v1017_v60 = vmul.f32 0.1, %v889_v50  ;;  %vm937_vm6 = vcmp.gt.f32.partialorder %v873_v49, 0.0  ;;  %vm953_vm7 = vcmp.gt.f32.partialorder %v889_v50, 0.0 }
  0x8e   :  { %vm906_vm4 = vcmp.gt.f32.partialorder %v842_v45, 0.0  ;;  %v970_v47 = vmul.f32 0.1, %v842_v45  ;;  %vm922_vm5 = vcmp.gt.f32.partialorder %v858_v46, 0.0  ;;  %v986_v48 = vmul.f32 0.1, %v858_v46 }
  0x8f   :  { %v1065_v3 = vsel %vm937_vm6, %v873_v49, %v1001_v59  ;;  %v1081_v4 = vsel %vm953_vm7, %v889_v50, %v1017_v60 }
  0x90   :  { %v1034_v53 = vsel %vm906_vm4, %v842_v45, %v970_v47  ;;  %v1050_v54 = vsel %vm922_vm5, %v858_v46, %v986_v48 }
  0x91   :  { %v1424_v55 = vpack.c.bf16 %v1034_v53, %v1033_v51  ;;  %v1464_v56 = vpack.c.bf16 %v1050_v54, %v1049_v52 }
  0x92   :  { %v564_v57 = vpop.f32.mrf.mxu2  ;;  %v604_v58 = vpop.f32.mrf.mxu3 }
  0x93   :  { %1425 = vst [vmem:[%s1935_s3] sm:$0xff] %v1424_v55   ;;  %v874_v61 = vadd.f32 %v1770_v36, %v564_v57  ;;  %v890_v62 = vadd.f32 %v1770_v36, %v604_v58  ;;  %v487_v63 = vpop.f32.mrf.mxu0  ;;  %v527_v0 = vpop.f32.mrf.mxu1 }
  0x94   :  { %1588 = vst [vmem:[%s1935_s3 + $0x40] sm:$0xff] %v1464_v56   ;;  %v843_v9 = vadd.f32 %v1770_v36, %v487_v63  ;;  %v859_v10 = vadd.f32 %v1770_v36, %v527_v0 }
  0x95   :  { %vm938_vm8 = vcmp.gt.f32.partialorder %v874_v61, 0.0  ;;  %v1002_v1 = vmul.f32 0.1, %v874_v61  ;;  %vm954_vm9 = vcmp.gt.f32.partialorder %v890_v62, 0.0  ;;  %v1018_v2 = vmul.f32 0.1, %v890_v62 }
  0x96   :  { %v971_v15 = vmul.f32 0.1, %v843_v9  ;;  %v987_v16 = vmul.f32 0.1, %v859_v10  ;;  %vm907_vm10 = vcmp.gt.f32.partialorder %v843_v9, 0.0  ;;  %vm923_vm11 = vcmp.gt.f32.partialorder %v859_v10, 0.0 }
  0x97   :  { %v1066_v5 = vsel %vm938_vm8, %v874_v61, %v1002_v1  ;;  %v1082_v6 = vsel %vm954_vm9, %v890_v62, %v1018_v2 }
  0x98   :  { %v1504_v7 = vpack.c.bf16 %v1066_v5, %v1065_v3  ;;  %v1544_v8 = vpack.c.bf16 %v1082_v6, %v1081_v4  ;;  %v1035_v23 = vsel %vm907_vm10, %v843_v9, %v971_v15  ;;  %v1051_v24 = vsel %vm923_vm11, %v859_v10, %v987_v16 }
  0x9a   :  { %1596 = vst [vmem:[%s1935_s3 + $0x80] sm:$0xff] %v1504_v7   ;;  %v567_v11 = vpop.f32.mrf.mxu2  ;;  %v607_v12 = vpop.f32.mrf.mxu3 }
  0x9b   :  { %1604 = vst [vmem:[%s1935_s3 + $0xc0] sm:$0xff] %v1544_v8   ;;  %v489_v13 = vpop.f32.mrf.mxu0  ;;  %v529_v14 = vpop.f32.mrf.mxu1  ;;  %v875_v21 = vadd.f32 %v1770_v36, %v567_v11  ;;  %v891_v22 = vadd.f32 %v1770_v36, %v607_v12 }
  0x9c   :  { %v844_v17 = vadd.f32 %v1770_v36, %v489_v13  ;;  %v860_v18 = vadd.f32 %v1770_v36, %v529_v14 }
  0x9d   :  { %v1003_v31 = vmul.f32 0.1, %v875_v21  ;;  %v1019_v32 = vmul.f32 0.1, %v891_v22  ;;  %vm939_vm14 = vcmp.gt.f32.partialorder %v875_v21, 0.0  ;;  %vm955_vm15 = vcmp.gt.f32.partialorder %v891_v22, 0.0 }
  0x9e   :  { %vm908_vm12 = vcmp.gt.f32.partialorder %v844_v17, 0.0  ;;  %v972_v19 = vmul.f32 0.1, %v844_v17  ;;  %vm924_vm13 = vcmp.gt.f32.partialorder %v860_v18, 0.0  ;;  %v988_v20 = vmul.f32 0.1, %v860_v18 }
  0x9f   :  { %v1067_v40 = vsel %vm939_vm14, %v875_v21, %v1003_v31  ;;  %v1083_v41 = vsel %vm955_vm15, %v891_v22, %v1019_v32 }
  0xa0   :  { %v1036_v25 = vsel %vm908_vm12, %v844_v17, %v972_v19  ;;  %v1052_v26 = vsel %vm924_vm13, %v860_v18, %v988_v20 }
  0xa1   :  { %v1429_v27 = vpack.c.bf16 %v1036_v25, %v1035_v23  ;;  %v1469_v28 = vpack.c.bf16 %v1052_v26, %v1051_v24 }
  0xa2   :  { %v569_v29 = vpop.f32.mrf.mxu2  ;;  %v609_v30 = vpop.f32.mrf.mxu3 }
  0xa3   :  { %1581 = vst [vmem:[%s1935_s3 + $0x8] sm:$0xff] %v1429_v27   ;;  %v876_v33 = vadd.f32 %v1770_v36, %v569_v29  ;;  %v892_v34 = vadd.f32 %v1770_v36, %v609_v30  ;;  %v492_v35 = vpop.f32.mrf.mxu0  ;;  %v532_v37 = vpop.f32.mrf.mxu1 }
  0xa4   :  { %1589 = vst [vmem:[%s1935_s3 + $0x48] sm:$0xff] %v1469_v28   ;;  %v845_v46 = vadd.f32 %v1770_v36, %v492_v35  ;;  %v861_v47 = vadd.f32 %v1770_v36, %v532_v37 }
  0xa5   :  { %vm940_vm0 = vcmp.gt.f32.partialorder %v876_v33, 0.0  ;;  %v1004_v38 = vmul.f32 0.1, %v876_v33  ;;  %vm956_vm1 = vcmp.gt.f32.partialorder %v892_v34, 0.0  ;;  %v1020_v39 = vmul.f32 0.1, %v892_v34 }
  0xa6   :  { %v973_v52 = vmul.f32 0.1, %v845_v46  ;;  %v989_v53 = vmul.f32 0.1, %v861_v47  ;;  %vm909_vm2 = vcmp.gt.f32.partialorder %v845_v46, 0.0  ;;  %vm925_vm3 = vcmp.gt.f32.partialorder %v861_v47, 0.0 }
  0xa7   :  { %v1068_v42 = vsel %vm940_vm0, %v876_v33, %v1004_v38  ;;  %v1084_v43 = vsel %vm956_vm1, %v892_v34, %v1020_v39 }
  0xa8   :  { %v1509_v44 = vpack.c.bf16 %v1068_v42, %v1067_v40  ;;  %v1549_v45 = vpack.c.bf16 %v1084_v43, %v1083_v41  ;;  %v1037_v60 = vsel %vm909_vm2, %v845_v46, %v973_v52  ;;  %v1053_v61 = vsel %vm925_vm3, %v861_v47, %v989_v53 }
  0xaa   :  { %1597 = vst [vmem:[%s1935_s3 + $0x88] sm:$0xff] %v1509_v44   ;;  %v572_v48 = vpop.f32.mrf.mxu2  ;;  %v612_v49 = vpop.f32.mrf.mxu3 }
  0xab   :  { %1605 = vst [vmem:[%s1935_s3 + $0xc8] sm:$0xff] %v1549_v45   ;;  %v494_v50 = vpop.f32.mrf.mxu0  ;;  %v534_v51 = vpop.f32.mrf.mxu1  ;;  %v877_v58 = vadd.f32 %v1770_v36, %v572_v48  ;;  %v893_v59 = vadd.f32 %v1770_v36, %v612_v49 }
  0xac   :  { %v846_v54 = vadd.f32 %v1770_v36, %v494_v50  ;;  %v862_v55 = vadd.f32 %v1770_v36, %v534_v51 }
  0xad   :  { %v1005_v4 = vmul.f32 0.1, %v877_v58  ;;  %v1021_v5 = vmul.f32 0.1, %v893_v59  ;;  %vm941_vm6 = vcmp.gt.f32.partialorder %v877_v58, 0.0  ;;  %vm957_vm7 = vcmp.gt.f32.partialorder %v893_v59, 0.0 }
  0xae   :  { %vm910_vm4 = vcmp.gt.f32.partialorder %v846_v54, 0.0  ;;  %v974_v56 = vmul.f32 0.1, %v846_v54  ;;  %vm926_vm5 = vcmp.gt.f32.partialorder %v862_v55, 0.0  ;;  %v990_v57 = vmul.f32 0.1, %v862_v55 }
  0xaf   :  { %v1069_v12 = vsel %vm941_vm6, %v877_v58, %v1005_v4  ;;  %v1085_v13 = vsel %vm957_vm7, %v893_v59, %v1021_v5 }
  0xb0   :  { %v1038_v62 = vsel %vm910_vm4, %v846_v54, %v974_v56  ;;  %v1054_v63 = vsel %vm926_vm5, %v862_v55, %v990_v57 }
  0xb1   :  { %v1434_v0 = vpack.c.bf16 %v1038_v62, %v1037_v60  ;;  %v1474_v1 = vpack.c.bf16 %v1054_v63, %v1053_v61 }
  0xb2   :  { %v574_v2 = vpop.f32.mrf.mxu2  ;;  %v614_v3 = vpop.f32.mrf.mxu3 }
  0xb3   :  { %1582 = vst [vmem:[%s1935_s3 + $0x10] sm:$0xff] %v1434_v0   ;;  %v878_v6 = vadd.f32 %v1770_v36, %v574_v2  ;;  %v894_v7 = vadd.f32 %v1770_v36, %v614_v3  ;;  %v497_v8 = vpop.f32.mrf.mxu0  ;;  %v537_v9 = vpop.f32.mrf.mxu1 }
  0xb4   :  { %1590 = vst [vmem:[%s1935_s3 + $0x50] sm:$0xff] %v1474_v1   ;;  %v847_v18 = vadd.f32 %v1770_v36, %v497_v8  ;;  %v863_v19 = vadd.f32 %v1770_v36, %v537_v9 }
  0xb5   :  { %vm942_vm8 = vcmp.gt.f32.partialorder %v878_v6, 0.0  ;;  %v1006_v10 = vmul.f32 0.1, %v878_v6  ;;  %vm958_vm9 = vcmp.gt.f32.partialorder %v894_v7, 0.0  ;;  %v1022_v11 = vmul.f32 0.1, %v894_v7 }
  0xb6   :  { %v975_v24 = vmul.f32 0.1, %v847_v18  ;;  %v991_v25 = vmul.f32 0.1, %v863_v19  ;;  %vm911_vm10 = vcmp.gt.f32.partialorder %v847_v18, 0.0  ;;  %vm927_vm11 = vcmp.gt.f32.partialorder %v863_v19, 0.0 }
  0xb7   :  { %v1070_v14 = vsel %vm942_vm8, %v878_v6, %v1006_v10  ;;  %v1086_v15 = vsel %vm958_vm9, %v894_v7, %v1022_v11 }
  0xb8   :  { %v1514_v16 = vpack.c.bf16 %v1070_v14, %v1069_v12  ;;  %v1554_v17 = vpack.c.bf16 %v1086_v15, %v1085_v13  ;;  %v1039_v32 = vsel %vm911_vm10, %v847_v18, %v975_v24  ;;  %v1055_v33 = vsel %vm927_vm11, %v863_v19, %v991_v25 }
  0xba   :  { %1598 = vst [vmem:[%s1935_s3 + $0x90] sm:$0xff] %v1514_v16   ;;  %v577_v20 = vpop.f32.mrf.mxu2  ;;  %v617_v21 = vpop.f32.mrf.mxu3 }
  0xbb   :  { %1606 = vst [vmem:[%s1935_s3 + $0xd0] sm:$0xff] %v1554_v17   ;;  %v499_v22 = vpop.f32.mrf.mxu0  ;;  %v539_v23 = vpop.f32.mrf.mxu1  ;;  %v879_v30 = vadd.f32 %v1770_v36, %v577_v20  ;;  %v895_v31 = vadd.f32 %v1770_v36, %v617_v21 }
  0xbc   :  { %v848_v26 = vadd.f32 %v1770_v36, %v499_v22  ;;  %v864_v27 = vadd.f32 %v1770_v36, %v539_v23 }
  0xbd   :  { %v1007_v41 = vmul.f32 0.1, %v879_v30  ;;  %v1023_v42 = vmul.f32 0.1, %v895_v31  ;;  %vm943_vm14 = vcmp.gt.f32.partialorder %v879_v30, 0.0  ;;  %vm959_vm15 = vcmp.gt.f32.partialorder %v895_v31, 0.0 }
  0xbe   :  { %vm912_vm12 = vcmp.gt.f32.partialorder %v848_v26, 0.0  ;;  %v976_v28 = vmul.f32 0.1, %v848_v26  ;;  %vm928_vm13 = vcmp.gt.f32.partialorder %v864_v27, 0.0  ;;  %v992_v29 = vmul.f32 0.1, %v864_v27 }
  0xbf   :  { %v1071_v49 = vsel %vm943_vm14, %v879_v30, %v1007_v41  ;;  %v1087_v50 = vsel %vm959_vm15, %v895_v31, %v1023_v42 }
  0xc0   :  { %v1040_v34 = vsel %vm912_vm12, %v848_v26, %v976_v28  ;;  %v1056_v35 = vsel %vm928_vm13, %v864_v27, %v992_v29 }
  0xc1   :  { %v1439_v37 = vpack.c.bf16 %v1040_v34, %v1039_v32  ;;  %v1479_v38 = vpack.c.bf16 %v1056_v35, %v1055_v33 }
  0xc2   :  { %v579_v39 = vpop.f32.mrf.mxu2  ;;  %v619_v40 = vpop.f32.mrf.mxu3 }
  0xc3   :  { %1583 = vst [vmem:[%s1935_s3 + $0x18] sm:$0xff] %v1439_v37   ;;  %v880_v43 = vadd.f32 %v1770_v36, %v579_v39  ;;  %v896_v44 = vadd.f32 %v1770_v36, %v619_v40  ;;  %v502_v45 = vpop.f32.mrf.mxu0  ;;  %v542_v46 = vpop.f32.mrf.mxu1 }
  0xc4   :  { %1591 = vst [vmem:[%s1935_s3 + $0x58] sm:$0xff] %v1479_v38   ;;  %v849_v55 = vadd.f32 %v1770_v36, %v502_v45  ;;  %v865_v56 = vadd.f32 %v1770_v36, %v542_v46 }
  0xc5   :  { %vm944_vm0 = vcmp.gt.f32.partialorder %v880_v43, 0.0  ;;  %v1008_v47 = vmul.f32 0.1, %v880_v43  ;;  %vm960_vm1 = vcmp.gt.f32.partialorder %v896_v44, 0.0  ;;  %v1024_v48 = vmul.f32 0.1, %v896_v44 }
  0xc6   :  { %v977_v61 = vmul.f32 0.1, %v849_v55  ;;  %v993_v62 = vmul.f32 0.1, %v865_v56  ;;  %vm913_vm2 = vcmp.gt.f32.partialorder %v849_v55, 0.0  ;;  %vm929_vm3 = vcmp.gt.f32.partialorder %v865_v56, 0.0 }
  0xc7   :  { %v1072_v51 = vsel %vm944_vm0, %v880_v43, %v1008_v47  ;;  %v1088_v52 = vsel %vm960_vm1, %v896_v44, %v1024_v48 }
  0xc8   :  { %v1519_v53 = vpack.c.bf16 %v1072_v51, %v1071_v49  ;;  %v1559_v54 = vpack.c.bf16 %v1088_v52, %v1087_v50  ;;  %v1041_v5 = vsel %vm913_vm2, %v849_v55, %v977_v61  ;;  %v1057_v6 = vsel %vm929_vm3, %v865_v56, %v993_v62 }
  0xca   :  { %1599 = vst [vmem:[%s1935_s3 + $0x98] sm:$0xff] %v1519_v53   ;;  %v582_v57 = vpop.f32.mrf.mxu2  ;;  %v622_v58 = vpop.f32.mrf.mxu3 }
  0xcb   :  { %1607 = vst [vmem:[%s1935_s3 + $0xd8] sm:$0xff] %v1559_v54   ;;  %v504_v59 = vpop.f32.mrf.mxu0  ;;  %v544_v60 = vpop.f32.mrf.mxu1  ;;  %v881_v3 = vadd.f32 %v1770_v36, %v582_v57  ;;  %v897_v4 = vadd.f32 %v1770_v36, %v622_v58 }
  0xcc   :  { %v850_v63 = vadd.f32 %v1770_v36, %v504_v59  ;;  %v866_v0 = vadd.f32 %v1770_v36, %v544_v60 }
  0xcd   :  { %v1009_v13 = vmul.f32 0.1, %v881_v3  ;;  %v1025_v14 = vmul.f32 0.1, %v897_v4  ;;  %vm945_vm6 = vcmp.gt.f32.partialorder %v881_v3, 0.0  ;;  %vm961_vm7 = vcmp.gt.f32.partialorder %v897_v4, 0.0 }
  0xce   :  { %vm914_vm4 = vcmp.gt.f32.partialorder %v850_v63, 0.0  ;;  %v978_v1 = vmul.f32 0.1, %v850_v63  ;;  %vm930_vm5 = vcmp.gt.f32.partialorder %v866_v0, 0.0  ;;  %v994_v2 = vmul.f32 0.1, %v866_v0 }
  0xcf   :  { %v1073_v21 = vsel %vm945_vm6, %v881_v3, %v1009_v13  ;;  %v1089_v22 = vsel %vm961_vm7, %v897_v4, %v1025_v14 }
  0xd0   :  { %v1042_v7 = vsel %vm914_vm4, %v850_v63, %v978_v1  ;;  %v1058_v8 = vsel %vm930_vm5, %v866_v0, %v994_v2 }
  0xd1   :  { %v1444_v9 = vpack.c.bf16 %v1042_v7, %v1041_v5  ;;  %v1484_v10 = vpack.c.bf16 %v1058_v8, %v1057_v6 }
  0xd2   :  { %v584_v11 = vpop.f32.mrf.mxu2  ;;  %v624_v12 = vpop.f32.mrf.mxu3 }
  0xd3   :  { %1584 = vst [vmem:[%s1935_s3 + $0x20] sm:$0xff] %v1444_v9   ;;  %v882_v15 = vadd.f32 %v1770_v36, %v584_v11  ;;  %v898_v16 = vadd.f32 %v1770_v36, %v624_v12  ;;  %v507_v17 = vpop.f32.mrf.mxu0  ;;  %v547_v18 = vpop.f32.mrf.mxu1 }
  0xd4   :  { %1592 = vst [vmem:[%s1935_s3 + $0x60] sm:$0xff] %v1484_v10   ;;  %v851_v27 = vadd.f32 %v1770_v36, %v507_v17  ;;  %v867_v28 = vadd.f32 %v1770_v36, %v547_v18 }
  0xd5   :  { %vm946_vm8 = vcmp.gt.f32.partialorder %v882_v15, 0.0  ;;  %v1010_v19 = vmul.f32 0.1, %v882_v15  ;;  %vm962_vm9 = vcmp.gt.f32.partialorder %v898_v16, 0.0  ;;  %v1026_v20 = vmul.f32 0.1, %v898_v16 }
  0xd6   :  { %v979_v33 = vmul.f32 0.1, %v851_v27  ;;  %v995_v34 = vmul.f32 0.1, %v867_v28  ;;  %vm915_vm10 = vcmp.gt.f32.partialorder %v851_v27, 0.0  ;;  %vm931_vm11 = vcmp.gt.f32.partialorder %v867_v28, 0.0 }
  0xd7   :  { %v1074_v23 = vsel %vm946_vm8, %v882_v15, %v1010_v19  ;;  %v1090_v24 = vsel %vm962_vm9, %v898_v16, %v1026_v20 }
  0xd8   :  { %v1524_v25 = vpack.c.bf16 %v1074_v23, %v1073_v21  ;;  %v1564_v26 = vpack.c.bf16 %v1090_v24, %v1089_v22  ;;  %v1043_v42 = vsel %vm915_vm10, %v851_v27, %v979_v33  ;;  %v1059_v43 = vsel %vm931_vm11, %v867_v28, %v995_v34 }
  0xda   :  { %1600 = vst [vmem:[%s1935_s3 + $0xa0] sm:$0xff] %v1524_v25   ;;  %v587_v29 = vpop.f32.mrf.mxu2  ;;  %v627_v30 = vpop.f32.mrf.mxu3 }
  0xdb   :  { %1608 = vst [vmem:[%s1935_s3 + $0xe0] sm:$0xff] %v1564_v26   ;;  %v509_v31 = vpop.f32.mrf.mxu0  ;;  %v549_v32 = vpop.f32.mrf.mxu1  ;;  %v883_v40 = vadd.f32 %v1770_v36, %v587_v29  ;;  %v899_v41 = vadd.f32 %v1770_v36, %v627_v30 }
  0xdc   :  { %v852_v35 = vadd.f32 %v1770_v36, %v509_v31  ;;  %v868_v37 = vadd.f32 %v1770_v36, %v549_v32 }
  0xdd   :  { %v1011_v50 = vmul.f32 0.1, %v883_v40  ;;  %v1027_v51 = vmul.f32 0.1, %v899_v41  ;;  %vm947_vm14 = vcmp.gt.f32.partialorder %v883_v40, 0.0  ;;  %vm963_vm15 = vcmp.gt.f32.partialorder %v899_v41, 0.0 }
  0xde   :  { %vm916_vm12 = vcmp.gt.f32.partialorder %v852_v35, 0.0  ;;  %v980_v38 = vmul.f32 0.1, %v852_v35  ;;  %vm932_vm13 = vcmp.gt.f32.partialorder %v868_v37, 0.0  ;;  %v996_v39 = vmul.f32 0.1, %v868_v37 }
  0xdf   :  { %v1075_v58 = vsel %vm947_vm14, %v883_v40, %v1011_v50  ;;  %v1091_v59 = vsel %vm963_vm15, %v899_v41, %v1027_v51 }
  0xe0   :  { %v1044_v44 = vsel %vm916_vm12, %v852_v35, %v980_v38  ;;  %v1060_v45 = vsel %vm932_vm13, %v868_v37, %v996_v39 }
  0xe1   :  { %v1449_v46 = vpack.c.bf16 %v1044_v44, %v1043_v42  ;;  %v1489_v47 = vpack.c.bf16 %v1060_v45, %v1059_v43 }
  0xe2   :  { %v589_v48 = vpop.f32.mrf.mxu2  ;;  %v629_v49 = vpop.f32.mrf.mxu3 }
  0xe3   :  { %1585 = vst [vmem:[%s1935_s3 + $0x28] sm:$0xff] %v1449_v46   ;;  %v884_v52 = vadd.f32 %v1770_v36, %v589_v48  ;;  %v900_v53 = vadd.f32 %v1770_v36, %v629_v49  ;;  %v512_v54 = vpop.f32.mrf.mxu0  ;;  %v552_v55 = vpop.f32.mrf.mxu1 }
  0xe4   :  { %1593 = vst [vmem:[%s1935_s3 + $0x68] sm:$0xff] %v1489_v47   ;;  %v853_v0 = vadd.f32 %v1770_v36, %v512_v54  ;;  %v869_v1 = vadd.f32 %v1770_v36, %v552_v55 }
  0xe5   :  { %vm948_vm0 = vcmp.gt.f32.partialorder %v884_v52, 0.0  ;;  %v1012_v56 = vmul.f32 0.1, %v884_v52  ;;  %vm964_vm1 = vcmp.gt.f32.partialorder %v900_v53, 0.0  ;;  %v1028_v57 = vmul.f32 0.1, %v900_v53 }
  0xe6   :  { %v981_v6 = vmul.f32 0.1, %v853_v0  ;;  %v997_v7 = vmul.f32 0.1, %v869_v1  ;;  %vm917_vm2 = vcmp.gt.f32.partialorder %v853_v0, 0.0  ;;  %vm933_vm3 = vcmp.gt.f32.partialorder %v869_v1, 0.0 }
  0xe7   :  { %v1076_v60 = vsel %vm948_vm0, %v884_v52, %v1012_v56  ;;  %v1092_v61 = vsel %vm964_vm1, %v900_v53, %v1028_v57 }
  0xe8   :  { %v1529_v62 = vpack.c.bf16 %v1076_v60, %v1075_v58  ;;  %v1569_v63 = vpack.c.bf16 %v1092_v61, %v1091_v59  ;;  %v1045_v14 = vsel %vm917_vm2, %v853_v0, %v981_v6  ;;  %v1061_v15 = vsel %vm933_vm3, %v869_v1, %v997_v7 }
  0xea   :  { %1601 = vst [vmem:[%s1935_s3 + $0xa8] sm:$0xff] %v1529_v62   ;;  %v592_v2 = vpop.f32.mrf.mxu2  ;;  %v632_v3 = vpop.f32.mrf.mxu3 }
  0xeb   :  { %1609 = vst [vmem:[%s1935_s3 + $0xe8] sm:$0xff] %v1569_v63   ;;  %v514_v4 = vpop.f32.mrf.mxu0  ;;  %v554_v5 = vpop.f32.mrf.mxu1  ;;  %v885_v12 = vadd.f32 %v1770_v36, %v592_v2  ;;  %v901_v13 = vadd.f32 %v1770_v36, %v632_v3 }
  0xec   :  { %v854_v8 = vadd.f32 %v1770_v36, %v514_v4  ;;  %v870_v9 = vadd.f32 %v1770_v36, %v554_v5 }
  0xed   :  { %v1013_v22 = vmul.f32 0.1, %v885_v12  ;;  %v1029_v23 = vmul.f32 0.1, %v901_v13  ;;  %vm949_vm6 = vcmp.gt.f32.partialorder %v885_v12, 0.0  ;;  %vm965_vm7 = vcmp.gt.f32.partialorder %v901_v13, 0.0 }
  0xee   :  { %vm918_vm4 = vcmp.gt.f32.partialorder %v854_v8, 0.0  ;;  %v982_v10 = vmul.f32 0.1, %v854_v8  ;;  %vm934_vm5 = vcmp.gt.f32.partialorder %v870_v9, 0.0  ;;  %v998_v11 = vmul.f32 0.1, %v870_v9 }
  0xef   :  { %v1077_v30 = vsel %vm949_vm6, %v885_v12, %v1013_v22  ;;  %v1093_v31 = vsel %vm965_vm7, %v901_v13, %v1029_v23 }
  0xf0   :  { %v1046_v16 = vsel %vm918_vm4, %v854_v8, %v982_v10  ;;  %v1062_v17 = vsel %vm934_vm5, %v870_v9, %v998_v11 }
  0xf1   :  { %v1454_v18 = vpack.c.bf16 %v1046_v16, %v1045_v14  ;;  %v1494_v19 = vpack.c.bf16 %v1062_v17, %v1061_v15 }
  0xf2   :  { %v594_v20 = vpop.f32.mrf.mxu2  ;;  %v634_v21 = vpop.f32.mrf.mxu3 }
  0xf3   :  { %1586 = vst [vmem:[%s1935_s3 + $0x30] sm:$0xff] %v1454_v18   ;;  %v886_v24 = vadd.f32 %v1770_v36, %v594_v20  ;;  %v902_v25 = vadd.f32 %v1770_v36, %v634_v21  ;;  %v517_v26 = vpop.f32.mrf.mxu0  ;;  %v557_v27 = vpop.f32.mrf.mxu1 }
  0xf4   :  { %1594 = vst [vmem:[%s1935_s3 + $0x70] sm:$0xff] %v1494_v19   ;;  %v855_v37 = vadd.f32 %v1770_v36, %v517_v26  ;;  %v871_v38 = vadd.f32 %v1770_v36, %v557_v27 }
  0xf5   :  { %vm950_vm8 = vcmp.gt.f32.partialorder %v886_v24, 0.0  ;;  %v1014_v28 = vmul.f32 0.1, %v886_v24  ;;  %vm966_vm9 = vcmp.gt.f32.partialorder %v902_v25, 0.0  ;;  %v1030_v29 = vmul.f32 0.1, %v902_v25 }
  0xf6   :  { %v983_v43 = vmul.f32 0.1, %v855_v37  ;;  %v999_v44 = vmul.f32 0.1, %v871_v38  ;;  %vm919_vm10 = vcmp.gt.f32.partialorder %v855_v37, 0.0  ;;  %vm935_vm11 = vcmp.gt.f32.partialorder %v871_v38, 0.0 }
  0xf7   :  { %v1078_v32 = vsel %vm950_vm8, %v886_v24, %v1014_v28  ;;  %v1094_v33 = vsel %vm966_vm9, %v902_v25, %v1030_v29 }
  0xf8   :  { %v1534_v34 = vpack.c.bf16 %v1078_v32, %v1077_v30  ;;  %v1574_v35 = vpack.c.bf16 %v1094_v33, %v1093_v31  ;;  %v1047_v51 = vsel %vm919_vm10, %v855_v37, %v983_v43  ;;  %v1063_v52 = vsel %vm935_vm11, %v871_v38, %v999_v44 }
  0xfa   :  { %1602 = vst [vmem:[%s1935_s3 + $0xb0] sm:$0xff] %v1534_v34   ;;  %v597_v39 = vpop.f32.mrf.mxu2  ;;  %v637_v40 = vpop.f32.mrf.mxu3 }
  0xfb   :  { %1610 = vst [vmem:[%s1935_s3 + $0xf0] sm:$0xff] %v1574_v35   ;;  %v519_v41 = vpop.f32.mrf.mxu0  ;;  %v559_v42 = vpop.f32.mrf.mxu1  ;;  %v887_v49 = vadd.f32 %v1770_v36, %v597_v39  ;;  %v903_v50 = vadd.f32 %v1770_v36, %v637_v40 }
  0xfc   :  { %v856_v45 = vadd.f32 %v1770_v36, %v519_v41  ;;  %v872_v46 = vadd.f32 %v1770_v36, %v559_v42 }
  0xfd   :  { %v1015_v59 = vmul.f32 0.1, %v887_v49  ;;  %v1031_v60 = vmul.f32 0.1, %v903_v50  ;;  %vm951_vm14 = vcmp.gt.f32.partialorder %v887_v49, 0.0  ;;  %vm967_vm15 = vcmp.gt.f32.partialorder %v903_v50, 0.0 }
  0xfe   :  { %vm920_vm12 = vcmp.gt.f32.partialorder %v856_v45, 0.0  ;;  %v984_v47 = vmul.f32 0.1, %v856_v45  ;;  %vm936_vm13 = vcmp.gt.f32.partialorder %v872_v46, 0.0  ;;  %v1000_v48 = vmul.f32 0.1, %v872_v46 }
  0xff   :  { %v1079_v1 = vsel %vm951_vm14, %v887_v49, %v1015_v59  ;;  %v1095_v2 = vsel %vm967_vm15, %v903_v50, %v1031_v60 }
 0x100   :  { %v1048_v53 = vsel %vm920_vm12, %v856_v45, %v984_v47  ;;  %v1064_v54 = vsel %vm936_vm13, %v872_v46, %v1000_v48 }
 0x101   :  { %v1459_v55 = vpack.c.bf16 %v1048_v53, %v1047_v51  ;;  %v1499_v56 = vpack.c.bf16 %v1064_v54, %v1063_v52 }
 0x102   :  { %v599_v57 = vpop.f32.mrf.mxu2  ;;  %v639_v58 = vpop.f32.mrf.mxu3 }
 0x103   :  { %1587 = vst [vmem:[%s1935_s3 + $0x38] sm:$0xff] %v1459_v55   ;;  %v888_v61 = vadd.f32 %v1770_v36, %v599_v57  ;;  %v904_v62 = vadd.f32 %v1770_v36, %v639_v58 }
 0x104   :  { %1595 = vst [vmem:[%s1935_s3 + $0x78] sm:$0xff] %v1499_v56  }
 0x105   :  { %vm952_vm0 = vcmp.gt.f32.partialorder %v888_v61, 0.0  ;;  %v1016_v63 = vmul.f32 0.1, %v888_v61  ;;  %vm968_vm1 = vcmp.gt.f32.partialorder %v904_v62, 0.0  ;;  %v1032_v0 = vmul.f32 0.1, %v904_v62 }
 0x107   :  { %v1080_v3 = vsel %vm952_vm0, %v888_v61, %v1016_v63  ;;  %v1096_v4 = vsel %vm968_vm1, %v904_v62, %v1032_v0 }
 0x108   :  { %v1539_v5 = vpack.c.bf16 %v1080_v3, %v1079_v1  ;;  %v1579_v6 = vpack.c.bf16 %v1096_v4, %v1095_v2 }
 0x10a   :  { %1603 = vst [vmem:[%s1935_s3 + $0xb8] sm:$0xff] %v1539_v5  }
 0x10b   :  { %1611 = vst [vmem:[%s1935_s3 + $0xf8] sm:$0xff] %v1579_v6  }

// kernel: yolov3_forward.65
= control target key start
LH: loop header
LB: loop body
LE: loop exit
PB: predicated region body
PF: predicated region fallthrough
CT: control target
= control target key end

     0   :  { %vm491_vm0 = vcmask 1041408   ;;  %vm394_vm1 = vcmask 293888   ;;  %s2432_s1 = inlined_call_operand.vmem [shape: bf16[36,128], index: 1, kind: input, shape index: {}]   ;;  %s2433_s2 = inlined_call_operand.vmem [shape: f32[1,128], index: 2, kind: input, shape index: {}]   ;;  %s2434_s0 = inlined_call_operand.vmem [shape: bf16[512,36], index: 0, kind: input, shape index: {}]   ;;  %s2435_s3 = inlined_call_operand.vmem [shape: bf16[512,128], index: 3, kind: input, shape index: {}]   ;;  %s2436_s4 = inlined_call_operand.vmem [shape: bf16[512,128], index: 4, kind: output, shape index: {}]  }
   0x1   :  { %v218_v0 = vld [vmem:[%s2432_s1 + $0x10] sm:$0x3]  ;;  %v1644_v4 = vld [vmem:[%s2432_s1 + $0x8] sm:$0xff]  ;;  %v1643_v5 = vld [vmem:[%s2432_s1] sm:$0xff] }
   0x2   :  { %v388_v1 = vunpack.c.l.b16 %v218_v0  ;;  %v1611_v6 = vld [vmem:[%s2434_s0] sm:$0xff]  ;;  %v1612_v10 = vld [vmem:[%s2434_s0 + $0x8] sm:$0xff]  ;;  %v1613_v14 = vld [vmem:[%s2434_s0 + $0x10] sm:$0xff] }
   0x3   :  { %v1619_v7 = vld [vmem:[%s2434_s0 + $0x40] sm:$0xff]  ;;  %v1620_v11 = vld [vmem:[%s2434_s0 + $0x48] sm:$0xff]  ;;  %v1621_v15 = vld [vmem:[%s2434_s0 + $0x50] sm:$0xff] }
   0x4   :  { %v391_v2 = vpack.c.b16 %v388_v1, %v388_v1  ;;  %v1627_v8 = vld [vmem:[%s2434_s0 + $0x80] sm:$0xff]  ;;  %v1628_v12 = vld [vmem:[%s2434_s0 + $0x88] sm:$0xff]  ;;  %v1629_v16 = vld [vmem:[%s2434_s0 + $0x90] sm:$0xff] }
   0x5   :  { %v1635_v9 = vld [vmem:[%s2434_s0 + $0xc0] sm:$0xff]  ;;  %v1636_v13 = vld [vmem:[%s2434_s0 + $0xc8] sm:$0xff]  ;;  %v1637_v17 = vld [vmem:[%s2434_s0 + $0xd0] sm:$0xff] }
   0x6   :  { %v493_v3 = vsel %vm491_vm0, %v391_v2, 0  ;;  %v1614_v18 = vld [vmem:[%s2434_s0 + $0x18] sm:$0xff]  ;;  %v1615_v22 = vld [vmem:[%s2434_s0 + $0x20] sm:$0xff]  ;;  %v1616_v26 = vld [vmem:[%s2434_s0 + $0x28] sm:$0xff] }
   0x7   :  { %500 = vmatpush.bf16.msra.mxu0 %v493_v3  ;;  %1995 = vmatpush.bf16.msra.mxu1 %v493_v3  ;;  %v1622_v19 = vld [vmem:[%s2434_s0 + $0x58] sm:$0xff]  ;;  %v1623_v23 = vld [vmem:[%s2434_s0 + $0x60] sm:$0xff]  ;;  %v1624_v27 = vld [vmem:[%s2434_s0 + $0x68] sm:$0xff] }
   0x8   :  { %1996 = vmatpush.bf16.msra.mxu2 %v493_v3  ;;  %1997 = vmatpush.bf16.msra.mxu3 %v493_v3  ;;  %v1630_v20 = vld [vmem:[%s2434_s0 + $0x98] sm:$0xff]  ;;  %v1631_v24 = vld [vmem:[%s2434_s0 + $0xa0] sm:$0xff]  ;;  %v1632_v28 = vld [vmem:[%s2434_s0 + $0xa8] sm:$0xff] }
   0x9   :  { %v1638_v21 = vld [vmem:[%s2434_s0 + $0xd8] sm:$0xff]  ;;  %v1639_v25 = vld [vmem:[%s2434_s0 + $0xe0] sm:$0xff]  ;;  %v1640_v29 = vld [vmem:[%s2434_s0 + $0xe8] sm:$0xff] }
   0xa   :  { %v1617_v30 = vld [vmem:[%s2434_s0 + $0x30] sm:$0xff]  ;;  %v1618_v34 = vld [vmem:[%s2434_s0 + $0x38] sm:$0xff]  ;;  %v2171_v38 = vld [vmem:[%s2433_s2] ss:$0 sm:$0xff] }
   0xb   :  { %501 = vmatpush.bf16.msra.mxu0 %v1644_v4  ;;  %1998 = vmatpush.bf16.msra.mxu1 %v1644_v4  ;;  %v1625_v31 = vld [vmem:[%s2434_s0 + $0x70] sm:$0xff]  ;;  %v1626_v35 = vld [vmem:[%s2434_s0 + $0x78] sm:$0xff]  ;;  %v1646_v45 = vld [vmem:[%s2435_s3] sm:$0xff]  }
   0xc   :  { %1999 = vmatpush.bf16.msra.mxu2 %v1644_v4  ;;  %2000 = vmatpush.bf16.msra.mxu3 %v1644_v4  ;;  %v1633_v32 = vld [vmem:[%s2434_s0 + $0xb0] sm:$0xff]  ;;  %v1634_v36 = vld [vmem:[%s2434_s0 + $0xb8] sm:$0xff]  ;;  %v1940_v46 = vld [vmem:[%s2435_s3 + $0x40] sm:$0xff]   ;;  %v1647_v50 = vunpack.c.l.bf16 %v1646_v45  ;;  %v1648_v59 = vunpack.c.h.bf16 %v1646_v45 }
   0xd   :  { %v1641_v33 = vld [vmem:[%s2434_s0 + $0xf0] sm:$0xff]  ;;  %v1642_v37 = vld [vmem:[%s2434_s0 + $0xf8] sm:$0xff]  ;;  %v1679_v52 = vunpack.c.l.bf16 %v1940_v46  ;;  %v1680_v60 = vunpack.c.h.bf16 %v1940_v46  ;;  %v1948_v1 = vld [vmem:[%s2435_s3 + $0x80] sm:$0xff]  }
   0xe   :  { %v1956_v2 = vld [vmem:[%s2435_s3 + $0xc0] sm:$0xff]  }
   0xf   :  { %502 = vmatpush.bf16.msra.mxu0 %v1643_v5  ;;  %2001 = vmatpush.bf16.msra.mxu1 %v1643_v5 }
  0x10   :  { %2002 = vmatpush.bf16.msra.mxu2 %v1643_v5  ;;  %2003 = vmatpush.bf16.msra.mxu3 %v1643_v5 }
  0x12   :  { %1579 = vmatmul.msk.bf16.vlgmr.msra.gmra.mxu0 %vm394_vm1, %v1611_v6  ;;  %1587 = vmatmul.msk.bf16.vlgmr.msra.gmra.mxu1 %vm394_vm1, %v1619_v7 }
  0x13   :  { %1595 = vmatmul.msk.bf16.vlgmr.msra.gmra.mxu2 %vm394_vm1, %v1627_v8  ;;  %1603 = vmatmul.msk.bf16.vlgmr.msra.gmra.mxu3 %vm394_vm1, %v1635_v9  ;;  %v1711_v9 = vunpack.c.l.bf16 %v1948_v1 }
  0x22   :  { %1580 = vmatmul.msk.bf16.gmra.mxu0 %vm394_vm1, %v1612_v10  ;;  %1588 = vmatmul.msk.bf16.gmra.mxu1 %vm394_vm1, %v1620_v11  ;;  %v1743_v10 = vunpack.c.l.bf16 %v1956_v2 }
  0x23   :  { %1596 = vmatmul.msk.bf16.gmra.mxu2 %vm394_vm1, %v1628_v12  ;;  %1604 = vmatmul.msk.bf16.gmra.mxu3 %vm394_vm1, %v1636_v13  ;;  %v1712_v12 = vunpack.c.h.bf16 %v1948_v1 }
  0x32   :  { %1581 = vmatmul.msk.bf16.gmra.mxu0 %vm394_vm1, %v1613_v14  ;;  %1589 = vmatmul.msk.bf16.gmra.mxu1 %vm394_vm1, %v1621_v15 }
  0x33   :  { %1597 = vmatmul.msk.bf16.gmra.mxu2 %vm394_vm1, %v1629_v16  ;;  %1605 = vmatmul.msk.bf16.gmra.mxu3 %vm394_vm1, %v1637_v17 }
  0x42   :  { %1582 = vmatmul.msk.bf16.gmra.mxu0 %vm394_vm1, %v1614_v18  ;;  %1590 = vmatmul.msk.bf16.gmra.mxu1 %vm394_vm1, %v1622_v19 }
  0x43   :  { %1598 = vmatmul.msk.bf16.gmra.mxu2 %vm394_vm1, %v1630_v20  ;;  %1606 = vmatmul.msk.bf16.gmra.mxu3 %vm394_vm1, %v1638_v21 }
  0x52   :  { %1583 = vmatmul.msk.bf16.gmra.mxu0 %vm394_vm1, %v1615_v22  ;;  %1591 = vmatmul.msk.bf16.gmra.mxu1 %vm394_vm1, %v1623_v23  ;;  %v1744_v22 = vunpack.c.h.bf16 %v1956_v2 }
  0x53   :  { %1599 = vmatmul.msk.bf16.gmra.mxu2 %vm394_vm1, %v1631_v24  ;;  %1607 = vmatmul.msk.bf16.gmra.mxu3 %vm394_vm1, %v1639_v25 }
  0x62   :  { %1584 = vmatmul.msk.bf16.gmra.mxu0 %vm394_vm1, %v1616_v26  ;;  %1592 = vmatmul.msk.bf16.gmra.mxu1 %vm394_vm1, %v1624_v27 }
  0x63   :  { %1600 = vmatmul.msk.bf16.gmra.mxu2 %vm394_vm1, %v1632_v28  ;;  %1608 = vmatmul.msk.bf16.gmra.mxu3 %vm394_vm1, %v1640_v29 }
  0x72   :  { %1585 = vmatmul.msk.bf16.gmra.mxu0 %vm394_vm1, %v1617_v30  ;;  %1593 = vmatmul.msk.bf16.gmra.mxu1 %vm394_vm1, %v1625_v31 }
  0x73   :  { %1601 = vmatmul.msk.bf16.gmra.mxu2 %vm394_vm1, %v1633_v32  ;;  %1609 = vmatmul.msk.bf16.gmra.mxu3 %vm394_vm1, %v1641_v33  ;;  %v1933_v33 = vld [vmem:[%s2435_s3 + $0x8] sm:$0xff]  }
  0x82   :  { %1586 = vmatmul.msk.bf16.gmra.mxu0 %vm394_vm1, %v1618_v34  ;;  %1594 = vmatmul.msk.bf16.gmra.mxu1 %vm394_vm1, %v1626_v35 }
  0x83   :  { %1602 = vmatmul.msk.bf16.gmra.mxu2 %vm394_vm1, %v1634_v36  ;;  %1610 = vmatmul.msk.bf16.gmra.mxu3 %vm394_vm1, %v1642_v37  ;;  %v1941_v37 = vld [vmem:[%s2435_s3 + $0x48] sm:$0xff]  }
  0x8f   :  { %v504_v39 = vpop.f32.mrf.mxu0  ;;  %v544_v40 = vpop.f32.mrf.mxu1 }
  0x90   :  { %v863_v41 = vadd.f32 %v2171_v38, %v504_v39  ;;  %v879_v42 = vadd.f32 %v2171_v38, %v544_v40 }
  0x92   :  { %v991_v43 = vmul.f32 0.1, %v863_v41  ;;  %v1007_v44 = vmul.f32 0.1, %v879_v42  ;;  %vm927_vm2 = vcmp.gt.f32.partialorder %v863_v41, 0.0  ;;  %vm943_vm3 = vcmp.gt.f32.partialorder %v879_v42, 0.0 }
  0x94   :  { %v1055_v49 = vsel %vm927_vm2, %v863_v41, %v991_v43  ;;  %v1071_v51 = vsel %vm943_vm3, %v879_v42, %v1007_v44  ;;  %v1651_v41 = vunpack.c.l.bf16 %v1933_v33 }
  0x95   :  { %v1247_v63 = vadd.f32 %v1647_v50, %v1055_v49  ;;  %v1263_v0 = vadd.f32 %v1679_v52, %v1071_v51  ;;  %v1683_v49 = vunpack.c.l.bf16 %v1941_v37  ;;  %v1949_v50 = vld [vmem:[%s2435_s3 + $0x88] sm:$0xff]   ;;  %v1652_v51 = vunpack.c.h.bf16 %v1933_v33 }
  0x96   :  { %v584_v47 = vpop.f32.mrf.mxu2  ;;  %v624_v48 = vpop.f32.mrf.mxu3  ;;  %v1684_v52 = vunpack.c.h.bf16 %v1941_v37 }
  0x97   :  { %v506_v53 = vpop.f32.mrf.mxu0  ;;  %v546_v54 = vpop.f32.mrf.mxu1  ;;  %v895_v55 = vadd.f32 %v2171_v38, %v584_v47  ;;  %v911_v56 = vadd.f32 %v2171_v38, %v624_v48 }
  0x98   :  { %v864_v57 = vadd.f32 %v2171_v38, %v506_v53  ;;  %v880_v58 = vadd.f32 %v2171_v38, %v546_v54 }
  0x99   :  { %v1023_v3 = vmul.f32 0.1, %v895_v55  ;;  %v1039_v4 = vmul.f32 0.1, %v911_v56  ;;  %vm959_vm6 = vcmp.gt.f32.partialorder %v895_v55, 0.0  ;;  %vm975_vm7 = vcmp.gt.f32.partialorder %v911_v56, 0.0 }
  0x9a   :  { %vm928_vm4 = vcmp.gt.f32.partialorder %v864_v57, 0.0  ;;  %v992_v61 = vmul.f32 0.1, %v864_v57  ;;  %vm944_vm5 = vcmp.gt.f32.partialorder %v880_v58, 0.0  ;;  %v1008_v62 = vmul.f32 0.1, %v880_v58 }
  0x9b   :  { %v1087_v20 = vsel %vm959_vm6, %v895_v55, %v1023_v3  ;;  %v1103_v21 = vsel %vm975_vm7, %v911_v56, %v1039_v4  ;;  %v1957_v56 = vld [vmem:[%s2435_s3 + $0xc8] sm:$0xff]  }
  0x9c   :  { %v1056_v5 = vsel %vm928_vm4, %v864_v57, %v992_v61  ;;  %v1072_v6 = vsel %vm944_vm5, %v880_v58, %v1008_v62  ;;  %v1279_v29 = vadd.f32 %v1711_v9, %v1087_v20  ;;  %v1295_v30 = vadd.f32 %v1743_v10, %v1103_v21 }
  0x9d   :  { %v1248_v7 = vadd.f32 %v1648_v59, %v1056_v5  ;;  %v1264_v8 = vadd.f32 %v1680_v60, %v1072_v6  ;;  %v1715_v59 = vunpack.c.l.bf16 %v1949_v50  ;;  %v1747_v2 = vunpack.c.l.bf16 %v1957_v56 }
  0x9e   :  { %v586_v11 = vpop.f32.mrf.mxu2  ;;  %v626_v13 = vpop.f32.mrf.mxu3 }
  0x9f   :  { %v1776_v14 = vpack.c.bf16 %v1248_v7, %v1247_v63  ;;  %v1816_v15 = vpack.c.bf16 %v1264_v8, %v1263_v0  ;;  %v896_v16 = vadd.f32 %v2171_v38, %v586_v11  ;;  %v912_v17 = vadd.f32 %v2171_v38, %v626_v13  ;;  %v509_v18 = vpop.f32.mrf.mxu0  ;;  %v549_v19 = vpop.f32.mrf.mxu1 }
  0xa0   :  { %v865_v23 = vadd.f32 %v2171_v38, %v509_v18  ;;  %v881_v28 = vadd.f32 %v2171_v38, %v549_v19  ;;  %v1716_v13 = vunpack.c.h.bf16 %v1949_v50 }
  0xa1   :  { %1777 = vst [vmem:[%s2436_s4] sm:$0xff] %v1776_v14   ;;  %vm960_vm8 = vcmp.gt.f32.partialorder %v896_v16, 0.0  ;;  %v1024_v24 = vmul.f32 0.1, %v896_v16  ;;  %vm976_vm9 = vcmp.gt.f32.partialorder %v912_v17, 0.0  ;;  %v1040_v25 = vmul.f32 0.1, %v912_v17 }
  0xa2   :  { %1971 = vst [vmem:[%s2436_s4 + $0x40] sm:$0xff] %v1816_v15   ;;  %v993_v34 = vmul.f32 0.1, %v865_v23  ;;  %vm929_vm10 = vcmp.gt.f32.partialorder %v865_v23, 0.0  ;;  %v1009_v42 = vmul.f32 0.1, %v881_v28  ;;  %v1748_v14 = vunpack.c.h.bf16 %v1957_v56 }
  0xa3   :  { %v1088_v26 = vsel %vm960_vm8, %v896_v16, %v1024_v24  ;;  %v1104_v27 = vsel %vm976_vm9, %v912_v17, %v1040_v25  ;;  %vm945_vm11 = vcmp.gt.f32.partialorder %v881_v28, 0.0  ;;  %v1934_v24 = vld [vmem:[%s2435_s3 + $0x10] sm:$0xff]  }
  0xa4   :  { %v1280_v31 = vadd.f32 %v1712_v12, %v1088_v26  ;;  %v1296_v32 = vadd.f32 %v1744_v22, %v1104_v27  ;;  %v1057_v48 = vsel %vm929_vm10, %v865_v23, %v993_v34  ;;  %v1073_v55 = vsel %vm945_vm11, %v881_v28, %v1009_v42 }
  0xa5   :  { %v1249_v61 = vadd.f32 %v1651_v41, %v1057_v48  ;;  %v1265_v0 = vadd.f32 %v1683_v49, %v1073_v55  ;;  %v1655_v33 = vunpack.c.l.bf16 %v1934_v24  ;;  %v1958_v49 = vld [vmem:[%s2435_s3 + $0xd0] sm:$0xff]  }
  0xa6   :  { %v1856_v35 = vpack.c.bf16 %v1280_v31, %v1279_v29  ;;  %v1896_v36 = vpack.c.bf16 %v1296_v32, %v1295_v30  ;;  %v589_v39 = vpop.f32.mrf.mxu2  ;;  %v629_v40 = vpop.f32.mrf.mxu3  ;;  %v1942_v29 = vld [vmem:[%s2435_s3 + $0x50] sm:$0xff]  }
  0xa7   :  { %v511_v43 = vpop.f32.mrf.mxu0  ;;  %v551_v44 = vpop.f32.mrf.mxu1  ;;  %v897_v45 = vadd.f32 %v2171_v38, %v589_v39  ;;  %v913_v53 = vadd.f32 %v2171_v38, %v629_v40  ;;  %v1687_v42 = vunpack.c.l.bf16 %v1942_v29 }
  0xa8   :  { %1979 = vst [vmem:[%s2436_s4 + $0x80] sm:$0xff] %v1856_v35   ;;  %v866_v46 = vadd.f32 %v2171_v38, %v511_v43  ;;  %v882_v47 = vadd.f32 %v2171_v38, %v551_v44  ;;  %v1950_v43 = vld [vmem:[%s2435_s3 + $0x90] sm:$0xff]   ;;  %v1656_v44 = vunpack.c.h.bf16 %v1934_v24 }
  0xa9   :  { %1987 = vst [vmem:[%s2436_s4 + $0xc0] sm:$0xff] %v1896_v36   ;;  %v1025_v58 = vmul.f32 0.1, %v897_v45  ;;  %vm961_vm14 = vcmp.gt.f32.partialorder %v897_v45, 0.0  ;;  %v1041_v1 = vmul.f32 0.1, %v913_v53 }
  0xaa   :  { %vm930_vm12 = vcmp.gt.f32.partialorder %v866_v46, 0.0  ;;  %v994_v54 = vmul.f32 0.1, %v866_v46  ;;  %vm946_vm13 = vcmp.gt.f32.partialorder %v882_v47, 0.0  ;;  %v1010_v57 = vmul.f32 0.1, %v882_v47 }
  0xab   :  { %vm977_vm15 = vcmp.gt.f32.partialorder %v913_v53, 0.0  ;;  %v1089_v11 = vsel %vm961_vm14, %v897_v45, %v1025_v58  ;;  %v1688_v45 = vunpack.c.h.bf16 %v1942_v29 }
  0xac   :  { %v1058_v60 = vsel %vm930_vm12, %v866_v46, %v994_v54  ;;  %v1074_v63 = vsel %vm946_vm13, %v882_v47, %v1010_v57  ;;  %v1105_v17 = vsel %vm977_vm15, %v913_v53, %v1041_v1  ;;  %v1281_v21 = vadd.f32 %v1715_v59, %v1089_v11 }
  0xad   :  { %v1250_v62 = vadd.f32 %v1652_v51, %v1058_v60  ;;  %v1266_v3 = vadd.f32 %v1684_v52, %v1074_v63  ;;  %v1297_v25 = vadd.f32 %v1747_v2, %v1105_v17  ;;  %v1719_v52 = vunpack.c.l.bf16 %v1950_v43  ;;  %v1935_v17 = vld [vmem:[%s2435_s3 + $0x18] sm:$0xff]  }
  0xae   :  { %v591_v4 = vpop.f32.mrf.mxu2  ;;  %v631_v5 = vpop.f32.mrf.mxu3  ;;  %v1751_v59 = vunpack.c.l.bf16 %v1958_v49 }
  0xaf   :  { %v1781_v6 = vpack.c.bf16 %v1250_v62, %v1249_v61  ;;  %v898_v7 = vadd.f32 %v2171_v38, %v591_v4  ;;  %v914_v8 = vadd.f32 %v2171_v38, %v631_v5  ;;  %v514_v9 = vpop.f32.mrf.mxu0  ;;  %v554_v10 = vpop.f32.mrf.mxu1  ;;  %v1821_v12 = vpack.c.bf16 %v1266_v3, %v1265_v0 }
  0xb0   :  { %v867_v16 = vadd.f32 %v2171_v38, %v514_v9  ;;  %v883_v20 = vadd.f32 %v2171_v38, %v554_v10 }
  0xb1   :  { %1964 = vst [vmem:[%s2436_s4 + $0x8] sm:$0xff] %v1781_v6   ;;  %vm962_vm0 = vcmp.gt.f32.partialorder %v898_v7, 0.0  ;;  %v1026_v15 = vmul.f32 0.1, %v898_v7  ;;  %vm978_vm1 = vcmp.gt.f32.partialorder %v914_v8, 0.0  ;;  %v1720_v6 = vunpack.c.h.bf16 %v1950_v43 }
  0xb2   :  { %1972 = vst [vmem:[%s2436_s4 + $0x48] sm:$0xff] %v1821_v12   ;;  %v1042_v18 = vmul.f32 0.1, %v914_v8  ;;  %v995_v27 = vmul.f32 0.1, %v867_v16  ;;  %vm931_vm2 = vcmp.gt.f32.partialorder %v867_v16, 0.0 }
  0xb3   :  { %v1090_v19 = vsel %vm962_vm0, %v898_v7, %v1026_v15  ;;  %v1011_v34 = vmul.f32 0.1, %v883_v20  ;;  %vm947_vm3 = vcmp.gt.f32.partialorder %v883_v20, 0.0  ;;  %v1752_v7 = vunpack.c.h.bf16 %v1958_v49 }
  0xb4   :  { %v1282_v22 = vadd.f32 %v1716_v13, %v1090_v19  ;;  %v1106_v23 = vsel %vm978_vm1, %v914_v8, %v1042_v18  ;;  %v1059_v41 = vsel %vm931_vm2, %v867_v16, %v995_v27 }
  0xb5   :  { %v1298_v26 = vadd.f32 %v1748_v14, %v1106_v23  ;;  %v1075_v48 = vsel %vm947_vm3, %v883_v20, %v1011_v34  ;;  %v1251_v54 = vadd.f32 %v1655_v33, %v1059_v41 }
  0xb6   :  { %v1861_v28 = vpack.c.bf16 %v1282_v22, %v1281_v21  ;;  %v594_v30 = vpop.f32.mrf.mxu2  ;;  %v634_v31 = vpop.f32.mrf.mxu3  ;;  %v1267_v57 = vadd.f32 %v1687_v42, %v1075_v48  ;;  %v1943_v22 = vld [vmem:[%s2435_s3 + $0x58] sm:$0xff]  }
  0xb7   :  { %v1901_v32 = vpack.c.bf16 %v1298_v26, %v1297_v25  ;;  %v516_v35 = vpop.f32.mrf.mxu0  ;;  %v556_v36 = vpop.f32.mrf.mxu1  ;;  %v899_v37 = vadd.f32 %v2171_v38, %v594_v30  ;;  %v915_v46 = vadd.f32 %v2171_v38, %v634_v31  ;;  %v1659_v26 = vunpack.c.l.bf16 %v1935_v17  ;;  %v1959_v42 = vld [vmem:[%s2435_s3 + $0xd8] sm:$0xff]  }
  0xb8   :  { %1980 = vst [vmem:[%s2436_s4 + $0x88] sm:$0xff] %v1861_v28   ;;  %v868_v39 = vadd.f32 %v2171_v38, %v516_v35  ;;  %v884_v40 = vadd.f32 %v2171_v38, %v556_v36  ;;  %v1691_v34 = vunpack.c.l.bf16 %v1943_v22  ;;  %v1951_v35 = vld [vmem:[%s2435_s3 + $0x98] sm:$0xff]   ;;  %v1660_v36 = vunpack.c.h.bf16 %v1935_v17 }
  0xb9   :  { %1988 = vst [vmem:[%s2436_s4 + $0xc8] sm:$0xff] %v1901_v32   ;;  %v1027_v51 = vmul.f32 0.1, %v899_v37  ;;  %vm963_vm6 = vcmp.gt.f32.partialorder %v899_v37, 0.0  ;;  %v1043_v58 = vmul.f32 0.1, %v915_v46 }
  0xba   :  { %vm932_vm4 = vcmp.gt.f32.partialorder %v868_v39, 0.0  ;;  %v996_v47 = vmul.f32 0.1, %v868_v39  ;;  %vm948_vm5 = vcmp.gt.f32.partialorder %v884_v40, 0.0  ;;  %v1012_v50 = vmul.f32 0.1, %v884_v40 }
  0xbb   :  { %vm979_vm7 = vcmp.gt.f32.partialorder %v915_v46, 0.0  ;;  %v1091_v4 = vsel %vm963_vm6, %v899_v37, %v1027_v51  ;;  %v1692_v37 = vunpack.c.h.bf16 %v1943_v22 }
  0xbc   :  { %v1060_v53 = vsel %vm932_vm4, %v868_v39, %v996_v47  ;;  %v1076_v56 = vsel %vm948_vm5, %v884_v40, %v1012_v50  ;;  %v1107_v10 = vsel %vm979_vm7, %v915_v46, %v1043_v58  ;;  %v1283_v14 = vadd.f32 %v1719_v52, %v1091_v4 }
  0xbd   :  { %v1252_v55 = vadd.f32 %v1656_v44, %v1060_v53  ;;  %v1268_v60 = vadd.f32 %v1688_v45, %v1076_v56  ;;  %v1299_v18 = vadd.f32 %v1751_v59, %v1107_v10  ;;  %v1723_v45 = vunpack.c.l.bf16 %v1951_v35  ;;  %v1936_v10 = vld [vmem:[%s2435_s3 + $0x20] sm:$0xff]  }
  0xbe   :  { %v596_v61 = vpop.f32.mrf.mxu2  ;;  %v636_v62 = vpop.f32.mrf.mxu3  ;;  %v1755_v52 = vunpack.c.l.bf16 %v1959_v42 }
  0xbf   :  { %v1786_v63 = vpack.c.bf16 %v1252_v55, %v1251_v54  ;;  %v900_v0 = vadd.f32 %v2171_v38, %v596_v61  ;;  %v916_v1 = vadd.f32 %v2171_v38, %v636_v62  ;;  %v519_v2 = vpop.f32.mrf.mxu0  ;;  %v559_v3 = vpop.f32.mrf.mxu1  ;;  %v1826_v5 = vpack.c.bf16 %v1268_v60, %v1267_v57 }
  0xc0   :  { %v869_v9 = vadd.f32 %v2171_v38, %v519_v2  ;;  %v885_v13 = vadd.f32 %v2171_v38, %v559_v3 }
  0xc1   :  { %1965 = vst [vmem:[%s2436_s4 + $0x10] sm:$0xff] %v1786_v63   ;;  %vm964_vm8 = vcmp.gt.f32.partialorder %v900_v0, 0.0  ;;  %v1028_v8 = vmul.f32 0.1, %v900_v0  ;;  %vm980_vm9 = vcmp.gt.f32.partialorder %v916_v1, 0.0  ;;  %v1724_v63 = vunpack.c.h.bf16 %v1951_v35 }
  0xc2   :  { %1973 = vst [vmem:[%s2436_s4 + $0x50] sm:$0xff] %v1826_v5   ;;  %v1044_v11 = vmul.f32 0.1, %v916_v1  ;;  %v997_v20 = vmul.f32 0.1, %v869_v9  ;;  %vm933_vm10 = vcmp.gt.f32.partialorder %v869_v9, 0.0 }
  0xc3   :  { %v1092_v12 = vsel %vm964_vm8, %v900_v0, %v1028_v8  ;;  %v1013_v27 = vmul.f32 0.1, %v885_v13  ;;  %vm949_vm11 = vcmp.gt.f32.partialorder %v885_v13, 0.0  ;;  %v1756_v0 = vunpack.c.h.bf16 %v1959_v42 }
  0xc4   :  { %v1284_v15 = vadd.f32 %v1720_v6, %v1092_v12  ;;  %v1108_v16 = vsel %vm980_vm9, %v916_v1, %v1044_v11  ;;  %v1061_v33 = vsel %vm933_vm10, %v869_v9, %v997_v20 }
  0xc5   :  { %v1300_v19 = vadd.f32 %v1752_v7, %v1108_v16  ;;  %v1077_v41 = vsel %vm949_vm11, %v885_v13, %v1013_v27  ;;  %v1253_v47 = vadd.f32 %v1659_v26, %v1061_v33 }
  0xc6   :  { %v1866_v21 = vpack.c.bf16 %v1284_v15, %v1283_v14  ;;  %v599_v23 = vpop.f32.mrf.mxu2  ;;  %v639_v24 = vpop.f32.mrf.mxu3  ;;  %v1269_v50 = vadd.f32 %v1691_v34, %v1077_v41  ;;  %v1944_v15 = vld [vmem:[%s2435_s3 + $0x60] sm:$0xff]  }
  0xc7   :  { %v1906_v25 = vpack.c.bf16 %v1300_v19, %v1299_v18  ;;  %v521_v28 = vpop.f32.mrf.mxu0  ;;  %v561_v29 = vpop.f32.mrf.mxu1  ;;  %v901_v30 = vadd.f32 %v2171_v38, %v599_v23  ;;  %v917_v39 = vadd.f32 %v2171_v38, %v639_v24  ;;  %v1663_v19 = vunpack.c.l.bf16 %v1936_v10  ;;  %v1960_v34 = vld [vmem:[%s2435_s3 + $0xe0] sm:$0xff]  }
  0xc8   :  { %1981 = vst [vmem:[%s2436_s4 + $0x90] sm:$0xff] %v1866_v21   ;;  %v870_v31 = vadd.f32 %v2171_v38, %v521_v28  ;;  %v886_v32 = vadd.f32 %v2171_v38, %v561_v29  ;;  %v1695_v27 = vunpack.c.l.bf16 %v1944_v15  ;;  %v1952_v28 = vld [vmem:[%s2435_s3 + $0xa0] sm:$0xff]   ;;  %v1664_v29 = vunpack.c.h.bf16 %v1936_v10 }
  0xc9   :  { %1989 = vst [vmem:[%s2436_s4 + $0xd0] sm:$0xff] %v1906_v25   ;;  %v1029_v44 = vmul.f32 0.1, %v901_v30  ;;  %vm965_vm14 = vcmp.gt.f32.partialorder %v901_v30, 0.0  ;;  %v1045_v51 = vmul.f32 0.1, %v917_v39 }
  0xca   :  { %vm934_vm12 = vcmp.gt.f32.partialorder %v870_v31, 0.0  ;;  %v998_v40 = vmul.f32 0.1, %v870_v31  ;;  %vm950_vm13 = vcmp.gt.f32.partialorder %v886_v32, 0.0  ;;  %v1014_v43 = vmul.f32 0.1, %v886_v32 }
  0xcb   :  { %vm981_vm15 = vcmp.gt.f32.partialorder %v917_v39, 0.0  ;;  %v1093_v61 = vsel %vm965_vm14, %v901_v30, %v1029_v44  ;;  %v1696_v30 = vunpack.c.h.bf16 %v1944_v15 }
  0xcc   :  { %v1062_v46 = vsel %vm934_vm12, %v870_v31, %v998_v40  ;;  %v1078_v49 = vsel %vm950_vm13, %v886_v32, %v1014_v43  ;;  %v1109_v3 = vsel %vm981_vm15, %v917_v39, %v1045_v51  ;;  %v1285_v7 = vadd.f32 %v1723_v45, %v1093_v61 }
  0xcd   :  { %v1254_v48 = vadd.f32 %v1660_v36, %v1062_v46  ;;  %v1270_v53 = vadd.f32 %v1692_v37, %v1078_v49  ;;  %v1301_v11 = vadd.f32 %v1755_v52, %v1109_v3  ;;  %v1727_v37 = vunpack.c.l.bf16 %v1952_v28  ;;  %v1937_v3 = vld [vmem:[%s2435_s3 + $0x28] sm:$0xff]  }
  0xce   :  { %v601_v54 = vpop.f32.mrf.mxu2  ;;  %v641_v55 = vpop.f32.mrf.mxu3  ;;  %v1759_v45 = vunpack.c.l.bf16 %v1960_v34 }
  0xcf   :  { %v1791_v56 = vpack.c.bf16 %v1254_v48, %v1253_v47  ;;  %v902_v57 = vadd.f32 %v2171_v38, %v601_v54  ;;  %v918_v58 = vadd.f32 %v2171_v38, %v641_v55  ;;  %v524_v59 = vpop.f32.mrf.mxu0  ;;  %v564_v60 = vpop.f32.mrf.mxu1  ;;  %v1831_v62 = vpack.c.bf16 %v1270_v53, %v1269_v50 }
  0xd0   :  { %v871_v2 = vadd.f32 %v2171_v38, %v524_v59  ;;  %v887_v6 = vadd.f32 %v2171_v38, %v564_v60 }
  0xd1   :  { %1966 = vst [vmem:[%s2436_s4 + $0x18] sm:$0xff] %v1791_v56   ;;  %vm966_vm0 = vcmp.gt.f32.partialorder %v902_v57, 0.0  ;;  %v1030_v1 = vmul.f32 0.1, %v902_v57  ;;  %vm982_vm1 = vcmp.gt.f32.partialorder %v918_v58, 0.0  ;;  %v1728_v56 = vunpack.c.h.bf16 %v1952_v28 }
  0xd2   :  { %1974 = vst [vmem:[%s2436_s4 + $0x58] sm:$0xff] %v1831_v62   ;;  %v1046_v4 = vmul.f32 0.1, %v918_v58  ;;  %v999_v13 = vmul.f32 0.1, %v871_v2  ;;  %vm935_vm2 = vcmp.gt.f32.partialorder %v871_v2, 0.0 }
  0xd3   :  { %v1094_v5 = vsel %vm966_vm0, %v902_v57, %v1030_v1  ;;  %v1015_v20 = vmul.f32 0.1, %v887_v6  ;;  %vm951_vm3 = vcmp.gt.f32.partialorder %v887_v6, 0.0  ;;  %v1760_v57 = vunpack.c.h.bf16 %v1960_v34 }
  0xd4   :  { %v1286_v8 = vadd.f32 %v1724_v63, %v1094_v5  ;;  %v1110_v9 = vsel %vm982_vm1, %v918_v58, %v1046_v4  ;;  %v1063_v26 = vsel %vm935_vm2, %v871_v2, %v999_v13 }
  0xd5   :  { %v1302_v12 = vadd.f32 %v1756_v0, %v1110_v9  ;;  %v1079_v33 = vsel %vm951_vm3, %v887_v6, %v1015_v20  ;;  %v1255_v40 = vadd.f32 %v1663_v19, %v1063_v26 }
  0xd6   :  { %v1871_v14 = vpack.c.bf16 %v1286_v8, %v1285_v7  ;;  %v604_v16 = vpop.f32.mrf.mxu2  ;;  %v644_v17 = vpop.f32.mrf.mxu3  ;;  %v1271_v43 = vadd.f32 %v1695_v27, %v1079_v33  ;;  %v1945_v8 = vld [vmem:[%s2435_s3 + $0x68] sm:$0xff]  }
  0xd7   :  { %v1911_v18 = vpack.c.bf16 %v1302_v12, %v1301_v11  ;;  %v526_v21 = vpop.f32.mrf.mxu0  ;;  %v566_v22 = vpop.f32.mrf.mxu1  ;;  %v903_v23 = vadd.f32 %v2171_v38, %v604_v16  ;;  %v919_v31 = vadd.f32 %v2171_v38, %v644_v17  ;;  %v1667_v12 = vunpack.c.l.bf16 %v1937_v3  ;;  %v1961_v27 = vld [vmem:[%s2435_s3 + $0xe8] sm:$0xff]  }
  0xd8   :  { %1982 = vst [vmem:[%s2436_s4 + $0x98] sm:$0xff] %v1871_v14   ;;  %v872_v24 = vadd.f32 %v2171_v38, %v526_v21  ;;  %v888_v25 = vadd.f32 %v2171_v38, %v566_v22  ;;  %v1699_v20 = vunpack.c.l.bf16 %v1945_v8  ;;  %v1953_v21 = vld [vmem:[%s2435_s3 + $0xa8] sm:$0xff]   ;;  %v1668_v22 = vunpack.c.h.bf16 %v1937_v3 }
  0xd9   :  { %1990 = vst [vmem:[%s2436_s4 + $0xd8] sm:$0xff] %v1911_v18   ;;  %v1031_v36 = vmul.f32 0.1, %v903_v23  ;;  %vm967_vm6 = vcmp.gt.f32.partialorder %v903_v23, 0.0  ;;  %v1047_v44 = vmul.f32 0.1, %v919_v31 }
  0xda   :  { %vm936_vm4 = vcmp.gt.f32.partialorder %v872_v24, 0.0  ;;  %v1000_v32 = vmul.f32 0.1, %v872_v24  ;;  %vm952_vm5 = vcmp.gt.f32.partialorder %v888_v25, 0.0  ;;  %v1016_v35 = vmul.f32 0.1, %v888_v25 }
  0xdb   :  { %vm983_vm7 = vcmp.gt.f32.partialorder %v919_v31, 0.0  ;;  %v1095_v54 = vsel %vm967_vm6, %v903_v23, %v1031_v36  ;;  %v1700_v23 = vunpack.c.h.bf16 %v1945_v8 }
  0xdc   :  { %v1064_v39 = vsel %vm936_vm4, %v872_v24, %v1000_v32  ;;  %v1080_v42 = vsel %vm952_vm5, %v888_v25, %v1016_v35  ;;  %v1111_v60 = vsel %vm983_vm7, %v919_v31, %v1047_v44  ;;  %v1287_v0 = vadd.f32 %v1727_v37, %v1095_v54 }
  0xdd   :  { %v1256_v41 = vadd.f32 %v1664_v29, %v1064_v39  ;;  %v1272_v46 = vadd.f32 %v1696_v30, %v1080_v42  ;;  %v1303_v4 = vadd.f32 %v1759_v45, %v1111_v60  ;;  %v1731_v30 = vunpack.c.l.bf16 %v1953_v21  ;;  %v1938_v60 = vld [vmem:[%s2435_s3 + $0x30] sm:$0xff]  }
  0xde   :  { %v606_v47 = vpop.f32.mrf.mxu2  ;;  %v646_v48 = vpop.f32.mrf.mxu3  ;;  %v1763_v37 = vunpack.c.l.bf16 %v1961_v27 }
  0xdf   :  { %v1796_v49 = vpack.c.bf16 %v1256_v41, %v1255_v40  ;;  %v904_v50 = vadd.f32 %v2171_v38, %v606_v47  ;;  %v920_v51 = vadd.f32 %v2171_v38, %v646_v48  ;;  %v529_v52 = vpop.f32.mrf.mxu0  ;;  %v569_v53 = vpop.f32.mrf.mxu1  ;;  %v1836_v55 = vpack.c.bf16 %v1272_v46, %v1271_v43 }
  0xe0   :  { %v873_v59 = vadd.f32 %v2171_v38, %v529_v52  ;;  %v889_v63 = vadd.f32 %v2171_v38, %v569_v53 }
  0xe1   :  { %1967 = vst [vmem:[%s2436_s4 + $0x20] sm:$0xff] %v1796_v49   ;;  %vm968_vm8 = vcmp.gt.f32.partialorder %v904_v50, 0.0  ;;  %v1032_v58 = vmul.f32 0.1, %v904_v50  ;;  %vm984_vm9 = vcmp.gt.f32.partialorder %v920_v51, 0.0  ;;  %v1732_v49 = vunpack.c.h.bf16 %v1953_v21 }
  0xe2   :  { %1975 = vst [vmem:[%s2436_s4 + $0x60] sm:$0xff] %v1836_v55   ;;  %v1048_v61 = vmul.f32 0.1, %v920_v51  ;;  %v1001_v6 = vmul.f32 0.1, %v873_v59  ;;  %vm937_vm10 = vcmp.gt.f32.partialorder %v873_v59, 0.0 }
  0xe3   :  { %v1096_v62 = vsel %vm968_vm8, %v904_v50, %v1032_v58  ;;  %v1017_v13 = vmul.f32 0.1, %v889_v63  ;;  %vm953_vm11 = vcmp.gt.f32.partialorder %v889_v63, 0.0  ;;  %v1764_v50 = vunpack.c.h.bf16 %v1961_v27 }
  0xe4   :  { %v1288_v1 = vadd.f32 %v1728_v56, %v1096_v62  ;;  %v1112_v2 = vsel %vm984_vm9, %v920_v51, %v1048_v61  ;;  %v1065_v19 = vsel %vm937_vm10, %v873_v59, %v1001_v6 }
  0xe5   :  { %v1304_v5 = vadd.f32 %v1760_v57, %v1112_v2  ;;  %v1081_v26 = vsel %vm953_vm11, %v889_v63, %v1017_v13  ;;  %v1257_v32 = vadd.f32 %v1667_v12, %v1065_v19 }
  0xe6   :  { %v1876_v7 = vpack.c.bf16 %v1288_v1, %v1287_v0  ;;  %v609_v9 = vpop.f32.mrf.mxu2  ;;  %v649_v10 = vpop.f32.mrf.mxu3  ;;  %v1273_v35 = vadd.f32 %v1699_v20, %v1081_v26  ;;  %v1946_v1 = vld [vmem:[%s2435_s3 + $0x70] sm:$0xff]  }
  0xe7   :  { %v1916_v11 = vpack.c.bf16 %v1304_v5, %v1303_v4  ;;  %v531_v14 = vpop.f32.mrf.mxu0  ;;  %v571_v15 = vpop.f32.mrf.mxu1  ;;  %v905_v16 = vadd.f32 %v2171_v38, %v609_v9  ;;  %v921_v24 = vadd.f32 %v2171_v38, %v649_v10  ;;  %v1671_v5 = vunpack.c.l.bf16 %v1938_v60  ;;  %v1962_v20 = vld [vmem:[%s2435_s3 + $0xf0] sm:$0xff]  }
  0xe8   :  { %1983 = vst [vmem:[%s2436_s4 + $0xa0] sm:$0xff] %v1876_v7   ;;  %v874_v17 = vadd.f32 %v2171_v38, %v531_v14  ;;  %v890_v18 = vadd.f32 %v2171_v38, %v571_v15  ;;  %v1703_v13 = vunpack.c.l.bf16 %v1946_v1  ;;  %v1954_v14 = vld [vmem:[%s2435_s3 + $0xb0] sm:$0xff]   ;;  %v1672_v15 = vunpack.c.h.bf16 %v1938_v60 }
  0xe9   :  { %1991 = vst [vmem:[%s2436_s4 + $0xe0] sm:$0xff] %v1916_v11   ;;  %v1033_v29 = vmul.f32 0.1, %v905_v16  ;;  %vm969_vm14 = vcmp.gt.f32.partialorder %v905_v16, 0.0  ;;  %v1049_v36 = vmul.f32 0.1, %v921_v24 }
  0xea   :  { %vm938_vm12 = vcmp.gt.f32.partialorder %v874_v17, 0.0  ;;  %v1002_v25 = vmul.f32 0.1, %v874_v17  ;;  %vm954_vm13 = vcmp.gt.f32.partialorder %v890_v18, 0.0  ;;  %v1018_v28 = vmul.f32 0.1, %v890_v18 }
  0xeb   :  { %vm985_vm15 = vcmp.gt.f32.partialorder %v921_v24, 0.0  ;;  %v1097_v47 = vsel %vm969_vm14, %v905_v16, %v1033_v29  ;;  %v1704_v16 = vunpack.c.h.bf16 %v1946_v1 }
  0xec   :  { %v1066_v31 = vsel %vm938_vm12, %v874_v17, %v1002_v25  ;;  %v1082_v34 = vsel %vm954_vm13, %v890_v18, %v1018_v28  ;;  %v1113_v53 = vsel %vm985_vm15, %v921_v24, %v1049_v36  ;;  %v1289_v57 = vadd.f32 %v1731_v30, %v1097_v47 }
  0xed   :  { %v1258_v33 = vadd.f32 %v1668_v22, %v1066_v31  ;;  %v1274_v39 = vadd.f32 %v1700_v23, %v1082_v34  ;;  %v1305_v61 = vadd.f32 %v1763_v37, %v1113_v53  ;;  %v1735_v23 = vunpack.c.l.bf16 %v1954_v14  ;;  %v1939_v53 = vld [vmem:[%s2435_s3 + $0x38] sm:$0xff]  }
  0xee   :  { %v611_v40 = vpop.f32.mrf.mxu2  ;;  %v651_v41 = vpop.f32.mrf.mxu3  ;;  %v1767_v30 = vunpack.c.l.bf16 %v1962_v20 }
  0xef   :  { %v1801_v42 = vpack.c.bf16 %v1258_v33, %v1257_v32  ;;  %v906_v43 = vadd.f32 %v2171_v38, %v611_v40  ;;  %v922_v44 = vadd.f32 %v2171_v38, %v651_v41  ;;  %v534_v45 = vpop.f32.mrf.mxu0  ;;  %v574_v46 = vpop.f32.mrf.mxu1  ;;  %v1841_v48 = vpack.c.bf16 %v1274_v39, %v1273_v35 }
  0xf0   :  { %v875_v52 = vadd.f32 %v2171_v38, %v534_v45  ;;  %v891_v56 = vadd.f32 %v2171_v38, %v574_v46 }
  0xf1   :  { %1968 = vst [vmem:[%s2436_s4 + $0x28] sm:$0xff] %v1801_v42   ;;  %vm970_vm0 = vcmp.gt.f32.partialorder %v906_v43, 0.0  ;;  %v1034_v51 = vmul.f32 0.1, %v906_v43  ;;  %vm986_vm1 = vcmp.gt.f32.partialorder %v922_v44, 0.0  ;;  %v1736_v42 = vunpack.c.h.bf16 %v1954_v14 }
  0xf2   :  { %1976 = vst [vmem:[%s2436_s4 + $0x68] sm:$0xff] %v1841_v48   ;;  %v1050_v54 = vmul.f32 0.1, %v922_v44  ;;  %v1003_v63 = vmul.f32 0.1, %v875_v52  ;;  %vm939_vm2 = vcmp.gt.f32.partialorder %v875_v52, 0.0 }
  0xf3   :  { %v1098_v55 = vsel %vm970_vm0, %v906_v43, %v1034_v51  ;;  %v1019_v6 = vmul.f32 0.1, %v891_v56  ;;  %vm955_vm3 = vcmp.gt.f32.partialorder %v891_v56, 0.0  ;;  %v1768_v43 = vunpack.c.h.bf16 %v1962_v20 }
  0xf4   :  { %v1290_v58 = vadd.f32 %v1732_v49, %v1098_v55  ;;  %v1114_v59 = vsel %vm986_vm1, %v922_v44, %v1050_v54  ;;  %v1067_v12 = vsel %vm939_vm2, %v875_v52, %v1003_v63 }
  0xf5   :  { %v1306_v62 = vadd.f32 %v1764_v50, %v1114_v59  ;;  %v1083_v19 = vsel %vm955_vm3, %v891_v56, %v1019_v6  ;;  %v1259_v25 = vadd.f32 %v1671_v5, %v1067_v12 }
  0xf6   :  { %v1881_v0 = vpack.c.bf16 %v1290_v58, %v1289_v57  ;;  %v614_v2 = vpop.f32.mrf.mxu2  ;;  %v654_v3 = vpop.f32.mrf.mxu3  ;;  %v1275_v28 = vadd.f32 %v1703_v13, %v1083_v19  ;;  %v1947_v57 = vld [vmem:[%s2435_s3 + $0x78] sm:$0xff]  }
  0xf7   :  { %v1921_v4 = vpack.c.bf16 %v1306_v62, %v1305_v61  ;;  %v536_v7 = vpop.f32.mrf.mxu0  ;;  %v576_v8 = vpop.f32.mrf.mxu1  ;;  %v907_v9 = vadd.f32 %v2171_v38, %v614_v2  ;;  %v923_v17 = vadd.f32 %v2171_v38, %v654_v3  ;;  %v1675_v62 = vunpack.c.l.bf16 %v1939_v53 }
  0xf8   :  { %1984 = vst [vmem:[%s2436_s4 + $0xa8] sm:$0xff] %v1881_v0   ;;  %v876_v10 = vadd.f32 %v2171_v38, %v536_v7  ;;  %v892_v11 = vadd.f32 %v2171_v38, %v576_v8  ;;  %v1707_v2 = vunpack.c.l.bf16 %v1947_v57  ;;  %v1955_v7 = vld [vmem:[%s2435_s3 + $0xb8] sm:$0xff]   ;;  %v1676_v8 = vunpack.c.h.bf16 %v1939_v53 }
  0xf9   :  { %1992 = vst [vmem:[%s2436_s4 + $0xe8] sm:$0xff] %v1921_v4   ;;  %v1035_v22 = vmul.f32 0.1, %v907_v9  ;;  %vm971_vm6 = vcmp.gt.f32.partialorder %v907_v9, 0.0  ;;  %v1051_v29 = vmul.f32 0.1, %v923_v17  ;;  %v1739_v14 = vunpack.c.l.bf16 %v1955_v7 }
  0xfa   :  { %vm940_vm4 = vcmp.gt.f32.partialorder %v876_v10, 0.0  ;;  %v1004_v18 = vmul.f32 0.1, %v876_v10  ;;  %vm956_vm5 = vcmp.gt.f32.partialorder %v892_v11, 0.0  ;;  %v1020_v21 = vmul.f32 0.1, %v892_v11 }
  0xfb   :  { %vm987_vm7 = vcmp.gt.f32.partialorder %v923_v17, 0.0  ;;  %v1099_v40 = vsel %vm971_vm6, %v907_v9, %v1035_v22  ;;  %v1708_v9 = vunpack.c.h.bf16 %v1947_v57 }
  0xfc   :  { %v1068_v24 = vsel %vm940_vm4, %v876_v10, %v1004_v18  ;;  %v1084_v27 = vsel %vm956_vm5, %v892_v11, %v1020_v21  ;;  %v1115_v46 = vsel %vm987_vm7, %v923_v17, %v1051_v29  ;;  %v1291_v50 = vadd.f32 %v1735_v23, %v1099_v40  ;;  %v1963_v18 = vld [vmem:[%s2435_s3 + $0xf8] sm:$0xff]  }
  0xfd   :  { %v1260_v26 = vadd.f32 %v1672_v15, %v1068_v24  ;;  %v1276_v31 = vadd.f32 %v1704_v16, %v1084_v27  ;;  %v1307_v54 = vadd.f32 %v1767_v30, %v1115_v46  ;;  %v1771_v29 = vunpack.c.l.bf16 %v1963_v18 }
  0xfe   :  { %v616_v32 = vpop.f32.mrf.mxu2  ;;  %v656_v33 = vpop.f32.mrf.mxu3 }
  0xff   :  { %v1806_v34 = vpack.c.bf16 %v1260_v26, %v1259_v25  ;;  %v908_v35 = vadd.f32 %v2171_v38, %v616_v32  ;;  %v924_v36 = vadd.f32 %v2171_v38, %v656_v33  ;;  %v539_v37 = vpop.f32.mrf.mxu0  ;;  %v579_v39 = vpop.f32.mrf.mxu1  ;;  %v1846_v41 = vpack.c.bf16 %v1276_v31, %v1275_v28  ;;  %v2005_v26 = vld [vmem:[%s2433_s2] ss:$0 sm:$0xff] }
 0x100   :  { %v877_v45 = vadd.f32 %v2171_v38, %v539_v37  ;;  %v893_v49 = vadd.f32 %v2171_v38, %v579_v39  ;;  %v1740_v31 = vunpack.c.h.bf16 %v1955_v7  ;;  %v1772_v32 = vunpack.c.h.bf16 %v1963_v18 }
 0x101   :  { %1969 = vst [vmem:[%s2436_s4 + $0x30] sm:$0xff] %v1806_v34   ;;  %vm972_vm8 = vcmp.gt.f32.partialorder %v908_v35, 0.0  ;;  %v1036_v44 = vmul.f32 0.1, %v908_v35  ;;  %vm988_vm9 = vcmp.gt.f32.partialorder %v924_v36, 0.0 }
 0x102   :  { %1977 = vst [vmem:[%s2436_s4 + $0x70] sm:$0xff] %v1846_v41   ;;  %v1052_v47 = vmul.f32 0.1, %v924_v36  ;;  %v1005_v56 = vmul.f32 0.1, %v877_v45  ;;  %vm941_vm10 = vcmp.gt.f32.partialorder %v877_v45, 0.0 }
 0x103   :  { %v1100_v48 = vsel %vm972_vm8, %v908_v35, %v1036_v44  ;;  %v1021_v63 = vmul.f32 0.1, %v893_v49  ;;  %vm957_vm11 = vcmp.gt.f32.partialorder %v893_v49, 0.0 }
 0x104   :  { %v1292_v51 = vadd.f32 %v1736_v42, %v1100_v48  ;;  %v1116_v52 = vsel %vm988_vm9, %v924_v36, %v1052_v47  ;;  %v1069_v5 = vsel %vm941_vm10, %v877_v45, %v1005_v56 }
 0x105   :  { %v1308_v55 = vadd.f32 %v1768_v43, %v1116_v52  ;;  %v1085_v12 = vsel %vm957_vm11, %v893_v49, %v1021_v63  ;;  %v1261_v16 = vadd.f32 %v1675_v62, %v1069_v5 }
 0x106   :  { %v1886_v58 = vpack.c.bf16 %v1292_v51, %v1291_v50  ;;  %v619_v59 = vpop.f32.mrf.mxu2  ;;  %v659_v60 = vpop.f32.mrf.mxu3  ;;  %v1277_v21 = vadd.f32 %v1707_v2, %v1085_v12 }
 0x107   :  { %v1926_v61 = vpack.c.bf16 %v1308_v55, %v1307_v54  ;;  %v541_v0 = vpop.f32.mrf.mxu0  ;;  %v581_v1 = vpop.f32.mrf.mxu1  ;;  %v909_v6 = vadd.f32 %v2171_v38, %v619_v59  ;;  %v925_v10 = vadd.f32 %v2171_v38, %v659_v60 }
 0x108   :  { %1985 = vst [vmem:[%s2436_s4 + $0xb0] sm:$0xff] %v1886_v58   ;;  %v878_v3 = vadd.f32 %v2171_v38, %v541_v0  ;;  %v894_v4 = vadd.f32 %v2171_v38, %v581_v1 }
 0x109   :  { %1993 = vst [vmem:[%s2436_s4 + $0xf0] sm:$0xff] %v1926_v61   ;;  %v1037_v17 = vmul.f32 0.1, %v909_v6  ;;  %vm973_vm14 = vcmp.gt.f32.partialorder %v909_v6, 0.0  ;;  %v1053_v22 = vmul.f32 0.1, %v925_v10 }
 0x10a   :  { %vm942_vm12 = vcmp.gt.f32.partialorder %v878_v3, 0.0  ;;  %v1006_v11 = vmul.f32 0.1, %v878_v3  ;;  %vm958_vm13 = vcmp.gt.f32.partialorder %v894_v4, 0.0  ;;  %v1022_v13 = vmul.f32 0.1, %v894_v4 }
 0x10b   :  { %vm989_vm15 = vcmp.gt.f32.partialorder %v925_v10, 0.0  ;;  %v1101_v33 = vsel %vm973_vm14, %v909_v6, %v1037_v17 }
 0x10c   :  { %v1070_v15 = vsel %vm942_vm12, %v878_v3, %v1006_v11  ;;  %v1086_v20 = vsel %vm958_vm13, %v894_v4, %v1022_v13  ;;  %v1117_v35 = vsel %vm989_vm15, %v925_v10, %v1053_v22  ;;  %v1293_v39 = vadd.f32 %v1739_v14, %v1101_v33 }
 0x10d   :  { %v1262_v19 = vadd.f32 %v1676_v8, %v1070_v15  ;;  %v1278_v23 = vadd.f32 %v1708_v9, %v1086_v20  ;;  %v1309_v42 = vadd.f32 %v1771_v29, %v1117_v35 }
 0x10e   :  { %v621_v38 = vpop.f32.mrf.mxu2  ;;  %v661_v24 = vpop.f32.mrf.mxu3 }
 0x10f   :  { %v1811_v25 = vpack.c.bf16 %v1262_v19, %v1261_v16  ;;  %v910_v27 = vadd.f32 %v2005_v26, %v621_v38  ;;  %v926_v28 = vadd.f32 %v2005_v26, %v661_v24  ;;  %v1851_v30 = vpack.c.bf16 %v1278_v23, %v1277_v21 }
 0x111   :  { %1970 = vst [vmem:[%s2436_s4 + $0x38] sm:$0xff] %v1811_v25   ;;  %vm974_vm0 = vcmp.gt.f32.partialorder %v910_v27, 0.0  ;;  %v1038_v34 = vmul.f32 0.1, %v910_v27  ;;  %vm990_vm1 = vcmp.gt.f32.partialorder %v926_v28, 0.0 }
 0x112   :  { %1978 = vst [vmem:[%s2436_s4 + $0x78] sm:$0xff] %v1851_v30   ;;  %v1054_v36 = vmul.f32 0.1, %v926_v28 }
 0x113   :  { %v1102_v37 = vsel %vm974_vm0, %v910_v27, %v1038_v34 }
 0x114   :  { %v1294_v40 = vadd.f32 %v1740_v31, %v1102_v37  ;;  %v1118_v41 = vsel %vm990_vm1, %v926_v28, %v1054_v36 }
 0x115   :  { %v1310_v43 = vadd.f32 %v1772_v32, %v1118_v41 }
 0x116   :  { %v1891_v44 = vpack.c.bf16 %v1294_v40, %v1293_v39 }
 0x117   :  { %v1931_v45 = vpack.c.bf16 %v1310_v43, %v1309_v42 }
 0x118   :  { %1986 = vst [vmem:[%s2436_s4 + $0xb8] sm:$0xff] %v1891_v44  }
 0x119   :  { %1994 = vst [vmem:[%s2436_s4 + $0xf8] sm:$0xff] %v1931_v45  }

// kernel: yolov3_forward.69
= control target key start
LH: loop header
LB: loop body
LE: loop exit
PB: predicated region body
PF: predicated region fallthrough
CT: control target
= control target key end

     0   :  { %vm115_vm0 = vcmask 130048   ;;  %s548_s1 = inlined_call_operand.vmem [shape: bf16[16,128], index: 1, kind: input, shape index: {}]   ;;  %s549_s0 = inlined_call_operand.vmem [shape: bf16[128,16], index: 0, kind: input, shape index: {}]   ;;  %s550_s2 = inlined_call_operand.vmem [shape: f32[1,128], index: 2, kind: input, shape index: {}]   ;;  %s551_s3 = inlined_call_operand.vmem [shape: bf16[128,128], index: 3, kind: output, shape index: {}]  }
   0x1   :  { %v396_v0 = vld [vmem:[%s548_s1] sm:$0xff]  ;;  %v390_v2 = vld [vmem:[%s549_s0 + $0x10] sm:$0xff]  ;;  %v389_v5 = vld [vmem:[%s549_s0 + $0x8] sm:$0xff] }
   0x2   :  { %v388_v1 = vld [vmem:[%s549_s0] sm:$0xff]  ;;  %147 = vmatpush.bf16.msra.mxu0 %v396_v0  ;;  %444 = vmatpush.bf16.msra.mxu1 %v396_v0  ;;  %v394_v4 = vld [vmem:[%s549_s0 + $0x30] sm:$0xff]  ;;  %v391_v6 = vld [vmem:[%s549_s0 + $0x18] sm:$0xff] }
   0x3   :  { %v392_v3 = vld [vmem:[%s549_s0 + $0x20] sm:$0xff]  ;;  %445 = vmatpush.bf16.msra.mxu2 %v396_v0  ;;  %446 = vmatpush.bf16.msra.mxu3 %v396_v0  ;;  %v393_v7 = vld [vmem:[%s549_s0 + $0x28] sm:$0xff]  ;;  %v395_v8 = vld [vmem:[%s549_s0 + $0x38] sm:$0xff] }
   0x4   :  { %v506_v11 = vld [vmem:[%s550_s2] ss:$0 sm:$0xff] }
   0x5   :  { %380 = vmatmul.msk.bf16.vlgmr.msra.gmra.mxu0 %vm115_vm0, %v388_v1  ;;  %382 = vmatmul.msk.bf16.vlgmr.msra.gmra.mxu1 %vm115_vm0, %v390_v2 }
   0x6   :  { %384 = vmatmul.msk.bf16.vlgmr.msra.gmra.mxu2 %vm115_vm0, %v392_v3  ;;  %386 = vmatmul.msk.bf16.vlgmr.msra.gmra.mxu3 %vm115_vm0, %v394_v4 }
  0x15   :  { %381 = vmatmul.msk.bf16.gmra.mxu0 %vm115_vm0, %v389_v5  ;;  %383 = vmatmul.msk.bf16.gmra.mxu1 %vm115_vm0, %v391_v6 }
  0x16   :  { %385 = vmatmul.msk.bf16.gmra.mxu2 %vm115_vm0, %v393_v7  ;;  %387 = vmatmul.msk.bf16.gmra.mxu3 %vm115_vm0, %v395_v8 }
  0x82   :  { %v149_v9 = vpop.f32.mrf.mxu0  ;;  %v159_v10 = vpop.f32.mrf.mxu1 }
  0x83   :  { %v244_v12 = vadd.f32 %v506_v11, %v149_v9  ;;  %v248_v13 = vadd.f32 %v506_v11, %v159_v10 }
  0x85   :  { %v276_v18 = vmul.f32 0.1, %v244_v12  ;;  %v280_v19 = vmul.f32 0.1, %v248_v13  ;;  %vm260_vm1 = vcmp.gt.f32.partialorder %v244_v12, 0.0  ;;  %vm264_vm2 = vcmp.gt.f32.partialorder %v248_v13, 0.0 }
  0x87   :  { %v292_v26 = vsel %vm260_vm1, %v244_v12, %v276_v18  ;;  %v296_v27 = vsel %vm264_vm2, %v248_v13, %v280_v19 }
  0x89   :  { %v169_v14 = vpop.f32.mrf.mxu2  ;;  %v179_v15 = vpop.f32.mrf.mxu3 }
  0x8a   :  { %v151_v16 = vpop.f32.mrf.mxu0  ;;  %v161_v17 = vpop.f32.mrf.mxu1  ;;  %v252_v24 = vadd.f32 %v506_v11, %v169_v14  ;;  %v256_v25 = vadd.f32 %v506_v11, %v179_v15 }
  0x8b   :  { %v245_v20 = vadd.f32 %v506_v11, %v151_v16  ;;  %v249_v21 = vadd.f32 %v506_v11, %v161_v17 }
  0x8c   :  { %v284_v34 = vmul.f32 0.1, %v252_v24  ;;  %v288_v35 = vmul.f32 0.1, %v256_v25  ;;  %vm268_vm5 = vcmp.gt.f32.partialorder %v252_v24, 0.0  ;;  %vm272_vm6 = vcmp.gt.f32.partialorder %v256_v25, 0.0 }
  0x8d   :  { %vm261_vm3 = vcmp.gt.f32.partialorder %v245_v20, 0.0  ;;  %v277_v22 = vmul.f32 0.1, %v245_v20  ;;  %vm265_vm4 = vcmp.gt.f32.partialorder %v249_v21, 0.0  ;;  %v281_v23 = vmul.f32 0.1, %v249_v21 }
  0x8e   :  { %v300_v42 = vsel %vm268_vm5, %v252_v24, %v284_v34  ;;  %v304_v43 = vsel %vm272_vm6, %v256_v25, %v288_v35 }
  0x8f   :  { %v293_v28 = vsel %vm261_vm3, %v245_v20, %v277_v22  ;;  %v297_v29 = vsel %vm265_vm4, %v249_v21, %v281_v23 }
  0x90   :  { %v400_v30 = vpack.c.bf16 %v293_v28, %v292_v26  ;;  %v410_v31 = vpack.c.bf16 %v297_v29, %v296_v27 }
  0x91   :  { %v171_v32 = vpop.f32.mrf.mxu2  ;;  %v181_v33 = vpop.f32.mrf.mxu3 }
  0x92   :  { %401 = vst [vmem:[%s551_s3] sm:$0xff] %v400_v30   ;;  %v253_v36 = vadd.f32 %v506_v11, %v171_v32  ;;  %v257_v37 = vadd.f32 %v506_v11, %v181_v33  ;;  %v154_v38 = vpop.f32.mrf.mxu0  ;;  %v164_v39 = vpop.f32.mrf.mxu1 }
  0x93   :  { %438 = vst [vmem:[%s551_s3 + $0x10] sm:$0xff] %v410_v31   ;;  %v246_v48 = vadd.f32 %v506_v11, %v154_v38  ;;  %v250_v49 = vadd.f32 %v506_v11, %v164_v39 }
  0x94   :  { %vm269_vm7 = vcmp.gt.f32.partialorder %v253_v36, 0.0  ;;  %v285_v40 = vmul.f32 0.1, %v253_v36  ;;  %vm273_vm8 = vcmp.gt.f32.partialorder %v257_v37, 0.0  ;;  %v289_v41 = vmul.f32 0.1, %v257_v37 }
  0x95   :  { %v278_v54 = vmul.f32 0.1, %v246_v48  ;;  %v282_v55 = vmul.f32 0.1, %v250_v49  ;;  %vm262_vm9 = vcmp.gt.f32.partialorder %v246_v48, 0.0  ;;  %vm266_vm10 = vcmp.gt.f32.partialorder %v250_v49, 0.0 }
  0x96   :  { %v301_v44 = vsel %vm269_vm7, %v253_v36, %v285_v40  ;;  %v305_v45 = vsel %vm273_vm8, %v257_v37, %v289_v41 }
  0x97   :  { %v420_v46 = vpack.c.bf16 %v301_v44, %v300_v42  ;;  %v430_v47 = vpack.c.bf16 %v305_v45, %v304_v43  ;;  %v294_v62 = vsel %vm262_vm9, %v246_v48, %v278_v54  ;;  %v298_v63 = vsel %vm266_vm10, %v250_v49, %v282_v55 }
  0x99   :  { %440 = vst [vmem:[%s551_s3 + $0x20] sm:$0xff] %v420_v46   ;;  %v174_v50 = vpop.f32.mrf.mxu2  ;;  %v184_v51 = vpop.f32.mrf.mxu3 }
  0x9a   :  { %442 = vst [vmem:[%s551_s3 + $0x30] sm:$0xff] %v430_v47   ;;  %v156_v52 = vpop.f32.mrf.mxu0  ;;  %v166_v53 = vpop.f32.mrf.mxu1  ;;  %v254_v60 = vadd.f32 %v506_v11, %v174_v50  ;;  %v258_v61 = vadd.f32 %v506_v11, %v184_v51 }
  0x9b   :  { %v247_v56 = vadd.f32 %v506_v11, %v156_v52  ;;  %v251_v57 = vadd.f32 %v506_v11, %v166_v53 }
  0x9c   :  { %v286_v6 = vmul.f32 0.1, %v254_v60  ;;  %v290_v7 = vmul.f32 0.1, %v258_v61  ;;  %vm270_vm13 = vcmp.gt.f32.partialorder %v254_v60, 0.0  ;;  %vm274_vm14 = vcmp.gt.f32.partialorder %v258_v61, 0.0 }
  0x9d   :  { %vm263_vm11 = vcmp.gt.f32.partialorder %v247_v56, 0.0  ;;  %v279_v58 = vmul.f32 0.1, %v247_v56  ;;  %vm267_vm12 = vcmp.gt.f32.partialorder %v251_v57, 0.0  ;;  %v283_v59 = vmul.f32 0.1, %v251_v57 }
  0x9e   :  { %v302_v13 = vsel %vm270_vm13, %v254_v60, %v286_v6  ;;  %v306_v14 = vsel %vm274_vm14, %v258_v61, %v290_v7 }
  0x9f   :  { %v295_v0 = vsel %vm263_vm11, %v247_v56, %v279_v58  ;;  %v299_v1 = vsel %vm267_vm12, %v251_v57, %v283_v59 }
  0xa0   :  { %v405_v2 = vpack.c.bf16 %v295_v0, %v294_v62  ;;  %v415_v3 = vpack.c.bf16 %v299_v1, %v298_v63 }
  0xa1   :  { %v176_v4 = vpop.f32.mrf.mxu2  ;;  %v186_v5 = vpop.f32.mrf.mxu3 }
  0xa2   :  { %437 = vst [vmem:[%s551_s3 + $0x8] sm:$0xff] %v405_v2   ;;  %v255_v8 = vadd.f32 %v506_v11, %v176_v4  ;;  %v259_v9 = vadd.f32 %v506_v11, %v186_v5 }
  0xa3   :  { %439 = vst [vmem:[%s551_s3 + $0x18] sm:$0xff] %v415_v3  }
  0xa4   :  { %vm271_vm15 = vcmp.gt.f32.partialorder %v255_v8, 0.0  ;;  %v287_v10 = vmul.f32 0.1, %v255_v8  ;;  %vm275_vm0 = vcmp.gt.f32.partialorder %v259_v9, 0.0  ;;  %v291_v12 = vmul.f32 0.1, %v259_v9 }
  0xa6   :  { %v303_v15 = vsel %vm271_vm15, %v255_v8, %v287_v10  ;;  %v307_v16 = vsel %vm275_vm0, %v259_v9, %v291_v12 }
  0xa7   :  { %v425_v17 = vpack.c.bf16 %v303_v15, %v302_v13  ;;  %v435_v18 = vpack.c.bf16 %v307_v16, %v306_v14 }
  0xa9   :  { %441 = vst [vmem:[%s551_s3 + $0x28] sm:$0xff] %v425_v17  }
  0xaa   :  { %443 = vst [vmem:[%s551_s3 + $0x38] sm:$0xff] %v435_v18  }

// kernel: yolov3_forward.68
= control target key start
LH: loop header
LB: loop body
LE: loop exit
PB: predicated region body
PF: predicated region fallthrough
CT: control target
= control target key end

     0   :  { %vm168_vm0 = vcmask 1043456   ;;  %vm143_vm1 = vcmask 588800   ;;  %s619_s1 = inlined_call_operand.vmem [shape: bf16[72,128], index: 1, kind: input, shape index: {}]   ;;  %s620_s2 = inlined_call_operand.vmem [shape: f32[1,128], index: 2, kind: input, shape index: {}]   ;;  %s621_s0 = inlined_call_operand.vmem [shape: bf16[128,72], index: 0, kind: input, shape index: {}]   ;;  %s622_s3 = inlined_call_operand.vmem [shape: bf16[128,128], index: 3, kind: output, shape index: {}]  }
   0x1   :  { %v75_v0 = vld [vmem:[%s619_s1 + $0x20] sm:$0xf]  ;;  %v443_v4 = vld [vmem:[%s619_s1 + $0x18] sm:$0xff]  ;;  %v442_v5 = vld [vmem:[%s619_s1 + $0x10] sm:$0xff] }
   0x2   :  { %v133_v1 = vunpack.c.l.b16 %v75_v0  ;;  %v441_v6 = vld [vmem:[%s619_s1 + $0x8] sm:$0xff]  ;;  %v440_v7 = vld [vmem:[%s619_s1] sm:$0xff]  ;;  %v434_v9 = vld [vmem:[%s621_s0 + $0x10] sm:$0xff] }
   0x3   :  { %v432_v8 = vld [vmem:[%s621_s0] sm:$0xff]  ;;  %v438_v11 = vld [vmem:[%s621_s0 + $0x30] sm:$0xff]  ;;  %v433_v12 = vld [vmem:[%s621_s0 + $0x8] sm:$0xff] }
   0x4   :  { %v138_v2 = vpack.c.b16 %v133_v1, %v133_v1  ;;  %v436_v10 = vld [vmem:[%s621_s0 + $0x20] sm:$0xff]  ;;  %v435_v13 = vld [vmem:[%s621_s0 + $0x18] sm:$0xff]  ;;  %v437_v14 = vld [vmem:[%s621_s0 + $0x28] sm:$0xff] }
   0x5   :  { %v439_v15 = vld [vmem:[%s621_s0 + $0x38] sm:$0xff]  ;;  %v577_v18 = vld [vmem:[%s620_s2] ss:$0 sm:$0xff] }
   0x6   :  { %v170_v3 = vsel %vm168_vm0, %v138_v2, 0 }
   0x7   :  { %175 = vmatpush.bf16.msra.mxu0 %v170_v3  ;;  %491 = vmatpush.bf16.msra.mxu1 %v170_v3 }
   0x8   :  { %492 = vmatpush.bf16.msra.mxu2 %v170_v3  ;;  %493 = vmatpush.bf16.msra.mxu3 %v170_v3 }
   0xb   :  { %176 = vmatpush.bf16.msra.mxu0 %v443_v4  ;;  %494 = vmatpush.bf16.msra.mxu1 %v443_v4 }
   0xc   :  { %495 = vmatpush.bf16.msra.mxu2 %v443_v4  ;;  %496 = vmatpush.bf16.msra.mxu3 %v443_v4 }
   0xf   :  { %177 = vmatpush.bf16.msra.mxu0 %v442_v5  ;;  %497 = vmatpush.bf16.msra.mxu1 %v442_v5 }
  0x10   :  { %498 = vmatpush.bf16.msra.mxu2 %v442_v5  ;;  %499 = vmatpush.bf16.msra.mxu3 %v442_v5 }
  0x13   :  { %178 = vmatpush.bf16.msra.mxu0 %v441_v6  ;;  %500 = vmatpush.bf16.msra.mxu1 %v441_v6 }
  0x14   :  { %501 = vmatpush.bf16.msra.mxu2 %v441_v6  ;;  %502 = vmatpush.bf16.msra.mxu3 %v441_v6 }
  0x17   :  { %179 = vmatpush.bf16.msra.mxu0 %v440_v7  ;;  %503 = vmatpush.bf16.msra.mxu1 %v440_v7 }
  0x18   :  { %504 = vmatpush.bf16.msra.mxu2 %v440_v7  ;;  %505 = vmatpush.bf16.msra.mxu3 %v440_v7 }
  0x1a   :  { %424 = vmatmul.msk.bf16.vlgmr.msra.gmra.mxu0 %vm143_vm1, %v432_v8  ;;  %426 = vmatmul.msk.bf16.vlgmr.msra.gmra.mxu1 %vm143_vm1, %v434_v9 }
  0x1b   :  { %428 = vmatmul.msk.bf16.vlgmr.msra.gmra.mxu2 %vm143_vm1, %v436_v10  ;;  %430 = vmatmul.msk.bf16.vlgmr.msra.gmra.mxu3 %vm143_vm1, %v438_v11 }
  0x2a   :  { %425 = vmatmul.msk.bf16.gmra.mxu0 %vm143_vm1, %v433_v12  ;;  %427 = vmatmul.msk.bf16.gmra.mxu1 %vm143_vm1, %v435_v13 }
  0x2b   :  { %429 = vmatmul.msk.bf16.gmra.mxu2 %vm143_vm1, %v437_v14  ;;  %431 = vmatmul.msk.bf16.gmra.mxu3 %vm143_vm1, %v439_v15 }
  0x97   :  { %v181_v16 = vpop.f32.mrf.mxu0  ;;  %v191_v17 = vpop.f32.mrf.mxu1 }
  0x98   :  { %v276_v19 = vadd.f32 %v577_v18, %v181_v16  ;;  %v280_v20 = vadd.f32 %v577_v18, %v191_v17 }
  0x9a   :  { %v308_v25 = vmul.f32 0.1, %v276_v19  ;;  %v312_v26 = vmul.f32 0.1, %v280_v20  ;;  %vm292_vm2 = vcmp.gt.f32.partialorder %v276_v19, 0.0  ;;  %vm296_vm3 = vcmp.gt.f32.partialorder %v280_v20, 0.0 }
  0x9c   :  { %v324_v33 = vsel %vm292_vm2, %v276_v19, %v308_v25  ;;  %v328_v34 = vsel %vm296_vm3, %v280_v20, %v312_v26 }
  0x9e   :  { %v201_v21 = vpop.f32.mrf.mxu2  ;;  %v211_v22 = vpop.f32.mrf.mxu3 }
  0x9f   :  { %v183_v23 = vpop.f32.mrf.mxu0  ;;  %v193_v24 = vpop.f32.mrf.mxu1  ;;  %v284_v31 = vadd.f32 %v577_v18, %v201_v21  ;;  %v288_v32 = vadd.f32 %v577_v18, %v211_v22 }
  0xa0   :  { %v277_v27 = vadd.f32 %v577_v18, %v183_v23  ;;  %v281_v28 = vadd.f32 %v577_v18, %v193_v24 }
  0xa1   :  { %v316_v41 = vmul.f32 0.1, %v284_v31  ;;  %v320_v42 = vmul.f32 0.1, %v288_v32  ;;  %vm300_vm6 = vcmp.gt.f32.partialorder %v284_v31, 0.0  ;;  %vm304_vm7 = vcmp.gt.f32.partialorder %v288_v32, 0.0 }
  0xa2   :  { %vm293_vm4 = vcmp.gt.f32.partialorder %v277_v27, 0.0  ;;  %v309_v29 = vmul.f32 0.1, %v277_v27  ;;  %vm297_vm5 = vcmp.gt.f32.partialorder %v281_v28, 0.0  ;;  %v313_v30 = vmul.f32 0.1, %v281_v28 }
  0xa3   :  { %v332_v49 = vsel %vm300_vm6, %v284_v31, %v316_v41  ;;  %v336_v50 = vsel %vm304_vm7, %v288_v32, %v320_v42 }
  0xa4   :  { %v325_v35 = vsel %vm293_vm4, %v277_v27, %v309_v29  ;;  %v329_v36 = vsel %vm297_vm5, %v281_v28, %v313_v30 }
  0xa5   :  { %v447_v37 = vpack.c.bf16 %v325_v35, %v324_v33  ;;  %v457_v38 = vpack.c.bf16 %v329_v36, %v328_v34 }
  0xa6   :  { %v203_v39 = vpop.f32.mrf.mxu2  ;;  %v213_v40 = vpop.f32.mrf.mxu3 }
  0xa7   :  { %448 = vst [vmem:[%s622_s3] sm:$0xff] %v447_v37   ;;  %v285_v43 = vadd.f32 %v577_v18, %v203_v39  ;;  %v289_v44 = vadd.f32 %v577_v18, %v213_v40  ;;  %v186_v45 = vpop.f32.mrf.mxu0  ;;  %v196_v46 = vpop.f32.mrf.mxu1 }
  0xa8   :  { %485 = vst [vmem:[%s622_s3 + $0x10] sm:$0xff] %v457_v38   ;;  %v278_v55 = vadd.f32 %v577_v18, %v186_v45  ;;  %v282_v56 = vadd.f32 %v577_v18, %v196_v46 }
  0xa9   :  { %vm301_vm8 = vcmp.gt.f32.partialorder %v285_v43, 0.0  ;;  %v317_v47 = vmul.f32 0.1, %v285_v43  ;;  %vm305_vm9 = vcmp.gt.f32.partialorder %v289_v44, 0.0  ;;  %v321_v48 = vmul.f32 0.1, %v289_v44 }
  0xaa   :  { %v310_v61 = vmul.f32 0.1, %v278_v55  ;;  %v314_v62 = vmul.f32 0.1, %v282_v56  ;;  %vm294_vm10 = vcmp.gt.f32.partialorder %v278_v55, 0.0  ;;  %vm298_vm11 = vcmp.gt.f32.partialorder %v282_v56, 0.0 }
  0xab   :  { %v333_v51 = vsel %vm301_vm8, %v285_v43, %v317_v47  ;;  %v337_v52 = vsel %vm305_vm9, %v289_v44, %v321_v48 }
  0xac   :  { %v467_v53 = vpack.c.bf16 %v333_v51, %v332_v49  ;;  %v477_v54 = vpack.c.bf16 %v337_v52, %v336_v50  ;;  %v326_v5 = vsel %vm294_vm10, %v278_v55, %v310_v61  ;;  %v330_v6 = vsel %vm298_vm11, %v282_v56, %v314_v62 }
  0xae   :  { %487 = vst [vmem:[%s622_s3 + $0x20] sm:$0xff] %v467_v53   ;;  %v206_v57 = vpop.f32.mrf.mxu2  ;;  %v216_v58 = vpop.f32.mrf.mxu3 }
  0xaf   :  { %489 = vst [vmem:[%s622_s3 + $0x30] sm:$0xff] %v477_v54   ;;  %v188_v59 = vpop.f32.mrf.mxu0  ;;  %v198_v60 = vpop.f32.mrf.mxu1  ;;  %v286_v3 = vadd.f32 %v577_v18, %v206_v57  ;;  %v290_v4 = vadd.f32 %v577_v18, %v216_v58 }
  0xb0   :  { %v279_v63 = vadd.f32 %v577_v18, %v188_v59  ;;  %v283_v0 = vadd.f32 %v577_v18, %v198_v60 }
  0xb1   :  { %v318_v13 = vmul.f32 0.1, %v286_v3  ;;  %v322_v14 = vmul.f32 0.1, %v290_v4  ;;  %vm302_vm14 = vcmp.gt.f32.partialorder %v286_v3, 0.0  ;;  %vm306_vm15 = vcmp.gt.f32.partialorder %v290_v4, 0.0 }
  0xb2   :  { %vm295_vm12 = vcmp.gt.f32.partialorder %v279_v63, 0.0  ;;  %v311_v1 = vmul.f32 0.1, %v279_v63  ;;  %vm299_vm13 = vcmp.gt.f32.partialorder %v283_v0, 0.0  ;;  %v315_v2 = vmul.f32 0.1, %v283_v0 }
  0xb3   :  { %v334_v20 = vsel %vm302_vm14, %v286_v3, %v318_v13  ;;  %v338_v21 = vsel %vm306_vm15, %v290_v4, %v322_v14 }
  0xb4   :  { %v327_v7 = vsel %vm295_vm12, %v279_v63, %v311_v1  ;;  %v331_v8 = vsel %vm299_vm13, %v283_v0, %v315_v2 }
  0xb5   :  { %v452_v9 = vpack.c.bf16 %v327_v7, %v326_v5  ;;  %v462_v10 = vpack.c.bf16 %v331_v8, %v330_v6 }
  0xb6   :  { %v208_v11 = vpop.f32.mrf.mxu2  ;;  %v218_v12 = vpop.f32.mrf.mxu3 }
  0xb7   :  { %484 = vst [vmem:[%s622_s3 + $0x8] sm:$0xff] %v452_v9   ;;  %v287_v15 = vadd.f32 %v577_v18, %v208_v11  ;;  %v291_v16 = vadd.f32 %v577_v18, %v218_v12 }
  0xb8   :  { %486 = vst [vmem:[%s622_s3 + $0x18] sm:$0xff] %v462_v10  }
  0xb9   :  { %vm303_vm0 = vcmp.gt.f32.partialorder %v287_v15, 0.0  ;;  %v319_v17 = vmul.f32 0.1, %v287_v15  ;;  %vm307_vm1 = vcmp.gt.f32.partialorder %v291_v16, 0.0  ;;  %v323_v19 = vmul.f32 0.1, %v291_v16 }
  0xbb   :  { %v335_v22 = vsel %vm303_vm0, %v287_v15, %v319_v17  ;;  %v339_v23 = vsel %vm307_vm1, %v291_v16, %v323_v19 }
  0xbc   :  { %v472_v24 = vpack.c.bf16 %v335_v22, %v334_v20  ;;  %v482_v25 = vpack.c.bf16 %v339_v23, %v338_v21 }
  0xbe   :  { %488 = vst [vmem:[%s622_s3 + $0x28] sm:$0xff] %v472_v24  }
  0xbf   :  { %490 = vst [vmem:[%s622_s3 + $0x38] sm:$0xff] %v482_v25  }

// kernel: yolov3_forward.70
= control target key start
LH: loop header
LB: loop body
LE: loop exit
PB: predicated region body
PF: predicated region fallthrough
CT: control target
= control target key end

     0   :  { %vm171_vm0 = vcmask 1043456   ;;  %vm146_vm1 = vcmask 588800   ;;  %s740_s1 = inlined_call_operand.vmem [shape: bf16[72,128], index: 1, kind: input, shape index: {}]   ;;  %s741_s2 = inlined_call_operand.vmem [shape: f32[1,128], index: 2, kind: input, shape index: {}]   ;;  %s742_s0 = inlined_call_operand.vmem [shape: bf16[128,72], index: 0, kind: input, shape index: {}]   ;;  %s743_s3 = inlined_call_operand.vmem [shape: bf16[128,128], index: 3, kind: input, shape index: {}]   ;;  %s744_s4 = inlined_call_operand.vmem [shape: bf16[128,128], index: 4, kind: output, shape index: {}]  }
   0x1   :  { %v78_v0 = vld [vmem:[%s740_s1 + $0x20] sm:$0xf]  ;;  %v494_v4 = vld [vmem:[%s740_s1 + $0x18] sm:$0xff]  ;;  %v493_v5 = vld [vmem:[%s740_s1 + $0x10] sm:$0xff] }
   0x2   :  { %v136_v1 = vunpack.c.l.b16 %v78_v0  ;;  %v492_v6 = vld [vmem:[%s740_s1 + $0x8] sm:$0xff]  ;;  %v491_v7 = vld [vmem:[%s740_s1] sm:$0xff]  ;;  %v485_v9 = vld [vmem:[%s742_s0 + $0x10] sm:$0xff] }
   0x3   :  { %v483_v8 = vld [vmem:[%s742_s0] sm:$0xff]  ;;  %v489_v11 = vld [vmem:[%s742_s0 + $0x30] sm:$0xff]  ;;  %v484_v12 = vld [vmem:[%s742_s0 + $0x8] sm:$0xff] }
   0x4   :  { %v141_v2 = vpack.c.b16 %v136_v1, %v136_v1  ;;  %v487_v10 = vld [vmem:[%s742_s0 + $0x20] sm:$0xff]  ;;  %v486_v13 = vld [vmem:[%s742_s0 + $0x18] sm:$0xff]  ;;  %v488_v14 = vld [vmem:[%s742_s0 + $0x28] sm:$0xff] }
   0x5   :  { %v490_v15 = vld [vmem:[%s742_s0 + $0x38] sm:$0xff]  ;;  %v672_v16 = vld [vmem:[%s741_s2] ss:$0 sm:$0xff]  ;;  %v568_v24 = vld [vmem:[%s743_s3 + $0x10] sm:$0xff]  }
   0x6   :  { %v173_v3 = vsel %vm171_vm0, %v141_v2, 0  ;;  %v496_v23 = vld [vmem:[%s743_s3] sm:$0xff]   ;;  %v505_v30 = vunpack.c.l.bf16 %v568_v24  ;;  %v506_v38 = vunpack.c.h.bf16 %v568_v24  ;;  %v572_v44 = vld [vmem:[%s743_s3 + $0x30] sm:$0xff]  }
   0x7   :  { %178 = vmatpush.bf16.msra.mxu0 %v173_v3  ;;  %581 = vmatpush.bf16.msra.mxu1 %v173_v3  ;;  %v497_v28 = vunpack.c.l.bf16 %v496_v23  ;;  %v498_v37 = vunpack.c.h.bf16 %v496_v23  ;;  %v570_v43 = vld [vmem:[%s743_s3 + $0x20] sm:$0xff]   ;;  %v521_v52 = vunpack.c.l.bf16 %v572_v44  ;;  %v522_v0 = vunpack.c.h.bf16 %v572_v44 }
   0x8   :  { %582 = vmatpush.bf16.msra.mxu2 %v173_v3  ;;  %583 = vmatpush.bf16.msra.mxu3 %v173_v3  ;;  %v513_v51 = vunpack.c.l.bf16 %v570_v43  ;;  %v514_v54 = vunpack.c.h.bf16 %v570_v43 }
   0xb   :  { %179 = vmatpush.bf16.msra.mxu0 %v494_v4  ;;  %584 = vmatpush.bf16.msra.mxu1 %v494_v4 }
   0xc   :  { %585 = vmatpush.bf16.msra.mxu2 %v494_v4  ;;  %586 = vmatpush.bf16.msra.mxu3 %v494_v4 }
   0xf   :  { %180 = vmatpush.bf16.msra.mxu0 %v493_v5  ;;  %587 = vmatpush.bf16.msra.mxu1 %v493_v5 }
  0x10   :  { %588 = vmatpush.bf16.msra.mxu2 %v493_v5  ;;  %589 = vmatpush.bf16.msra.mxu3 %v493_v5 }
  0x13   :  { %181 = vmatpush.bf16.msra.mxu0 %v492_v6  ;;  %590 = vmatpush.bf16.msra.mxu1 %v492_v6 }
  0x14   :  { %591 = vmatpush.bf16.msra.mxu2 %v492_v6  ;;  %592 = vmatpush.bf16.msra.mxu3 %v492_v6 }
  0x17   :  { %182 = vmatpush.bf16.msra.mxu0 %v491_v7  ;;  %593 = vmatpush.bf16.msra.mxu1 %v491_v7 }
  0x18   :  { %594 = vmatpush.bf16.msra.mxu2 %v491_v7  ;;  %595 = vmatpush.bf16.msra.mxu3 %v491_v7 }
  0x1a   :  { %475 = vmatmul.msk.bf16.vlgmr.msra.gmra.mxu0 %vm146_vm1, %v483_v8  ;;  %477 = vmatmul.msk.bf16.vlgmr.msra.gmra.mxu1 %vm146_vm1, %v485_v9 }
  0x1b   :  { %479 = vmatmul.msk.bf16.vlgmr.msra.gmra.mxu2 %vm146_vm1, %v487_v10  ;;  %481 = vmatmul.msk.bf16.vlgmr.msra.gmra.mxu3 %vm146_vm1, %v489_v11  ;;  %v567_v11 = vld [vmem:[%s743_s3 + $0x8] sm:$0xff]  }
  0x2a   :  { %476 = vmatmul.msk.bf16.gmra.mxu0 %vm146_vm1, %v484_v12  ;;  %478 = vmatmul.msk.bf16.gmra.mxu1 %vm146_vm1, %v486_v13  ;;  %v569_v13 = vld [vmem:[%s743_s3 + $0x18] sm:$0xff]  }
  0x2b   :  { %480 = vmatmul.msk.bf16.gmra.mxu2 %vm146_vm1, %v488_v14  ;;  %482 = vmatmul.msk.bf16.gmra.mxu3 %vm146_vm1, %v490_v15  ;;  %v509_v23 = vunpack.c.l.bf16 %v569_v13 }
  0x97   :  { %v184_v17 = vpop.f32.mrf.mxu0  ;;  %v194_v18 = vpop.f32.mrf.mxu1 }
  0x98   :  { %v279_v19 = vadd.f32 %v672_v16, %v184_v17  ;;  %v283_v20 = vadd.f32 %v672_v16, %v194_v18 }
  0x9a   :  { %v311_v21 = vmul.f32 0.1, %v279_v19  ;;  %v315_v22 = vmul.f32 0.1, %v283_v20  ;;  %vm295_vm2 = vcmp.gt.f32.partialorder %v279_v19, 0.0  ;;  %vm299_vm3 = vcmp.gt.f32.partialorder %v283_v20, 0.0 }
  0x9c   :  { %v327_v27 = vsel %vm295_vm2, %v279_v19, %v311_v21  ;;  %v331_v29 = vsel %vm299_vm3, %v283_v20, %v315_v22  ;;  %v501_v19 = vunpack.c.l.bf16 %v567_v11 }
  0x9d   :  { %v375_v41 = vadd.f32 %v497_v28, %v327_v27  ;;  %v379_v42 = vadd.f32 %v505_v30, %v331_v29  ;;  %v571_v28 = vld [vmem:[%s743_s3 + $0x28] sm:$0xff]   ;;  %v502_v29 = vunpack.c.h.bf16 %v567_v11  ;;  %v510_v30 = vunpack.c.h.bf16 %v569_v13 }
  0x9e   :  { %v204_v25 = vpop.f32.mrf.mxu2  ;;  %v214_v26 = vpop.f32.mrf.mxu3 }
  0x9f   :  { %v186_v31 = vpop.f32.mrf.mxu0  ;;  %v196_v32 = vpop.f32.mrf.mxu1  ;;  %v287_v33 = vadd.f32 %v672_v16, %v204_v25  ;;  %v291_v34 = vadd.f32 %v672_v16, %v214_v26 }
  0xa0   :  { %v280_v35 = vadd.f32 %v672_v16, %v186_v31  ;;  %v284_v36 = vadd.f32 %v672_v16, %v196_v32 }
  0xa1   :  { %v319_v45 = vmul.f32 0.1, %v287_v33  ;;  %v323_v46 = vmul.f32 0.1, %v291_v34  ;;  %vm303_vm6 = vcmp.gt.f32.partialorder %v287_v33, 0.0  ;;  %vm307_vm7 = vcmp.gt.f32.partialorder %v291_v34, 0.0 }
  0xa2   :  { %vm296_vm4 = vcmp.gt.f32.partialorder %v280_v35, 0.0  ;;  %v312_v39 = vmul.f32 0.1, %v280_v35  ;;  %vm300_vm5 = vcmp.gt.f32.partialorder %v284_v36, 0.0  ;;  %v316_v40 = vmul.f32 0.1, %v284_v36 }
  0xa3   :  { %v335_v62 = vsel %vm303_vm6, %v287_v33, %v319_v45  ;;  %v339_v63 = vsel %vm307_vm7, %v291_v34, %v323_v46 }
  0xa4   :  { %v328_v47 = vsel %vm296_vm4, %v280_v35, %v312_v39  ;;  %v332_v48 = vsel %vm300_vm5, %v284_v36, %v316_v40  ;;  %v383_v7 = vadd.f32 %v513_v51, %v335_v62  ;;  %v387_v8 = vadd.f32 %v521_v52, %v339_v63  ;;  %v573_v39 = vld [vmem:[%s743_s3 + $0x38] sm:$0xff]  }
  0xa5   :  { %v376_v49 = vadd.f32 %v498_v37, %v328_v47  ;;  %v380_v50 = vadd.f32 %v506_v38, %v332_v48  ;;  %v517_v35 = vunpack.c.l.bf16 %v571_v28  ;;  %v518_v52 = vunpack.c.h.bf16 %v571_v28 }
  0xa6   :  { %v206_v53 = vpop.f32.mrf.mxu2  ;;  %v216_v55 = vpop.f32.mrf.mxu3 }
  0xa7   :  { %v530_v56 = vpack.c.bf16 %v376_v49, %v375_v41  ;;  %v540_v57 = vpack.c.bf16 %v380_v50, %v379_v42  ;;  %v288_v58 = vadd.f32 %v672_v16, %v206_v53  ;;  %v292_v59 = vadd.f32 %v672_v16, %v216_v55  ;;  %v189_v60 = vpop.f32.mrf.mxu0  ;;  %v199_v61 = vpop.f32.mrf.mxu1 }
  0xa8   :  { %v281_v1 = vadd.f32 %v672_v16, %v189_v60  ;;  %v285_v6 = vadd.f32 %v672_v16, %v199_v61  ;;  %v525_v50 = vunpack.c.l.bf16 %v573_v39  ;;  %v526_v53 = vunpack.c.h.bf16 %v573_v39 }
  0xa9   :  { %531 = vst [vmem:[%s744_s4] sm:$0xff] %v530_v56   ;;  %vm304_vm8 = vcmp.gt.f32.partialorder %v288_v58, 0.0  ;;  %v320_v2 = vmul.f32 0.1, %v288_v58  ;;  %vm308_vm9 = vcmp.gt.f32.partialorder %v292_v59, 0.0  ;;  %v324_v3 = vmul.f32 0.1, %v292_v59 }
  0xaa   :  { %575 = vst [vmem:[%s744_s4 + $0x10] sm:$0xff] %v540_v57   ;;  %v313_v12 = vmul.f32 0.1, %v281_v1  ;;  %vm297_vm10 = vcmp.gt.f32.partialorder %v281_v1, 0.0  ;;  %v317_v20 = vmul.f32 0.1, %v285_v6 }
  0xab   :  { %v336_v4 = vsel %vm304_vm8, %v288_v58, %v320_v2  ;;  %v340_v5 = vsel %vm308_vm9, %v292_v59, %v324_v3  ;;  %vm301_vm11 = vcmp.gt.f32.partialorder %v285_v6, 0.0 }
  0xac   :  { %v384_v9 = vadd.f32 %v514_v54, %v336_v4  ;;  %v388_v10 = vadd.f32 %v522_v0, %v340_v5  ;;  %v329_v26 = vsel %vm297_vm10, %v281_v1, %v313_v12  ;;  %v333_v33 = vsel %vm301_vm11, %v285_v6, %v317_v20 }
  0xad   :  { %v377_v37 = vadd.f32 %v501_v19, %v329_v26  ;;  %v381_v42 = vadd.f32 %v509_v23, %v333_v33 }
  0xae   :  { %v550_v14 = vpack.c.bf16 %v384_v9, %v383_v7  ;;  %v560_v15 = vpack.c.bf16 %v388_v10, %v387_v8  ;;  %v209_v17 = vpop.f32.mrf.mxu2  ;;  %v219_v18 = vpop.f32.mrf.mxu3 }
  0xaf   :  { %v191_v21 = vpop.f32.mrf.mxu0  ;;  %v201_v22 = vpop.f32.mrf.mxu1  ;;  %v289_v27 = vadd.f32 %v672_v16, %v209_v17  ;;  %v293_v31 = vadd.f32 %v672_v16, %v219_v18 }
  0xb0   :  { %577 = vst [vmem:[%s744_s4 + $0x20] sm:$0xff] %v550_v14   ;;  %v282_v24 = vadd.f32 %v672_v16, %v191_v21  ;;  %v286_v25 = vadd.f32 %v672_v16, %v201_v22 }
  0xb1   :  { %579 = vst [vmem:[%s744_s4 + $0x30] sm:$0xff] %v560_v15   ;;  %v321_v38 = vmul.f32 0.1, %v289_v27  ;;  %vm305_vm14 = vcmp.gt.f32.partialorder %v289_v27, 0.0  ;;  %v325_v43 = vmul.f32 0.1, %v293_v31 }
  0xb2   :  { %vm298_vm12 = vcmp.gt.f32.partialorder %v282_v24, 0.0  ;;  %v314_v32 = vmul.f32 0.1, %v282_v24  ;;  %vm302_vm13 = vcmp.gt.f32.partialorder %v286_v25, 0.0  ;;  %v318_v34 = vmul.f32 0.1, %v286_v25 }
  0xb3   :  { %vm309_vm15 = vcmp.gt.f32.partialorder %v293_v31, 0.0  ;;  %v337_v54 = vsel %vm305_vm14, %v289_v27, %v321_v38 }
  0xb4   :  { %v330_v36 = vsel %vm298_vm12, %v282_v24, %v314_v32  ;;  %v334_v41 = vsel %vm302_vm13, %v286_v25, %v318_v34  ;;  %v341_v56 = vsel %vm309_vm15, %v293_v31, %v325_v43 }
  0xb5   :  { %v378_v40 = vadd.f32 %v502_v29, %v330_v36  ;;  %v382_v44 = vadd.f32 %v510_v30, %v334_v41  ;;  %v389_v61 = vadd.f32 %v525_v50, %v341_v56 }
  0xb6   :  { %v211_v45 = vpop.f32.mrf.mxu2  ;;  %v221_v46 = vpop.f32.mrf.mxu3 }
  0xb7   :  { %v535_v47 = vpack.c.bf16 %v378_v40, %v377_v37  ;;  %v290_v48 = vadd.f32 %v672_v16, %v211_v45  ;;  %v294_v49 = vadd.f32 %v672_v16, %v221_v46  ;;  %v545_v51 = vpack.c.bf16 %v382_v44, %v381_v42 }
  0xb8   :  { %v385_v16 = vadd.f32 %v517_v35, %v337_v54 }
  0xb9   :  { %574 = vst [vmem:[%s744_s4 + $0x8] sm:$0xff] %v535_v47   ;;  %vm306_vm0 = vcmp.gt.f32.partialorder %v290_v48, 0.0  ;;  %v322_v55 = vmul.f32 0.1, %v290_v48  ;;  %vm310_vm1 = vcmp.gt.f32.partialorder %v294_v49, 0.0 }
  0xba   :  { %576 = vst [vmem:[%s744_s4 + $0x18] sm:$0xff] %v545_v51   ;;  %v326_v57 = vmul.f32 0.1, %v294_v49 }
  0xbb   :  { %v338_v58 = vsel %vm306_vm0, %v290_v48, %v322_v55 }
  0xbc   :  { %v386_v59 = vadd.f32 %v518_v52, %v338_v58  ;;  %v342_v60 = vsel %vm310_vm1, %v294_v49, %v326_v57 }
  0xbd   :  { %v390_v62 = vadd.f32 %v526_v53, %v342_v60 }
  0xbe   :  { %v555_v63 = vpack.c.bf16 %v386_v59, %v385_v16 }
  0xbf   :  { %v565_v0 = vpack.c.bf16 %v390_v62, %v389_v61 }
  0xc0   :  { %578 = vst [vmem:[%s744_s4 + $0x28] sm:$0xff] %v555_v63  }
  0xc1   :  { %580 = vst [vmem:[%s744_s4 + $0x38] sm:$0xff] %v565_v0  }

// kernel: yolov3_forward.75
= control target key start
LH: loop header
LB: loop body
LE: loop exit
PB: predicated region body
PF: predicated region fallthrough
CT: control target
= control target key end

     0   :  { %vm121_vm0 = vcmask 130048   ;;  %s382_s1 = inlined_call_operand.vmem [shape: bf16[144,128], index: 1, kind: input, shape index: {}]   ;;  %s383_s0 = inlined_call_operand.vmem [shape: bf16[32,144], index: 0, kind: input, shape index: {}]   ;;  %s384_s2 = inlined_call_operand.vmem [shape: f32[1,128], index: 2, kind: input, shape index: {}]   ;;  %s385_s3 = inlined_call_operand.vmem [shape: bf16[32,128], index: 3, kind: output, shape index: {}]  }
   0x1   :  { %v278_v0 = vld [vmem:[%s382_s1 + $0x38] sm:$0xff]  ;;  %v279_v1 = vld [vmem:[%s382_s1 + $0x40] sm:$0xff]  ;;  %v277_v3 = vld [vmem:[%s382_s1 + $0x30] sm:$0xff] }
   0x2   :  { %v267_v2 = vld [vmem:[%s383_s0 + $0x4] sm:$0xf]  ;;  %128 = vmatpush.bf16.msra.mxu0 %v278_v0  ;;  %291 = vmatpush.bf16.msra.mxu2 %v278_v0  ;;  %v217_v4 = vld [vmem:[%s383_s0 + $0x8] sm:$0xf0]  ;;  %v274_v8 = vld [vmem:[%s382_s1 + $0x18] sm:$0xff] }
   0x3   :  { %154 = vmatpush.bf16.msra.mxu1 %v279_v1  ;;  %v220_v5 = vor.u32 %v267_v2, %v217_v4  ;;  %v276_v6 = vld [vmem:[%s382_s1 + $0x28] sm:$0xff]  ;;  %v275_v7 = vld [vmem:[%s382_s1 + $0x20] sm:$0xff]  ;;  %v269_v9 = vld [vmem:[%s383_s0 + $0x14] sm:$0xf] }
   0x4   :  { %v225_v10 = vld [vmem:[%s383_s0 + $0x18] sm:$0xf0]  ;;  %v273_v11 = vld [vmem:[%s382_s1 + $0x10] sm:$0xff]  ;;  %v272_v13 = vld [vmem:[%s382_s1 + $0x8] sm:$0xff] }
   0x5   :  { %v228_v12 = vor.u32 %v269_v9, %v225_v10  ;;  %v271_v14 = vld [vmem:[%s382_s1] sm:$0xff]  ;;  %v268_v16 = vld [vmem:[%s383_s0 + $0x4] sm:$0xf0]  ;;  %v223_v17 = vld [vmem:[%s383_s0 + $0x10] sm:$0xf] }
   0x6   :  { %129 = vmatpush.bf16.msra.mxu0 %v277_v3  ;;  %292 = vmatpush.bf16.msra.mxu2 %v277_v3  ;;  %v215_v15 = vld [vmem:[%s383_s0] sm:$0xf]  ;;  %v270_v18 = vld [vmem:[%s383_s0 + $0x14] sm:$0xf0] }
   0x7   :  { %265 = vmatmul.msk.bf16.vlgmr.msra.gmra.mxu1 %vm121_vm0, %v220_v5  ;;  %v216_v19 = vor.u32 %v268_v16, %v215_v15  ;;  %v224_v20 = vor.u32 %v270_v18, %v223_v17  ;;  %v299_v25 = vld [vmem:[%s384_s2] ss:$0 sm:$0xff] }
   0xa   :  { %130 = vmatpush.bf16.msra.mxu0 %v276_v6  ;;  %293 = vmatpush.bf16.msra.mxu2 %v276_v6 }
   0xe   :  { %131 = vmatpush.bf16.msra.mxu0 %v275_v7  ;;  %294 = vmatpush.bf16.msra.mxu2 %v275_v7 }
  0x12   :  { %132 = vmatpush.bf16.msra.mxu0 %v274_v8  ;;  %295 = vmatpush.bf16.msra.mxu2 %v274_v8 }
  0x16   :  { %133 = vmatpush.bf16.msra.mxu0 %v273_v11  ;;  %296 = vmatpush.bf16.msra.mxu2 %v273_v11 }
  0x17   :  { %266 = vmatmul.msk.bf16.gmra.mxu1 %vm121_vm0, %v228_v12 }
  0x1a   :  { %134 = vmatpush.bf16.msra.mxu0 %v272_v13  ;;  %297 = vmatpush.bf16.msra.mxu2 %v272_v13 }
  0x1e   :  { %135 = vmatpush.bf16.msra.mxu0 %v271_v14  ;;  %298 = vmatpush.bf16.msra.mxu2 %v271_v14 }
  0x21   :  { %136 = vmatmul.bf16.vlgmr.msra.gmra.mxu0 %v216_v19  ;;  %141 = vmatmul.bf16.vlgmr.msra.gmra.mxu2 %v224_v20 }
  0x84   :  { %v156_v21 = vpop.f32.mrf.mxu1 }
  0x8c   :  { %v158_v22 = vpop.f32.mrf.mxu1 }
  0x94   :  { %v161_v26 = vpop.f32.mrf.mxu1 }
  0x9c   :  { %v163_v36 = vpop.f32.mrf.mxu1 }
  0x9e   :  { %v137_v23 = vpop.f32.mrf.mxu0 }
  0x9f   :  { %v157_v24 = vadd.f32 %v156_v21, %v137_v23 }
  0xa1   :  { %v185_v28 = vadd.f32 %v299_v25, %v157_v24 }
  0xa3   :  { %v193_v32 = vmul.f32 0.1, %v185_v28  ;;  %vm189_vm1 = vcmp.gt.f32.partialorder %v185_v28, 0.0 }
  0xa4   :  { %v142_v27 = vpop.f32.mrf.mxu2 }
  0xa5   :  { %v162_v30 = vadd.f32 %v161_v26, %v142_v27  ;;  %v197_v38 = vsel %vm189_vm1, %v185_v28, %v193_v32 }
  0xa6   :  { %v139_v29 = vpop.f32.mrf.mxu0 }
  0xa7   :  { %v159_v31 = vadd.f32 %v158_v22, %v139_v29  ;;  %v187_v34 = vadd.f32 %v299_v25, %v162_v30 }
  0xa9   :  { %v186_v33 = vadd.f32 %v299_v25, %v159_v31  ;;  %v195_v42 = vmul.f32 0.1, %v187_v34  ;;  %vm191_vm3 = vcmp.gt.f32.partialorder %v187_v34, 0.0 }
  0xab   :  { %vm190_vm2 = vcmp.gt.f32.partialorder %v186_v33, 0.0  ;;  %v194_v35 = vmul.f32 0.1, %v186_v33  ;;  %v199_v45 = vsel %vm191_vm3, %v187_v34, %v195_v42 }
  0xac   :  { %v144_v37 = vpop.f32.mrf.mxu2 }
  0xad   :  { %v198_v39 = vsel %vm190_vm2, %v186_v33, %v194_v35  ;;  %v164_v40 = vadd.f32 %v163_v36, %v144_v37 }
  0xae   :  { %v283_v41 = vpack.c.bf16 %v198_v39, %v197_v38 }
  0xaf   :  { %v188_v43 = vadd.f32 %v299_v25, %v164_v40 }
  0xb0   :  { %284 = vst [vmem:[%s385_s3] sm:$0xff] %v283_v41  }
  0xb1   :  { %vm192_vm4 = vcmp.gt.f32.partialorder %v188_v43, 0.0  ;;  %v196_v44 = vmul.f32 0.1, %v188_v43 }
  0xb3   :  { %v200_v46 = vsel %vm192_vm4, %v188_v43, %v196_v44 }
  0xb4   :  { %v288_v47 = vpack.c.bf16 %v200_v46, %v199_v45 }
  0xb6   :  { %290 = vst [vmem:[%s385_s3 + $0x8] sm:$0xff] %v288_v47  }

// kernel: yolov3_forward.76
= control target key start
LH: loop header
LB: loop body
LE: loop exit
PB: predicated region body
PF: predicated region fallthrough
CT: control target
= control target key end

     0   :  { %vm57_vm0 = vcmask 261120   ;;  %s207_s1 = inlined_call_operand.vmem [shape: bf16[32,128], index: 1, kind: input, shape index: {}]   ;;  %s208_s2 = inlined_call_operand.vmem [shape: f32[1,128], index: 2, kind: input, shape index: {}]   ;;  %s209_s0 = inlined_call_operand.vmem [shape: bf16[32,32], index: 0, kind: input, shape index: {}]   ;;  %s210_s3 = inlined_call_operand.vmem [shape: bf16[32,128], index: 3, kind: output, shape index: {}]  }
   0x1   :  { %v151_v0 = vld [vmem:[%s207_s1 + $0x8] sm:$0xff]  ;;  %v150_v1 = vld [vmem:[%s207_s1] sm:$0xff] }
   0x2   :  { %70 = vmatpush.bf16.msra.mxu0 %v151_v0  ;;  %163 = vmatpush.bf16.msra.mxu1 %v151_v0  ;;  %v148_v2 = vld [vmem:[%s209_s0] sm:$0xff]  ;;  %v149_v3 = vld [vmem:[%s209_s0 + $0x8] sm:$0xff] }
   0x3   :  { %v165_v6 = vld [vmem:[%s208_s2] ss:$0 sm:$0xff] }
   0x6   :  { %71 = vmatpush.bf16.msra.mxu0 %v150_v1  ;;  %164 = vmatpush.bf16.msra.mxu1 %v150_v1 }
   0x9   :  { %146 = vmatmul.msk.bf16.vlgmr.msra.gmra.mxu0 %vm57_vm0, %v148_v2  ;;  %147 = vmatmul.msk.bf16.vlgmr.msra.gmra.mxu1 %vm57_vm0, %v149_v3 }
  0x86   :  { %v73_v4 = vpop.f32.mrf.mxu0  ;;  %v78_v5 = vpop.f32.mrf.mxu1 }
  0x87   :  { %v102_v7 = vadd.f32 %v165_v6, %v73_v4  ;;  %v104_v8 = vadd.f32 %v165_v6, %v78_v5 }
  0x89   :  { %v110_v11 = vmul.f32 0.1, %v102_v7  ;;  %v112_v12 = vmul.f32 0.1, %v104_v8  ;;  %vm106_vm1 = vcmp.gt.f32.partialorder %v102_v7, 0.0  ;;  %vm108_vm2 = vcmp.gt.f32.partialorder %v104_v8, 0.0 }
  0x8b   :  { %v114_v17 = vsel %vm106_vm1, %v102_v7, %v110_v11  ;;  %v116_v18 = vsel %vm108_vm2, %v104_v8, %v112_v12 }
  0x8e   :  { %v75_v9 = vpop.f32.mrf.mxu0  ;;  %v80_v10 = vpop.f32.mrf.mxu1 }
  0x8f   :  { %v103_v13 = vadd.f32 %v165_v6, %v75_v9  ;;  %v105_v14 = vadd.f32 %v165_v6, %v80_v10 }
  0x91   :  { %vm107_vm3 = vcmp.gt.f32.partialorder %v103_v13, 0.0  ;;  %v111_v15 = vmul.f32 0.1, %v103_v13  ;;  %vm109_vm4 = vcmp.gt.f32.partialorder %v105_v14, 0.0  ;;  %v113_v16 = vmul.f32 0.1, %v105_v14 }
  0x93   :  { %v115_v19 = vsel %vm107_vm3, %v103_v13, %v111_v15  ;;  %v117_v20 = vsel %vm109_vm4, %v105_v14, %v113_v16 }
  0x94   :  { %v155_v21 = vpack.c.bf16 %v115_v19, %v114_v17  ;;  %v160_v22 = vpack.c.bf16 %v117_v20, %v116_v18 }
  0x96   :  { %156 = vst [vmem:[%s210_s3] sm:$0xff] %v155_v21  }
  0x97   :  { %162 = vst [vmem:[%s210_s3 + $0x8] sm:$0xff] %v160_v22  }

// kernel: yolov3_forward.77
= control target key start
LH: loop header
LB: loop body
LE: loop exit
PB: predicated region body
PF: predicated region fallthrough
CT: control target
= control target key end

     0   :  { %vm124_vm0 = vcmask 130048   ;;  %s417_s1 = inlined_call_operand.vmem [shape: bf16[144,128], index: 1, kind: input, shape index: {}]   ;;  %s418_s0 = inlined_call_operand.vmem [shape: bf16[32,144], index: 0, kind: input, shape index: {}]   ;;  %s419_s2 = inlined_call_operand.vmem [shape: f32[1,128], index: 2, kind: input, shape index: {}]   ;;  %s420_s3 = inlined_call_operand.vmem [shape: bf16[32,128], index: 3, kind: input, shape index: {}]   ;;  %s421_s4 = inlined_call_operand.vmem [shape: bf16[32,128], index: 4, kind: output, shape index: {}]  }
   0x1   :  { %v293_v0 = vld [vmem:[%s417_s1 + $0x38] sm:$0xff]  ;;  %v294_v1 = vld [vmem:[%s417_s1 + $0x40] sm:$0xff]  ;;  %v292_v3 = vld [vmem:[%s417_s1 + $0x30] sm:$0xff] }
   0x2   :  { %v282_v2 = vld [vmem:[%s418_s0 + $0x4] sm:$0xf]  ;;  %131 = vmatpush.bf16.msra.mxu0 %v293_v0  ;;  %315 = vmatpush.bf16.msra.mxu2 %v293_v0  ;;  %v232_v4 = vld [vmem:[%s418_s0 + $0x8] sm:$0xf0]  ;;  %v289_v8 = vld [vmem:[%s417_s1 + $0x18] sm:$0xff] }
   0x3   :  { %157 = vmatpush.bf16.msra.mxu1 %v294_v1  ;;  %v235_v5 = vor.u32 %v282_v2, %v232_v4  ;;  %v291_v6 = vld [vmem:[%s417_s1 + $0x28] sm:$0xff]  ;;  %v290_v7 = vld [vmem:[%s417_s1 + $0x20] sm:$0xff]  ;;  %v284_v9 = vld [vmem:[%s418_s0 + $0x14] sm:$0xf] }
   0x4   :  { %v240_v10 = vld [vmem:[%s418_s0 + $0x18] sm:$0xf0]  ;;  %v288_v11 = vld [vmem:[%s417_s1 + $0x10] sm:$0xff]  ;;  %v287_v13 = vld [vmem:[%s417_s1 + $0x8] sm:$0xff] }
   0x5   :  { %v243_v12 = vor.u32 %v284_v9, %v240_v10  ;;  %v286_v14 = vld [vmem:[%s417_s1] sm:$0xff]  ;;  %v283_v16 = vld [vmem:[%s418_s0 + $0x4] sm:$0xf0]  ;;  %v238_v17 = vld [vmem:[%s418_s0 + $0x10] sm:$0xf] }
   0x6   :  { %132 = vmatpush.bf16.msra.mxu0 %v292_v3  ;;  %316 = vmatpush.bf16.msra.mxu2 %v292_v3  ;;  %v230_v15 = vld [vmem:[%s418_s0] sm:$0xf]  ;;  %v285_v18 = vld [vmem:[%s418_s0 + $0x14] sm:$0xf0]  ;;  %v313_v43 = vld [vmem:[%s420_s3 + $0x8] sm:$0xff]  }
   0x7   :  { %280 = vmatmul.msk.bf16.vlgmr.msra.gmra.mxu1 %vm124_vm0, %v235_v5  ;;  %v231_v19 = vor.u32 %v283_v16, %v230_v15  ;;  %v239_v20 = vor.u32 %v285_v18, %v238_v17  ;;  %v323_v25 = vld [vmem:[%s419_s2] ss:$0 sm:$0xff]  ;;  %v301_v49 = vunpack.c.l.bf16 %v313_v43  ;;  %v302_v51 = vunpack.c.h.bf16 %v313_v43 }
   0x8   :  { %v296_v32 = vld [vmem:[%s420_s3] sm:$0xff]  }
   0x9   :  { %v297_v36 = vunpack.c.l.bf16 %v296_v32  ;;  %v298_v37 = vunpack.c.h.bf16 %v296_v32 }
   0xa   :  { %133 = vmatpush.bf16.msra.mxu0 %v291_v6  ;;  %317 = vmatpush.bf16.msra.mxu2 %v291_v6 }
   0xe   :  { %134 = vmatpush.bf16.msra.mxu0 %v290_v7  ;;  %318 = vmatpush.bf16.msra.mxu2 %v290_v7 }
  0x12   :  { %135 = vmatpush.bf16.msra.mxu0 %v289_v8  ;;  %319 = vmatpush.bf16.msra.mxu2 %v289_v8 }
  0x16   :  { %136 = vmatpush.bf16.msra.mxu0 %v288_v11  ;;  %320 = vmatpush.bf16.msra.mxu2 %v288_v11 }
  0x17   :  { %281 = vmatmul.msk.bf16.gmra.mxu1 %vm124_vm0, %v243_v12 }
  0x1a   :  { %137 = vmatpush.bf16.msra.mxu0 %v287_v13  ;;  %321 = vmatpush.bf16.msra.mxu2 %v287_v13 }
  0x1e   :  { %138 = vmatpush.bf16.msra.mxu0 %v286_v14  ;;  %322 = vmatpush.bf16.msra.mxu2 %v286_v14 }
  0x21   :  { %139 = vmatmul.bf16.vlgmr.msra.gmra.mxu0 %v231_v19  ;;  %144 = vmatmul.bf16.vlgmr.msra.gmra.mxu2 %v239_v20 }
  0x84   :  { %v159_v21 = vpop.f32.mrf.mxu1 }
  0x8c   :  { %v161_v22 = vpop.f32.mrf.mxu1 }
  0x94   :  { %v164_v26 = vpop.f32.mrf.mxu1 }
  0x9c   :  { %v166_v40 = vpop.f32.mrf.mxu1 }
  0x9e   :  { %v140_v23 = vpop.f32.mrf.mxu0 }
  0x9f   :  { %v160_v24 = vadd.f32 %v159_v21, %v140_v23 }
  0xa1   :  { %v188_v27 = vadd.f32 %v323_v25, %v160_v24 }
  0xa3   :  { %v196_v31 = vmul.f32 0.1, %v188_v27  ;;  %vm192_vm1 = vcmp.gt.f32.partialorder %v188_v27, 0.0 }
  0xa4   :  { %v145_v28 = vpop.f32.mrf.mxu2 }
  0xa5   :  { %v165_v29 = vadd.f32 %v164_v26, %v145_v28  ;;  %v200_v38 = vsel %vm192_vm1, %v188_v27, %v196_v31 }
  0xa6   :  { %v142_v30 = vpop.f32.mrf.mxu0  ;;  %v212_v46 = vadd.f32 %v297_v36, %v200_v38 }
  0xa7   :  { %v162_v33 = vadd.f32 %v161_v22, %v142_v30  ;;  %v190_v34 = vadd.f32 %v323_v25, %v165_v29 }
  0xa9   :  { %v189_v35 = vadd.f32 %v323_v25, %v162_v33  ;;  %v198_v42 = vmul.f32 0.1, %v190_v34  ;;  %vm194_vm3 = vcmp.gt.f32.partialorder %v190_v34, 0.0 }
  0xab   :  { %vm193_vm2 = vcmp.gt.f32.partialorder %v189_v35, 0.0  ;;  %v197_v39 = vmul.f32 0.1, %v189_v35  ;;  %v202_v52 = vsel %vm194_vm3, %v190_v34, %v198_v42 }
  0xac   :  { %v147_v41 = vpop.f32.mrf.mxu2  ;;  %v214_v55 = vadd.f32 %v301_v49, %v202_v52 }
  0xad   :  { %v201_v44 = vsel %vm193_vm2, %v189_v35, %v197_v39  ;;  %v167_v45 = vadd.f32 %v166_v40, %v147_v41 }
  0xae   :  { %v213_v47 = vadd.f32 %v298_v37, %v201_v44 }
  0xaf   :  { %v191_v48 = vadd.f32 %v323_v25, %v167_v45 }
  0xb0   :  { %v306_v50 = vpack.c.bf16 %v213_v47, %v212_v46 }
  0xb1   :  { %vm195_vm4 = vcmp.gt.f32.partialorder %v191_v48, 0.0  ;;  %v199_v53 = vmul.f32 0.1, %v191_v48 }
  0xb2   :  { %307 = vst [vmem:[%s421_s4] sm:$0xff] %v306_v50  }
  0xb3   :  { %v203_v54 = vsel %vm195_vm4, %v191_v48, %v199_v53 }
  0xb4   :  { %v215_v56 = vadd.f32 %v302_v51, %v203_v54 }
  0xb6   :  { %v311_v57 = vpack.c.bf16 %v215_v56, %v214_v55 }
  0xb8   :  { %314 = vst [vmem:[%s421_s4 + $0x8] sm:$0xff] %v311_v57  }

// kernel: yolov3_forward.94
= control target key start
LH: loop header
LB: loop body
LE: loop exit
PB: predicated region body
PF: predicated region fallthrough
CT: control target
= control target key end

     0   :  { %vm177_vm0 = vcmask 261120   ;;  %s418_s1 = inlined_call_operand.vmem [shape: bf16[288,128], index: 1, kind: input, shape index: {}]   ;;  %s419_s0 = inlined_call_operand.vmem [shape: bf16[8,288], index: 0, kind: input, shape index: {}]   ;;  %s420_s2 = inlined_call_operand.vmem [shape: f32[1,128], index: 2, kind: input, shape index: {}]   ;;  %s421_s3 = inlined_call_operand.vmem [shape: bf16[8,128], index: 3, kind: output, shape index: {}]  }
   0x1   :  { %v320_v0 = vld [vmem:[%s418_s1 + $0x38] sm:$0xff]  ;;  %v319_v2 = vld [vmem:[%s418_s1 + $0x30] sm:$0xff]  ;;  %v330_v4 = vld [vmem:[%s418_s1 + $0x88] sm:$0xff] }
   0x2   :  { %v328_v1 = vld [vmem:[%s418_s1 + $0x78] sm:$0xff]  ;;  %181 = vmatpush.bf16.msra.mxu0 %v320_v0  ;;  %v327_v3 = vld [vmem:[%s418_s1 + $0x70] sm:$0xff]  ;;  %213 = vmatpush.bf16.msra.mxu2 %v330_v4  ;;  %v329_v5 = vld [vmem:[%s418_s1 + $0x80] sm:$0xff] }
   0x3   :  { %194 = vmatpush.bf16.msra.mxu1 %v328_v1  ;;  %v22_v6 = vld [vmem:[%s419_s0 + $0x8] sm:$0xf]  ;;  %v317_v11 = vld [vmem:[%s418_s1 + $0x20] sm:$0xff]  ;;  %v316_v13 = vld [vmem:[%s418_s1 + $0x18] sm:$0xff] }
   0x4   :  { %v63_v7 = vunpack.c.l.b16 %v22_v6  ;;  %v318_v8 = vld [vmem:[%s418_s1 + $0x28] sm:$0xff]  ;;  %v325_v12 = vld [vmem:[%s418_s1 + $0x60] sm:$0xff]  ;;  %v324_v14 = vld [vmem:[%s418_s1 + $0x58] sm:$0xff] }
   0x5   :  { %v326_v9 = vld [vmem:[%s418_s1 + $0x68] sm:$0xff]  ;;  %v315_v15 = vld [vmem:[%s418_s1 + $0x10] sm:$0xff]  ;;  %v21_v19 = vld [vmem:[%s419_s0] sm:$0xff] }
   0x6   :  { %182 = vmatpush.bf16.msra.mxu0 %v319_v2  ;;  %v66_v10 = vpack.c.b16 %v63_v7, %v63_v7  ;;  %214 = vmatpush.bf16.msra.mxu2 %v329_v5  ;;  %v323_v16 = vld [vmem:[%s418_s1 + $0x50] sm:$0xff]  ;;  %v314_v17 = vld [vmem:[%s418_s1 + $0x8] sm:$0xff]  ;;  %v61_v20 = vunpack.c.l.b16 %v21_v19  ;;  %v62_v21 = vunpack.c.h.b16 %v21_v19  ;;  %v313_v22 = vld [vmem:[%s418_s1] sm:$0xff] }
   0x7   :  { %195 = vmatpush.bf16.msra.mxu1 %v327_v3  ;;  %v322_v18 = vld [vmem:[%s418_s1 + $0x48] sm:$0xff]  ;;  %v321_v23 = vld [vmem:[%s418_s1 + $0x40] sm:$0xff] }
   0x8   :  { %v64_v24 = vpack.c.b16 %v61_v20, %v61_v20  ;;  %v65_v25 = vpack.c.b16 %v62_v21, %v62_v21  ;;  %v331_v31 = vld [vmem:[%s420_s2] ss:$0 sm:$0xff] }
   0x9   :  { %312 = vmatmul.msk.bf16.vlgmr.msra.gmra.mxu2 %vm177_vm0, %v66_v10 }
   0xa   :  { %183 = vmatpush.bf16.msra.mxu0 %v318_v8 }
   0xb   :  { %196 = vmatpush.bf16.msra.mxu1 %v326_v9 }
   0xe   :  { %184 = vmatpush.bf16.msra.mxu0 %v317_v11 }
   0xf   :  { %197 = vmatpush.bf16.msra.mxu1 %v325_v12 }
  0x12   :  { %185 = vmatpush.bf16.msra.mxu0 %v316_v13 }
  0x13   :  { %198 = vmatpush.bf16.msra.mxu1 %v324_v14 }
  0x16   :  { %186 = vmatpush.bf16.msra.mxu0 %v315_v15 }
  0x17   :  { %199 = vmatpush.bf16.msra.mxu1 %v323_v16 }
  0x1a   :  { %187 = vmatpush.bf16.msra.mxu0 %v314_v17 }
  0x1b   :  { %200 = vmatpush.bf16.msra.mxu1 %v322_v18 }
  0x1e   :  { %188 = vmatpush.bf16.msra.mxu0 %v313_v22 }
  0x1f   :  { %201 = vmatpush.bf16.msra.mxu1 %v321_v23 }
  0x21   :  { %189 = vmatmul.bf16.vlgmr.msra.gmra.mxu0 %v64_v24 }
  0x22   :  { %202 = vmatmul.bf16.vlgmr.msra.gmra.mxu1 %v65_v25 }
  0x8c   :  { %v216_v26 = vpop.f32.mrf.mxu2 }
  0x94   :  { %v218_v27 = vpop.f32.mrf.mxu2 }
  0x9e   :  { %v190_v28 = vpop.f32.mrf.mxu0 }
  0x9f   :  { %v203_v29 = vpop.f32.mrf.mxu1 }
  0xa0   :  { %v204_v30 = vadd.f32 %v203_v29, %v190_v28 }
  0xa2   :  { %v217_v32 = vadd.f32 %v216_v26, %v204_v30 }
  0xa4   :  { %v230_v33 = vadd.f32 %v331_v31, %v217_v32 }
  0xa6   :  { %vm231_vm1 = vcmp.gt.f32.partialorder %v230_v33, 0.0  ;;  %v232_v34 = vmul.f32 0.1, %v230_v33  ;;  %v192_v35 = vpop.f32.mrf.mxu0 }
  0xa7   :  { %v205_v36 = vpop.f32.mrf.mxu1 }
  0xa8   :  { %v233_v37 = vsel %vm231_vm1, %v230_v33, %v232_v34 }
  0xa9   :  { %v234_v38 = vpack.c.bf16 %v233_v37, %v233_v37 }
  0xab   :  { %235 = vst [vmem:[%s421_s3] sm:$0xf] %v234_v38 }

// kernel: yolov3_forward.95
= control target key start
LH: loop header
LB: loop body
LE: loop exit
PB: predicated region body
PF: predicated region fallthrough
CT: control target
= control target key end

     0   :  { %vm54_vm0 = vcmask 523264   ;;  %s154_s1 = inlined_call_operand.vmem [shape: bf16[64,128], index: 1, kind: input, shape index: {}]   ;;  %s155_s2 = inlined_call_operand.vmem [shape: f32[1,128], index: 2, kind: input, shape index: {}]   ;;  %s156_s0 = inlined_call_operand.vmem [shape: bf16[8,64], index: 0, kind: input, shape index: {}]   ;;  %s157_s3 = inlined_call_operand.vmem [shape: bf16[8,128], index: 3, kind: output, shape index: {}]  }
   0x1   :  { %v111_v0 = vld [vmem:[%s154_s1 + $0x18] sm:$0xff]  ;;  %v110_v1 = vld [vmem:[%s154_s1 + $0x10] sm:$0xff]  ;;  %v109_v2 = vld [vmem:[%s154_s1 + $0x8] sm:$0xff] }
   0x2   :  { %62 = vmatpush.bf16.msra.mxu0 %v111_v0  ;;  %v108_v3 = vld [vmem:[%s154_s1] sm:$0xff] }
   0x3   :  { %v21_v4 = vld [vmem:[%s156_s0] sm:$0xf] }
   0x4   :  { %v112_v5 = vld [vmem:[%s155_s2] ss:$0 sm:$0xff] }
   0x6   :  { %63 = vmatpush.bf16.msra.mxu0 %v110_v1 }
   0xa   :  { %64 = vmatpush.bf16.msra.mxu0 %v109_v2 }
   0xe   :  { %65 = vmatpush.bf16.msra.mxu0 %v108_v3 }
  0x11   :  { %107 = vmatmul.msk.bf16.vlgmr.msra.gmra.mxu0 %vm54_vm0, %v21_v4 }
  0x8e   :  { %v67_v6 = vpop.f32.mrf.mxu0 }
  0x8f   :  { %v81_v7 = vadd.f32 %v112_v5, %v67_v6 }
  0x91   :  { %vm82_vm1 = vcmp.gt.f32.partialorder %v81_v7, 0.0  ;;  %v83_v8 = vmul.f32 0.1, %v81_v7 }
  0x93   :  { %v84_v9 = vsel %vm82_vm1, %v81_v7, %v83_v8 }
  0x94   :  { %v85_v10 = vpack.c.bf16 %v84_v9, %v84_v9 }
  0x96   :  { %86 = vst [vmem:[%s157_s3] sm:$0xf] %v85_v10  ;;  %v69_v11 = vpop.f32.mrf.mxu0 }

// kernel: yolov3_forward.96
= control target key start
LH: loop header
LB: loop body
LE: loop exit
PB: predicated region body
PF: predicated region fallthrough
CT: control target
= control target key end

     0   :  { %vm180_vm0 = vcmask 261120   ;;  %s432_s1 = inlined_call_operand.vmem [shape: bf16[288,128], index: 1, kind: input, shape index: {}]   ;;  %s433_s0 = inlined_call_operand.vmem [shape: bf16[8,288], index: 0, kind: input, shape index: {}]   ;;  %s434_s2 = inlined_call_operand.vmem [shape: f32[1,128], index: 2, kind: input, shape index: {}]   ;;  %s435_s3 = inlined_call_operand.vmem [shape: bf16[8,128], index: 3, kind: input, shape index: {}]   ;;  %s436_s4 = inlined_call_operand.vmem [shape: bf16[8,128], index: 4, kind: output, shape index: {}]  }
   0x1   :  { %v326_v0 = vld [vmem:[%s432_s1 + $0x38] sm:$0xff]  ;;  %v325_v2 = vld [vmem:[%s432_s1 + $0x30] sm:$0xff]  ;;  %v336_v4 = vld [vmem:[%s432_s1 + $0x88] sm:$0xff] }
   0x2   :  { %v334_v1 = vld [vmem:[%s432_s1 + $0x78] sm:$0xff]  ;;  %184 = vmatpush.bf16.msra.mxu0 %v326_v0  ;;  %v333_v3 = vld [vmem:[%s432_s1 + $0x70] sm:$0xff]  ;;  %216 = vmatpush.bf16.msra.mxu2 %v336_v4  ;;  %v335_v5 = vld [vmem:[%s432_s1 + $0x80] sm:$0xff] }
   0x3   :  { %197 = vmatpush.bf16.msra.mxu1 %v334_v1  ;;  %v25_v6 = vld [vmem:[%s433_s0 + $0x8] sm:$0xf]  ;;  %v323_v11 = vld [vmem:[%s432_s1 + $0x20] sm:$0xff]  ;;  %v322_v13 = vld [vmem:[%s432_s1 + $0x18] sm:$0xff] }
   0x4   :  { %v66_v7 = vunpack.c.l.b16 %v25_v6  ;;  %v324_v8 = vld [vmem:[%s432_s1 + $0x28] sm:$0xff]  ;;  %v331_v12 = vld [vmem:[%s432_s1 + $0x60] sm:$0xff]  ;;  %v330_v14 = vld [vmem:[%s432_s1 + $0x58] sm:$0xff] }
   0x5   :  { %v332_v9 = vld [vmem:[%s432_s1 + $0x68] sm:$0xff]  ;;  %v321_v15 = vld [vmem:[%s432_s1 + $0x10] sm:$0xff]  ;;  %v24_v19 = vld [vmem:[%s433_s0] sm:$0xff] }
   0x6   :  { %185 = vmatpush.bf16.msra.mxu0 %v325_v2  ;;  %v69_v10 = vpack.c.b16 %v66_v7, %v66_v7  ;;  %217 = vmatpush.bf16.msra.mxu2 %v335_v5  ;;  %v329_v16 = vld [vmem:[%s432_s1 + $0x50] sm:$0xff]  ;;  %v320_v17 = vld [vmem:[%s432_s1 + $0x8] sm:$0xff]  ;;  %v64_v20 = vunpack.c.l.b16 %v24_v19  ;;  %v65_v21 = vunpack.c.h.b16 %v24_v19  ;;  %v319_v22 = vld [vmem:[%s432_s1] sm:$0xff] }
   0x7   :  { %198 = vmatpush.bf16.msra.mxu1 %v333_v3  ;;  %v328_v18 = vld [vmem:[%s432_s1 + $0x48] sm:$0xff]  ;;  %v327_v23 = vld [vmem:[%s432_s1 + $0x40] sm:$0xff] }
   0x8   :  { %v67_v24 = vpack.c.b16 %v64_v20, %v64_v20  ;;  %v68_v25 = vpack.c.b16 %v65_v21, %v65_v21  ;;  %v337_v31 = vld [vmem:[%s434_s2] ss:$0 sm:$0xff] }
   0x9   :  { %318 = vmatmul.msk.bf16.vlgmr.msra.gmra.mxu2 %vm180_vm0, %v69_v10  ;;  %v237_v33 = vld [vmem:[%s435_s3] sm:$0xf] }
   0xa   :  { %186 = vmatpush.bf16.msra.mxu0 %v324_v8  ;;  %v238_v35 = vunpack.c.l.bf16 %v237_v33 }
   0xb   :  { %199 = vmatpush.bf16.msra.mxu1 %v332_v9 }
   0xe   :  { %187 = vmatpush.bf16.msra.mxu0 %v323_v11 }
   0xf   :  { %200 = vmatpush.bf16.msra.mxu1 %v331_v12 }
  0x12   :  { %188 = vmatpush.bf16.msra.mxu0 %v322_v13 }
  0x13   :  { %201 = vmatpush.bf16.msra.mxu1 %v330_v14 }
  0x16   :  { %189 = vmatpush.bf16.msra.mxu0 %v321_v15 }
  0x17   :  { %202 = vmatpush.bf16.msra.mxu1 %v329_v16 }
  0x1a   :  { %190 = vmatpush.bf16.msra.mxu0 %v320_v17 }
  0x1b   :  { %203 = vmatpush.bf16.msra.mxu1 %v328_v18 }
  0x1e   :  { %191 = vmatpush.bf16.msra.mxu0 %v319_v22 }
  0x1f   :  { %204 = vmatpush.bf16.msra.mxu1 %v327_v23 }
  0x21   :  { %192 = vmatmul.bf16.vlgmr.msra.gmra.mxu0 %v67_v24 }
  0x22   :  { %205 = vmatmul.bf16.vlgmr.msra.gmra.mxu1 %v68_v25 }
  0x8c   :  { %v219_v26 = vpop.f32.mrf.mxu2 }
  0x94   :  { %v221_v27 = vpop.f32.mrf.mxu2 }
  0x9e   :  { %v193_v28 = vpop.f32.mrf.mxu0 }
  0x9f   :  { %v206_v29 = vpop.f32.mrf.mxu1 }
  0xa0   :  { %v207_v30 = vadd.f32 %v206_v29, %v193_v28 }
  0xa2   :  { %v220_v32 = vadd.f32 %v219_v26, %v207_v30 }
  0xa4   :  { %v233_v34 = vadd.f32 %v337_v31, %v220_v32 }
  0xa6   :  { %vm234_vm1 = vcmp.gt.f32.partialorder %v233_v34, 0.0  ;;  %v235_v36 = vmul.f32 0.1, %v233_v34  ;;  %v195_v37 = vpop.f32.mrf.mxu0 }
  0xa7   :  { %v208_v38 = vpop.f32.mrf.mxu1 }
  0xa8   :  { %v236_v39 = vsel %vm234_vm1, %v233_v34, %v235_v36 }
  0xa9   :  { %v239_v40 = vadd.f32 %v238_v35, %v236_v39 }
  0xab   :  { %v240_v41 = vpack.c.bf16 %v239_v40, %v239_v40 }
  0xad   :  { %241 = vst [vmem:[%s436_s4] sm:$0xf] %v240_v41 }

// kernel: yolov3_forward.113
= control target key start
LH: loop header
LB: loop body
LE: loop exit
PB: predicated region body
PF: predicated region fallthrough
CT: control target
= control target key end

     0   :  { %vm329_vm0 = vcmask 523264   ;;  %s743_s1 = inlined_call_operand.vmem [shape: bf16[576,128], index: 1, kind: input, shape index: {}]   ;;  %s744_s0 = inlined_call_operand.vmem [shape: bf16[8,576], index: 0, kind: input, shape index: {}]   ;;  %s745_s2 = inlined_call_operand.vmem [shape: f32[1,128], index: 2, kind: input, shape index: {}]   ;;  %s746_s3 = inlined_call_operand.vmem [shape: bf16[8,128], index: 3, kind: output, shape index: {}]  }
   0x1   :  { %v570_v0 = vld [vmem:[%s743_s1 + $0x38] sm:$0xff]  ;;  %v569_v4 = vld [vmem:[%s743_s1 + $0x30] sm:$0xff]  ;;  %v568_v8 = vld [vmem:[%s743_s1 + $0x28] sm:$0xff] }
   0x2   :  { %v578_v1 = vld [vmem:[%s743_s1 + $0x78] sm:$0xff]  ;;  %333 = vmatpush.bf16.msra.mxu0 %v570_v0  ;;  %v577_v5 = vld [vmem:[%s743_s1 + $0x70] sm:$0xff]  ;;  %v576_v9 = vld [vmem:[%s743_s1 + $0x68] sm:$0xff] }
   0x3   :  { %v586_v2 = vld [vmem:[%s743_s1 + $0xb8] sm:$0xff]  ;;  %346 = vmatpush.bf16.msra.mxu1 %v578_v1  ;;  %v585_v6 = vld [vmem:[%s743_s1 + $0xb0] sm:$0xff]  ;;  %v584_v10 = vld [vmem:[%s743_s1 + $0xa8] sm:$0xff] }
   0x4   :  { %v594_v3 = vld [vmem:[%s743_s1 + $0xf8] sm:$0xff]  ;;  %359 = vmatpush.bf16.msra.mxu2 %v586_v2  ;;  %v593_v7 = vld [vmem:[%s743_s1 + $0xf0] sm:$0xff]  ;;  %v592_v11 = vld [vmem:[%s743_s1 + $0xe8] sm:$0xff] }
   0x5   :  { %372 = vmatpush.bf16.msra.mxu3 %v594_v3  ;;  %v567_v12 = vld [vmem:[%s743_s1 + $0x20] sm:$0xff]  ;;  %v566_v16 = vld [vmem:[%s743_s1 + $0x18] sm:$0xff]  ;;  %v565_v20 = vld [vmem:[%s743_s1 + $0x10] sm:$0xff] }
   0x6   :  { %334 = vmatpush.bf16.msra.mxu0 %v569_v4  ;;  %v575_v13 = vld [vmem:[%s743_s1 + $0x60] sm:$0xff]  ;;  %v574_v17 = vld [vmem:[%s743_s1 + $0x58] sm:$0xff]  ;;  %v573_v21 = vld [vmem:[%s743_s1 + $0x50] sm:$0xff] }
   0x7   :  { %347 = vmatpush.bf16.msra.mxu1 %v577_v5  ;;  %v583_v14 = vld [vmem:[%s743_s1 + $0xa0] sm:$0xff]  ;;  %v582_v18 = vld [vmem:[%s743_s1 + $0x98] sm:$0xff]  ;;  %v581_v22 = vld [vmem:[%s743_s1 + $0x90] sm:$0xff] }
   0x8   :  { %360 = vmatpush.bf16.msra.mxu2 %v585_v6  ;;  %v591_v15 = vld [vmem:[%s743_s1 + $0xe0] sm:$0xff]  ;;  %v590_v19 = vld [vmem:[%s743_s1 + $0xd8] sm:$0xff]  ;;  %v589_v23 = vld [vmem:[%s743_s1 + $0xd0] sm:$0xff] }
   0x9   :  { %373 = vmatpush.bf16.msra.mxu3 %v593_v7  ;;  %v564_v24 = vld [vmem:[%s743_s1 + $0x8] sm:$0xff]  ;;  %v21_v26 = vld [vmem:[%s744_s0] sm:$0xff]  ;;  %v598_v38 = vld [vmem:[%s743_s1 + $0x118] sm:$0xff] }
   0xa   :  { %335 = vmatpush.bf16.msra.mxu0 %v568_v8  ;;  %v572_v25 = vld [vmem:[%s743_s1 + $0x48] sm:$0xff]  ;;  %v99_v30 = vunpack.c.l.b16 %v21_v26  ;;  %v100_v31 = vunpack.c.h.b16 %v21_v26  ;;  %v563_v32 = vld [vmem:[%s743_s1] sm:$0xff]  ;;  %v597_v43 = vld [vmem:[%s743_s1 + $0x110] sm:$0xff] }
   0xb   :  { %348 = vmatpush.bf16.msra.mxu1 %v576_v9  ;;  %v580_v27 = vld [vmem:[%s743_s1 + $0x88] sm:$0xff]  ;;  %v571_v33 = vld [vmem:[%s743_s1 + $0x40] sm:$0xff]  ;;  %v23_v45 = vld [vmem:[%s744_s0 + $0x10] sm:$0xf] }
   0xc   :  { %361 = vmatpush.bf16.msra.mxu2 %v584_v10  ;;  %v588_v28 = vld [vmem:[%s743_s1 + $0xc8] sm:$0xff]  ;;  %v579_v36 = vld [vmem:[%s743_s1 + $0x80] sm:$0xff]  ;;  %v104_v39 = vpack.c.b16 %v99_v30, %v99_v30  ;;  %v105_v40 = vpack.c.b16 %v100_v31, %v100_v31  ;;  %v103_v47 = vunpack.c.l.b16 %v23_v45 }
   0xd   :  { %374 = vmatpush.bf16.msra.mxu3 %v592_v11  ;;  %v22_v29 = vld [vmem:[%s744_s0 + $0x8] sm:$0xff]  ;;  %v587_v37 = vld [vmem:[%s743_s1 + $0xc0] sm:$0xff] }
   0xe   :  { %336 = vmatpush.bf16.msra.mxu0 %v567_v12  ;;  %v101_v34 = vunpack.c.l.b16 %v22_v29  ;;  %v102_v35 = vunpack.c.h.b16 %v22_v29  ;;  %v596_v44 = vld [vmem:[%s743_s1 + $0x108] sm:$0xff]  ;;  %v595_v46 = vld [vmem:[%s743_s1 + $0x100] sm:$0xff]  ;;  %v108_v48 = vpack.c.b16 %v103_v47, %v103_v47 }
   0xf   :  { %349 = vmatpush.bf16.msra.mxu1 %v575_v13  ;;  %v599_v60 = vld [vmem:[%s745_s2] ss:$0 sm:$0xff] }
  0x10   :  { %362 = vmatpush.bf16.msra.mxu2 %v583_v14  ;;  %v106_v41 = vpack.c.b16 %v101_v34, %v101_v34  ;;  %v107_v42 = vpack.c.b16 %v102_v35, %v102_v35 }
  0x11   :  { %375 = vmatpush.bf16.msra.mxu3 %v591_v15 }
  0x12   :  { %337 = vmatpush.bf16.msra.mxu0 %v566_v16 }
  0x13   :  { %350 = vmatpush.bf16.msra.mxu1 %v574_v17 }
  0x14   :  { %363 = vmatpush.bf16.msra.mxu2 %v582_v18 }
  0x15   :  { %376 = vmatpush.bf16.msra.mxu3 %v590_v19 }
  0x16   :  { %338 = vmatpush.bf16.msra.mxu0 %v565_v20 }
  0x17   :  { %351 = vmatpush.bf16.msra.mxu1 %v573_v21 }
  0x18   :  { %364 = vmatpush.bf16.msra.mxu2 %v581_v22 }
  0x19   :  { %377 = vmatpush.bf16.msra.mxu3 %v589_v23 }
  0x1a   :  { %339 = vmatpush.bf16.msra.mxu0 %v564_v24 }
  0x1b   :  { %352 = vmatpush.bf16.msra.mxu1 %v572_v25 }
  0x1c   :  { %365 = vmatpush.bf16.msra.mxu2 %v580_v27 }
  0x1d   :  { %378 = vmatpush.bf16.msra.mxu3 %v588_v28 }
  0x1e   :  { %340 = vmatpush.bf16.msra.mxu0 %v563_v32 }
  0x1f   :  { %353 = vmatpush.bf16.msra.mxu1 %v571_v33 }
  0x20   :  { %366 = vmatpush.bf16.msra.mxu2 %v579_v36 }
  0x21   :  { %379 = vmatpush.bf16.msra.mxu3 %v587_v37  ;;  %341 = vmatmul.bf16.vlgmr.msra.gmra.mxu0 %v104_v39 }
  0x22   :  { %389 = vmatpush.bf16.msrb.mxu0 %v598_v38  ;;  %354 = vmatmul.bf16.vlgmr.msra.gmra.mxu1 %v105_v40 }
  0x23   :  { %367 = vmatmul.bf16.vlgmr.msra.gmra.mxu2 %v106_v41 }
  0x24   :  { %380 = vmatmul.bf16.vlgmr.msra.gmra.mxu3 %v107_v42 }
  0x26   :  { %390 = vmatpush.bf16.msrb.mxu0 %v597_v43 }
  0x2a   :  { %391 = vmatpush.bf16.msrb.mxu0 %v596_v44 }
  0x2e   :  { %392 = vmatpush.bf16.msrb.mxu0 %v595_v46 }
  0x31   :  { %562 = vmatmul.msk.bf16.vlgmr.msrb.gmra.mxu0 %vm329_vm0, %v108_v48 }
  0x9e   :  { %v342_v49 = vpop.f32.mrf.mxu0 }
  0x9f   :  { %v355_v50 = vpop.f32.mrf.mxu1 }
  0xa0   :  { %v356_v55 = vadd.f32 %v355_v50, %v342_v49 }
  0xa6   :  { %v368_v51 = vpop.f32.mrf.mxu2  ;;  %v344_v53 = vpop.f32.mrf.mxu0 }
  0xa7   :  { %v381_v52 = vpop.f32.mrf.mxu3  ;;  %v357_v54 = vpop.f32.mrf.mxu1  ;;  %v369_v56 = vadd.f32 %v368_v51, %v356_v55 }
  0xa9   :  { %v382_v57 = vadd.f32 %v381_v52, %v369_v56 }
  0xae   :  { %v370_v58 = vpop.f32.mrf.mxu2  ;;  %v394_v61 = vpop.f32.mrf.mxu0 }
  0xaf   :  { %v383_v59 = vpop.f32.mrf.mxu3  ;;  %v395_v62 = vadd.f32 %v394_v61, %v382_v57 }
  0xb1   :  { %v408_v63 = vadd.f32 %v599_v60, %v395_v62 }
  0xb3   :  { %vm409_vm1 = vcmp.gt.f32.partialorder %v408_v63, 0.0  ;;  %v410_v0 = vmul.f32 0.1, %v408_v63 }
  0xb5   :  { %v411_v1 = vsel %vm409_vm1, %v408_v63, %v410_v0 }
  0xb6   :  { %v412_v2 = vpack.c.bf16 %v411_v1, %v411_v1  ;;  %v396_v3 = vpop.f32.mrf.mxu0 }
  0xb8   :  { %413 = vst [vmem:[%s746_s3] sm:$0xf] %v412_v2 }

// kernel: yolov3_forward.114
= control target key start
LH: loop header
LB: loop body
LE: loop exit
PB: predicated region body
PF: predicated region fallthrough
CT: control target
= control target key end

     0   :  { %s212_s1 = inlined_call_operand.vmem [shape: bf16[128,128], index: 1, kind: input, shape index: {}]   ;;  %s213_s2 = inlined_call_operand.vmem [shape: f32[1,128], index: 2, kind: input, shape index: {}]   ;;  %s214_s0 = inlined_call_operand.vmem [shape: bf16[8,128], index: 0, kind: input, shape index: {}]   ;;  %s215_s3 = inlined_call_operand.vmem [shape: bf16[8,128], index: 3, kind: output, shape index: {}]  }
   0x1   :  { %v157_v0 = vld [vmem:[%s212_s1 + $0x38] sm:$0xff]  ;;  %v156_v1 = vld [vmem:[%s212_s1 + $0x30] sm:$0xff]  ;;  %v155_v2 = vld [vmem:[%s212_s1 + $0x28] sm:$0xff] }
   0x2   :  { %85 = vmatpush.bf16.msra.mxu0 %v157_v0  ;;  %v154_v3 = vld [vmem:[%s212_s1 + $0x20] sm:$0xff]  ;;  %v153_v4 = vld [vmem:[%s212_s1 + $0x18] sm:$0xff]  ;;  %v152_v5 = vld [vmem:[%s212_s1 + $0x10] sm:$0xff] }
   0x3   :  { %v151_v6 = vld [vmem:[%s212_s1 + $0x8] sm:$0xff]  ;;  %v150_v7 = vld [vmem:[%s212_s1] sm:$0xff] }
   0x4   :  { %v20_v8 = vld [vmem:[%s214_s0] sm:$0xf] }
   0x5   :  { %v158_v9 = vld [vmem:[%s213_s2] ss:$0 sm:$0xff] }
   0x6   :  { %86 = vmatpush.bf16.msra.mxu0 %v156_v1 }
   0xa   :  { %87 = vmatpush.bf16.msra.mxu0 %v155_v2 }
   0xe   :  { %88 = vmatpush.bf16.msra.mxu0 %v154_v3 }
  0x12   :  { %89 = vmatpush.bf16.msra.mxu0 %v153_v4 }
  0x16   :  { %90 = vmatpush.bf16.msra.mxu0 %v152_v5 }
  0x1a   :  { %91 = vmatpush.bf16.msra.mxu0 %v151_v6 }
  0x1e   :  { %92 = vmatpush.bf16.msra.mxu0 %v150_v7 }
  0x21   :  { %93 = vmatmul.bf16.vlgmr.msra.gmra.mxu0 %v20_v8 }
  0x9e   :  { %v94_v10 = vpop.f32.mrf.mxu0 }
  0x9f   :  { %v108_v11 = vadd.f32 %v158_v9, %v94_v10 }
  0xa1   :  { %vm109_vm0 = vcmp.gt.f32.partialorder %v108_v11, 0.0  ;;  %v110_v12 = vmul.f32 0.1, %v108_v11 }
  0xa3   :  { %v111_v13 = vsel %vm109_vm0, %v108_v11, %v110_v12 }
  0xa4   :  { %v112_v14 = vpack.c.bf16 %v111_v13, %v111_v13 }
  0xa6   :  { %113 = vst [vmem:[%s215_s3] sm:$0xf] %v112_v14  ;;  %v96_v15 = vpop.f32.mrf.mxu0 }

// kernel: yolov3_forward.115
= control target key start
LH: loop header
LB: loop body
LE: loop exit
PB: predicated region body
PF: predicated region fallthrough
CT: control target
= control target key end

     0   :  { %vm332_vm0 = vcmask 523264   ;;  %s757_s1 = inlined_call_operand.vmem [shape: bf16[576,128], index: 1, kind: input, shape index: {}]   ;;  %s758_s0 = inlined_call_operand.vmem [shape: bf16[8,576], index: 0, kind: input, shape index: {}]   ;;  %s759_s2 = inlined_call_operand.vmem [shape: f32[1,128], index: 2, kind: input, shape index: {}]   ;;  %s760_s3 = inlined_call_operand.vmem [shape: bf16[8,128], index: 3, kind: input, shape index: {}]   ;;  %s761_s4 = inlined_call_operand.vmem [shape: bf16[8,128], index: 4, kind: output, shape index: {}]  }
   0x1   :  { %v576_v0 = vld [vmem:[%s757_s1 + $0x38] sm:$0xff]  ;;  %v575_v4 = vld [vmem:[%s757_s1 + $0x30] sm:$0xff]  ;;  %v574_v8 = vld [vmem:[%s757_s1 + $0x28] sm:$0xff] }
   0x2   :  { %v584_v1 = vld [vmem:[%s757_s1 + $0x78] sm:$0xff]  ;;  %336 = vmatpush.bf16.msra.mxu0 %v576_v0  ;;  %v583_v5 = vld [vmem:[%s757_s1 + $0x70] sm:$0xff]  ;;  %v582_v9 = vld [vmem:[%s757_s1 + $0x68] sm:$0xff] }
   0x3   :  { %v592_v2 = vld [vmem:[%s757_s1 + $0xb8] sm:$0xff]  ;;  %349 = vmatpush.bf16.msra.mxu1 %v584_v1  ;;  %v591_v6 = vld [vmem:[%s757_s1 + $0xb0] sm:$0xff]  ;;  %v590_v10 = vld [vmem:[%s757_s1 + $0xa8] sm:$0xff] }
   0x4   :  { %v600_v3 = vld [vmem:[%s757_s1 + $0xf8] sm:$0xff]  ;;  %362 = vmatpush.bf16.msra.mxu2 %v592_v2  ;;  %v599_v7 = vld [vmem:[%s757_s1 + $0xf0] sm:$0xff]  ;;  %v598_v11 = vld [vmem:[%s757_s1 + $0xe8] sm:$0xff] }
   0x5   :  { %375 = vmatpush.bf16.msra.mxu3 %v600_v3  ;;  %v573_v12 = vld [vmem:[%s757_s1 + $0x20] sm:$0xff]  ;;  %v572_v16 = vld [vmem:[%s757_s1 + $0x18] sm:$0xff]  ;;  %v571_v20 = vld [vmem:[%s757_s1 + $0x10] sm:$0xff] }
   0x6   :  { %337 = vmatpush.bf16.msra.mxu0 %v575_v4  ;;  %v581_v13 = vld [vmem:[%s757_s1 + $0x60] sm:$0xff]  ;;  %v580_v17 = vld [vmem:[%s757_s1 + $0x58] sm:$0xff]  ;;  %v579_v21 = vld [vmem:[%s757_s1 + $0x50] sm:$0xff] }
   0x7   :  { %350 = vmatpush.bf16.msra.mxu1 %v583_v5  ;;  %v589_v14 = vld [vmem:[%s757_s1 + $0xa0] sm:$0xff]  ;;  %v588_v18 = vld [vmem:[%s757_s1 + $0x98] sm:$0xff]  ;;  %v587_v22 = vld [vmem:[%s757_s1 + $0x90] sm:$0xff] }
   0x8   :  { %363 = vmatpush.bf16.msra.mxu2 %v591_v6  ;;  %v597_v15 = vld [vmem:[%s757_s1 + $0xe0] sm:$0xff]  ;;  %v596_v19 = vld [vmem:[%s757_s1 + $0xd8] sm:$0xff]  ;;  %v595_v23 = vld [vmem:[%s757_s1 + $0xd0] sm:$0xff] }
   0x9   :  { %376 = vmatpush.bf16.msra.mxu3 %v599_v7  ;;  %v570_v24 = vld [vmem:[%s757_s1 + $0x8] sm:$0xff]  ;;  %v24_v26 = vld [vmem:[%s758_s0] sm:$0xff]  ;;  %v604_v38 = vld [vmem:[%s757_s1 + $0x118] sm:$0xff] }
   0xa   :  { %338 = vmatpush.bf16.msra.mxu0 %v574_v8  ;;  %v578_v25 = vld [vmem:[%s757_s1 + $0x48] sm:$0xff]  ;;  %v102_v30 = vunpack.c.l.b16 %v24_v26  ;;  %v103_v31 = vunpack.c.h.b16 %v24_v26  ;;  %v569_v32 = vld [vmem:[%s757_s1] sm:$0xff]  ;;  %v603_v43 = vld [vmem:[%s757_s1 + $0x110] sm:$0xff] }
   0xb   :  { %351 = vmatpush.bf16.msra.mxu1 %v582_v9  ;;  %v586_v27 = vld [vmem:[%s757_s1 + $0x88] sm:$0xff]  ;;  %v577_v33 = vld [vmem:[%s757_s1 + $0x40] sm:$0xff]  ;;  %v26_v45 = vld [vmem:[%s758_s0 + $0x10] sm:$0xf] }
   0xc   :  { %364 = vmatpush.bf16.msra.mxu2 %v590_v10  ;;  %v594_v28 = vld [vmem:[%s757_s1 + $0xc8] sm:$0xff]  ;;  %v585_v36 = vld [vmem:[%s757_s1 + $0x80] sm:$0xff]  ;;  %v107_v39 = vpack.c.b16 %v102_v30, %v102_v30  ;;  %v108_v40 = vpack.c.b16 %v103_v31, %v103_v31  ;;  %v106_v47 = vunpack.c.l.b16 %v26_v45 }
   0xd   :  { %377 = vmatpush.bf16.msra.mxu3 %v598_v11  ;;  %v25_v29 = vld [vmem:[%s758_s0 + $0x8] sm:$0xff]  ;;  %v593_v37 = vld [vmem:[%s757_s1 + $0xc0] sm:$0xff] }
   0xe   :  { %339 = vmatpush.bf16.msra.mxu0 %v573_v12  ;;  %v104_v34 = vunpack.c.l.b16 %v25_v29  ;;  %v105_v35 = vunpack.c.h.b16 %v25_v29  ;;  %v602_v44 = vld [vmem:[%s757_s1 + $0x108] sm:$0xff]  ;;  %v601_v46 = vld [vmem:[%s757_s1 + $0x100] sm:$0xff]  ;;  %v111_v48 = vpack.c.b16 %v106_v47, %v106_v47 }
   0xf   :  { %352 = vmatpush.bf16.msra.mxu1 %v581_v13  ;;  %v605_v60 = vld [vmem:[%s759_s2] ss:$0 sm:$0xff] }
  0x10   :  { %365 = vmatpush.bf16.msra.mxu2 %v589_v14  ;;  %v109_v41 = vpack.c.b16 %v104_v34, %v104_v34  ;;  %v110_v42 = vpack.c.b16 %v105_v35, %v105_v35  ;;  %v415_v63 = vld [vmem:[%s760_s3] sm:$0xf] }
  0x11   :  { %378 = vmatpush.bf16.msra.mxu3 %v597_v15  ;;  %v416_v1 = vunpack.c.l.bf16 %v415_v63 }
  0x12   :  { %340 = vmatpush.bf16.msra.mxu0 %v572_v16 }
  0x13   :  { %353 = vmatpush.bf16.msra.mxu1 %v580_v17 }
  0x14   :  { %366 = vmatpush.bf16.msra.mxu2 %v588_v18 }
  0x15   :  { %379 = vmatpush.bf16.msra.mxu3 %v596_v19 }
  0x16   :  { %341 = vmatpush.bf16.msra.mxu0 %v571_v20 }
  0x17   :  { %354 = vmatpush.bf16.msra.mxu1 %v579_v21 }
  0x18   :  { %367 = vmatpush.bf16.msra.mxu2 %v587_v22 }
  0x19   :  { %380 = vmatpush.bf16.msra.mxu3 %v595_v23 }
  0x1a   :  { %342 = vmatpush.bf16.msra.mxu0 %v570_v24 }
  0x1b   :  { %355 = vmatpush.bf16.msra.mxu1 %v578_v25 }
  0x1c   :  { %368 = vmatpush.bf16.msra.mxu2 %v586_v27 }
  0x1d   :  { %381 = vmatpush.bf16.msra.mxu3 %v594_v28 }
  0x1e   :  { %343 = vmatpush.bf16.msra.mxu0 %v569_v32 }
  0x1f   :  { %356 = vmatpush.bf16.msra.mxu1 %v577_v33 }
  0x20   :  { %369 = vmatpush.bf16.msra.mxu2 %v585_v36 }
  0x21   :  { %382 = vmatpush.bf16.msra.mxu3 %v593_v37  ;;  %344 = vmatmul.bf16.vlgmr.msra.gmra.mxu0 %v107_v39 }
  0x22   :  { %392 = vmatpush.bf16.msrb.mxu0 %v604_v38  ;;  %357 = vmatmul.bf16.vlgmr.msra.gmra.mxu1 %v108_v40 }
  0x23   :  { %370 = vmatmul.bf16.vlgmr.msra.gmra.mxu2 %v109_v41 }
  0x24   :  { %383 = vmatmul.bf16.vlgmr.msra.gmra.mxu3 %v110_v42 }
  0x26   :  { %393 = vmatpush.bf16.msrb.mxu0 %v603_v43 }
  0x2a   :  { %394 = vmatpush.bf16.msrb.mxu0 %v602_v44 }
  0x2e   :  { %395 = vmatpush.bf16.msrb.mxu0 %v601_v46 }
  0x31   :  { %568 = vmatmul.msk.bf16.vlgmr.msrb.gmra.mxu0 %vm332_vm0, %v111_v48 }
  0x9e   :  { %v345_v49 = vpop.f32.mrf.mxu0 }
  0x9f   :  { %v358_v50 = vpop.f32.mrf.mxu1 }
  0xa0   :  { %v359_v55 = vadd.f32 %v358_v50, %v345_v49 }
  0xa6   :  { %v371_v51 = vpop.f32.mrf.mxu2  ;;  %v347_v53 = vpop.f32.mrf.mxu0 }
  0xa7   :  { %v384_v52 = vpop.f32.mrf.mxu3  ;;  %v360_v54 = vpop.f32.mrf.mxu1  ;;  %v372_v56 = vadd.f32 %v371_v51, %v359_v55 }
  0xa9   :  { %v385_v57 = vadd.f32 %v384_v52, %v372_v56 }
  0xae   :  { %v373_v58 = vpop.f32.mrf.mxu2  ;;  %v397_v61 = vpop.f32.mrf.mxu0 }
  0xaf   :  { %v386_v59 = vpop.f32.mrf.mxu3  ;;  %v398_v62 = vadd.f32 %v397_v61, %v385_v57 }
  0xb1   :  { %v411_v0 = vadd.f32 %v605_v60, %v398_v62 }
  0xb3   :  { %vm412_vm1 = vcmp.gt.f32.partialorder %v411_v0, 0.0  ;;  %v413_v2 = vmul.f32 0.1, %v411_v0 }
  0xb5   :  { %v414_v3 = vsel %vm412_vm1, %v411_v0, %v413_v2 }
  0xb6   :  { %v417_v4 = vadd.f32 %v416_v1, %v414_v3  ;;  %v399_v5 = vpop.f32.mrf.mxu0 }
  0xb8   :  { %v418_v6 = vpack.c.bf16 %v417_v4, %v417_v4 }
  0xba   :  { %419 = vst [vmem:[%s761_s4] sm:$0xf] %v418_v6 }

</bundles_post_ra>
